<compile_context>
chip_gen: v5e
topology: v5e:2x2
jax: 0.10.0
libtpu: 0.0.40
codegen_flags: <defaults>
</compile_context>

<pallas_src>
import functools

import jax
import jax.numpy as jnp
from jax import lax
from jax.experimental import pallas as pl
from jax.experimental.pallas import tpu as pltpu

EPS = 1e-5

_COMPILER_PARAMS = pltpu.CompilerParams(
    dimension_semantics=("parallel",),      # batch axis -> both TCs on v7x
    vmem_limit_bytes=64 * 1024 * 1024,      # headroom for wide (640ch) layers
)


# ------------------------------ Pallas kernels ------------------------------


def _conv3x3_from_scratch(pad_ref, w_ref, lm, rm, hw, w):
    """Accumulate the 9 tap matmuls of a 3x3/pad=1/stride=1 conv.

    pad_ref: (hw + 2w + 8, Cin) f32 VMEM scratch holding the activation with one
             zero image-row of padding above/below (flattened row-major).
    w_ref:   (9, Cin, Cout) bf16 tap weight matrices.
    lm/rm:   (hw, 1) f32 masks that zero the left/right image-border wrap rows.
    """
    cout = w_ref.shape[2]
    acc = jnp.zeros((hw, cout), jnp.float32)
    for kh in range(3):
        for kw in range(3):
            start = kh * w + kw                       # static offset
            tap = pad_ref[start:start + hw, :]        # (hw, Cin) f32
            if kw == 0:
                tap = tap * lm                        # zero left-border wrap
            elif kw == 2:
                tap = tap * rm                        # zero right-border wrap
            acc = acc + jnp.dot(tap.astype(jnp.bfloat16), w_ref[kh * 3 + kw],
                                preferred_element_type=jnp.float32)
    return acc


def _make_conv1_kernel(h, w):
    """bn1 + relu1 + conv1(3x3, stride 1) + bn2 + relu2, fully fused."""
    hw = h * w

    def kernel(x_ref, w1_ref, lm_ref, rm_ref, s1_ref, b1_ref, s2_ref, b2_ref,
               bn1_ref, out1_ref, pad_ref):
        x = x_ref[0]                                  # (hw, Cin) f32
        bn1 = x * s1_ref[...] + b1_ref[...]           # eval-mode BN (VPU)
        bn1_ref[0] = bn1                              # feature output
        act = jnp.maximum(bn1, 0.0)

        pad_ref[...] = jnp.zeros_like(pad_ref)        # zero padding rows
        pad_ref[w + 1:w + 1 + hw, :] = act            # interior

        acc = _conv3x3_from_scratch(pad_ref, w1_ref, lm_ref[...], rm_ref[...],
                                    hw, w)
        y = acc * s2_ref[...] + b2_ref[...]           # bn2
        out1_ref[0] = jnp.maximum(y, 0.0).astype(out1_ref.dtype)  # relu2

    return kernel


def _make_conv2_kernel(h, w, proj):
    """conv2 (3x3, stride 1) fused with the residual add.

    proj=False: identity shortcut -> plain elementwise add (no identity matmul).
    proj=True : 1x1 convShortcut -> relu + 1x1 matmul done in-kernel on the
                (already stride-subsampled) bn1 output.
    """
    hw = h * w

    def _conv(pad_ref, w2_ref, lm_ref, rm_ref, o1_ref):
        pad_ref[...] = jnp.zeros_like(pad_ref)
        pad_ref[w + 1:w + 1 + hw, :] = o1_ref[0].astype(pad_ref.dtype)
        return _conv3x3_from_scratch(pad_ref, w2_ref, lm_ref[...], rm_ref[...],
                                     hw, w)

    if proj:
        def kernel(o1_ref, w2_ref, lm_ref, rm_ref, bn1s_ref, ws_ref,
                   out_ref, pad_ref):
            acc = _conv(pad_ref, w2_ref, lm_ref, rm_ref, o1_ref)
            sc = jnp.maximum(bn1s_ref[0], 0.0).astype(jnp.bfloat16)
            acc = acc + jnp.dot(sc, ws_ref[...],
                                preferred_element_type=jnp.float32)
            out_ref[0] = acc.astype(out_ref.dtype)
    else:
        def kernel(o1_ref, w2_ref, lm_ref, rm_ref, sc_ref, out_ref, pad_ref):
            acc = _conv(pad_ref, w2_ref, lm_ref, rm_ref, o1_ref)
            acc = acc + sc_ref[0]                     # residual add on the VPU
            out_ref[0] = acc.astype(out_ref.dtype)

    return kernel


# ------------------------------ kernel wrappers ------------------------------


def _border_masks(h, w):
    # Row m of the flat (H*W) layout is image column m % w; taps shifted by +-1
    # in W wrap across image rows, so zero those contributions.
    col = jnp.arange(h * w, dtype=jnp.int32) % w
    lm = (col != 0).astype(jnp.float32).reshape(h * w, 1)
    rm = (col != (w - 1)).astype(jnp.float32).reshape(h * w, 1)
    return lm, rm


def conv1_bn_relu(x2d, w1, scale1, shift1, scale2, shift2, h, w):
    n, hw, cin = x2d.shape
    cout = w1.shape[2]
    lm, rm = _border_masks(h, w)
    vec = lambda v: v.reshape(1, -1)
    return pl.pallas_call(
        _make_conv1_kernel(h, w),
        out_shape=(jax.ShapeDtypeStruct((n, hw, cin), jnp.float32),     # bn1(x)
                   jax.ShapeDtypeStruct((n, hw, cout), jnp.bfloat16)),  # relu2(bn2(conv1))
        grid=(n,),
        in_specs=[
            pl.BlockSpec((1, hw, cin), lambda b: (b, 0, 0)),
            pl.BlockSpec((9, cin, cout), lambda b: (0, 0, 0)),
            pl.BlockSpec((hw, 1), lambda b: (0, 0)),
            pl.BlockSpec((hw, 1), lambda b: (0, 0)),
            pl.BlockSpec((1, cin), lambda b: (0, 0)),
            pl.BlockSpec((1, cin), lambda b: (0, 0)),
            pl.BlockSpec((1, cout), lambda b: (0, 0)),
            pl.BlockSpec((1, cout), lambda b: (0, 0)),
        ],
        out_specs=(
            pl.BlockSpec((1, hw, cin), lambda b: (b, 0, 0)),
            pl.BlockSpec((1, hw, cout), lambda b: (b, 0, 0)),
        ),
        scratch_shapes=[pltpu.VMEM((hw + 2 * w + 8, cin), jnp.float32)],
        compiler_params=_COMPILER_PARAMS,
    )(x2d, w1, lm, rm, vec(scale1), vec(shift1), vec(scale2), vec(shift2))


def conv2_residual(out1, w2, shortcut, ws, h, w):
    n, hw, cout = out1.shape
    proj = ws is not None
    lm, rm = _border_masks(h, w)
    in_specs = [
        pl.BlockSpec((1, hw, cout), lambda b: (b, 0, 0)),
        pl.BlockSpec((9, cout, cout), lambda b: (0, 0, 0)),
        pl.BlockSpec((hw, 1), lambda b: (0, 0)),
        pl.BlockSpec((hw, 1), lambda b: (0, 0)),
        pl.BlockSpec((1, hw, shortcut.shape[2]), lambda b: (b, 0, 0)),
    ]
    args = [out1, w2, lm, rm, shortcut]
    if proj:
        in_specs.append(pl.BlockSpec(ws.shape, lambda b: (0, 0)))
        args.append(ws)
    return pl.pallas_call(
        _make_conv2_kernel(h, w, proj),
        out_shape=jax.ShapeDtypeStruct((n, hw, cout), jnp.float32),
        grid=(n,),
        in_specs=in_specs,
        out_specs=pl.BlockSpec((1, hw, cout), lambda b: (b, 0, 0)),
        scratch_shapes=[pltpu.VMEM((hw + 2 * w + 8, cout), jnp.float32)],
        compiler_params=_COMPILER_PARAMS,
    )(*args)


# -------------------------------- glue (JAX) ---------------------------------


@functools.partial(jax.jit, static_argnames=("stride",))
def basic_block_forward(x_nchw, params, stride):
    in_planes = x_nchw.shape[1]
    out_planes = params["conv1_w"].shape[0]
    equal = in_planes == out_planes

    x = jnp.transpose(x_nchw, (0, 2, 3, 1))            # NCHW -> NHWC
    n, h, w, cin = x.shape
    x2d = x.reshape(n, h * w, cin)

    # Eval-mode BatchNorm folded to per-channel scale/shift.
    scale1 = params["bn1_g"] * lax.rsqrt(params["bn1_rv"] + EPS)
    shift1 = params["bn1_b"] - params["bn1_rm"] * scale1
    scale2 = params["bn2_g"] * lax.rsqrt(params["bn2_rv"] + EPS)
    shift2 = params["bn2_b"] - params["bn2_rm"] * scale2

    # Conv weights as 9 (Cin, Cout) bf16 tap matrices (MXU-native operands).
    w1 = jnp.transpose(params["conv1_w"], (2, 3, 1, 0)) \
            .reshape(9, cin, out_planes).astype(jnp.bfloat16)
    w2 = jnp.transpose(params["conv2_w"], (2, 3, 1, 0)) \
            .reshape(9, out_planes, out_planes).astype(jnp.bfloat16)

    # Fused bn1 + relu1 + conv1(stride 1) + bn2 + relu2.
    bn1_2d, out1_2d = conv1_bn_relu(x2d, w1, scale1, shift1, scale2, shift2, h, w)
    bn1_out = bn1_2d.reshape(n, h, w, cin)

    ho = (h - 1) // stride + 1
    wo = (w - 1) // stride + 1
    if stride == 1:
        out1 = out1_2d
    else:
        # TODO(synk): fold the conv1 stride into the in-kernel tap reads
        # (strided pl.ds) instead of computing at stride 1 and subsampling here.
        out1 = out1_2d.reshape(n, h, w, out_planes)[:, ::stride, ::stride, :] \
                      .reshape(n, ho * wo, out_planes)

    # conv2 (3x3, stride 1) fused with the residual/shortcut add.
    if equal:
        # identity shortcut on the ORIGINAL x (equalInOut blocks use stride 1).
        out_2d = conv2_residual(out1, w2, x2d, None, ho, wo)
    else:
        # 1x1 convShortcut (with stride) on relu1(bn1(x)), fused in-kernel.
        bn1_sub = bn1_out[:, ::stride, ::stride, :].reshape(n, ho * wo, cin)
        ws = jnp.transpose(params["convsc_w"], (2, 3, 1, 0)) \
                .reshape(cin, out_planes).astype(jnp.bfloat16)
        out_2d = conv2_residual(out1, w2, bn1_sub, ws, ho, wo)

    # TODO(synk): dropout (dropRate > 0, training) and training-mode BN stats
    # are not implemented (module is exercised with dropRate=0.0 / eval mode).
    # TODO(synk): for C < 128 the channel-on-lane layout under-fills the lanes;
    # pad channels or fold W into the lane axis for the first WRN stages.

    out_nchw = jnp.transpose(out_2d.reshape(n, ho, wo, out_planes), (0, 3, 1, 2))
    bn1_nchw = jnp.transpose(bn1_out, (0, 3, 1, 2))
    return out_nchw, [bn1_nchw]                        # mirrors `return (out, features)`


# ------------------------- pure-JAX reference (NCHW) -------------------------


def _ref_forward(x, p, stride):
    def bn(y, g, b, rm, rv):
        return ((y - rm[None, :, None, None])
                / jnp.sqrt(rv + EPS)[None, :, None, None]
                * g[None, :, None, None] + b[None, :, None, None])

    def conv(y, w, s, pad):
        return lax.conv_general_dilated(
            y, w, (s, s), [(pad, pad), (pad, pad)],
            dimension_numbers=("NCHW", "OIHW", "NCHW"))

    equal = x.shape[1] == p["conv1_w"].shape[0]
    bn1 = bn(x, p["bn1_g"], p["bn1_b"], p["bn1_rm"], p["bn1_rv"])
    act1 = jnp.maximum(bn1, 0.0)
    out = conv(act1, p["conv1_w"], stride, 1)
    out = jnp.maximum(bn(out, p["bn2_g"], p["bn2_b"], p["bn2_rm"], p["bn2_rv"]), 0.0)
    out = conv(out, p["conv2_w"], 1, 1)
    sc = x if equal else conv(act1, p["convsc_w"], stride, 0)
    return sc + out, [bn1]


# -------------------------------- param init ---------------------------------


def init_params(key, in_planes, out_planes):
    ks = jax.random.split(key, 12)
    p = {
        "bn1_g": jax.random.uniform(ks[0], (in_planes,), jnp.float32, 0.5, 1.5),
        "bn1_b": 0.1 * jax.random.normal(ks[1], (in_planes,), jnp.float32),
        "bn1_rm": 0.1 * jax.random.normal(ks[2], (in_planes,), jnp.float32),
        "bn1_rv": jax.random.uniform(ks[3], (in_planes,), jnp.float32, 0.5, 1.5),
        "conv1_w": 0.1 * jax.random.normal(ks[4], (out_planes, in_planes, 3, 3), jnp.float32),
        "bn2_g": jax.random.uniform(ks[5], (out_planes,), jnp.float32, 0.5, 1.5),
        "bn2_b": 0.1 * jax.random.normal(ks[6], (out_planes,), jnp.float32),
        "bn2_rm": 0.1 * jax.random.normal(ks[7], (out_planes,), jnp.float32),
        "bn2_rv": jax.random.uniform(ks[8], (out_planes,), jnp.float32, 0.5, 1.5),
        "conv2_w": 0.1 * jax.random.normal(ks[9], (out_planes, out_planes, 3, 3), jnp.float32),
    }
    if in_planes != out_planes:
        p["convsc_w"] = 0.1 * jax.random.normal(ks[10], (out_planes, in_planes, 1, 1), jnp.float32)
    return p


# ----------------------------------- main ------------------------------------


if __name__ == "__main__":
    key = jax.random.PRNGKey(0)
    kx, kp1, kp2, kp3 = jax.random.split(key, 4)
    x = jax.random.normal(kx, (2, 4, 16, 16), jnp.float32)

    # MXU operands are bf16 (per perf review); compare against the f32 reference
    # with a correspondingly relaxed tolerance. bn1 (pure f32 path) stays tight.
    TOL = dict(atol=5e-2, rtol=5e-2)

    # Case 1: equalInOut (identity shortcut, stride 1).
    p1 = init_params(kp1, 4, 4)
    out1, feats1 = basic_block_forward(x, p1, stride=1)
    jax.block_until_ready(out1)
    ref1, rfeats1 = _ref_forward(x, p1, 1)
    assert out1.shape == (2, 4, 16, 16)
    assert jnp.allclose(out1, ref1, **TOL)
    assert jnp.allclose(feats1[0], rfeats1[0], atol=1e-5, rtol=1e-5)

    # Case 2: channel expansion + stride 2 (1x1 convShortcut path).
    p2 = init_params(kp2, 4, 8)
    out2, feats2 = basic_block_forward(x, p2, stride=2)
    jax.block_until_ready(out2)
    ref2, rfeats2 = _ref_forward(x, p2, 2)
    assert out2.shape == (2, 8, 8, 8)
    assert jnp.allclose(out2, ref2, **TOL)
    assert jnp.allclose(feats2[0], rfeats2[0], atol=1e-5, rtol=1e-5)

    # Case 3: channel expansion, stride 1 (convShortcut without subsampling).
    p3 = init_params(kp3, 4, 8)
    out3, _ = basic_block_forward(x, p3, stride=1)
    jax.block_until_ready(out3)
    ref3, _ = _ref_forward(x, p3, 1)
    assert out3.shape == (2, 8, 16, 16)
    assert jnp.allclose(out3, ref3, **TOL)

    print("KERNEL_OK")
</pallas_src>

<mosaic_0001>
module attributes {stable_mosaic.version = 11 : i64} {
  func.func @kernel(%arg0: i32, %arg1: memref<1x256x4xf32, #tpu.memory_space<vmem>>, %arg2: memref<9x4x4xbf16, #tpu.memory_space<vmem>>, %arg3: memref<256x1xf32, #tpu.memory_space<vmem>>, %arg4: memref<256x1xf32, #tpu.memory_space<vmem>>, %arg5: memref<1x4xf32, #tpu.memory_space<vmem>>, %arg6: memref<1x4xf32, #tpu.memory_space<vmem>>, %arg7: memref<1x4xf32, #tpu.memory_space<vmem>>, %arg8: memref<1x4xf32, #tpu.memory_space<vmem>>, %arg9: memref<1x256x4xf32, #tpu.memory_space<vmem>>, %arg10: memref<1x256x4xbf16, #tpu.memory_space<vmem>>, %arg11: memref<296x4xf32, #tpu.memory_space<vmem>>) attributes {dimension_semantics = [#tpu.dimension_semantics<parallel>], iteration_bounds = array<i64: 2>, scalar_prefetch = 0 : i64, scratch_operands = 1 : i64, tpu.core_type = #tpu.core_type<tc>, window_params = [{transform_indices = @transform_0, window_bounds = array<i64: 1, 256, 4>}, {pipeline_mode = #tpu.pipeline_mode<synchronous>, transform_indices = @transform_1, window_bounds = array<i64: 9, 4, 4>}, {pipeline_mode = #tpu.pipeline_mode<synchronous>, transform_indices = @transform_2, window_bounds = array<i64: 256, 1>}, {pipeline_mode = #tpu.pipeline_mode<synchronous>, transform_indices = @transform_3, window_bounds = array<i64: 256, 1>}, {pipeline_mode = #tpu.pipeline_mode<synchronous>, transform_indices = @transform_4, window_bounds = array<i64: 1, 4>}, {pipeline_mode = #tpu.pipeline_mode<synchronous>, transform_indices = @transform_5, window_bounds = array<i64: 1, 4>}, {pipeline_mode = #tpu.pipeline_mode<synchronous>, transform_indices = @transform_6, window_bounds = array<i64: 1, 4>}, {pipeline_mode = #tpu.pipeline_mode<synchronous>, transform_indices = @transform_7, window_bounds = array<i64: 1, 4>}, {transform_indices = @transform_8, window_bounds = array<i64: 1, 256, 4>}, {transform_indices = @transform_9, window_bounds = array<i64: 1, 256, 4>}]} {
    %c0 = arith.constant 0 : index
    %c0_0 = arith.constant 0 : index
    %c0_1 = arith.constant 0 : index
    %0 = vector.load %arg1[%c0, %c0_0, %c0_1] : memref<1x256x4xf32, #tpu.memory_space<vmem>>, vector<1x256x4xf32>
    %1 = vector.shape_cast %0 : vector<1x256x4xf32> to vector<256x4xf32>
    %c0_2 = arith.constant 0 : index
    %c0_3 = arith.constant 0 : index
    %2 = vector.load %arg5[%c0_2, %c0_3] : memref<1x4xf32, #tpu.memory_space<vmem>>, vector<1x4xf32>
    %3 = vector.broadcast %2 : vector<1x4xf32> to vector<256x4xf32>
    %4 = arith.mulf %1, %3 : vector<256x4xf32>
    %c0_4 = arith.constant 0 : index
    %c0_5 = arith.constant 0 : index
    %5 = vector.load %arg6[%c0_4, %c0_5] : memref<1x4xf32, #tpu.memory_space<vmem>>, vector<1x4xf32>
    %6 = vector.broadcast %5 : vector<1x4xf32> to vector<256x4xf32>
    %7 = arith.addf %4, %6 : vector<256x4xf32>
    %c0_6 = arith.constant 0 : index
    %c0_7 = arith.constant 0 : index
    %c0_8 = arith.constant 0 : index
    %8 = vector.load %arg9[%c0_6, %c0_7, %c0_8] : memref<1x256x4xf32, #tpu.memory_space<vmem>>, vector<1x256x4xf32>
    %9 = vector.shape_cast %8 : vector<1x256x4xf32> to vector<256x4xf32>
    %10 = vector.shape_cast %7 : vector<256x4xf32> to vector<1x256x4xf32>
    tpu.vector_store %arg9[%c0_6, %c0_7, %c0_8], %10 {strides = array<i32>} : memref<1x256x4xf32, #tpu.memory_space<vmem>>, vector<1x256x4xf32>,
    %cst = arith.constant 0.000000e+00 : f32
    %11 = vector.broadcast %cst : f32 to vector<256x4xf32>
    %12 = arith.maximumf %7, %11 : vector<256x4xf32>
    %cst_9 = arith.constant 0.000000e+00 : f32
    %13 = vector.broadcast %cst_9 : f32 to vector<296x4xf32>
    %c0_10 = arith.constant 0 : index
    %c0_11 = arith.constant 0 : index
    %14 = vector.load %arg11[%c0_10, %c0_11] : memref<296x4xf32, #tpu.memory_space<vmem>>, vector<296x4xf32>
    tpu.vector_store %arg11[%c0_10, %c0_11], %13 {strides = array<i32>} : memref<296x4xf32, #tpu.memory_space<vmem>>, vector<296x4xf32>,
    %c17 = arith.constant 17 : index
    %c0_12 = arith.constant 0 : index
    %15 = vector.load %arg11[%c17, %c0_12] : memref<296x4xf32, #tpu.memory_space<vmem>>, vector<256x4xf32>
    tpu.vector_store %arg11[%c17, %c0_12], %12 {strides = array<i32>} : memref<296x4xf32, #tpu.memory_space<vmem>>, vector<256x4xf32>,
    %c0_13 = arith.constant 0 : index
    %c0_14 = arith.constant 0 : index
    %16 = vector.load %arg3[%c0_13, %c0_14] : memref<256x1xf32, #tpu.memory_space<vmem>>, vector<256x1xf32>
    %c0_15 = arith.constant 0 : index
    %c0_16 = arith.constant 0 : index
    %17 = vector.load %arg4[%c0_15, %c0_16] : memref<256x1xf32, #tpu.memory_space<vmem>>, vector<256x1xf32>
    %cst_17 = arith.constant 0.000000e+00 : f32
    %18 = vector.broadcast %cst_17 : f32 to vector<256x4xf32>
    %c0_18 = arith.constant 0 : index
    %c0_19 = arith.constant 0 : index
    %19 = vector.load %arg11[%c0_18, %c0_19] : memref<296x4xf32, #tpu.memory_space<vmem>>, vector<256x4xf32>
    %20 = vector.broadcast %16 : vector<256x1xf32> to vector<256x4xf32>
    %21 = arith.mulf %19, %20 : vector<256x4xf32>
    %22 = arith.truncf %21 : vector<256x4xf32> to vector<256x4xbf16>
    %c0_20 = arith.constant 0 : index
    %c0_21 = arith.constant 0 : index
    %c0_22 = arith.constant 0 : index
    %23 = vector.load %arg2[%c0_20, %c0_21, %c0_22] : memref<9x4x4xbf16, #tpu.memory_space<vmem>>, vector<1x4x4xbf16>
    %24 = vector.shape_cast %23 : vector<1x4x4xbf16> to vector<4x4xbf16>
    %cst_23 = arith.constant dense<0.000000e+00> : vector<256x4xf32>
    %25 = tpu.matmul %22, %24, %cst_23 {dimension_numbers = #tpu.dot_dimension_numbers<[1], [0], [0], [1], [0, 0, 1, 1], [], []>} : vector<256x4xbf16>, vector<4x4xbf16>, vector<256x4xf32> -> vector<256x4xf32>
    %26 = arith.addf %18, %25 : vector<256x4xf32>
    %c1 = arith.constant 1 : index
    %c0_24 = arith.constant 0 : index
    %27 = vector.load %arg11[%c1, %c0_24] : memref<296x4xf32, #tpu.memory_space<vmem>>, vector<256x4xf32>
    %28 = arith.truncf %27 : vector<256x4xf32> to vector<256x4xbf16>
    %c1_25 = arith.constant 1 : index
    %c0_26 = arith.constant 0 : index
    %c0_27 = arith.constant 0 : index
    %29 = vector.load %arg2[%c1_25, %c0_26, %c0_27] : memref<9x4x4xbf16, #tpu.memory_space<vmem>>, vector<1x4x4xbf16>
    %30 = vector.shape_cast %29 : vector<1x4x4xbf16> to vector<4x4xbf16>
    %cst_28 = arith.constant dense<0.000000e+00> : vector<256x4xf32>
    %31 = tpu.matmul %28, %30, %cst_28 {dimension_numbers = #tpu.dot_dimension_numbers<[1], [0], [0], [1], [0, 0, 1, 1], [], []>} : vector<256x4xbf16>, vector<4x4xbf16>, vector<256x4xf32> -> vector<256x4xf32>
    %32 = arith.addf %26, %31 : vector<256x4xf32>
    %c2 = arith.constant 2 : index
    %c0_29 = arith.constant 0 : index
    %33 = vector.load %arg11[%c2, %c0_29] : memref<296x4xf32, #tpu.memory_space<vmem>>, vector<256x4xf32>
    %34 = vector.broadcast %17 : vector<256x1xf32> to vector<256x4xf32>
    %35 = arith.mulf %33, %34 : vector<256x4xf32>
    %36 = arith.truncf %35 : vector<256x4xf32> to vector<256x4xbf16>
    %c2_30 = arith.constant 2 : index
    %c0_31 = arith.constant 0 : index
    %c0_32 = arith.constant 0 : index
    %37 = vector.load %arg2[%c2_30, %c0_31, %c0_32] : memref<9x4x4xbf16, #tpu.memory_space<vmem>>, vector<1x4x4xbf16>
    %38 = vector.shape_cast %37 : vector<1x4x4xbf16> to vector<4x4xbf16>
    %cst_33 = arith.constant dense<0.000000e+00> : vector<256x4xf32>
    %39 = tpu.matmul %36, %38, %cst_33 {dimension_numbers = #tpu.dot_dimension_numbers<[1], [0], [0], [1], [0, 0, 1, 1], [], []>} : vector<256x4xbf16>, vector<4x4xbf16>, vector<256x4xf32> -> vector<256x4xf32>
    %40 = arith.addf %32, %39 : vector<256x4xf32>
    %c16 = arith.constant 16 : index
    %c0_34 = arith.constant 0 : index
    %41 = vector.load %arg11[%c16, %c0_34] : memref<296x4xf32, #tpu.memory_space<vmem>>, vector<256x4xf32>
    %42 = vector.broadcast %16 : vector<256x1xf32> to vector<256x4xf32>
    %43 = arith.mulf %41, %42 : vector<256x4xf32>
    %44 = arith.truncf %43 : vector<256x4xf32> to vector<256x4xbf16>
    %c3 = arith.constant 3 : index
    %c0_35 = arith.constant 0 : index
    %c0_36 = arith.constant 0 : index
    %45 = vector.load %arg2[%c3, %c0_35, %c0_36] : memref<9x4x4xbf16, #tpu.memory_space<vmem>>, vector<1x4x4xbf16>
    %46 = vector.shape_cast %45 : vector<1x4x4xbf16> to vector<4x4xbf16>
    %cst_37 = arith.constant dense<0.000000e+00> : vector<256x4xf32>
    %47 = tpu.matmul %44, %46, %cst_37 {dimension_numbers = #tpu.dot_dimension_numbers<[1], [0], [0], [1], [0, 0, 1, 1], [], []>} : vector<256x4xbf16>, vector<4x4xbf16>, vector<256x4xf32> -> vector<256x4xf32>
    %48 = arith.addf %40, %47 : vector<256x4xf32>
    %c17_38 = arith.constant 17 : index
    %c0_39 = arith.constant 0 : index
    %49 = vector.load %arg11[%c17_38, %c0_39] : memref<296x4xf32, #tpu.memory_space<vmem>>, vector<256x4xf32>
    %50 = arith.truncf %49 : vector<256x4xf32> to vector<256x4xbf16>
    %c4 = arith.constant 4 : index
    %c0_40 = arith.constant 0 : index
    %c0_41 = arith.constant 0 : index
    %51 = vector.load %arg2[%c4, %c0_40, %c0_41] : memref<9x4x4xbf16, #tpu.memory_space<vmem>>, vector<1x4x4xbf16>
    %52 = vector.shape_cast %51 : vector<1x4x4xbf16> to vector<4x4xbf16>
    %cst_42 = arith.constant dense<0.000000e+00> : vector<256x4xf32>
    %53 = tpu.matmul %50, %52, %cst_42 {dimension_numbers = #tpu.dot_dimension_numbers<[1], [0], [0], [1], [0, 0, 1, 1], [], []>} : vector<256x4xbf16>, vector<4x4xbf16>, vector<256x4xf32> -> vector<256x4xf32>
    %54 = arith.addf %48, %53 : vector<256x4xf32>
    %c18 = arith.constant 18 : index
    %c0_43 = arith.constant 0 : index
    %55 = vector.load %arg11[%c18, %c0_43] : memref<296x4xf32, #tpu.memory_space<vmem>>, vector<256x4xf32>
    %56 = vector.broadcast %17 : vector<256x1xf32> to vector<256x4xf32>
    %57 = arith.mulf %55, %56 : vector<256x4xf32>
    %58 = arith.truncf %57 : vector<256x4xf32> to vector<256x4xbf16>
    %c5 = arith.constant 5 : index
    %c0_44 = arith.constant 0 : index
    %c0_45 = arith.constant 0 : index
    %59 = vector.load %arg2[%c5, %c0_44, %c0_45] : memref<9x4x4xbf16, #tpu.memory_space<vmem>>, vector<1x4x4xbf16>
    %60 = vector.shape_cast %59 : vector<1x4x4xbf16> to vector<4x4xbf16>
    %cst_46 = arith.constant dense<0.000000e+00> : vector<256x4xf32>
    %61 = tpu.matmul %58, %60, %cst_46 {dimension_numbers = #tpu.dot_dimension_numbers<[1], [0], [0], [1], [0, 0, 1, 1], [], []>} : vector<256x4xbf16>, vector<4x4xbf16>, vector<256x4xf32> -> vector<256x4xf32>
    %62 = arith.addf %54, %61 : vector<256x4xf32>
    %c32 = arith.constant 32 : index
    %c0_47 = arith.constant 0 : index
    %63 = vector.load %arg11[%c32, %c0_47] : memref<296x4xf32, #tpu.memory_space<vmem>>, vector<256x4xf32>
    %64 = vector.broadcast %16 : vector<256x1xf32> to vector<256x4xf32>
    %65 = arith.mulf %63, %64 : vector<256x4xf32>
    %66 = arith.truncf %65 : vector<256x4xf32> to vector<256x4xbf16>
    %c6 = arith.constant 6 : index
    %c0_48 = arith.constant 0 : index
    %c0_49 = arith.constant 0 : index
    %67 = vector.load %arg2[%c6, %c0_48, %c0_49] : memref<9x4x4xbf16, #tpu.memory_space<vmem>>, vector<1x4x4xbf16>
    %68 = vector.shape_cast %67 : vector<1x4x4xbf16> to vector<4x4xbf16>
    %cst_50 = arith.constant dense<0.000000e+00> : vector<256x4xf32>
    %69 = tpu.matmul %66, %68, %cst_50 {dimension_numbers = #tpu.dot_dimension_numbers<[1], [0], [0], [1], [0, 0, 1, 1], [], []>} : vector<256x4xbf16>, vector<4x4xbf16>, vector<256x4xf32> -> vector<256x4xf32>
    %70 = arith.addf %62, %69 : vector<256x4xf32>
    %c33 = arith.constant 33 : index
    %c0_51 = arith.constant 0 : index
    %71 = vector.load %arg11[%c33, %c0_51] : memref<296x4xf32, #tpu.memory_space<vmem>>, vector<256x4xf32>
    %72 = arith.truncf %71 : vector<256x4xf32> to vector<256x4xbf16>
    %c7 = arith.constant 7 : index
    %c0_52 = arith.constant 0 : index
    %c0_53 = arith.constant 0 : index
    %73 = vector.load %arg2[%c7, %c0_52, %c0_53] : memref<9x4x4xbf16, #tpu.memory_space<vmem>>, vector<1x4x4xbf16>
    %74 = vector.shape_cast %73 : vector<1x4x4xbf16> to vector<4x4xbf16>
    %cst_54 = arith.constant dense<0.000000e+00> : vector<256x4xf32>
    %75 = tpu.matmul %72, %74, %cst_54 {dimension_numbers = #tpu.dot_dimension_numbers<[1], [0], [0], [1], [0, 0, 1, 1], [], []>} : vector<256x4xbf16>, vector<4x4xbf16>, vector<256x4xf32> -> vector<256x4xf32>
    %76 = arith.addf %70, %75 : vector<256x4xf32>
    %c34 = arith.constant 34 : index
    %c0_55 = arith.constant 0 : index
    %77 = vector.load %arg11[%c34, %c0_55] : memref<296x4xf32, #tpu.memory_space<vmem>>, vector<256x4xf32>
    %78 = vector.broadcast %17 : vector<256x1xf32> to vector<256x4xf32>
    %79 = arith.mulf %77, %78 : vector<256x4xf32>
    %80 = arith.truncf %79 : vector<256x4xf32> to vector<256x4xbf16>
    %c8 = arith.constant 8 : index
    %c0_56 = arith.constant 0 : index
    %c0_57 = arith.constant 0 : index
    %81 = vector.load %arg2[%c8, %c0_56, %c0_57] : memref<9x4x4xbf16, #tpu.memory_space<vmem>>, vector<1x4x4xbf16>
    %82 = vector.shape_cast %81 : vector<1x4x4xbf16> to vector<4x4xbf16>
    %cst_58 = arith.constant dense<0.000000e+00> : vector<256x4xf32>
    %83 = tpu.matmul %80, %82, %cst_58 {dimension_numbers = #tpu.dot_dimension_numbers<[1], [0], [0], [1], [0, 0, 1, 1], [], []>} : vector<256x4xbf16>, vector<4x4xbf16>, vector<256x4xf32> -> vector<256x4xf32>
    %84 = arith.addf %76, %83 : vector<256x4xf32>
    %c0_59 = arith.constant 0 : index
    %c0_60 = arith.constant 0 : index
    %85 = vector.load %arg7[%c0_59, %c0_60] : memref<1x4xf32, #tpu.memory_space<vmem>>, vector<1x4xf32>
    %86 = vector.broadcast %85 : vector<1x4xf32> to vector<256x4xf32>
    %87 = arith.mulf %84, %86 : vector<256x4xf32>
    %c0_61 = arith.constant 0 : index
    %c0_62 = arith.constant 0 : index
    %88 = vector.load %arg8[%c0_61, %c0_62] : memref<1x4xf32, #tpu.memory_space<vmem>>, vector<1x4xf32>
    %89 = vector.broadcast %88 : vector<1x4xf32> to vector<256x4xf32>
    %90 = arith.addf %87, %89 : vector<256x4xf32>
    %cst_63 = arith.constant 0.000000e+00 : f32
    %91 = vector.broadcast %cst_63 : f32 to vector<256x4xf32>
    %92 = arith.maximumf %90, %91 : vector<256x4xf32>
    %93 = arith.truncf %92 : vector<256x4xf32> to vector<256x4xbf16>
    %c0_64 = arith.constant 0 : index
    %c0_65 = arith.constant 0 : index
    %c0_66 = arith.constant 0 : index
    %94 = vector.load %arg10[%c0_64, %c0_65, %c0_66] : memref<1x256x4xbf16, #tpu.memory_space<vmem>>, vector<1x256x4xbf16>
    %95 = vector.shape_cast %94 : vector<1x256x4xbf16> to vector<256x4xbf16>
    %96 = vector.shape_cast %93 : vector<256x4xbf16> to vector<1x256x4xbf16>
    tpu.vector_store %arg10[%c0_64, %c0_65, %c0_66], %96 {strides = array<i32>} : memref<1x256x4xbf16, #tpu.memory_space<vmem>>, vector<1x256x4xbf16>,
    return
  }
  func.func @transform_0(%arg0: i32) -> (i32, i32, i32) {
    %c0_i32 = arith.constant 0 : i32
    %c0_i32_0 = arith.constant 0 : i32
    %c0_i32_1 = arith.constant 0 : i32
    return %arg0, %c0_i32, %c0_i32_0 : i32, i32, i32
  }
  func.func @transform_1(%arg0: i32) -> (i32, i32, i32) {
    %c0_i32 = arith.constant 0 : i32
    %c0_i32_0 = arith.constant 0 : i32
    %c0_i32_1 = arith.constant 0 : i32
    %c0_i32_2 = arith.constant 0 : i32
    return %c0_i32, %c0_i32_0, %c0_i32_1 : i32, i32, i32
  }
  func.func @transform_2(%arg0: i32) -> (i32, i32) {
    %c0_i32 = arith.constant 0 : i32
    %c0_i32_0 = arith.constant 0 : i32
    %c0_i32_1 = arith.constant 0 : i32
    return %c0_i32, %c0_i32_0 : i32, i32
  }
  func.func @transform_3(%arg0: i32) -> (i32, i32) {
    %c0_i32 = arith.constant 0 : i32
    %c0_i32_0 = arith.constant 0 : i32
    %c0_i32_1 = arith.constant 0 : i32
    return %c0_i32, %c0_i32_0 : i32, i32
  }
  func.func @transform_4(%arg0: i32) -> (i32, i32) {
    %c0_i32 = arith.constant 0 : i32
    %c0_i32_0 = arith.constant 0 : i32
    %c0_i32_1 = arith.constant 0 : i32
    return %c0_i32, %c0_i32_0 : i32, i32
  }
  func.func @transform_5(%arg0: i32) -> (i32, i32) {
    %c0_i32 = arith.constant 0 : i32
    %c0_i32_0 = arith.constant 0 : i32
    %c0_i32_1 = arith.constant 0 : i32
    return %c0_i32, %c0_i32_0 : i32, i32
  }
  func.func @transform_6(%arg0: i32) -> (i32, i32) {
    %c0_i32 = arith.constant 0 : i32
    %c0_i32_0 = arith.constant 0 : i32
    %c0_i32_1 = arith.constant 0 : i32
    return %c0_i32, %c0_i32_0 : i32, i32
  }
  func.func @transform_7(%arg0: i32) -> (i32, i32) {
    %c0_i32 = arith.constant 0 : i32
    %c0_i32_0 = arith.constant 0 : i32
    %c0_i32_1 = arith.constant 0 : i32
    return %c0_i32, %c0_i32_0 : i32, i32
  }
  func.func @transform_8(%arg0: i32) -> (i32, i32, i32) {
    %c0_i32 = arith.constant 0 : i32
    %c0_i32_0 = arith.constant 0 : i32
    %c0_i32_1 = arith.constant 0 : i32
    return %arg0, %c0_i32, %c0_i32_0 : i32, i32, i32
  }
  func.func @transform_9(%arg0: i32) -> (i32, i32, i32) {
    %c0_i32 = arith.constant 0 : i32
    %c0_i32_0 = arith.constant 0 : i32
    %c0_i32_1 = arith.constant 0 : i32
    return %arg0, %c0_i32, %c0_i32_0 : i32, i32, i32
  }
}

module attributes {stable_mosaic.version = 11 : i64} {
  func.func @kernel(%arg0: i32, %arg1: memref<1x256x4xbf16, #tpu.memory_space<vmem>>, %arg2: memref<9x4x4xbf16, #tpu.memory_space<vmem>>, %arg3: memref<256x1xf32, #tpu.memory_space<vmem>>, %arg4: memref<256x1xf32, #tpu.memory_space<vmem>>, %arg5: memref<1x256x4xf32, #tpu.memory_space<vmem>>, %arg6: memref<1x256x4xf32, #tpu.memory_space<vmem>>, %arg7: memref<296x4xf32, #tpu.memory_space<vmem>>) attributes {dimension_semantics = [#tpu.dimension_semantics<parallel>], iteration_bounds = array<i64: 2>, scalar_prefetch = 0 : i64, scratch_operands = 1 : i64, tpu.core_type = #tpu.core_type<tc>, window_params = [{transform_indices = @transform_0, window_bounds = array<i64: 1, 256, 4>}, {pipeline_mode = #tpu.pipeline_mode<synchronous>, transform_indices = @transform_1, window_bounds = array<i64: 9, 4, 4>}, {pipeline_mode = #tpu.pipeline_mode<synchronous>, transform_indices = @transform_2, window_bounds = array<i64: 256, 1>}, {pipeline_mode = #tpu.pipeline_mode<synchronous>, transform_indices = @transform_3, window_bounds = array<i64: 256, 1>}, {transform_indices = @transform_4, window_bounds = array<i64: 1, 256, 4>}, {transform_indices = @transform_5, window_bounds = array<i64: 1, 256, 4>}]} {
    %cst = arith.constant 0.000000e+00 : f32
    %0 = vector.broadcast %cst : f32 to vector<296x4xf32>
    %c0 = arith.constant 0 : index
    %c0_0 = arith.constant 0 : index
    %1 = vector.load %arg7[%c0, %c0_0] : memref<296x4xf32, #tpu.memory_space<vmem>>, vector<296x4xf32>
    tpu.vector_store %arg7[%c0, %c0_0], %0 {strides = array<i32>} : memref<296x4xf32, #tpu.memory_space<vmem>>, vector<296x4xf32>,
    %c0_1 = arith.constant 0 : index
    %c0_2 = arith.constant 0 : index
    %c0_3 = arith.constant 0 : index
    %2 = vector.load %arg1[%c0_1, %c0_2, %c0_3] : memref<1x256x4xbf16, #tpu.memory_space<vmem>>, vector<1x256x4xbf16>
    %3 = vector.shape_cast %2 : vector<1x256x4xbf16> to vector<256x4xbf16>
    %4 = arith.extf %3 : vector<256x4xbf16> to vector<256x4xf32>
    %c17 = arith.constant 17 : index
    %c0_4 = arith.constant 0 : index
    %5 = vector.load %arg7[%c17, %c0_4] : memref<296x4xf32, #tpu.memory_space<vmem>>, vector<256x4xf32>
    tpu.vector_store %arg7[%c17, %c0_4], %4 {strides = array<i32>} : memref<296x4xf32, #tpu.memory_space<vmem>>, vector<256x4xf32>,
    %c0_5 = arith.constant 0 : index
    %c0_6 = arith.constant 0 : index
    %6 = vector.load %arg3[%c0_5, %c0_6] : memref<256x1xf32, #tpu.memory_space<vmem>>, vector<256x1xf32>
    %c0_7 = arith.constant 0 : index
    %c0_8 = arith.constant 0 : index
    %7 = vector.load %arg4[%c0_7, %c0_8] : memref<256x1xf32, #tpu.memory_space<vmem>>, vector<256x1xf32>
    %cst_9 = arith.constant 0.000000e+00 : f32
    %8 = vector.broadcast %cst_9 : f32 to vector<256x4xf32>
    %c0_10 = arith.constant 0 : index
    %c0_11 = arith.constant 0 : index
    %9 = vector.load %arg7[%c0_10, %c0_11] : memref<296x4xf32, #tpu.memory_space<vmem>>, vector<256x4xf32>
    %10 = vector.broadcast %6 : vector<256x1xf32> to vector<256x4xf32>
    %11 = arith.mulf %9, %10 : vector<256x4xf32>
    %12 = arith.truncf %11 : vector<256x4xf32> to vector<256x4xbf16>
    %c0_12 = arith.constant 0 : index
    %c0_13 = arith.constant 0 : index
    %c0_14 = arith.constant 0 : index
    %13 = vector.load %arg2[%c0_12, %c0_13, %c0_14] : memref<9x4x4xbf16, #tpu.memory_space<vmem>>, vector<1x4x4xbf16>
    %14 = vector.shape_cast %13 : vector<1x4x4xbf16> to vector<4x4xbf16>
    %cst_15 = arith.constant dense<0.000000e+00> : vector<256x4xf32>
    %15 = tpu.matmul %12, %14, %cst_15 {dimension_numbers = #tpu.dot_dimension_numbers<[1], [0], [0], [1], [0, 0, 1, 1], [], []>} : vector<256x4xbf16>, vector<4x4xbf16>, vector<256x4xf32> -> vector<256x4xf32>
    %16 = arith.addf %8, %15 : vector<256x4xf32>
    %c1 = arith.constant 1 : index
    %c0_16 = arith.constant 0 : index
    %17 = vector.load %arg7[%c1, %c0_16] : memref<296x4xf32, #tpu.memory_space<vmem>>, vector<256x4xf32>
    %18 = arith.truncf %17 : vector<256x4xf32> to vector<256x4xbf16>
    %c1_17 = arith.constant 1 : index
    %c0_18 = arith.constant 0 : index
    %c0_19 = arith.constant 0 : index
    %19 = vector.load %arg2[%c1_17, %c0_18, %c0_19] : memref<9x4x4xbf16, #tpu.memory_space<vmem>>, vector<1x4x4xbf16>
    %20 = vector.shape_cast %19 : vector<1x4x4xbf16> to vector<4x4xbf16>
    %cst_20 = arith.constant dense<0.000000e+00> : vector<256x4xf32>
    %21 = tpu.matmul %18, %20, %cst_20 {dimension_numbers = #tpu.dot_dimension_numbers<[1], [0], [0], [1], [0, 0, 1, 1], [], []>} : vector<256x4xbf16>, vector<4x4xbf16>, vector<256x4xf32> -> vector<256x4xf32>
    %22 = arith.addf %16, %21 : vector<256x4xf32>
    %c2 = arith.constant 2 : index
    %c0_21 = arith.constant 0 : index
    %23 = vector.load %arg7[%c2, %c0_21] : memref<296x4xf32, #tpu.memory_space<vmem>>, vector<256x4xf32>
    %24 = vector.broadcast %7 : vector<256x1xf32> to vector<256x4xf32>
    %25 = arith.mulf %23, %24 : vector<256x4xf32>
    %26 = arith.truncf %25 : vector<256x4xf32> to vector<256x4xbf16>
    %c2_22 = arith.constant 2 : index
    %c0_23 = arith.constant 0 : index
    %c0_24 = arith.constant 0 : index
    %27 = vector.load %arg2[%c2_22, %c0_23, %c0_24] : memref<9x4x4xbf16, #tpu.memory_space<vmem>>, vector<1x4x4xbf16>
    %28 = vector.shape_cast %27 : vector<1x4x4xbf16> to vector<4x4xbf16>
    %cst_25 = arith.constant dense<0.000000e+00> : vector<256x4xf32>
    %29 = tpu.matmul %26, %28, %cst_25 {dimension_numbers = #tpu.dot_dimension_numbers<[1], [0], [0], [1], [0, 0, 1, 1], [], []>} : vector<256x4xbf16>, vector<4x4xbf16>, vector<256x4xf32> -> vector<256x4xf32>
    %30 = arith.addf %22, %29 : vector<256x4xf32>
    %c16 = arith.constant 16 : index
    %c0_26 = arith.constant 0 : index
    %31 = vector.load %arg7[%c16, %c0_26] : memref<296x4xf32, #tpu.memory_space<vmem>>, vector<256x4xf32>
    %32 = vector.broadcast %6 : vector<256x1xf32> to vector<256x4xf32>
    %33 = arith.mulf %31, %32 : vector<256x4xf32>
    %34 = arith.truncf %33 : vector<256x4xf32> to vector<256x4xbf16>
    %c3 = arith.constant 3 : index
    %c0_27 = arith.constant 0 : index
    %c0_28 = arith.constant 0 : index
    %35 = vector.load %arg2[%c3, %c0_27, %c0_28] : memref<9x4x4xbf16, #tpu.memory_space<vmem>>, vector<1x4x4xbf16>
    %36 = vector.shape_cast %35 : vector<1x4x4xbf16> to vector<4x4xbf16>
    %cst_29 = arith.constant dense<0.000000e+00> : vector<256x4xf32>
    %37 = tpu.matmul %34, %36, %cst_29 {dimension_numbers = #tpu.dot_dimension_numbers<[1], [0], [0], [1], [0, 0, 1, 1], [], []>} : vector<256x4xbf16>, vector<4x4xbf16>, vector<256x4xf32> -> vector<256x4xf32>
    %38 = arith.addf %30, %37 : vector<256x4xf32>
    %c17_30 = arith.constant 17 : index
    %c0_31 = arith.constant 0 : index
    %39 = vector.load %arg7[%c17_30, %c0_31] : memref<296x4xf32, #tpu.memory_space<vmem>>, vector<256x4xf32>
    %40 = arith.truncf %39 : vector<256x4xf32> to vector<256x4xbf16>
    %c4 = arith.constant 4 : index
    %c0_32 = arith.constant 0 : index
    %c0_33 = arith.constant 0 : index
    %41 = vector.load %arg2[%c4, %c0_32, %c0_33] : memref<9x4x4xbf16, #tpu.memory_space<vmem>>, vector<1x4x4xbf16>
    %42 = vector.shape_cast %41 : vector<1x4x4xbf16> to vector<4x4xbf16>
    %cst_34 = arith.constant dense<0.000000e+00> : vector<256x4xf32>
    %43 = tpu.matmul %40, %42, %cst_34 {dimension_numbers = #tpu.dot_dimension_numbers<[1], [0], [0], [1], [0, 0, 1, 1], [], []>} : vector<256x4xbf16>, vector<4x4xbf16>, vector<256x4xf32> -> vector<256x4xf32>
    %44 = arith.addf %38, %43 : vector<256x4xf32>
    %c18 = arith.constant 18 : index
    %c0_35 = arith.constant 0 : index
    %45 = vector.load %arg7[%c18, %c0_35] : memref<296x4xf32, #tpu.memory_space<vmem>>, vector<256x4xf32>
    %46 = vector.broadcast %7 : vector<256x1xf32> to vector<256x4xf32>
    %47 = arith.mulf %45, %46 : vector<256x4xf32>
    %48 = arith.truncf %47 : vector<256x4xf32> to vector<256x4xbf16>
    %c5 = arith.constant 5 : index
    %c0_36 = arith.constant 0 : index
    %c0_37 = arith.constant 0 : index
    %49 = vector.load %arg2[%c5, %c0_36, %c0_37] : memref<9x4x4xbf16, #tpu.memory_space<vmem>>, vector<1x4x4xbf16>
    %50 = vector.shape_cast %49 : vector<1x4x4xbf16> to vector<4x4xbf16>
    %cst_38 = arith.constant dense<0.000000e+00> : vector<256x4xf32>
    %51 = tpu.matmul %48, %50, %cst_38 {dimension_numbers = #tpu.dot_dimension_numbers<[1], [0], [0], [1], [0, 0, 1, 1], [], []>} : vector<256x4xbf16>, vector<4x4xbf16>, vector<256x4xf32> -> vector<256x4xf32>
    %52 = arith.addf %44, %51 : vector<256x4xf32>
    %c32 = arith.constant 32 : index
    %c0_39 = arith.constant 0 : index
    %53 = vector.load %arg7[%c32, %c0_39] : memref<296x4xf32, #tpu.memory_space<vmem>>, vector<256x4xf32>
    %54 = vector.broadcast %6 : vector<256x1xf32> to vector<256x4xf32>
    %55 = arith.mulf %53, %54 : vector<256x4xf32>
    %56 = arith.truncf %55 : vector<256x4xf32> to vector<256x4xbf16>
    %c6 = arith.constant 6 : index
    %c0_40 = arith.constant 0 : index
    %c0_41 = arith.constant 0 : index
    %57 = vector.load %arg2[%c6, %c0_40, %c0_41] : memref<9x4x4xbf16, #tpu.memory_space<vmem>>, vector<1x4x4xbf16>
    %58 = vector.shape_cast %57 : vector<1x4x4xbf16> to vector<4x4xbf16>
    %cst_42 = arith.constant dense<0.000000e+00> : vector<256x4xf32>
    %59 = tpu.matmul %56, %58, %cst_42 {dimension_numbers = #tpu.dot_dimension_numbers<[1], [0], [0], [1], [0, 0, 1, 1], [], []>} : vector<256x4xbf16>, vector<4x4xbf16>, vector<256x4xf32> -> vector<256x4xf32>
    %60 = arith.addf %52, %59 : vector<256x4xf32>
    %c33 = arith.constant 33 : index
    %c0_43 = arith.constant 0 : index
    %61 = vector.load %arg7[%c33, %c0_43] : memref<296x4xf32, #tpu.memory_space<vmem>>, vector<256x4xf32>
    %62 = arith.truncf %61 : vector<256x4xf32> to vector<256x4xbf16>
    %c7 = arith.constant 7 : index
    %c0_44 = arith.constant 0 : index
    %c0_45 = arith.constant 0 : index
    %63 = vector.load %arg2[%c7, %c0_44, %c0_45] : memref<9x4x4xbf16, #tpu.memory_space<vmem>>, vector<1x4x4xbf16>
    %64 = vector.shape_cast %63 : vector<1x4x4xbf16> to vector<4x4xbf16>
    %cst_46 = arith.constant dense<0.000000e+00> : vector<256x4xf32>
    %65 = tpu.matmul %62, %64, %cst_46 {dimension_numbers = #tpu.dot_dimension_numbers<[1], [0], [0], [1], [0, 0, 1, 1], [], []>} : vector<256x4xbf16>, vector<4x4xbf16>, vector<256x4xf32> -> vector<256x4xf32>
    %66 = arith.addf %60, %65 : vector<256x4xf32>
    %c34 = arith.constant 34 : index
    %c0_47 = arith.constant 0 : index
    %67 = vector.load %arg7[%c34, %c0_47] : memref<296x4xf32, #tpu.memory_space<vmem>>, vector<256x4xf32>
    %68 = vector.broadcast %7 : vector<256x1xf32> to vector<256x4xf32>
    %69 = arith.mulf %67, %68 : vector<256x4xf32>
    %70 = arith.truncf %69 : vector<256x4xf32> to vector<256x4xbf16>
    %c8 = arith.constant 8 : index
    %c0_48 = arith.constant 0 : index
    %c0_49 = arith.constant 0 : index
    %71 = vector.load %arg2[%c8, %c0_48, %c0_49] : memref<9x4x4xbf16, #tpu.memory_space<vmem>>, vector<1x4x4xbf16>
    %72 = vector.shape_cast %71 : vector<1x4x4xbf16> to vector<4x4xbf16>
    %cst_50 = arith.constant dense<0.000000e+00> : vector<256x4xf32>
    %73 = tpu.matmul %70, %72, %cst_50 {dimension_numbers = #tpu.dot_dimension_numbers<[1], [0], [0], [1], [0, 0, 1, 1], [], []>} : vector<256x4xbf16>, vector<4x4xbf16>, vector<256x4xf32> -> vector<256x4xf32>
    %74 = arith.addf %66, %73 : vector<256x4xf32>
    %c0_51 = arith.constant 0 : index
    %c0_52 = arith.constant 0 : index
    %c0_53 = arith.constant 0 : index
    %75 = vector.load %arg5[%c0_51, %c0_52, %c0_53] : memref<1x256x4xf32, #tpu.memory_space<vmem>>, vector<1x256x4xf32>
    %76 = vector.shape_cast %75 : vector<1x256x4xf32> to vector<256x4xf32>
    %77 = arith.addf %74, %76 : vector<256x4xf32>
    %c0_54 = arith.constant 0 : index
    %c0_55 = arith.constant 0 : index
    %c0_56 = arith.constant 0 : index
    %78 = vector.load %arg6[%c0_54, %c0_55, %c0_56] : memref<1x256x4xf32, #tpu.memory_space<vmem>>, vector<1x256x4xf32>
    %79 = vector.shape_cast %78 : vector<1x256x4xf32> to vector<256x4xf32>
    %80 = vector.shape_cast %77 : vector<256x4xf32> to vector<1x256x4xf32>
    tpu.vector_store %arg6[%c0_54, %c0_55, %c0_56], %80 {strides = array<i32>} : memref<1x256x4xf32, #tpu.memory_space<vmem>>, vector<1x256x4xf32>,
    return
  }
  func.func @transform_0(%arg0: i32) -> (i32, i32, i32) {
    %c0_i32 = arith.constant 0 : i32
    %c0_i32_0 = arith.constant 0 : i32
    %c0_i32_1 = arith.constant 0 : i32
    return %arg0, %c0_i32, %c0_i32_0 : i32, i32, i32
  }
  func.func @transform_1(%arg0: i32) -> (i32, i32, i32) {
    %c0_i32 = arith.constant 0 : i32
    %c0_i32_0 = arith.constant 0 : i32
    %c0_i32_1 = arith.constant 0 : i32
    %c0_i32_2 = arith.constant 0 : i32
    return %c0_i32, %c0_i32_0, %c0_i32_1 : i32, i32, i32
  }
  func.func @transform_2(%arg0: i32) -> (i32, i32) {
    %c0_i32 = arith.constant 0 : i32
    %c0_i32_0 = arith.constant 0 : i32
    %c0_i32_1 = arith.constant 0 : i32
    return %c0_i32, %c0_i32_0 : i32, i32
  }
  func.func @transform_3(%arg0: i32) -> (i32, i32) {
    %c0_i32 = arith.constant 0 : i32
    %c0_i32_0 = arith.constant 0 : i32
    %c0_i32_1 = arith.constant 0 : i32
    return %c0_i32, %c0_i32_0 : i32, i32
  }
  func.func @transform_4(%arg0: i32) -> (i32, i32, i32) {
    %c0_i32 = arith.constant 0 : i32
    %c0_i32_0 = arith.constant 0 : i32
    %c0_i32_1 = arith.constant 0 : i32
    return %arg0, %c0_i32, %c0_i32_0 : i32, i32, i32
  }
  func.func @transform_5(%arg0: i32) -> (i32, i32, i32) {
    %c0_i32 = arith.constant 0 : i32
    %c0_i32_0 = arith.constant 0 : i32
    %c0_i32_1 = arith.constant 0 : i32
    return %arg0, %c0_i32, %c0_i32_0 : i32, i32, i32
  }
}

</mosaic_0001>

<bundles_post_ra>
// kernel: basic_block_forward.3
= control target key start
LH: loop header
LB: loop body
LE: loop exit
PB: predicated region body
PF: predicated region fallthrough
CT: control target
= control target key end

     0   :  { %s3356_s18 = smov 0   ;;  %s5342_s0 = inlined_call_operand.vmem [shape: bf16[2,256,4], index: 0, kind: input, shape index: {}]   ;;  %s5343_s1 = inlined_call_operand.vmem [shape: bf16[9,4,4], index: 1, kind: input, shape index: {}]   ;;  %s5344_s2 = inlined_call_operand.vmem [shape: f32[256,1], index: 2, kind: input, shape index: {}]   ;;  %s5345_s3 = inlined_call_operand.vmem [shape: f32[256,1], index: 3, kind: input, shape index: {}]   ;;  %s5346_s4 = inlined_call_operand.vmem [shape: f32[2,256,4], index: 4, kind: input, shape index: {}]   ;;  %s5347_s5 = inlined_call_operand.vmem [shape: f32[2,256,4], index: 5, kind: output, shape index: {}]  }
   0x1 LB: > { %s3053_s19 = sadd.s32 4294967295, %s3322_s18   ;;  %p3057_p0 = scmp.ge.s32.totalorder %s3322_s18, 1  ;;  %s3322_s18 = sphi %s3356_s18, %s15_s18  }
   0x2   : > { %p197_p1 = scmp.lt.s32.totalorder %s3322_s18, 3 }
   0x4   : > { %p198_p2 = pnand %p3057_p0, %p197_p1 }
   0x6   : > { %201 = sbr.rel (%p198_p2) target bundleno = 792 (0x318), region = 40 }
   0xb   : > { %v414_v0 = vld [vmem:[%s5345_s3 + $0x10] sm:$0xff]  ;;  %v412_v1 = vld [vmem:[%s5345_s3] sm:$0xff]  ;;  %vm783_vm0 = vcmask 1041408   ;;  %vm246_vm1 = vcmask 31744   ;;  %v3324_v3 = vmov 0   ;;  %v3325_v6 = vmov 0.0  }
   0xc   : > { %v380_v2 = vld [vmem:[%s5344_s2] sm:$0xff]  ;;  %3315 = vset.pattern.permute.xlu2 %v3324_v3  ;;  %3314 = vset.pattern.permute.xlu1 %v3324_v3  ;;  %247 = vst.msk [vmem:[#allocation2] sm:$0xff] %vm246_vm1, %v3325_v6  ;;  %v415_v7 = vld [vmem:[%s5345_s3 + $0x18] sm:$0xff]  ;;  %v413_v8 = vld [vmem:[%s5345_s3 + $0x8] sm:$0xff]  ;;  %p230_p3 = scmp.lt.s32.totalorder %s3053_s19, 1 }
   0xd   : > { %v3064_v4 = vld [vmem:[%s5343_s1 + $0x2] sm:$0x3]  ;;  %3313 = vset.pattern.permute.xlu0 %v3324_v3  ;;  %1060 = vperm.xlu2 %3315, %v414_v0   ;;  %248 = vst.msk [vmem:[#allocation2 + $0x8] sm:$0xff] %vm246_vm1, %v3325_v6  ;;  %v381_v9 = vld [vmem:[%s5344_s2 + $0x8] sm:$0xff]  ;;  %v382_v14 = vld [vmem:[%s5344_s2 + $0x10] sm:$0xff] }
   0xe   : > { %v785_v5 = vsel %vm783_vm0, %v3064_v4, 0  ;;  %1050 = vperm.xlu0 %3313, %v412_v1   ;;  %478 = vperm.xlu1 %3314, %v380_v2   ;;  %249 = vst.msk [vmem:[#allocation2 + $0x10] sm:$0xff] %vm246_vm1, %v3325_v6  ;;  %v416_v13 = vld [vmem:[%s5345_s3 + $0x20] sm:$0xff]  ;;  %v383_v15 = vld [vmem:[%s5344_s2 + $0x18] sm:$0xff]  ;;  %s5795_s19 = smov (!%p230_p3, %s3053_s19), 1  ;;  %v385_v16 = vld [vmem:[%s5344_s2 + $0x28] sm:$0xff] }
   0xf   : > { %794 = vmatpush.bf16.msra.mxu0 %v785_v5  ;;  %3301 = vmatpush.bf16.msra.mxu2 %v785_v5  ;;  %250 = vst.msk [vmem:[#allocation2 + $0x18] sm:$0xff] %vm246_vm1, %v3325_v6  ;;  %v417_v17 = vld [vmem:[%s5345_s3 + $0x28] sm:$0xff]  ;;  %v384_v18 = vld [vmem:[%s5344_s2 + $0x20] sm:$0xff]  ;;  %s3218_s23 = sshll.u32 %s5795_s19, 7  ;;  %v386_v19 = vld [vmem:[%s5344_s2 + $0x30] sm:$0xff] }
  0x10   : > { %3302 = vmatpush.bf16.msra.mxu3 %v785_v5  ;;  %3300 = vmatpush.bf16.msra.mxu1 %v785_v5  ;;  %251 = vst.msk [vmem:[#allocation2 + $0x20] sm:$0xff] %vm246_vm1, %v3325_v6  ;;  %s3471_s26 = scalar_lea.vmem %s5342_s0, %s3218_s23  ;;  %v418_v21 = vld [vmem:[%s5345_s3 + $0x30] sm:$0xff]  ;;  %v419_v22 = vld [vmem:[%s5345_s3 + $0x38] sm:$0xff]  ;;  %v421_v30 = vld [vmem:[%s5345_s3 + $0x48] sm:$0xff] }
  0x11   : > { %252 = vst.msk [vmem:[#allocation2 + $0x28] sm:$0xff] %vm246_vm1, %v3325_v6  ;;  %v3222_v20 = vld [vmem:[%s3471_s26] sm:$0xff]   ;;  %v3285_v23 = vld [vmem:[%s3471_s26 + $0x8] sm:$0xff]   ;;  %v3291_v26 = vld [vmem:[%s3471_s26 + $0x38] sm:$0xff]  }
  0x12   : > { %253 = vst.msk [vmem:[#allocation2 + $0x30] sm:$0xff] %vm246_vm1, %v3325_v6  ;;  %v3223_v24 = vunpack.c.l.bf16 %v3222_v20  ;;  %v3224_v25 = vunpack.c.h.bf16 %v3222_v20  ;;  %v3227_v27 = vunpack.c.l.bf16 %v3285_v23  ;;  %v3228_v28 = vunpack.c.h.bf16 %v3285_v23  ;;  %v3286_v29 = vld [vmem:[%s3471_s26 + $0x10] sm:$0xff]   ;;  %v387_v32 = vld [vmem:[%s5344_s2 + $0x38] sm:$0xff]  ;;  %v420_v33 = vld [vmem:[%s5345_s3 + $0x40] sm:$0xff] }
  0x13   : > { %254 = vst.msk [vmem:[#allocation2 + $0x38] sm:$0xff] %vm246_vm1, %v3325_v6  ;;  %v3251_v31 = vunpack.c.l.bf16 %v3291_v26  ;;  %v3252_v34 = vunpack.c.h.bf16 %v3291_v26  ;;  %v3295_v35 = vld [vmem:[%s3471_s26 + $0x58] sm:$0xff]   ;;  %v3231_v36 = vunpack.c.l.bf16 %v3286_v29  ;;  %v3232_v37 = vunpack.c.h.bf16 %v3286_v29  ;;  %v422_v45 = vld [vmem:[%s5345_s3 + $0x50] sm:$0xff]  ;;  %v388_v47 = vld [vmem:[%s5344_s2 + $0x40] sm:$0xff] }
  0x14   : > { %v685_v10 = vld [vmem:[#allocation2 + $0x1] sm:$0xff]  ;;  %255 = vst.msk [vmem:[#allocation2 + $0x40] sm:$0xff] %vm246_vm1, %v3325_v6  ;;  %v3287_v38 = vld [vmem:[%s3471_s26 + $0x18] sm:$0xff]   ;;  %v3267_v39 = vunpack.c.l.bf16 %v3295_v35  ;;  %v3268_v40 = vunpack.c.h.bf16 %v3295_v35  ;;  %v390_v4 = vld [vmem:[%s5344_s2 + $0x50] sm:$0xff] }
  0x15   : > { %1065 = vperm.xlu2 %3315, %v415_v7   ;;  %v686_v11 = vld [vmem:[#allocation2 + $0x9] sm:$0xff]  ;;  %256 = vst.msk [vmem:[#allocation2 + $0x48] sm:$0xff] %vm246_vm1, %v3325_v6  ;;  %v3235_v41 = vunpack.c.l.bf16 %v3287_v38  ;;  %v3236_v43 = vunpack.c.h.bf16 %v3287_v38  ;;  %v3097_v50 = vld [vmem:[%s5343_s1 + $0x4] sm:$0x3]  ;;  %v3114_v54 = vld [vmem:[%s5343_s1 + $0x6] sm:$0x3] }
  0x16   : > { %1055 = vperm.xlu0 %3313, %v413_v8   ;;  %483 = vperm.xlu1 %3314, %v381_v9   ;;  %v717_v12 = vpack.c.bf16 %v686_v11, %v685_v10  ;;  %257 = vst.msk [vmem:[#allocation2 + $0x50] sm:$0xff] %vm246_vm1, %v3325_v6  ;;  %v389_v48 = vld [vmem:[%s5344_s2 + $0x48] sm:$0xff]  ;;  %v1307_v52 = vsel %vm783_vm0, %v3097_v50, 0  ;;  %v684_v55 = vld [vmem:[%s5343_s1] sm:$0x3]  ;;  %v1561_v56 = vsel %vm783_vm0, %v3114_v54, 0 }
  0x17   : > { %258 = vst.msk [vmem:[#allocation2 + $0x58] sm:$0xff] %vm246_vm1, %v3325_v6  ;;  %1316 = vmatpush.bf16.msrb.mxu2 %v1307_v52  ;;  %v925_v57 = vsel %vm783_vm0, %v684_v55, 0  ;;  %v3131_v58 = vld [vmem:[%s5343_s1 + $0x8] sm:$0x3]  ;;  %v3292_v59 = vld [vmem:[%s3471_s26 + $0x40] sm:$0xff]   ;;  %v391_v60 = vld [vmem:[%s5344_s2 + $0x58] sm:$0xff]  ;;  %1570 = vmatpush.bf16.msrb.mxu3 %v1561_v56 }
  0x18   : > { %3065 = vmatmul.msk.bf16.vlgmr.msra.gmra.mxu0 %vm246_vm1, %v717_v12  ;;  %259 = vst.msk [vmem:[#allocation2 + $0x60] sm:$0xff] %vm246_vm1, %v3325_v6  ;;  %v1783_v62 = vsel %vm783_vm0, %v3131_v58, 0  ;;  %v3255_v63 = vunpack.c.l.bf16 %v3292_v59  ;;  %v3256_v0 = vunpack.c.h.bf16 %v3292_v59  ;;  %v423_v1 = vld [vmem:[%s5345_s3 + $0x58] sm:$0xff]  ;;  %934 = vmatpush.bf16.msrb.mxu1 %v925_v57  ;;  %v3296_v3 = vld [vmem:[%s3471_s26 + $0x60] sm:$0xff]   ;;  %v425_v20 = vld [vmem:[%s5345_s3 + $0x68] sm:$0xff] }
  0x19   : > { %260 = vst.msk [vmem:[#allocation2 + $0x68] sm:$0xff] %vm246_vm1, %v3325_v6  ;;  %1792 = vmatpush.bf16.msrb.mxu0 %v1783_v62  ;;  %v3271_v7 = vunpack.c.l.bf16 %v3296_v3  ;;  %v3272_v8 = vunpack.c.h.bf16 %v3296_v3  ;;  %v3288_v9 = vld [vmem:[%s3471_s26 + $0x20] sm:$0xff]   ;;  %v3289_v35 = vld [vmem:[%s3471_s26 + $0x28] sm:$0xff]   ;;  %v3294_v55 = vld [vmem:[%s3471_s26 + $0x50] sm:$0xff]  }
  0x1a   : > { %261 = vst.msk [vmem:[#allocation2 + $0x70] sm:$0xff] %vm246_vm1, %v3325_v6  ;;  %v3239_v11 = vunpack.c.l.bf16 %v3288_v9  ;;  %v3240_v12 = vunpack.c.h.bf16 %v3288_v9  ;;  %v3263_v57 = vunpack.c.l.bf16 %v3294_v55  ;;  %v3264_v58 = vunpack.c.h.bf16 %v3294_v55  ;;  %v3298_v59 = vld [vmem:[%s3471_s26 + $0x70] sm:$0xff]  }
  0x1b   : > { %262 = vst.msk [vmem:[#allocation2 + $0x78] sm:$0xff] %vm246_vm1, %v3325_v6  ;;  %v3280_v62 = vunpack.c.h.bf16 %v3298_v59 }
  0x1c   : > { %263 = vst.msk [vmem:[#allocation2 + $0x80] sm:$0xff] %vm246_vm1, %v3325_v6 }
  0x1d   : > { %1070 = vperm.xlu2 %3315, %v416_v13   ;;  %264 = vst.msk [vmem:[#allocation2 + $0x88] sm:$0xff] %vm246_vm1, %v3325_v6 }
  0x1e   : > { %488 = vperm.xlu0 %3313, %v382_v14   ;;  %493 = vperm.xlu1 %3314, %v383_v15   ;;  %265 = vst.msk [vmem:[#allocation2 + $0x90] sm:$0xff] %vm246_vm1, %v3325_v6 }
  0x1f   : > { %266 = vst.msk [vmem:[#allocation2 + $0x98] sm:$0xff] %vm246_vm1, %v3325_v6 }
  0x20   : > { %267 = vst.msk [vmem:[#allocation2 + $0xa0] sm:$0xff] %vm246_vm1, %v3325_v6 }
  0x21   : > { %268 = vst.msk [vmem:[#allocation2 + $0xa8] sm:$0xff] %vm246_vm1, %v3325_v6 }
  0x22   : > { %269 = vst.msk [vmem:[#allocation2 + $0xb0] sm:$0xff] %vm246_vm1, %v3325_v6 }
  0x23   : > { %270 = vst.msk [vmem:[#allocation2 + $0xb8] sm:$0xff] %vm246_vm1, %v3325_v6 }
  0x24   : > { %271 = vst.msk [vmem:[#allocation2 + $0xc0] sm:$0xff] %vm246_vm1, %v3325_v6 }
  0x25   : > { %503 = vperm.xlu2 %3315, %v385_v16   ;;  %272 = vst.msk [vmem:[#allocation2 + $0xc8] sm:$0xff] %vm246_vm1, %v3325_v6 }
  0x26   : > { %1075 = vperm.xlu0 %3313, %v417_v17   ;;  %498 = vperm.xlu1 %3314, %v384_v18   ;;  %273 = vst.msk [vmem:[#allocation2 + $0xd0] sm:$0xff] %vm246_vm1, %v3325_v6  ;;  %v392_v17 = vld [vmem:[%s5344_s2 + $0x60] sm:$0xff] }
  0x27   : > { %274 = vst.msk [vmem:[#allocation2 + $0xd8] sm:$0xff] %vm246_vm1, %v3325_v6 }
  0x28   : > { %275 = vst.msk [vmem:[#allocation2 + $0xe0] sm:$0xff] %vm246_vm1, %v3325_v6 }
  0x29   : > { %276 = vst.msk [vmem:[#allocation2 + $0xe8] sm:$0xff] %vm246_vm1, %v3325_v6 }
  0x2a   : > { %277 = vst.msk [vmem:[#allocation2 + $0xf0] sm:$0xff] %vm246_vm1, %v3325_v6 }
  0x2b   : > { %278 = vst.msk [vmem:[#allocation2 + $0xf8] sm:$0xff] %vm246_vm1, %v3325_v6 }
  0x2c   : > { %279 = vst.msk [vmem:[#allocation2 + $0x100] sm:$0xff] %vm246_vm1, %v3325_v6 }
  0x2d   : > { %508 = vperm.xlu2 %3315, %v386_v19   ;;  %280 = vst.msk [vmem:[#allocation2 + $0x108] sm:$0xff] %vm246_vm1, %v3325_v6  ;;  %v424_v19 = vld [vmem:[%s5345_s3 + $0x60] sm:$0xff] }
  0x2e   : > { %1080 = vperm.xlu0 %3313, %v418_v21   ;;  %1085 = vperm.xlu1 %3314, %v419_v22   ;;  %281 = vst.msk [vmem:[#allocation2 + $0x110] sm:$0xff] %vm246_vm1, %v3325_v6 }
  0x2f   : > { %282 = vst.msk [vmem:[#allocation2 + $0x118] sm:$0xff] %vm246_vm1, %v3325_v6 }
  0x30   : > { %283 = vst.msk [vmem:[#allocation2 + $0x120] sm:$0xff] %vm246_vm1, %v3325_v6 }
  0x31   : > { %348 = vst.msk [vmem:[#allocation2 + $0x11] sm:$0xff] %vm246_vm1, %v3223_v24 }
  0x32   : > { %349 = vst.msk [vmem:[#allocation2 + $0x19] sm:$0xff] %vm246_vm1, %v3224_v25  ;;  %v3293_v25 = vld [vmem:[%s3471_s26 + $0x48] sm:$0xff]  }
  0x33   : > { %350 = vst.msk [vmem:[#allocation2 + $0x21] sm:$0xff] %vm246_vm1, %v3227_v27  ;;  %v3259_v26 = vunpack.c.l.bf16 %v3293_v25  ;;  %v3260_v27 = vunpack.c.h.bf16 %v3293_v25 }
  0x34   : > { %351 = vst.msk [vmem:[#allocation2 + $0x29] sm:$0xff] %vm246_vm1, %v3228_v28 }
  0x35   : > { %1095 = vperm.xlu2 %3315, %v421_v30   ;;  %362 = vst.msk [vmem:[#allocation2 + $0x81] sm:$0xff] %vm246_vm1, %v3251_v31  ;;  %v3297_v30 = vld [vmem:[%s3471_s26 + $0x68] sm:$0xff]  }
  0x36   : > { %513 = vperm.xlu0 %3313, %v387_v32   ;;  %1090 = vperm.xlu1 %3314, %v420_v33   ;;  %363 = vst.msk [vmem:[#allocation2 + $0x89] sm:$0xff] %vm246_vm1, %v3252_v34  ;;  %v3275_v32 = vunpack.c.l.bf16 %v3297_v30  ;;  %v3276_v33 = vunpack.c.h.bf16 %v3297_v30  ;;  %v427_v34 = vld [vmem:[%s5345_s3 + $0x78] sm:$0xff] }
  0x37   : > { %352 = vst.msk [vmem:[#allocation2 + $0x31] sm:$0xff] %vm246_vm1, %v3231_v36  ;;  %v393_v36 = vld [vmem:[%s5344_s2 + $0x68] sm:$0xff]  ;;  %v399_v30 = vld [vmem:[%s5344_s2 + $0x98] sm:$0xff] }
  0x38   : > { %v687_v42 = vld [vmem:[#allocation2 + $0x11] sm:$0xff]  ;;  %353 = vst.msk [vmem:[#allocation2 + $0x39] sm:$0xff] %vm246_vm1, %v3232_v37 }
  0x39   : > { %v688_v44 = vld [vmem:[#allocation2 + $0x19] sm:$0xff]  ;;  %370 = vst.msk [vmem:[#allocation2 + $0xc1] sm:$0xff] %vm246_vm1, %v3267_v39  ;;  %v426_v37 = vld [vmem:[%s5345_s3 + $0x70] sm:$0xff]  ;;  %v3243_v39 = vunpack.c.l.bf16 %v3289_v35 }
  0x3a   : > { %v3527_v46 = vpack.c.bf16 %v688_v44, %v687_v42  ;;  %371 = vst.msk [vmem:[#allocation2 + $0xc9] sm:$0xff] %vm246_vm1, %v3268_v40  ;;  %v689_v14 = vld [vmem:[#allocation2 + $0x21] sm:$0xff]  ;;  %v3244_v40 = vunpack.c.h.bf16 %v3289_v35 }
  0x3b   : > { %354 = vst.msk [vmem:[#allocation2 + $0x41] sm:$0xff] %vm246_vm1, %v3235_v41  ;;  %v690_v15 = vld [vmem:[#allocation2 + $0x29] sm:$0xff]  ;;  %v428_v44 = vld [vmem:[%s5345_s3 + $0x80] sm:$0xff] }
  0x3c   : > { %3066 = vmatmul.msk.bf16.gmra.mxu0 %vm246_vm1, %v3527_v46  ;;  %v701_v49 = vld [vmem:[#allocation2 + $0x81] sm:$0xff]  ;;  %355 = vst.msk [vmem:[#allocation2 + $0x49] sm:$0xff] %vm246_vm1, %v3236_v43  ;;  %v3580_v16 = vpack.c.bf16 %v690_v15, %v689_v14  ;;  %v431_v14 = vld [vmem:[%s5345_s3 + $0x98] sm:$0xff] }
  0x3d   : > { %1100 = vperm.xlu2 %3315, %v422_v45   ;;  %v702_v51 = vld [vmem:[#allocation2 + $0x89] sm:$0xff]  ;;  %364 = vst.msk [vmem:[#allocation2 + $0x91] sm:$0xff] %vm246_vm1, %v3255_v63 }
  0x3e   : > { %518 = vperm.xlu0 %3313, %v388_v47   ;;  %523 = vperm.xlu1 %3314, %v389_v48   ;;  %v725_v53 = vpack.c.bf16 %v702_v51, %v701_v49  ;;  %365 = vst.msk [vmem:[#allocation2 + $0x99] sm:$0xff] %vm246_vm1, %v3256_v0  ;;  %v691_v41 = vld [vmem:[#allocation2 + $0x31] sm:$0xff]  ;;  %v429_v0 = vld [vmem:[%s5345_s3 + $0x88] sm:$0xff] }
  0x3f   : > { %372 = vst.msk [vmem:[#allocation2 + $0xd1] sm:$0xff] %vm246_vm1, %v3271_v7  ;;  %v692_v42 = vld [vmem:[#allocation2 + $0x39] sm:$0xff]  ;;  %v394_v48 = vld [vmem:[%s5344_s2 + $0x70] sm:$0xff]  ;;  %v3654_v7 = vld [vmem:[#allocation2 + $0x22] sm:$0xff] }
  0x40   : > { %3073 = vmatmul.msk.bf16.vlgmr.msra.gmra.mxu2 %vm246_vm1, %v725_v53  ;;  %v709_v61 = vld [vmem:[#allocation2 + $0xc1] sm:$0xff]  ;;  %373 = vst.msk [vmem:[#allocation2 + $0xd9] sm:$0xff] %vm246_vm1, %v3272_v8  ;;  %v3617_v43 = vpack.c.bf16 %v692_v42, %v691_v41  ;;  %v395_v49 = vld [vmem:[%s5344_s2 + $0x78] sm:$0xff]  ;;  %v3290_v63 = vld [vmem:[%s3471_s26 + $0x30] sm:$0xff]  }
  0x41   : > { %v710_v2 = vld [vmem:[#allocation2 + $0xc9] sm:$0xff]  ;;  %356 = vst.msk [vmem:[#allocation2 + $0x51] sm:$0xff] %vm246_vm1, %v3239_v11  ;;  %v3247_v3 = vunpack.c.l.bf16 %v3290_v63  ;;  %v3737_v42 = vld [vmem:[#allocation2 + $0x12] sm:$0xff] }
  0x42   : > { %v729_v5 = vpack.c.bf16 %v710_v2, %v709_v61  ;;  %v693_v6 = vld [vmem:[#allocation2 + $0x41] sm:$0xff]  ;;  %357 = vst.msk [vmem:[#allocation2 + $0x59] sm:$0xff] %vm246_vm1, %v3240_v12  ;;  %v3279_v61 = vunpack.c.l.bf16 %v3298_v59  ;;  %v430_v12 = vld [vmem:[%s5345_s3 + $0x90] sm:$0xff]  ;;  %v435_v59 = vld [vmem:[%s5345_s3 + $0xb8] sm:$0xff] }
  0x43   : > { %v694_v10 = vld [vmem:[#allocation2 + $0x49] sm:$0xff]  ;;  %366 = vst.msk [vmem:[#allocation2 + $0xa1] sm:$0xff] %vm246_vm1, %v3259_v26 }
  0x44   : > { %3077 = vmatmul.msk.bf16.vlgmr.msra.gmra.mxu3 %vm246_vm1, %v729_v5  ;;  %v3572_v13 = vpack.c.bf16 %v694_v10, %v693_v6  ;;  %v703_v18 = vld [vmem:[#allocation2 + $0x91] sm:$0xff]  ;;  %367 = vst.msk [vmem:[#allocation2 + $0xa9] sm:$0xff] %vm246_vm1, %v3260_v27  ;;  %v3735_v41 = vld [vmem:[#allocation2 + $0x48] sm:$0xff] }
  0x45   : > { %533 = vperm.xlu2 %3315, %v391_v60   ;;  %v704_v21 = vld [vmem:[#allocation2 + $0x99] sm:$0xff]  ;;  %374 = vst.msk [vmem:[#allocation2 + $0xe1] sm:$0xff] %vm246_vm1, %v3275_v32  ;;  %v397_v60 = vld [vmem:[%s5344_s2 + $0x88] sm:$0xff]  ;;  %v398_v10 = vld [vmem:[%s5344_s2 + $0x90] sm:$0xff] }
  0x46   : > { %1105 = vperm.xlu0 %3313, %v423_v1   ;;  %528 = vperm.xlu1 %3314, %v390_v4   ;;  %v726_v22 = vpack.c.bf16 %v704_v21, %v703_v18  ;;  %v711_v23 = vld [vmem:[#allocation2 + $0xd1] sm:$0xff]  ;;  %375 = vst.msk [vmem:[#allocation2 + $0xe9] sm:$0xff] %vm246_vm1, %v3276_v33  ;;  %v396_v1 = vld [vmem:[%s5344_s2 + $0x80] sm:$0xff]  ;;  %v3248_v4 = vunpack.c.h.bf16 %v3290_v63 }
  0x47   : > { %3069 = vmatmul.msk.bf16.vlgmr.msra.gmra.mxu1 %vm246_vm1, %v3572_v13  ;;  %v712_v24 = vld [vmem:[#allocation2 + $0xd9] sm:$0xff]  ;;  %358 = vst.msk [vmem:[#allocation2 + $0x61] sm:$0xff] %vm246_vm1, %v3243_v39  ;;  %v3710_v33 = vld [vmem:[#allocation2 + $0x42] sm:$0xff] }
  0x48   : > { %v695_v28 = vld [vmem:[#allocation2 + $0x51] sm:$0xff]  ;;  %v730_v31 = vpack.c.bf16 %v712_v24, %v711_v23  ;;  %359 = vst.msk [vmem:[#allocation2 + $0x69] sm:$0xff] %vm246_vm1, %v3244_v40  ;;  %v400_v39 = vld [vmem:[%s5344_s2 + $0xa0] sm:$0xff]  ;;  %v401_v40 = vld [vmem:[%s5344_s2 + $0xa8] sm:$0xff] }
  0x49   : > { %v696_v29 = vld [vmem:[#allocation2 + $0x59] sm:$0xff]  ;;  %368 = vst.msk [vmem:[#allocation2 + $0xb1] sm:$0xff] %vm246_vm1, %v3263_v57  ;;  %v3777_v63 = vld [vmem:[#allocation2 + $0x50] sm:$0xff] }
  0x4a   : > { %v3608_v38 = vpack.c.bf16 %v696_v29, %v695_v28  ;;  %v705_v45 = vld [vmem:[#allocation2 + $0xa1] sm:$0xff]  ;;  %369 = vst.msk [vmem:[#allocation2 + $0xb9] sm:$0xff] %vm246_vm1, %v3264_v58  ;;  %v3648_v5 = vld [vmem:[#allocation2 + $0x32] sm:$0xff] }
  0x4b   : > { %v706_v47 = vld [vmem:[#allocation2 + $0xa9] sm:$0xff]  ;;  %376 = vst.msk [vmem:[#allocation2 + $0xf1] sm:$0xff] %vm246_vm1, %v3279_v61 }
  0x4c   : > { %3067 = vmatmul.msk.bf16.gmra.mxu0 %vm246_vm1, %v3580_v16  ;;  %v727_v50 = vpack.c.bf16 %v706_v47, %v705_v45  ;;  %v713_v51 = vld [vmem:[#allocation2 + $0xe1] sm:$0xff]  ;;  %377 = vst.msk [vmem:[#allocation2 + $0xf9] sm:$0xff] %vm246_vm1, %v3280_v62  ;;  %v3165_v47 = vld [vmem:[%s5343_s1 + $0xc] sm:$0x3] }
  0x4d   : > { %538 = vperm.xlu2 %3315, %v392_v17   ;;  %v714_v52 = vld [vmem:[#allocation2 + $0xe9] sm:$0xff]  ;;  %360 = vst.msk [vmem:[#allocation2 + $0x71] sm:$0xff] %vm246_vm1, %v3247_v3  ;;  %v3679_v17 = vld [vmem:[#allocation2 + $0x3a] sm:$0xff] }
  0x4e   : > { %1110 = vperm.xlu0 %3313, %v424_v19   ;;  %1115 = vperm.xlu1 %3314, %v425_v20   ;;  %v697_v53 = vld [vmem:[#allocation2 + $0x61] sm:$0xff]  ;;  %v731_v56 = vpack.c.bf16 %v714_v52, %v713_v51  ;;  %361 = vst.msk [vmem:[#allocation2 + $0x79] sm:$0xff] %vm246_vm1, %v3248_v4  ;;  %v3182_v51 = vld [vmem:[%s5343_s1 + $0xe] sm:$0x3] }
  0x4f   : > { %v698_v54 = vld [vmem:[#allocation2 + $0x69] sm:$0xff]  ;;  %v3741_v45 = vld [vmem:[#allocation2 + $0x20] sm:$0xff]  ;;  %v2513_v57 = vsel %vm783_vm0, %v3182_v51, 0 }
  0x50   : > { %3074 = vmatmul.msk.bf16.gmra.mxu2 %vm246_vm1, %v726_v22  ;;  %v3643_v2 = vpack.c.bf16 %v698_v54, %v697_v53  ;;  %v707_v11 = vld [vmem:[#allocation2 + $0xb1] sm:$0xff]  ;;  %v433_v29 = vld [vmem:[%s5345_s3 + $0xa8] sm:$0xff]  ;;  %2522 = vmatpush.bf16.msra.mxu3 %v2513_v57  ;;  %v444_v62 = vld [vmem:[#allocation2] sm:$0xff] }
  0x51   : > { %v708_v15 = vld [vmem:[#allocation2 + $0xb9] sm:$0xff]  ;;  %v3683_v22 = vld [vmem:[#allocation2 + $0x2a] sm:$0xff]  ;;  %v1016_v61 = vld [vmem:[#allocation2 + $0x2] sm:$0xff] }
  0x52   : > { %v728_v18 = vpack.c.bf16 %v708_v15, %v707_v11  ;;  %v715_v19 = vld [vmem:[#allocation2 + $0xf1] sm:$0xff]  ;;  %v3148_v54 = vld [vmem:[%s5343_s1 + $0xa] sm:$0x3]  ;;  %v3813_v57 = vld [vmem:[#allocation2 + $0x5a] sm:$0xff] }
  0x53   : > { %v716_v20 = vld [vmem:[#allocation2 + $0xf9] sm:$0xff]  ;;  %v2037_v58 = vsel %vm783_vm0, %v3148_v54, 0  ;;  %v445_v3 = vld [vmem:[#allocation2 + $0x8] sm:$0xff] }
  0x54   : > { %3078 = vmatmul.msk.bf16.gmra.mxu3 %vm246_vm1, %v730_v31  ;;  %v732_v26 = vpack.c.bf16 %v716_v20, %v715_v19  ;;  %v432_v31 = vld [vmem:[%s5345_s3 + $0xa0] sm:$0xff]  ;;  %2046 = vmatpush.bf16.msra.mxu1 %v2037_v58  ;;  %v3779_v4 = vld [vmem:[#allocation2 + $0x28] sm:$0xff] }
  0x55   : > { %1125 = vperm.xlu2 %3315, %v427_v34   ;;  %v700_v25 = vld [vmem:[#allocation2 + $0x79] sm:$0xff]  ;;  %v3815_v58 = vld [vmem:[#allocation2 + $0x6a] sm:$0xff] }
  0x56   : > { %543 = vperm.xlu0 %3313, %v393_v36   ;;  %1120 = vperm.xlu1 %3314, %v426_v37   ;;  %v434_v37 = vld [vmem:[%s5345_s3 + $0xb0] sm:$0xff]  ;;  %v436_v54 = vld [vmem:[%s5345_s3 + $0xc0] sm:$0xff] }
  0x57   : > { %3070 = vmatmul.msk.bf16.gmra.mxu1 %vm246_vm1, %v3608_v38 }
  0x5c   : > { %3068 = vmatmul.msk.bf16.gmra.mxu0 %vm246_vm1, %v3617_v43 }
  0x5d   : > { %1130 = vperm.xlu2 %3315, %v428_v44  }
  0x5e   : > { %548 = vperm.xlu0 %3313, %v394_v48   ;;  %553 = vperm.xlu1 %3314, %v395_v49  }
  0x60   : > { %3075 = vmatmul.msk.bf16.gmra.mxu2 %vm246_vm1, %v727_v50  ;;  %v2291_v50 = vsel %vm783_vm0, %v3165_v47, 0  ;;  %v440_v47 = vld [vmem:[%s5345_s3 + $0xe0] sm:$0xff] }
  0x61   : > { %2300 = vmatpush.bf16.msra.mxu2 %v2291_v50 }
  0x64   : > { %3079 = vmatmul.msk.bf16.gmra.mxu3 %vm246_vm1, %v731_v56  ;;  %v403_v56 = vld [vmem:[%s5344_s2 + $0xb8] sm:$0xff] }
  0x65   : > { %563 = vperm.xlu2 %3315, %v397_v60   ;;  %v402_v60 = vld [vmem:[%s5344_s2 + $0xb0] sm:$0xff] }
  0x66   : > { %1135 = vperm.xlu0 %3313, %v429_v0   ;;  %558 = vperm.xlu1 %3314, %v396_v1   ;;  %v1019_v0 = vld [vmem:[#allocation2 + $0x1a] sm:$0xff]  ;;  %v1017_v1 = vld [vmem:[#allocation2 + $0xa] sm:$0xff] }
  0x67   : > { %v3652_v6 = vpop.permute.xlu2 %1060  ;;  %3071 = vmatmul.msk.bf16.gmra.mxu1 %vm246_vm1, %v3643_v2 }
  0x68   : > { %v3661_v8 = vmul.f32 %v3654_v7, %v3652_v6  ;;  %v3665_v9 = vmul.f32 %v3648_v5, %v3652_v6 }
  0x6a   : > { %5466 = vst [vmem:[#allocation3_spill] sm:$0xff] %v3661_v8 }
  0x6b   : > { %5467 = vst [vmem:[#allocation4_spill] sm:$0xff] %v3665_v9 }
  0x6c   : > { %3132 = vmatmul.msk.bf16.vlgmr.msrb.gmra.mxu0 %vm246_vm1, %v3527_v46  ;;  %v699_v46 = vld [vmem:[#allocation2 + $0x71] sm:$0xff] }
  0x6d   : > { %568 = vperm.xlu2 %3315, %v398_v10   ;;  %v3707_v32 = vpack.c.bf16 %v700_v25, %v699_v46  ;;  %v1430_v10 = vld [vmem:[#allocation2 + $0x10] sm:$0xff] }
  0x6e   : > { %1140 = vperm.xlu0 %3313, %v430_v12   ;;  %1145 = vperm.xlu1 %3314, %v431_v14   ;;  %v1431_v12 = vld [vmem:[#allocation2 + $0x18] sm:$0xff] }
  0x6f   : > { %v3681_v21 = vpop.permute.xlu2 %1065 }
  0x70   : > { %v3687_v23 = vmul.f32 %v3683_v22, %v3681_v21  ;;  %v3691_v24 = vmul.f32 %v3679_v17, %v3681_v21  ;;  %3076 = vmatmul.msk.bf16.gmra.mxu2 %vm246_vm1, %v728_v18 }
  0x72   : > { %5468 = vst [vmem:[#allocation5_spill] sm:$0xff] %v3687_v23 }
  0x73   : > { %5469 = vst [vmem:[#allocation6_spill] sm:$0xff] %v3691_v24 }
  0x74   : > { %3080 = vmatmul.msk.bf16.gmra.mxu3 %vm246_vm1, %v732_v26 }
  0x75   : > { %1155 = vperm.xlu2 %3315, %v433_v29  }
  0x76   : > { %573 = vperm.xlu0 %3313, %v399_v30   ;;  %1150 = vperm.xlu1 %3314, %v432_v31  }
  0x77   : > { %v3712_v34 = vpop.permute.xlu2 %1070  ;;  %3072 = vmatmul.msk.bf16.gmra.mxu1 %vm246_vm1, %v3707_v32 }
  0x78   : > { %v3718_v35 = vmul.f32 %v3648_v5, %v3712_v34  ;;  %v3722_v36 = vmul.f32 %v3710_v33, %v3712_v34 }
  0x7a   : > { %5470 = vst [vmem:[#allocation7_spill] sm:$0xff] %v3718_v35  ;;  %v3954_v35 = vld [vmem:[#allocation2 + $0x58] sm:$0xff] }
  0x7b   : > { %5471 = vst [vmem:[#allocation8_spill] sm:$0xff] %v3722_v36 }
  0x7c   : > { %3133 = vmatmul.msk.bf16.gmra.mxu0 %vm246_vm1, %v3580_v16 }
  0x7d   : > { %1160 = vperm.xlu2 %3315, %v434_v37  }
  0x7e   : > { %578 = vperm.xlu0 %3313, %v400_v39   ;;  %583 = vperm.xlu1 %3314, %v401_v40  }
  0x7f   : > { %v3739_v44 = vpop.permute.xlu2 %503 }
  0x80   : > { %v1051_v48 = vpop.permute.xlu0 %1050  ;;  %v3748_v49 = vmul.f32 %v3735_v41, %v3739_v44  ;;  %v479_v16 = vpop.permute.xlu1 %478 }
  0x81   : > { %v3755_v52 = vmul.f32 %v1051_v48, %v3737_v42  ;;  %v3758_v53 = vmul.f32 %v3654_v7, %v1051_v48  ;;  %v3764_v55 = vmul.f32 %v3741_v45, %v479_v16  ;;  %v1208_v14 = vmul.f32 %v1051_v48, %v1016_v61 }
  0x82   : > { %5472 = vst [vmem:[#allocation9_spill] sm:$0xff] %v3748_v49  ;;  %v636_v15 = vmul.f32 %v479_v16, %v444_v62  ;;  %v1462_v30 = vmul.f32 %v1430_v10, %v479_v16  ;;  %v404_v16 = vld [vmem:[%s5344_s2 + $0xc0] sm:$0xff]  ;;  %v3825_v62 = vld [vmem:[#allocation2 + $0x38] sm:$0xff] }
  0x83   : > { %5473 = vst [vmem:[#allocation10_spill] sm:$0xff] %v3755_v52  ;;  %v3947_v49 = vld [vmem:[#allocation2 + $0x80] sm:$0xff] }
  0x84   : > { %5474 = vst [vmem:[#allocation11_spill] sm:$0xff] %v3758_v53  ;;  %v4090_v52 = vld [vmem:[#allocation2 + $0x82] sm:$0xff] }
  0x85   : > { %5475 = vst [vmem:[#allocation12_spill] sm:$0xff] %v3764_v55  ;;  %593 = vperm.xlu2 %3315, %v403_v56   ;;  %v437_v56 = vld [vmem:[%s5345_s3 + $0xc8] sm:$0xff] }
  0x86   : > { %1165 = vperm.xlu0 %3313, %v435_v59   ;;  %588 = vperm.xlu1 %3314, %v402_v60   ;;  %v3199_v59 = vld [vmem:[%s5343_s1 + $0x10] sm:$0x3] }
  0x87   : > { %v3781_v11 = vpop.permute.xlu2 %508  ;;  %v3820_v60 = vld [vmem:[#allocation2 + $0x30] sm:$0xff]  ;;  %v2767_v61 = vsel %vm783_vm0, %v3199_v59, 0 }
  0x88   : > { %v1056_v18 = vpop.permute.xlu0 %1055  ;;  %v3785_v19 = vmul.f32 %v3777_v63, %v3781_v11  ;;  %v484_v20 = vpop.permute.xlu1 %483  ;;  %2776 = vmatpush.bf16.msra.mxu0 %v2767_v61  ;;  %v3863_v61 = vld [vmem:[#allocation2 + $0x4a] sm:$0xff] }
  0x89   : > { %v1209_v46 = vmul.f32 %v1056_v18, %v1017_v1  ;;  %v3787_v25 = vmul.f32 %v1056_v18, %v1019_v0  ;;  %v3790_v26 = vmul.f32 %v3683_v22, %v1056_v18  ;;  %v637_v29 = vmul.f32 %v484_v20, %v445_v3 }
  0x8a   : > { %5476 = vst [vmem:[#allocation13_spill] sm:$0xff] %v3785_v19  ;;  %v1463_v31 = vmul.f32 %v1431_v12, %v484_v20  ;;  %v3793_v37 = vmul.f32 %v484_v20, %v3779_v4 }
  0x8b   : > { %5477 = vst [vmem:[#allocation14_spill] sm:$0xff] %v3787_v25  ;;  %v1240_v39 = vpack.c.bf16 %v1209_v46, %v1208_v14  ;;  %v668_v48 = vpack.c.bf16 %v637_v29, %v636_v15  ;;  %v439_v29 = vld [vmem:[%s5345_s3 + $0xd8] sm:$0xff] }
  0x8c   : > { %5478 = vst [vmem:[#allocation15_spill] sm:$0xff] %v3790_v26  ;;  %v1494_v50 = vpack.c.bf16 %v1463_v31, %v1462_v30  ;;  %3134 = vmatmul.msk.bf16.gmra.mxu0 %vm246_vm1, %v3617_v43  ;;  %v405_v30 = vld [vmem:[%s5344_s2 + $0xc8] sm:$0xff]  ;;  %v438_v31 = vld [vmem:[%s5345_s3 + $0xd0] sm:$0xff] }
  0x8d   : > { %5479 = vst [vmem:[#allocation16_spill] sm:$0xff] %v3793_v37  ;;  %3081 = vmatmul.msk.bf16.vlgmr.msrb.gmra.mxu1 %vm246_vm1, %v668_v48  ;;  %3098 = vmatmul.msk.bf16.vlgmr.msrb.gmra.mxu2 %vm246_vm1, %v1240_v39  ;;  %v3854_v39 = vld [vmem:[#allocation2 + $0x62] sm:$0xff]  ;;  %v3856_v48 = vld [vmem:[#allocation2 + $0x72] sm:$0xff] }
  0x8e   : > { %3115 = vmatmul.msk.bf16.vlgmr.msrb.gmra.mxu3 %vm246_vm1, %v1494_v50  ;;  %598 = vperm.xlu2 %3315, %v404_v16   ;;  %v1210_v50 = vmul.f32 %v3652_v6, %v3737_v42  ;;  %v1211_v16 = vmul.f32 %v3681_v21, %v1019_v0  ;;  %v3875_v0 = vld [vmem:[#allocation2 + $0x40] sm:$0xff] }
  0x8f   : > { %1170 = vperm.xlu0 %3313, %v436_v54   ;;  %v3827_v43 = vpop.permute.xlu2 %1095  ;;  %1175 = vperm.xlu1 %3314, %v437_v56  }
  0x90   : > { %v3831_v1 = vmul.f32 %v3813_v57, %v3827_v43  ;;  %v3835_v3 = vmul.f32 %v3815_v58, %v3827_v43  ;;  %v489_v14 = vpop.permute.xlu0 %488  ;;  %v494_v15 = vpop.permute.xlu1 %493  ;;  %v1241_v40 = vpack.c.bf16 %v1211_v16, %v1210_v50 }
  0x91   : > { %v3838_v18 = vmul.f32 %v489_v14, %v3820_v60  ;;  %v3841_v20 = vmul.f32 %v3825_v62, %v494_v15  ;;  %v638_v54 = vmul.f32 %v1430_v10, %v489_v14  ;;  %v639_v56 = vmul.f32 %v1431_v12, %v494_v15 }
  0x92   : > { %5480 = vst [vmem:[#allocation17_spill] sm:$0xff] %v3831_v1  ;;  %v1464_v46 = vmul.f32 %v3741_v45, %v489_v14  ;;  %v1465_v27 = vmul.f32 %v494_v15, %v3779_v4  ;;  %v441_v15 = vld [vmem:[%s5345_s3 + $0xe8] sm:$0xff] }
  0x93   : > { %5481 = vst [vmem:[#allocation18_spill] sm:$0xff] %v3835_v3 }
  0x94   : > { %5482 = vst [vmem:[#allocation19_spill] sm:$0xff] %v3838_v18  ;;  %v1495_v28 = vpack.c.bf16 %v1465_v27, %v1464_v46  ;;  %v406_v18 = vld [vmem:[%s5344_s2 + $0xd0] sm:$0xff] }
  0x95   : > { %5483 = vst [vmem:[#allocation20_spill] sm:$0xff] %v3841_v20  ;;  %v3910_v46 = vld [vmem:[#allocation2 + $0x52] sm:$0xff] }
  0x96   : > { %1185 = vperm.xlu2 %3315, %v439_v29   ;;  %v3942_v29 = vpop.f32.mrf.mxu0 }
  0x97   : > { %603 = vperm.xlu0 %3313, %v405_v30   ;;  %v3861_v59 = vpop.permute.xlu2 %1100  ;;  %1180 = vperm.xlu1 %3314, %v438_v31   ;;  %v669_v30 = vpack.c.bf16 %v639_v56, %v638_v54  ;;  %v407_v54 = vld [vmem:[%s5344_s2 + $0xd8] sm:$0xff]  ;;  %v409_v31 = vld [vmem:[%s5344_s2 + $0xe8] sm:$0xff] }
  0x98   : > { %v3869_v51 = vmul.f32 %v3854_v39, %v3861_v59  ;;  %v3873_v6 = vmul.f32 %v3856_v48, %v3861_v59  ;;  %v1076_v21 = vpop.permute.xlu0 %1075  ;;  %v499_v42 = vpop.permute.xlu1 %498  ;;  %v3904_v56 = vld [vmem:[#allocation2 + $0x78] sm:$0xff] }
  0x99   : > { %v3878_v10 = vmul.f32 %v3679_v17, %v1076_v21  ;;  %v3881_v12 = vmul.f32 %v1076_v21, %v3863_v61  ;;  %v3884_v14 = vmul.f32 %v3875_v0, %v499_v42 }
  0x9a   : > { %5484 = vst [vmem:[#allocation21_spill] sm:$0xff] %v3869_v51 }
  0x9b   : > { %5485 = vst [vmem:[#allocation22_spill] sm:$0xff] %v3873_v6 }
  0x9c   : > { %5486 = vst [vmem:[#allocation23_spill] sm:$0xff] %v3878_v10  ;;  %3135 = vmatmul.msk.bf16.gmra.mxu0 %vm246_vm1, %v3572_v13 }
  0x9d   : > { %5487 = vst [vmem:[#allocation24_spill] sm:$0xff] %v3881_v12  ;;  %3082 = vmatmul.msk.bf16.gmra.mxu1 %vm246_vm1, %v669_v30  ;;  %3099 = vmatmul.msk.bf16.gmra.mxu2 %vm246_vm1, %v1241_v40 }
  0x9e   : > { %5488 = vst [vmem:[#allocation25_spill] sm:$0xff] %v3884_v14  ;;  %3116 = vmatmul.msk.bf16.gmra.mxu3 %vm246_vm1, %v1495_v28  ;;  %1190 = vperm.xlu2 %3315, %v440_v47   ;;  %v408_v14 = vld [vmem:[%s5344_s2 + $0xe0] sm:$0xff] }
  0x9f   : > { %608 = vperm.xlu0 %3313, %v406_v18   ;;  %v3908_v27 = vpop.permute.xlu2 %533  ;;  %613 = vperm.xlu1 %3314, %v407_v54   ;;  %v640_v18 = vmul.f32 %v3741_v45, %v499_v42  ;;  %v641_v45 = vmul.f32 %v3739_v44, %v3779_v4  ;;  %v411_v4 = vld [vmem:[%s5344_s2 + $0xf8] sm:$0xff] }
  0xa0   : > { %v3914_v13 = vmul.f32 %v3904_v56, %v3908_v27  ;;  %v1081_v50 = vpop.permute.xlu0 %1080  ;;  %v3916_v16 = vpop.permute.xlu1 %1085 }
  0xa1   : > { %v3919_v30 = vmul.f32 %v3710_v33, %v1081_v50  ;;  %v3922_v40 = vmul.f32 %v1081_v50, %v3910_v46  ;;  %v3926_v28 = vmul.f32 %v3916_v16, %v3863_v61  ;;  %v3930_v47 = vmul.f32 %v3813_v57, %v3916_v16 }
  0xa2   : > { %5489 = vst [vmem:[#allocation26_spill] sm:$0xff] %v3914_v13  ;;  %v1214_v1 = vmul.f32 %v3648_v5, %v1081_v50  ;;  %v642_v50 = vmul.f32 %v3781_v11, %v3820_v60  ;;  %v4126_v13 = vld [vmem:[#allocation2 + $0xb0] sm:$0xff] }
  0xa3   : > { %5490 = vst [vmem:[#allocation27_spill] sm:$0xff] %v3919_v30  ;;  %v1213_v30 = vmul.f32 %v3683_v22, %v1076_v21  ;;  %v1212_v22 = vmul.f32 %v3654_v7, %v3712_v34  ;;  %v1467_v21 = vmul.f32 %v3825_v62, %v3739_v44  ;;  %v4030_v7 = vld [vmem:[#allocation2 + $0x92] sm:$0xff] }
  0xa4   : > { %5491 = vst [vmem:[#allocation28_spill] sm:$0xff] %v3922_v40  ;;  %v410_v40 = vld [vmem:[%s5344_s2 + $0xf0] sm:$0xff] }
  0xa5   : > { %5492 = vst [vmem:[#allocation29_spill] sm:$0xff] %v3926_v28  ;;  %v1466_v28 = vmul.f32 %v499_v42, %v3820_v60  ;;  %v1242_v34 = vpack.c.bf16 %v1213_v30, %v1212_v22  ;;  %v3999_v30 = vld [vmem:[#allocation2 + $0x9a] sm:$0xff] }
  0xa6   : > { %5493 = vst [vmem:[#allocation30_spill] sm:$0xff] %v3930_v47  ;;  %623 = vperm.xlu2 %3315, %v409_v31   ;;  %v670_v31 = vpack.c.bf16 %v641_v45, %v640_v18  ;;  %v442_v47 = vld [vmem:[%s5345_s3 + $0xf0] sm:$0xff]  ;;  %v443_v18 = vld [vmem:[%s5345_s3 + $0xf8] sm:$0xff] }
  0xa7   : > { %1195 = vperm.xlu0 %3313, %v441_v15   ;;  %v3950_v54 = vpop.permute.xlu2 %538  ;;  %618 = vperm.xlu1 %3314, %v408_v14   ;;  %v1496_v44 = vpack.c.bf16 %v1467_v21, %v1466_v28  ;;  %v3997_v45 = vld [vmem:[#allocation2 + $0x8a] sm:$0xff]  ;;  %v4003_v28 = vpop.f32.mrf.mxu0  ;;  %5517 = vst [vmem:[#allocation54_spill] sm:$0xff] %v4126_v13 }
  0xa8   : > { %v3958_v10 = vmul.f32 %v3947_v49, %v3950_v54  ;;  %v514_v20 = vpop.permute.xlu0 %513  ;;  %v3960_v8 = vpop.permute.xlu1 %1090 }
  0xa9   : > { %v3965_v15 = vmul.f32 %v514_v20, %v3954_v35  ;;  %v3973_v42 = vmul.f32 %v3960_v8, %v3910_v46  ;;  %v3977_v14 = vmul.f32 %v3854_v39, %v3960_v8  ;;  %v643_v19 = vmul.f32 %v3825_v62, %v514_v20 }
  0xaa   : > { %5494 = vst [vmem:[#allocation31_spill] sm:$0xff] %v3958_v10  ;;  %v4219_v10 = vld [vmem:[#allocation2 + $0xd2] sm:$0xff] }
  0xab   : > { %5495 = vst [vmem:[#allocation32_spill] sm:$0xff] %v3965_v15  ;;  %v671_v25 = vpack.c.bf16 %v643_v19, %v642_v50 }
  0xac   : > { %5496 = vst [vmem:[#allocation33_spill] sm:$0xff] %v3973_v42  ;;  %3136 = vmatmul.msk.bf16.gmra.mxu0 %vm246_vm1, %v3608_v38  ;;  %v4007_v38 = vld [vmem:[#allocation2 + $0x60] sm:$0xff] }
  0xad   : > { %5497 = vst [vmem:[#allocation34_spill] sm:$0xff] %v3977_v14  ;;  %3083 = vmatmul.msk.bf16.gmra.mxu1 %vm246_vm1, %v670_v31  ;;  %3100 = vmatmul.msk.bf16.gmra.mxu2 %vm246_vm1, %v1242_v34  ;;  %v4032_v42 = vld [vmem:[#allocation2 + $0xa2] sm:$0xff]  ;;  %v1215_v14 = vmul.f32 %v3679_v17, %v3916_v16  ;;  %v4057_v17 = vld [vmem:[#allocation2 + $0x70] sm:$0xff] }
  0xae   : > { %3117 = vmatmul.msk.bf16.gmra.mxu3 %vm246_vm1, %v1496_v44  ;;  %628 = vperm.xlu2 %3315, %v410_v40   ;;  %v4017_v44 = vld [vmem:[#allocation2 + $0x68] sm:$0xff] }
  0xaf   : > { %1200 = vperm.xlu0 %3313, %v442_v47   ;;  %v4005_v22 = vpop.permute.xlu2 %1125  ;;  %1205 = vperm.xlu1 %3314, %v443_v18   ;;  %v1469_v18 = vmul.f32 %v3735_v41, %v514_v20  ;;  %v1243_v12 = vpack.c.bf16 %v1215_v14, %v1214_v1 }
  0xb0   : > { %v4011_v21 = vmul.f32 %v3997_v45, %v4005_v22  ;;  %v4015_v31 = vmul.f32 %v3999_v30, %v4005_v22  ;;  %v519_v34 = vpop.permute.xlu0 %518  ;;  %v524_v23 = vpop.permute.xlu1 %523 }
  0xb1   : > { %v4020_v40 = vmul.f32 %v519_v34, %v4007_v38  ;;  %v4023_v47 = vmul.f32 %v4017_v44, %v524_v23  ;;  %v644_v51 = vmul.f32 %v3875_v0, %v519_v34  ;;  %v1470_v50 = vmul.f32 %v3777_v63, %v519_v34 }
  0xb2   : > { %5498 = vst [vmem:[#allocation35_spill] sm:$0xff] %v4011_v21  ;;  %v4217_v21 = vld [vmem:[#allocation2 + $0xc2] sm:$0xff] }
  0xb3   : > { %5499 = vst [vmem:[#allocation36_spill] sm:$0xff] %v4015_v31 }
  0xb4   : > { %5500 = vst [vmem:[#allocation37_spill] sm:$0xff] %v4020_v40  ;;  %v4041_v40 = vld [vmem:[#allocation2 + $0x7a] sm:$0xff] }
  0xb5   : > { %5501 = vst [vmem:[#allocation38_spill] sm:$0xff] %v4023_v47 }
  0xb7   : > { %633 = vperm.xlu0 %3313, %v411_v4   ;;  %v4036_v15 = vpop.permute.xlu2 %1130  ;;  %v1468_v4 = vmul.f32 %v3875_v0, %v3781_v11  ;;  %v4084_v11 = vld [vmem:[#allocation2 + $0xa8] sm:$0xff] }
  0xb8   : > { %v4045_v47 = vmul.f32 %v4030_v7, %v4036_v15  ;;  %v4049_v3 = vmul.f32 %v4032_v42, %v4036_v15  ;;  %v4051_v5 = vpop.permute.xlu0 %1105  ;;  %v4053_v62 = vpop.permute.xlu1 %528  ;;  %5508 = vst [vmem:[#allocation45_spill] sm:$0xff] %v4084_v11 }
  0xb9   : > { %v4061_v20 = vmul.f32 %v3815_v58, %v4051_v5  ;;  %v4065_v16 = vmul.f32 %v4051_v5, %v4041_v40  ;;  %v4069_v55 = vpop.f32.mrf.mxu0  ;;  %v4073_v37 = vmul.f32 %v4057_v17, %v4053_v62  ;;  %v1497_v9 = vpack.c.bf16 %v1469_v18, %v1468_v4  ;;  %v4136_v4 = vld [vmem:[#allocation2 + $0x88] sm:$0xff] }
  0xba   : > { %5502 = vst [vmem:[#allocation39_spill] sm:$0xff] %v4045_v47  ;;  %v646_v31 = vmul.f32 %v3777_v63, %v4053_v62  ;;  %v1700_v47 = vld [vmem:[#allocation2 + $0x91] sm:$0xff] }
  0xbb   : > { %5503 = vst [vmem:[#allocation40_spill] sm:$0xff] %v4049_v3 }
  0xbc   : > { %5504 = vst [vmem:[#allocation41_spill] sm:$0xff] %v4061_v20  ;;  %3137 = vmatmul.msk.bf16.gmra.mxu0 %vm246_vm1, %v3643_v2  ;;  %v645_v20 = vmul.f32 %v3735_v41, %v524_v23 }
  0xbd   : > { %5505 = vst [vmem:[#allocation42_spill] sm:$0xff] %v4065_v16  ;;  %3084 = vmatmul.msk.bf16.gmra.mxu1 %vm246_vm1, %v671_v25  ;;  %3101 = vmatmul.msk.bf16.gmra.mxu2 %vm246_vm1, %v1243_v12  ;;  %v1216_v16 = vmul.f32 %v3710_v33, %v3960_v8  ;;  %v1217_v8 = vmul.f32 %v3827_v43, %v3863_v61 }
  0xbe   : > { %5506 = vst [vmem:[#allocation43_spill] sm:$0xff] %v4069_v55  ;;  %3118 = vmatmul.msk.bf16.gmra.mxu3 %vm246_vm1, %v1497_v9  ;;  %v672_v24 = vpack.c.bf16 %v645_v20, %v644_v51  ;;  %v1472_v43 = vmul.f32 %v4053_v62, %v4007_v38  ;;  %v4247_v62 = vld [vmem:[#allocation2 + $0xa0] sm:$0xff] }
  0xbf   : > { %5507 = vst [vmem:[#allocation44_spill] sm:$0xff] %v4073_v37  ;;  %v4088_v60 = vpop.permute.xlu2 %563  ;;  %v1244_v61 = vpack.c.bf16 %v1217_v8, %v1216_v16  ;;  %v4185_v16 = vld [vmem:[#allocation2 + $0x90] sm:$0xff]  ;;  %v4199_v8 = vld [vmem:[#allocation2 + $0x98] sm:$0xff] }
  0xc0   : > { %v4094_v19 = vmul.f32 %v4084_v11, %v4088_v60  ;;  %v4096_v1 = vpop.permute.xlu0 %1110  ;;  %v4098_v14 = vpop.permute.xlu1 %1115  ;;  %5540 = vst [vmem:[#allocation77_spill] sm:$0xff] %v4247_v62 }
  0xc1   : > { %v4102_v2 = vmul.f32 %v3856_v48, %v4096_v1  ;;  %v4106_v25 = vmul.f32 %v4096_v1, %v4090_v52  ;;  %v4108_v9 = vpop.f32.mrf.mxu0  ;;  %v4112_v12 = vmul.f32 %v4098_v14, %v4041_v40  ;;  %v4116_v18 = vmul.f32 %v3997_v45, %v4098_v14 }
  0xc2   : > { %5509 = vst [vmem:[#allocation46_spill] sm:$0xff] %v4094_v19 }
  0xc3   : > { %5510 = vst [vmem:[#allocation47_spill] sm:$0xff] %v4102_v2  ;;  %v4124_v37 = vpop.f32.mrf.mxu2  ;;  %v1471_v2 = vmul.f32 %v524_v23, %v3954_v35 }
  0xc4   : > { %5511 = vst [vmem:[#allocation48_spill] sm:$0xff] %v4106_v25  ;;  %v4122_v36 = vpop.f32.mrf.mxu1 }
  0xc5   : > { %5512 = vst [vmem:[#allocation49_spill] sm:$0xff] %v4108_v9  ;;  %v1498_v53 = vpack.c.bf16 %v1471_v2, %v1470_v50  ;;  %v1221_v9 = vmul.f32 %v3815_v58, %v4098_v14  ;;  %v1474_v58 = vmul.f32 %v4057_v17, %v3950_v54 }
  0xc6   : > { %5513 = vst [vmem:[#allocation50_spill] sm:$0xff] %v4112_v12 }
  0xc7   : > { %5514 = vst [vmem:[#allocation51_spill] sm:$0xff] %v4116_v18  ;;  %v4130_v6 = vpop.permute.xlu2 %568  ;;  %v4150_v18 = vpop.f32.mrf.mxu3 }
  0xc8   : > { %5515 = vst [vmem:[#allocation52_spill] sm:$0xff] %v4122_v36  ;;  %v4140_v12 = vmul.f32 %v4126_v13, %v4130_v6  ;;  %v4142_v25 = vpop.permute.xlu0 %543  ;;  %v4144_v0 = vpop.permute.xlu1 %1120  ;;  %v4175_v36 = vld [vmem:[#allocation2 + $0xba] sm:$0xff]  ;;  %v1218_v13 = vmul.f32 %v3861_v59, %v3910_v46 }
  0xc9   : > { %5516 = vst [vmem:[#allocation53_spill] sm:$0xff] %v4124_v37  ;;  %v4148_v41 = vmul.f32 %v4142_v25, %v4136_v4  ;;  %v4154_v23 = vpop.f32.mrf.mxu0  ;;  %v4158_v33 = vmul.f32 %v4144_v0, %v4090_v52  ;;  %v4162_v34 = vmul.f32 %v4030_v7, %v4144_v0  ;;  %v649_v3 = vmul.f32 %v4017_v44, %v4142_v25 }
  0xca   : > { %5518 = vst [vmem:[#allocation55_spill] sm:$0xff] %v4130_v6  ;;  %v1475_v55 = vmul.f32 %v3904_v56, %v4142_v25 }
  0xcb   : > { %5519 = vst [vmem:[#allocation56_spill] sm:$0xff] %v4140_v12  ;;  %v4179_v51 = vpop.f32.mrf.mxu2 }
  0xcc   : > { %5520 = vst [vmem:[#allocation57_spill] sm:$0xff] %v4148_v41  ;;  %v4170_v26 = vpop.f32.mrf.mxu1  ;;  %3138 = vmatmul.msk.bf16.gmra.mxu0 %vm246_vm1, %v3707_v32  ;;  %v1698_v41 = vld [vmem:[#allocation2 + $0x81] sm:$0xff] }
  0xcd   : > { %5521 = vst [vmem:[#allocation58_spill] sm:$0xff] %v4150_v18  ;;  %3085 = vmatmul.msk.bf16.gmra.mxu1 %vm246_vm1, %v672_v24  ;;  %3102 = vmatmul.msk.bf16.gmra.mxu2 %vm246_vm1, %v1244_v61 }
  0xce   : > { %5522 = vst [vmem:[#allocation59_spill] sm:$0xff] %v4154_v23  ;;  %v4177_v23 = vld [vmem:[#allocation2 + $0xca] sm:$0xff]  ;;  %3119 = vmatmul.msk.bf16.gmra.mxu3 %vm246_vm1, %v1498_v53 }
  0xcf   : > { %5523 = vst [vmem:[#allocation60_spill] sm:$0xff] %v4158_v33  ;;  %v4183_v20 = vpop.permute.xlu2 %1155  ;;  %v4205_v61 = vpop.f32.mrf.mxu3 }
  0xd0   : > { %5524 = vst [vmem:[#allocation61_spill] sm:$0xff] %v4162_v34  ;;  %v4189_v2 = vmul.f32 %v4175_v36, %v4183_v20  ;;  %v4193_v24 = vmul.f32 %v4177_v23, %v4183_v20  ;;  %v4195_v32 = vpop.permute.xlu0 %548  ;;  %v4197_v50 = vpop.permute.xlu1 %553  ;;  %v1699_v34 = vld [vmem:[#allocation2 + $0x89] sm:$0xff] }
  0xd1   : > { %5525 = vst [vmem:[#allocation62_spill] sm:$0xff] %v4170_v26  ;;  %v4203_v53 = vmul.f32 %v4195_v32, %v4185_v16  ;;  %v4207_v18 = vpop.f32.mrf.mxu0  ;;  %v4211_v37 = vmul.f32 %v4199_v8, %v4197_v50  ;;  %v1219_v26 = vmul.f32 %v3813_v57, %v4051_v5  ;;  %v647_v57 = vmul.f32 %v3908_v27, %v3954_v35 }
  0xd2   : > { %5526 = vst [vmem:[#allocation63_spill] sm:$0xff] %v4177_v23  ;;  %v1723_v5 = vpack.c.bf16 %v1699_v34, %v1698_v41  ;;  %v1473_v35 = vmul.f32 %v4017_v44, %v3908_v27  ;;  %v3299_v27 = vld [vmem:[%s3471_s26 + $0x78] sm:$0xff]   ;;  %v648_v44 = vmul.f32 %v3950_v54, %v4007_v38  ;;  %s3219_s26 = sshll.u32 %s5795_s19, 8 }
  0xd3   : > { %5527 = vst [vmem:[#allocation64_spill] sm:$0xff] %v4179_v51  ;;  %v4225_v51 = vpop.f32.mrf.mxu2  ;;  %v673_v11 = vpack.c.bf16 %v647_v57, %v646_v31  ;;  %v1245_v59 = vpack.c.bf16 %v1219_v26, %v1218_v13  ;;  %v4287_v26 = vld [vmem:[#allocation2 + $0xb2] sm:$0xff]  ;;  %v3284_v19 = vunpack.c.h.bf16 %v3299_v27  ;;  %s5087_s14 = scalar_lea.vmem %s5346_s4, %s3219_s26  ;;  %s5094_s16 = scalar_lea.vmem %s5347_s5, %s3219_s26 }
  0xd4   : > { %5528 = vst [vmem:[#allocation65_spill] sm:$0xff] %v4183_v20  ;;  %v4215_v33 = vpop.f32.mrf.mxu1  ;;  %v1499_v46 = vpack.c.bf16 %v1473_v35, %v1472_v43 }
  0xd5   : > { %5529 = vst [vmem:[#allocation66_spill] sm:$0xff] %v4189_v2  ;;  %v1476_v2 = vmul.f32 %v3947_v49, %v4195_v32 }
  0xd6   : > { %5530 = vst [vmem:[#allocation67_spill] sm:$0xff] %v4193_v24 }
  0xd7   : > { %5531 = vst [vmem:[#allocation68_spill] sm:$0xff] %v4203_v53  ;;  %v4231_v53 = vld [vmem:[#allocation2 + $0xaa] sm:$0xff] }
  0xd8   : > { %5532 = vst [vmem:[#allocation69_spill] sm:$0xff] %v4205_v61  ;;  %v4223_v61 = vpop.permute.xlu2 %1160  ;;  %v4241_v63 = vpop.permute.xlu0 %1135 }
  0xd9   : > { %5533 = vst [vmem:[#allocation70_spill] sm:$0xff] %v4207_v18  ;;  %v4243_v18 = vpop.permute.xlu1 %558  ;;  %v4255_v20 = vmul.f32 %v4241_v63, %v4231_v53  ;;  %v4263_v41 = vpop.f32.mrf.mxu0 }
  0xda   : > { %5534 = vst [vmem:[#allocation71_spill] sm:$0xff] %v4211_v37  ;;  %v4235_v37 = vmul.f32 %v4217_v21, %v4223_v61  ;;  %v4267_v34 = vmul.f32 %v4247_v62, %v4243_v18  ;;  %v3283_v62 = vunpack.c.l.bf16 %v3299_v27 }
  0xdb   : > { %5535 = vst [vmem:[#allocation72_spill] sm:$0xff] %v4215_v33  ;;  %v4239_v33 = vmul.f32 %v4219_v10, %v4223_v61  ;;  %v4305_v35 = vpop.f32.mrf.mxu2 }
  0xdc   : > { %5536 = vst [vmem:[#allocation73_spill] sm:$0xff] %v4223_v61  ;;  %v4257_v61 = vpop.f32.mrf.mxu3  ;;  %v4275_v6 = vpop.f32.mrf.mxu1  ;;  %3139 = vmatmul.msk.bf16.gmra.mxu0 %vm246_vm1, %v1723_v5 }
  0xdd   : > { %5537 = vst [vmem:[#allocation74_spill] sm:$0xff] %v4225_v51  ;;  %v4251_v51 = vmul.f32 %v3999_v30, %v4241_v63  ;;  %3086 = vmatmul.msk.bf16.gmra.mxu1 %vm246_vm1, %v673_v11  ;;  %3103 = vmatmul.msk.bf16.gmra.mxu2 %vm246_vm1, %v1245_v59 }
  0xde   : > { %5538 = vst [vmem:[#allocation75_spill] sm:$0xff] %v4235_v37  ;;  %3120 = vmatmul.msk.bf16.gmra.mxu3 %vm246_vm1, %v1499_v46  ;;  %v1704_v37 = vld [vmem:[#allocation2 + $0xb1] sm:$0xff] }
  0xdf   : > { %5539 = vst [vmem:[#allocation76_spill] sm:$0xff] %v4239_v33  ;;  %v653_v33 = vmul.f32 %v4088_v60, %v4136_v4 }
  0xe0   : > { %5541 = vst [vmem:[#allocation78_spill] sm:$0xff] %v4251_v51  ;;  %v4284_v31 = vpop.permute.xlu2 %593  ;;  %v4293_v43 = vpop.permute.xlu0 %1140  ;;  %v1701_v51 = vld [vmem:[#allocation2 + $0x99] sm:$0xff] }
  0xe1   : > { %5542 = vst [vmem:[#allocation79_spill] sm:$0xff] %v4255_v20  ;;  %v4295_v11 = vpop.permute.xlu1 %1145  ;;  %v4299_v57 = vmul.f32 %v4032_v42, %v4293_v43  ;;  %v4303_v5 = vmul.f32 %v4293_v43, %v4287_v26  ;;  %v4327_v20 = vld [vmem:[#allocation2 + $0xe0] sm:$0xff] }
  0xe2   : > { %5543 = vst [vmem:[#allocation80_spill] sm:$0xff] %v4257_v61  ;;  %v4311_v59 = vmul.f32 %v4295_v11, %v4231_v53  ;;  %v4315_v46 = vmul.f32 %v4175_v36, %v4295_v11 }
  0xe3   : > { %5544 = vst [vmem:[#allocation81_spill] sm:$0xff] %v4263_v41  ;;  %v4280_v41 = vld [vmem:[#allocation2 + $0xd8] sm:$0xff] }
  0xe4   : > { %5545 = vst [vmem:[#allocation82_spill] sm:$0xff] %v4267_v34  ;;  %v4291_v13 = vmul.f32 %v4280_v41, %v4284_v31  ;;  %v4317_v61 = vpop.f32.mrf.mxu3  ;;  %v4323_v34 = vpop.f32.mrf.mxu1 }
  0xe5   : > { %5546 = vst [vmem:[#allocation83_spill] sm:$0xff] %v4275_v6  ;;  %v1500_v6 = vpack.c.bf16 %v1475_v55, %v1474_v58 }
  0xe6   : > { %5547 = vst [vmem:[#allocation84_spill] sm:$0xff] %v4280_v41 }
  0xe7   : > { %378 = vst.msk [vmem:[#allocation2 + $0x101] sm:$0xff] %vm246_vm1, %v3283_v62  ;;  %v4307_v62 = vpop.f32.mrf.mxu0 }
  0xe8   : > { %5548 = vst [vmem:[#allocation85_spill] sm:$0xff] %v4291_v13  ;;  %v4338_v27 = vpop.permute.xlu0 %573  ;;  %v1224_v13 = vmul.f32 %v4036_v15, %v4090_v52 }
  0xe9   : > { %5549 = vst [vmem:[#allocation86_spill] sm:$0xff] %v4299_v57  ;;  %v4336_v57 = vld [vmem:[#allocation2 + $0xb8] sm:$0xff] }
  0xea   : > { %5550 = vst [vmem:[#allocation87_spill] sm:$0xff] %v4303_v5  ;;  %v1724_v5 = vpack.c.bf16 %v1701_v51, %v1700_v47  ;;  %v4364_v47 = vpop.f32.mrf.mxu2  ;;  %v674_v51 = vpack.c.bf16 %v649_v3, %v648_v44  ;;  %v4382_v44 = vld [vmem:[#allocation2 + $0xea] sm:$0xff] }
  0xeb   : > { %5551 = vst [vmem:[#allocation88_spill] sm:$0xff] %v4305_v35 }
  0xec   : > { %5552 = vst [vmem:[#allocation89_spill] sm:$0xff] %v4307_v62  ;;  %v4372_v35 = vpop.f32.mrf.mxu3  ;;  %3140 = vmatmul.msk.bf16.gmra.mxu0 %vm246_vm1, %v1724_v5  ;;  %v4380_v3 = vpop.f32.mrf.mxu1 }
  0xed   : > { %5553 = vst [vmem:[#allocation90_spill] sm:$0xff] %v4311_v59  ;;  %v4340_v59 = vpop.permute.xlu1 %1150  ;;  %3087 = vmatmul.msk.bf16.gmra.mxu1 %vm246_vm1, %v674_v51 }
  0xee   : > { %5554 = vst [vmem:[#allocation91_spill] sm:$0xff] %v4315_v46  ;;  %v4360_v25 = vmul.f32 %v4340_v59, %v4287_v26  ;;  %v4370_v54 = vmul.f32 %v4217_v21, %v4340_v59  ;;  %3121 = vmatmul.msk.bf16.gmra.mxu3 %vm246_vm1, %v1500_v6  ;;  %v4384_v46 = vld [vmem:[#allocation2 + $0xfa] sm:$0xff]  ;;  %v4400_v6 = vld [vmem:[#allocation2 + $0xc8] sm:$0xff] }
  0xef   : > { %5555 = vst [vmem:[#allocation92_spill] sm:$0xff] %v4317_v61  ;;  %v1220_v61 = vmul.f32 %v3854_v39, %v4096_v1  ;;  %v4348_v39 = vmul.f32 %v4338_v27, %v4336_v57  ;;  %v4352_v1 = vpop.f32.mrf.mxu0 }
  0xf0   : > { %5556 = vst [vmem:[#allocation93_spill] sm:$0xff] %v4323_v34  ;;  %v4388_v55 = vpop.permute.xlu0 %578 }
  0xf1   : > { %5557 = vst [vmem:[#allocation94_spill] sm:$0xff] %v4327_v20  ;;  %v1246_v34 = vpack.c.bf16 %v1221_v9, %v1220_v61 }
  0xf2   : > { %379 = vst.msk [vmem:[#allocation2 + $0x109] sm:$0xff] %vm246_vm1, %v3284_v19  ;;  %v4344_v19 = vpop.permute.xlu2 %598  ;;  %v4416_v12 = vpop.f32.mrf.mxu2 }
  0xf3   : > { %5558 = vst [vmem:[#allocation95_spill] sm:$0xff] %v4344_v19  ;;  %v4356_v14 = vmul.f32 %v4327_v20, %v4344_v19  ;;  %3104 = vmatmul.msk.bf16.gmra.mxu2 %vm246_vm1, %v1246_v34 }
  0xf4   : > { %5559 = vst [vmem:[#allocation96_spill] sm:$0xff] %v4348_v39  ;;  %v1702_v39 = vld [vmem:[#allocation2 + $0xa1] sm:$0xff]  ;;  %v4418_v24 = vpop.f32.mrf.mxu3  ;;  %v4438_v20 = vpop.f32.mrf.mxu1 }
  0xf5   : > { %5560 = vst [vmem:[#allocation97_spill] sm:$0xff] %v4356_v14  ;;  %v4390_v9 = vpop.permute.xlu1 %583  ;;  %v1226_v14 = vmul.f32 %v4030_v7, %v4293_v43 }
  0xf6   : > { %5561 = vst [vmem:[#allocation98_spill] sm:$0xff] %v4360_v25  ;;  %v4386_v25 = vld [vmem:[#allocation2 + $0xc0] sm:$0xff]  ;;  %v4412_v38 = vmul.f32 %v4400_v6, %v4390_v9 }
  0xf7   : > { %5562 = vst [vmem:[#allocation99_spill] sm:$0xff] %v4364_v47  ;;  %v4396_v5 = vmul.f32 %v4388_v55, %v4386_v25  ;;  %v4398_v34 = vpop.f32.mrf.mxu0  ;;  %v651_v47 = vmul.f32 %v3904_v56, %v4197_v50 }
  0xf8   : > { %5563 = vst [vmem:[#allocation100_spill] sm:$0xff] %v4370_v54  ;;  %v1703_v54 = vld [vmem:[#allocation2 + $0xa9] sm:$0xff] }
  0xf9   : > { %5564 = vst [vmem:[#allocation101_spill] sm:$0xff] %v4372_v35  ;;  %v650_v35 = vmul.f32 %v4057_v17, %v4195_v32  ;;  %v1725_v17 = vpack.c.bf16 %v1703_v54, %v1702_v39  ;;  %v1223_v32 = vmul.f32 %v4005_v22, %v4041_v40  ;;  %v4458_v54 = vld [vmem:[#allocation2 + $0xd0] sm:$0xff] }
  0xfa   : > { %5565 = vst [vmem:[#allocation102_spill] sm:$0xff] %v4380_v3  ;;  %v4392_v61 = vpop.permute.xlu2 %1185  ;;  %v4424_v3 = vld [vmem:[#allocation2 + $0xf2] sm:$0xff] }
  0xfb   : > { %5566 = vst [vmem:[#allocation103_spill] sm:$0xff] %v4384_v46  ;;  %v4404_v58 = vmul.f32 %v4382_v44, %v4392_v61  ;;  %v4408_v51 = vmul.f32 %v4384_v46, %v4392_v61  ;;  %v675_v41 = vpack.c.bf16 %v651_v47, %v650_v35  ;;  %v4476_v35 = vld [vmem:[#allocation2 + $0x108] sm:$0xff] }
  0xfc   : > { %5567 = vst [vmem:[#allocation104_spill] sm:$0xff] %v4392_v61  ;;  %v1222_v61 = vmul.f32 %v3856_v48, %v4144_v0  ;;  %3141 = vmatmul.msk.bf16.gmra.mxu0 %vm246_vm1, %v1725_v17  ;;  %v4478_v47 = vpop.f32.mrf.mxu3 }
  0xfd   : > { %5568 = vst [vmem:[#allocation105_spill] sm:$0xff] %v4396_v5  ;;  %v1477_v5 = vmul.f32 %v4197_v50, %v4136_v4  ;;  %3088 = vmatmul.msk.bf16.gmra.mxu1 %vm246_vm1, %v675_v41  ;;  %v4486_v41 = vld [vmem:[#allocation2 + $0xe2] sm:$0xff] }
  0xfe   : > { %5569 = vst [vmem:[#allocation106_spill] sm:$0xff] %v4404_v58  ;;  %v1247_v22 = vpack.c.bf16 %v1223_v32, %v1222_v61  ;;  %v4494_v32 = vpop.f32.mrf.mxu1 }
  0xff   : > { %5570 = vst [vmem:[#allocation107_spill] sm:$0xff] %v4408_v51  ;;  %v4452_v50 = vpop.f32.mrf.mxu0  ;;  %v1501_v40 = vpack.c.bf16 %v1477_v5, %v1476_v2 }
 0x100   : > { %5571 = vst [vmem:[#allocation108_spill] sm:$0xff] %v4412_v38  ;;  %v4432_v38 = vld [vmem:[#allocation2 + $0xda] sm:$0xff] }
 0x101   : > { %5572 = vst [vmem:[#allocation109_spill] sm:$0xff] %v4416_v12  ;;  %v4436_v12 = vpop.permute.xlu1 %588  ;;  %3122 = vmatmul.msk.bf16.gmra.mxu3 %vm246_vm1, %v1501_v40 }
 0x102   : > { %5573 = vst [vmem:[#allocation110_spill] sm:$0xff] %v4418_v24  ;;  %v4434_v24 = vpop.permute.xlu0 %1165  ;;  %v4440_v56 = vpop.permute.xlu2 %1190  ;;  %v4466_v62 = vmul.f32 %v4458_v54, %v4436_v12 }
 0x103   : > { %5574 = vst [vmem:[#allocation111_spill] sm:$0xff] %v4424_v3  ;;  %v4444_v48 = vmul.f32 %v4177_v23, %v4434_v24  ;;  %v4448_v0 = vmul.f32 %v4434_v24, %v4432_v38  ;;  %v4456_v39 = vmul.f32 %v4424_v3, %v4440_v56  ;;  %3105 = vmatmul.msk.bf16.gmra.mxu2 %vm246_vm1, %v1247_v22 }
 0x104   : > { %5575 = vst [vmem:[#allocation112_spill] sm:$0xff] %v4438_v20  ;;  %v4474_v20 = vpop.f32.mrf.mxu2 }
 0x105   : > { %5576 = vst [vmem:[#allocation113_spill] sm:$0xff] %v4440_v56 }
 0x106   : > { %5577 = vst [vmem:[#allocation114_spill] sm:$0xff] %v4444_v48  ;;  %v1705_v48 = vld [vmem:[#allocation2 + $0xb9] sm:$0xff] }
 0x107   : > { %5578 = vst [vmem:[#allocation115_spill] sm:$0xff] %v4448_v0  ;;  %v4484_v61 = vpop.f32.mrf.mxu0  ;;  %v1225_v0 = vmul.f32 %v3997_v45, %v4241_v63  ;;  %v4532_v45 = vld [vmem:[#allocation2 + $0xe8] sm:$0xff] }
 0x108   : > { %5579 = vst [vmem:[#allocation116_spill] sm:$0xff] %v4456_v39 }
 0x109   : > { %5580 = vst [vmem:[#allocation117_spill] sm:$0xff] %v4466_v62  ;;  %v4492_v17 = vpop.permute.xlu1 %1175  ;;  %v1248_v4 = vpack.c.bf16 %v1225_v0, %v1224_v13 }
 0x10a   : > { %5581 = vst [vmem:[#allocation118_spill] sm:$0xff] %v4474_v20  ;;  %v4480_v19 = vpop.permute.xlu2 %623  ;;  %v4482_v2 = vpop.permute.xlu0 %1170  ;;  %v4506_v23 = vmul.f32 %v4492_v17, %v4432_v38  ;;  %v4510_v62 = vmul.f32 %v4382_v44, %v4492_v17  ;;  %v1478_v20 = vmul.f32 %v4243_v18, %v4185_v16 }
 0x10b   : > { %5582 = vst [vmem:[#allocation119_spill] sm:$0xff] %v4476_v35  ;;  %v4490_v5 = vmul.f32 %v4476_v35, %v4480_v19  ;;  %v4498_v22 = vmul.f32 %v4219_v10, %v4482_v2  ;;  %v4502_v40 = vmul.f32 %v4482_v2, %v4486_v41  ;;  %v936_v15 = vpop.f32.mrf.mxu1 }
 0x10c   : > { %5583 = vst [vmem:[#allocation120_spill] sm:$0xff] %v4478_v47  ;;  %v652_v47 = vmul.f32 %v3947_v49, %v4243_v18  ;;  %v4522_v35 = vpop.f32.mrf.mxu2  ;;  %v1479_v49 = vmul.f32 %v4199_v8, %v4088_v60 }
 0x10d   : > { %5584 = vst [vmem:[#allocation121_spill] sm:$0xff] %v4480_v19 }
 0x10e   : > { %5585 = vst [vmem:[#allocation122_spill] sm:$0xff] %v4486_v41 }
 0x10f   : > { %5586 = vst [vmem:[#allocation123_spill] sm:$0xff] %v4490_v5 }
 0x110   : > { %5587 = vst [vmem:[#allocation124_spill] sm:$0xff] %v4494_v32  ;;  %v1726_v32 = vpack.c.bf16 %v1705_v48, %v1704_v37  ;;  %v4538_v37 = vpop.f32.mrf.mxu3  ;;  %v676_v48 = vpack.c.bf16 %v653_v33, %v652_v47  ;;  %v937_v33 = vadd.f32 %v936_v15, %v3942_v29 }
 0x111   : > { %5588 = vst [vmem:[#allocation125_spill] sm:$0xff] %v4498_v22  ;;  %v4530_v22 = vpop.f32.mrf.mxu0  ;;  %v4534_v63 = vpop.permute.xlu1 %1180 }
 0x112   : > { %5589 = vst [vmem:[#allocation126_spill] sm:$0xff] %v4502_v40  ;;  %v4524_v19 = vpop.permute.xlu0 %603  ;;  %v4546_v52 = vmul.f32 %v4534_v63, %v4486_v41  ;;  %v1502_v40 = vpack.c.bf16 %v1479_v49, %v1478_v20  ;;  %3142 = vmatmul.msk.bf16.gmra.mxu0 %vm246_vm1, %v1726_v32  ;;  %3089 = vmatmul.msk.bf16.gmra.mxu1 %vm246_vm1, %v676_v48  ;;  %v4563_v20 = vld [vmem:[#allocation2 + $0xf0] sm:$0xff]  ;;  %v4569_v32 = vld [vmem:[#allocation2 + $0xf8] sm:$0xff] }
 0x113   : > { %5590 = vst [vmem:[#allocation127_spill] sm:$0xff] %v4506_v23  ;;  %v4542_v18 = vmul.f32 %v4524_v19, %v4532_v45  ;;  %v4550_v23 = vmul.f32 %v4424_v3, %v4534_v63  ;;  %3106 = vmatmul.msk.bf16.gmra.mxu2 %vm246_vm1, %v1248_v4  ;;  %v938_v15 = vpop.f32.mrf.mxu1 }
 0x114   : > { %5591 = vst [vmem:[#allocation128_spill] sm:$0xff] %v4510_v62  ;;  %3123 = vmatmul.msk.bf16.gmra.mxu3 %vm246_vm1, %v1502_v40  ;;  %v1318_v0 = vpop.f32.mrf.mxu2 }
 0x115   : > { %5592 = vst [vmem:[#allocation129_spill] sm:$0xff] %v4522_v35  ;;  %v1398_v4 = vadd.f32 %v1318_v0, %v937_v33  ;;  %v1227_v33 = vmul.f32 %v3999_v30, %v4295_v11  ;;  %v2664_v0 = vld [vmem:[#allocation2 + $0x102] sm:$0xff] }
 0x116   : > { %5593 = vst [vmem:[#allocation130_spill] sm:$0xff] %v4538_v37  ;;  %v1706_v37 = vld [vmem:[#allocation2 + $0xc1] sm:$0xff]  ;;  %v4602_v30 = vmul.f32 %v2664_v0, %v4440_v56 }
 0x117   : > { %5594 = vst [vmem:[#allocation131_spill] sm:$0xff] %v4542_v18  ;;  %v2665_v18 = vld [vmem:[#allocation2 + $0x10a] sm:$0xff]  ;;  %v4606_v11 = vld [vmem:[#allocation2 + $0x100] sm:$0xff] }
 0x118   : > { %5595 = vst [vmem:[#allocation132_spill] sm:$0xff] %v4546_v52  ;;  %v1572_v29 = vpop.f32.mrf.mxu3  ;;  %v1707_v52 = vld [vmem:[#allocation2 + $0xc9] sm:$0xff] }
 0x119   : > { %5596 = vst [vmem:[#allocation133_spill] sm:$0xff] %v4550_v23  ;;  %v4567_v47 = vpop.f32.mrf.mxu0  ;;  %v4575_v48 = vpop.permute.xlu1 %613  ;;  %v1652_v62 = vadd.f32 %v1572_v29, %v1398_v4  ;;  %v655_v23 = vmul.f32 %v4199_v8, %v4338_v27  ;;  %v939_v4 = vadd.f32 %v938_v15, %v4003_v28  ;;  %v5601_v29 = vld [vmem:[#allocation55_spill] sm:$0xff]  ;;  %v1249_v15 = vpack.c.bf16 %v1227_v33, %v1226_v14  ;;  %v5610_v14 = vld [vmem:[#allocation49_spill] sm:$0xff] }
 0x11a   : > { %v4565_v13 = vpop.permute.xlu0 %608  ;;  %5597 = vst [vmem:[#allocation134_spill] sm:$0xff] %v4569_v32  ;;  %v4579_v40 = vmul.f32 %v4569_v32, %v4575_v48  ;;  %v654_v60 = vmul.f32 %v5601_v29, %v4185_v16  ;;  %v5606_v33 = vld [vmem:[#allocation43_spill] sm:$0xff] }
 0x11b   : > { %v4573_v49 = vmul.f32 %v4565_v13, %v4563_v20  ;;  %v4584_v58 = vadd.f32 %v4352_v1, %v1652_v62  ;;  %v4597_v1 = vpack.c.bf16 %v1707_v52, %v1706_v37  ;;  %v5604_v37 = vld [vmem:[#allocation77_spill] sm:$0xff]  ;;  %v941_v35 = vpop.f32.mrf.mxu1 }
 0x11c   : > { %5599 = vst [vmem:[#allocation136_spill] sm:$0xff] %v4579_v40  ;;  %v1320_v7 = vpop.f32.mrf.mxu2  ;;  %v1480_v52 = vmul.f32 %v5604_v37, %v5601_v29  ;;  %v677_v3 = vpack.c.bf16 %v655_v23, %v654_v60  ;;  %v2666_v60 = vld [vmem:[#allocation2 + $0x112] sm:$0xff] }
 0x11d   : > { %5598 = vst [vmem:[#allocation135_spill] sm:$0xff] %v4573_v49  ;;  %v5602_v49 = vld [vmem:[#allocation45_spill] sm:$0xff] }
 0x11e   : > { %5600 = vst [vmem:[#allocation137_spill] sm:$0xff] %v4584_v58  ;;  %v1481_v62 = vmul.f32 %v5602_v49, %v4338_v27  ;;  %v1399_v27 = vadd.f32 %v1320_v7, %v939_v4  ;;  %v942_v4 = vadd.f32 %v941_v35, %v5606_v33 }
 0x120   : > { %v1574_v58 = vpop.f32.mrf.mxu3  ;;  %v1503_v41 = vpack.c.bf16 %v1481_v62, %v1480_v52 }
 0x121   : > { %v4604_v43 = vpop.f32.mrf.mxu0  ;;  %v4615_v8 = vpop.permute.xlu1 %618  ;;  %v1653_v56 = vadd.f32 %v1574_v58, %v1399_v27  ;;  %v2667_v58 = vld [vmem:[#allocation2 + $0x11a] sm:$0xff] }
 0x122   : > { %v4599_v40 = vpop.permute.xlu0 %1195  ;;  %v4621_v51 = vmul.f32 %v4606_v11, %v4615_v8  ;;  %3143 = vmatmul.msk.bf16.gmra.mxu0 %vm246_vm1, %v4597_v1  ;;  %3090 = vmatmul.msk.bf16.gmra.mxu1 %vm246_vm1, %v677_v3 }
 0x123   : > { %v4610_v28 = vmul.f32 %v4384_v46, %v4599_v40  ;;  %v4613_v16 = vmul.f32 %v2665_v18, %v4599_v40  ;;  %3107 = vmatmul.msk.bf16.gmra.mxu2 %vm246_vm1, %v1249_v15  ;;  %v4634_v23 = vadd.f32 %v4398_v34, %v1653_v56  ;;  %v943_v15 = vpop.f32.mrf.mxu1  ;;  %v1709_v46 = vld [vmem:[#allocation2 + $0xd9] sm:$0xff] }
 0x124   : > { %5605 = vst [vmem:[#allocation45_spill] sm:$0xff] %v4621_v51  ;;  %3124 = vmatmul.msk.bf16.gmra.mxu3 %vm246_vm1, %v1503_v41  ;;  %v1323_v62 = vpop.f32.mrf.mxu2 }
 0x125   : > { %5603 = vst [vmem:[#allocation55_spill] sm:$0xff] %v4610_v28  ;;  %v1400_v34 = vadd.f32 %v1323_v62, %v942_v4  ;;  %v4663_v4 = vpop.permute.xlu2 %628  ;;  %v2191_v62 = vld [vmem:[#allocation2 + $0x118] sm:$0xff] }
 0x128   : > { %v1577_v41 = vpop.f32.mrf.mxu3 }
 0x129   : > { %v4640_v7 = vpop.f32.mrf.mxu0  ;;  %v4648_v52 = vpop.permute.xlu1 %1205  ;;  %v1654_v33 = vadd.f32 %v1577_v41, %v1400_v34  ;;  %v656_v34 = vmul.f32 %v5604_v37, %v4388_v55  ;;  %v657_v41 = vmul.f32 %v5602_v49, %v4390_v9 }
 0x12a   : > { %v4638_v29 = vpop.permute.xlu0 %1200  ;;  %v4651_v56 = vmul.f32 %v2665_v18, %v4648_v52  ;;  %v4654_v35 = vmul.f32 %v2667_v58, %v4648_v52  ;;  %v2190_v18 = vld [vmem:[#allocation2 + $0x110] sm:$0xff]  ;;  %v1228_v58 = vmul.f32 %v4032_v42, %v4340_v59  ;;  %v5612_v42 = vld [vmem:[#allocation65_spill] sm:$0xff] }
 0x12b   : > { %v4643_v27 = vmul.f32 %v2664_v0, %v4638_v29  ;;  %v4646_v3 = vmul.f32 %v2666_v60, %v4638_v29  ;;  %v1708_v60 = vld [vmem:[#allocation2 + $0xd1] sm:$0xff]  ;;  %v4661_v32 = vadd.f32 %v4452_v50, %v1654_v33  ;;  %v944_v0 = vadd.f32 %v943_v15, %v5610_v14  ;;  %v946_v39 = vpop.f32.mrf.mxu1 }
 0x12c   : > { %5609 = vst [vmem:[#allocation138_spill] sm:$0xff] %v4651_v56  ;;  %v1483_v50 = vmul.f32 %v4390_v9, %v4336_v57  ;;  %v4676_v33 = vpack.c.bf16 %v1709_v46, %v1708_v60  ;;  %v1325_v5 = vpop.f32.mrf.mxu2  ;;  %v1229_v59 = vmul.f32 %v5612_v42, %v4231_v53  ;;  %v4683_v37 = vmul.f32 %v2190_v18, %v4663_v4  ;;  %v1711_v42 = vld [vmem:[#allocation2 + $0xe9] sm:$0xff] }
 0x12d   : > { %5607 = vst [vmem:[#allocation77_spill] sm:$0xff] %v4643_v27  ;;  %v5611_v27 = vld [vmem:[#allocation54_spill] sm:$0xff]  ;;  %v678_v46 = vpack.c.bf16 %v657_v41, %v656_v34 }
 0x12e   : > { %5608 = vst [vmem:[#allocation43_spill] sm:$0xff] %v4646_v3  ;;  %v1482_v56 = vmul.f32 %v5611_v27, %v4388_v55  ;;  %v1401_v55 = vadd.f32 %v1325_v5, %v944_v0  ;;  %v1250_v9 = vpack.c.bf16 %v1229_v59, %v1228_v58  ;;  %v5613_v5 = vld [vmem:[#allocation59_spill] sm:$0xff] }
 0x12f   : > { %v947_v0 = vadd.f32 %v946_v39, %v5613_v5 }
 0x130   : > { %v1579_v15 = vpop.f32.mrf.mxu3  ;;  %v1504_v3 = vpack.c.bf16 %v1483_v50, %v1482_v56  ;;  %v1710_v50 = vld [vmem:[#allocation2 + $0xe1] sm:$0xff] }
 0x131   : > { %v4685_v49 = vpop.f32.mrf.mxu0  ;;  %v1655_v28 = vadd.f32 %v1579_v15, %v1401_v55  ;;  %v1484_v55 = vmul.f32 %v4436_v12, %v4386_v25  ;;  %v4713_v15 = vpack.c.bf16 %v1711_v42, %v1710_v50 }
 0x132   : > { %v4678_v51 = vpop.permute.xlu0 %633  ;;  %3144 = vmatmul.msk.bf16.gmra.mxu0 %vm246_vm1, %v4676_v33  ;;  %3091 = vmatmul.msk.bf16.gmra.mxu1 %vm246_vm1, %v678_v46  ;;  %v5615_v46 = vld [vmem:[#allocation73_spill] sm:$0xff] }
 0x133   : > { %v4688_v14 = vmul.f32 %v2191_v62, %v4678_v51  ;;  %3108 = vmatmul.msk.bf16.gmra.mxu2 %vm246_vm1, %v1250_v9  ;;  %v4697_v53 = vadd.f32 %v4484_v61, %v1655_v28  ;;  %v948_v56 = vpop.f32.mrf.mxu1  ;;  %v1231_v61 = vmul.f32 %v4175_v36, %v4434_v24  ;;  %v658_v28 = vmul.f32 %v5611_v27, %v4436_v12 }
 0x134   : > { %3125 = vmatmul.msk.bf16.gmra.mxu3 %vm246_vm1, %v1504_v3  ;;  %v1328_v18 = vpop.f32.mrf.mxu2  ;;  %v5614_v3 = vld [vmem:[#allocation70_spill] sm:$0xff]  ;;  %v1230_v5 = vmul.f32 %v5615_v46, %v4287_v26  ;;  %v1485_v24 = vmul.f32 %v4400_v6, %v4284_v31  ;;  %v5617_v46 = vld [vmem:[#allocation63_spill] sm:$0xff] }
 0x135   : > { %v1402_v58 = vadd.f32 %v1328_v18, %v947_v0  ;;  %v949_v39 = vadd.f32 %v948_v56, %v5614_v3 }
 0x136   : > { %v1505_v56 = vpack.c.bf16 %v1485_v24, %v1484_v55  ;;  %v1713_v55 = vld [vmem:[#allocation2 + $0xf9] sm:$0xff] }
 0x138   : > { %v1582_v34 = vpop.f32.mrf.mxu3 }
 0x139   : > { %v4701_v62 = vpop.f32.mrf.mxu0  ;;  %v1656_v41 = vadd.f32 %v1582_v34, %v1402_v58  ;;  %v1251_v58 = vpack.c.bf16 %v1231_v61, %v1230_v5  ;;  %v1233_v5 = vmul.f32 %v5617_v46, %v4492_v17 }
 0x13b   : > { %v4704_v59 = vadd.f32 %v4530_v22, %v1656_v41  ;;  %v659_v22 = vmul.f32 %v4284_v31, %v4336_v57  ;;  %v951_v18 = vpop.f32.mrf.mxu1  ;;  %v5616_v57 = vld [vmem:[#allocation81_spill] sm:$0xff] }
 0x13c   : > { %v1330_v9 = vpop.f32.mrf.mxu2  ;;  %v952_v31 = vadd.f32 %v951_v18, %v5616_v57 }
 0x13d   : > { %v1403_v36 = vadd.f32 %v1330_v9, %v949_v39  ;;  %v679_v34 = vpack.c.bf16 %v659_v22, %v658_v28  ;;  %v1712_v39 = vld [vmem:[#allocation2 + $0xf1] sm:$0xff]  ;;  %v661_v22 = vmul.f32 %v4400_v6, %v4524_v19 }
 0x140   : > { %v1584_v27 = vpop.f32.mrf.mxu3 }
 0x141   : > { %v4719_v0 = vpop.f32.mrf.mxu0  ;;  %v1657_v12 = vadd.f32 %v1584_v27, %v1403_v36  ;;  %v5618_v36 = vld [vmem:[#allocation89_spill] sm:$0xff]  ;;  %v5619_v27 = vld [vmem:[#allocation84_spill] sm:$0xff] }
 0x142   : > { %3145 = vmatmul.msk.bf16.gmra.mxu0 %vm246_vm1, %v4713_v15  ;;  %3092 = vmatmul.msk.bf16.gmra.mxu1 %vm246_vm1, %v679_v34  ;;  %v1487_v18 = vmul.f32 %v5619_v27, %v4524_v19 }
 0x143   : > { %3109 = vmatmul.msk.bf16.gmra.mxu2 %vm246_vm1, %v1251_v58  ;;  %v4728_v26 = vadd.f32 %v4567_v47, %v1657_v12  ;;  %v953_v28 = vpop.f32.mrf.mxu1  ;;  %v1232_v47 = vmul.f32 %v4217_v21, %v4482_v2  ;;  %v4746_v58 = vpack.c.bf16 %v1713_v55, %v1712_v39 }
 0x144   : > { %3126 = vmatmul.msk.bf16.gmra.mxu3 %vm246_vm1, %v1505_v56  ;;  %v1333_v41 = vpop.f32.mrf.mxu2  ;;  %v954_v24 = vadd.f32 %v953_v28, %v5618_v36 }
 0x145   : > { %v1404_v42 = vadd.f32 %v1333_v41, %v952_v31  ;;  %v1252_v6 = vpack.c.bf16 %v1233_v5, %v1232_v47  ;;  %v1714_v5 = vld [vmem:[#allocation2 + $0x101] sm:$0xff] }
 0x148   : > { %v1587_v61 = vpop.f32.mrf.mxu3 }
 0x149   : > { %v4732_v50 = vpop.f32.mrf.mxu0  ;;  %v1658_v3 = vadd.f32 %v1587_v61, %v1404_v42 }
 0x14b   : > { %v4735_v9 = vadd.f32 %v4604_v43, %v1658_v3  ;;  %v5620_v43 = vld [vmem:[#allocation95_spill] sm:$0xff]  ;;  %v956_v57 = vpop.f32.mrf.mxu1 }
 0x14c   : > { %v1335_v34 = vpop.f32.mrf.mxu2  ;;  %v660_v12 = vmul.f32 %v5620_v43, %v4386_v25  ;;  %v1486_v2 = vmul.f32 %v4458_v54, %v5620_v43  ;;  %v5621_v25 = vld [vmem:[#allocation52_spill] sm:$0xff] }
 0x14d   : > { %v1405_v21 = vadd.f32 %v1335_v34, %v954_v24  ;;  %v957_v61 = vadd.f32 %v956_v57, %v5621_v25  ;;  %v662_v24 = vmul.f32 %v4458_v54, %v4565_v13  ;;  %v5622_v34 = vld [vmem:[#allocation62_spill] sm:$0xff]  ;;  %v5624_v57 = vld [vmem:[#allocation104_spill] sm:$0xff] }
 0x14e   : > { %v680_v31 = vpack.c.bf16 %v661_v22, %v660_v12  ;;  %v1506_v42 = vpack.c.bf16 %v1487_v18, %v1486_v2  ;;  %v1715_v22 = vld [vmem:[#allocation2 + $0x109] sm:$0xff]  ;;  %v663_v18 = vmul.f32 %v5619_v27, %v4575_v48  ;;  %v5623_v12 = vld [vmem:[#allocation94_spill] sm:$0xff]  ;;  %v1489_v2 = vmul.f32 %v4575_v48, %v4532_v45 }
 0x150   : > { %v1589_v17 = vpop.f32.mrf.mxu3 }
 0x151   : > { %v4750_v56 = vpop.f32.mrf.mxu0  ;;  %v1659_v41 = vadd.f32 %v1589_v17, %v1405_v21  ;;  %v1488_v21 = vmul.f32 %v5623_v12, %v4565_v13  ;;  %v4779_v17 = vpack.c.bf16 %v1715_v22, %v1714_v5  ;;  %v1237_v22 = vmul.f32 %v4382_v44, %v4599_v40  ;;  %v5630_v44 = vld [vmem:[#allocation134_spill] sm:$0xff] }
 0x152   : > { %3146 = vmatmul.msk.bf16.gmra.mxu0 %vm246_vm1, %v4746_v58  ;;  %3093 = vmatmul.msk.bf16.gmra.mxu1 %vm246_vm1, %v680_v31 }
 0x153   : > { %3110 = vmatmul.msk.bf16.gmra.mxu2 %vm246_vm1, %v1252_v6  ;;  %v4759_v19 = vadd.f32 %v4640_v7, %v1659_v41  ;;  %v958_v47 = vpop.f32.mrf.mxu1  ;;  %v1234_v7 = vmul.f32 %v4219_v10, %v4534_v63  ;;  %v1235_v10 = vmul.f32 %v5624_v57, %v4432_v38  ;;  %v681_v41 = vpack.c.bf16 %v663_v18, %v662_v24  ;;  %v5625_v38 = vld [vmem:[#allocation72_spill] sm:$0xff] }
 0x154   : > { %3127 = vmatmul.msk.bf16.gmra.mxu3 %vm246_vm1, %v1506_v42  ;;  %v1338_v28 = vpop.f32.mrf.mxu2  ;;  %v959_v43 = vadd.f32 %v958_v47, %v5622_v34  ;;  %v1507_v25 = vpack.c.bf16 %v1489_v2, %v1488_v21  ;;  %v1490_v18 = vmul.f32 %v4615_v8, %v4563_v20  ;;  %v5628_v21 = vld [vmem:[#allocation113_spill] sm:$0xff] }
 0x155   : > { %v1406_v39 = vadd.f32 %v1338_v28, %v957_v61  ;;  %v1253_v27 = vpack.c.bf16 %v1235_v10, %v1234_v7  ;;  %v5626_v7 = vld [vmem:[#allocation83_spill] sm:$0xff] }
 0x158   : > { %v1592_v55 = vpop.f32.mrf.mxu3 }
 0x159   : > { %v4763_v3 = vpop.f32.mrf.mxu0  ;;  %v1660_v46 = vadd.f32 %v1592_v55, %v1406_v39 }
 0x15b   : > { %v4766_v36 = vadd.f32 %v4685_v49, %v1660_v46  ;;  %v961_v31 = vpop.f32.mrf.mxu1 }
 0x15c   : > { %v1340_v49 = vpop.f32.mrf.mxu2  ;;  %v962_v48 = vadd.f32 %v961_v31, %v5625_v38  ;;  %v5634_v38 = vld [vmem:[#allocation93_spill] sm:$0xff] }
 0x15d   : > { %v1407_v54 = vadd.f32 %v1340_v49, %v959_v43  ;;  %v5627_v43 = vld [vmem:[#allocation122_spill] sm:$0xff]  ;;  %v5629_v49 = vld [vmem:[#allocation121_spill] sm:$0xff] }
 0x15e   : > { %v1236_v2 = vmul.f32 %v5628_v21, %v5627_v43  ;;  %v665_v57 = vmul.f32 %v5629_v49, %v4532_v45  ;;  %v1491_v40 = vmul.f32 %v5630_v44, %v5629_v49  ;;  %v5637_v43 = vld [vmem:[#allocation102_spill] sm:$0xff] }
 0x160   : > { %v1594_v6 = vpop.f32.mrf.mxu3 }
 0x161   : > { %v4783_v63 = vpop.f32.mrf.mxu0  ;;  %v1661_v42 = vadd.f32 %v1594_v6, %v1407_v54  ;;  %v1254_v6 = vpack.c.bf16 %v1237_v22, %v1236_v2  ;;  %v5638_v2 = vld [vmem:[#allocation119_spill] sm:$0xff] }
 0x162   : > { %3147 = vmatmul.msk.bf16.gmra.mxu0 %vm246_vm1, %v4779_v17  ;;  %3094 = vmatmul.msk.bf16.gmra.mxu1 %vm246_vm1, %v681_v41  ;;  %v1508_v41 = vpack.c.bf16 %v1491_v40, %v1490_v18  ;;  %v1493_v49 = vmul.f32 %v5638_v2, %v4678_v51  ;;  %v5644_v2 = vld [vmem:[#allocation24_spill] sm:$0xff] }
 0x163   : > { %3111 = vmatmul.msk.bf16.gmra.mxu2 %vm246_vm1, %v1253_v27  ;;  %v4790_v13 = vadd.f32 %v4701_v62, %v1661_v42  ;;  %v963_v47 = vpop.f32.mrf.mxu1  ;;  %v664_v62 = vmul.f32 %v5623_v12, %v4615_v8  ;;  %v5631_v8 = vld [vmem:[#allocation15_spill] sm:$0xff] }
 0x164   : > { %3128 = vmatmul.msk.bf16.gmra.mxu3 %vm246_vm1, %v1507_v25  ;;  %v1343_v61 = vpop.f32.mrf.mxu2  ;;  %v964_v24 = vadd.f32 %v963_v47, %v5626_v7  ;;  %v5632_v42 = vld [vmem:[#allocation11_spill] sm:$0xff] }
 0x165   : > { %v1408_v39 = vadd.f32 %v1343_v61, %v962_v48  ;;  %v682_v31 = vpack.c.bf16 %v665_v57, %v664_v62  ;;  %v5633_v25 = vpack.c.bf16 %v5631_v8, %v5632_v42  ;;  %v5635_v7 = vld [vmem:[#allocation111_spill] sm:$0xff] }
 0x168   : > { %v1597_v55 = vpop.f32.mrf.mxu3 }
 0x169   : > { %v4794_v28 = vpop.f32.mrf.mxu0  ;;  %v1662_v46 = vadd.f32 %v1597_v55, %v1408_v39 }
 0x16b   : > { %v4797_v5 = vadd.f32 %v4719_v0, %v1662_v46  ;;  %v966_v12 = vpop.f32.mrf.mxu1 }
 0x16c   : > { %v1345_v34 = vpop.f32.mrf.mxu2  ;;  %v967_v48 = vadd.f32 %v966_v12, %v5634_v38 }
 0x16d   : > { %v1409_v10 = vadd.f32 %v1345_v34, %v964_v24  ;;  %v1238_v24 = vmul.f32 %v5635_v7, %v4638_v29  ;;  %v667_v34 = vmul.f32 %v5630_v44, %v4678_v51  ;;  %v1492_v29 = vmul.f32 %v4606_v11, %v4663_v4  ;;  %v2415_v7 = vld [vmem:[#allocation2 + $0x29] sm:$0xff] }
 0x170   : > { %v1599_v54 = vpop.f32.mrf.mxu3 }
 0x171   : > { %v4810_v0 = vpop.f32.mrf.mxu0  ;;  %v1663_v27 = vadd.f32 %v1599_v54, %v1409_v10  ;;  %v666_v10 = vmul.f32 %v4663_v4, %v4563_v20  ;;  %v5642_v20 = vld [vmem:[#allocation112_spill] sm:$0xff] }
 0x172   : > { %3200 = vmatmul.msk.bf16.vlgmr.msra.gmra.mxu0 %vm246_vm1, %v5633_v25  ;;  %3095 = vmatmul.msk.bf16.gmra.mxu1 %vm246_vm1, %v682_v31  ;;  %v1509_v31 = vpack.c.bf16 %v1493_v49, %v1492_v29  ;;  %v5645_v49 = vld [vmem:[#allocation8_spill] sm:$0xff] }
 0x173   : > { %3112 = vmatmul.msk.bf16.gmra.mxu2 %vm246_vm1, %v1254_v6  ;;  %v4821_v45 = vadd.f32 %v4732_v50, %v1663_v27  ;;  %v968_v46 = vpop.f32.mrf.mxu1  ;;  %v5636_v50 = vld [vmem:[#allocation103_spill] sm:$0xff]  ;;  %v683_v6 = vpack.c.bf16 %v667_v34, %v666_v10  ;;  %v5639_v27 = vld [vmem:[#allocation6_spill] sm:$0xff]  ;;  %v5650_v29 = vld [vmem:[#allocation16_spill] sm:$0xff] }
 0x174   : > { %3129 = vmatmul.msk.bf16.gmra.mxu3 %vm246_vm1, %v1508_v41  ;;  %v1239_v18 = vmul.f32 %v5636_v50, %v4648_v52  ;;  %v969_v21 = vadd.f32 %v968_v46, %v5637_v43  ;;  %v5640_v41 = vld [vmem:[#allocation4_spill] sm:$0xff]  ;;  %v5647_v10 = vld [vmem:[#allocation14_spill] sm:$0xff] }
 0x175   : > { %v5641_v8 = vpack.c.bf16 %v5639_v27, %v5640_v41 }
 0x176   : > { %v1348_v61 = vpop.f32.mrf.mxu2  ;;  %v1255_v12 = vpack.c.bf16 %v1239_v18, %v1238_v24 }
 0x177   : > { %v1410_v55 = vadd.f32 %v1348_v61, %v967_v48 }
 0x178   : > { %v1602_v47 = vpop.f32.mrf.mxu3 }
 0x179   : > { %v4825_v39 = vpop.f32.mrf.mxu0  ;;  %v1664_v22 = vadd.f32 %v1602_v47, %v1410_v55  ;;  %v5643_v47 = vld [vmem:[#allocation124_spill] sm:$0xff] }
 0x17b   : > { %v4828_v62 = vadd.f32 %v4750_v56, %v1664_v22  ;;  %v971_v52 = vpop.f32.mrf.mxu1  ;;  %v2414_v22 = vld [vmem:[#allocation2 + $0x21] sm:$0xff] }
 0x17c   : > { %v972_v11 = vadd.f32 %v971_v52, %v5642_v20  ;;  %v2446_v43 = vpack.c.bf16 %v2415_v7, %v2414_v22 }
 0x17e   : > { %v1350_v57 = vpop.f32.mrf.mxu2 }
 0x17f   : > { %v1411_v40 = vadd.f32 %v1350_v57, %v969_v21  ;;  %v5646_v57 = vpack.c.bf16 %v5644_v2, %v5645_v49  ;;  %v5661_v49 = vld [vmem:[#allocation20_spill] sm:$0xff] }
 0x180   : > { %v1604_v54 = vpop.f32.mrf.mxu3 }
 0x181   : > { %v4841_v56 = vpop.f32.mrf.mxu0  ;;  %v1665_v44 = vadd.f32 %v1604_v54, %v1411_v40  ;;  %v5651_v54 = vld [vmem:[#allocation12_spill] sm:$0xff] }
 0x182   : > { %3201 = vmatmul.msk.bf16.gmra.mxu0 %vm246_vm1, %v5641_v8  ;;  %3096 = vmatmul.msk.bf16.gmra.mxu1 %vm246_vm1, %v683_v6  ;;  %v5652_v52 = vpack.c.bf16 %v5650_v29, %v5651_v54  ;;  %v5653_v6 = vld [vmem:[#allocation53_spill] sm:$0xff] }
 0x183   : > { %3113 = vmatmul.msk.bf16.gmra.mxu2 %vm246_vm1, %v1255_v12  ;;  %v4852_v51 = vadd.f32 %v4763_v3, %v1665_v44  ;;  %v973_v48 = vpop.f32.mrf.mxu1 }
 0x184   : > { %3130 = vmatmul.msk.bf16.gmra.mxu3 %vm246_vm1, %v1509_v31  ;;  %v974_v46 = vadd.f32 %v973_v48, %v5643_v47  ;;  %v2416_v48 = vld [vmem:[#allocation2 + $0x31] sm:$0xff] }
 0x186   : > { %v1353_v4 = vpop.f32.mrf.mxu2 }
 0x187   : > { %v1412_v25 = vadd.f32 %v1353_v4, %v972_v11 }
 0x188   : > { %v1607_v38 = vpop.f32.mrf.mxu3 }
 0x189   : > { %v4856_v42 = vpop.f32.mrf.mxu0  ;;  %v1666_v61 = vadd.f32 %v1607_v38, %v1412_v25  ;;  %v5654_v25 = vld [vmem:[#allocation64_spill] sm:$0xff] }
 0x18b   : > { %v4859_v55 = vadd.f32 %v4783_v63, %v1666_v61  ;;  %v5648_v63 = vld [vmem:[#allocation10_spill] sm:$0xff] }
 0x18c   : > { %v5649_v40 = vpack.c.bf16 %v5647_v10, %v5648_v63  ;;  %v2417_v61 = vld [vmem:[#allocation2 + $0x39] sm:$0xff] }
 0x18e   : > { %v1355_v3 = vpop.f32.mrf.mxu2 }
 0x18f   : > { %v1413_v50 = vadd.f32 %v1355_v3, %v974_v46  ;;  %v976_v34 = vpop.f32.mrf.mxu1  ;;  %v2447_v3 = vpack.c.bf16 %v2417_v61, %v2416_v48 }
 0x190   : > { %v1609_v18 = vpop.f32.mrf.mxu3  ;;  %v977_v44 = vadd.f32 %v976_v34, %v5653_v6  ;;  %v5656_v34 = vld [vmem:[#allocation28_spill] sm:$0xff] }
 0x191   : > { %v4862_v24 = vpop.f32.mrf.mxu0  ;;  %v1667_v21 = vadd.f32 %v1609_v18, %v1413_v50  ;;  %v5655_v18 = vld [vmem:[#allocation30_spill] sm:$0xff] }
 0x192   : > { %3202 = vmatmul.msk.bf16.gmra.mxu0 %vm246_vm1, %v5646_v57  ;;  %3149 = vmatmul.msk.bf16.vlgmr.msra.gmra.mxu1 %vm246_vm1, %v5649_v40  ;;  %v5662_v57 = vld [vmem:[#allocation19_spill] sm:$0xff]  ;;  %v5664_v40 = vld [vmem:[#allocation74_spill] sm:$0xff] }
 0x193   : > { %3166 = vmatmul.msk.bf16.vlgmr.msra.gmra.mxu2 %vm246_vm1, %v5652_v52  ;;  %v4877_v12 = vadd.f32 %v4794_v28, %v1667_v21  ;;  %v5658_v21 = vld [vmem:[#allocation5_spill] sm:$0xff]  ;;  %v5663_v10 = vpack.c.bf16 %v5661_v49, %v5662_v57  ;;  %v5675_v57 = vld [vmem:[#allocation99_spill] sm:$0xff] }
 0x194   : > { %3183 = vmatmul.msk.bf16.vlgmr.msra.gmra.mxu3 %vm246_vm1, %v2446_v43  ;;  %v5657_v43 = vpack.c.bf16 %v5655_v18, %v5656_v34  ;;  %v5669_v34 = vld [vmem:[#allocation23_spill] sm:$0xff] }
 0x196   : > { %v1358_v31 = vpop.f32.mrf.mxu2 }
 0x197   : > { %v1414_v41 = vadd.f32 %v1358_v31, %v977_v44  ;;  %v978_v20 = vpop.f32.mrf.mxu1 }
 0x198   : > { %v1612_v8 = vpop.f32.mrf.mxu3  ;;  %v979_v38 = vadd.f32 %v978_v20, %v5654_v25  ;;  %v5665_v20 = vld [vmem:[#allocation88_spill] sm:$0xff]  ;;  %v2418_v25 = vld [vmem:[#allocation2 + $0x41] sm:$0xff] }
 0x199   : > { %v4881_v27 = vpop.f32.mrf.mxu0  ;;  %v1668_v11 = vadd.f32 %v1612_v8, %v1414_v41 }
 0x19b   : > { %v4884_v4 = vadd.f32 %v4810_v0, %v1668_v11  ;;  %v5659_v0 = vld [vmem:[#allocation3_spill] sm:$0xff] }
 0x19c   : > { %v5660_v2 = vpack.c.bf16 %v5658_v21, %v5659_v0  ;;  %v5672_v21 = vld [vmem:[#allocation9_spill] sm:$0xff] }
 0x19d   : > { %v5673_v0 = vld [vmem:[#allocation25_spill] sm:$0xff] }
 0x19e   : > { %v1360_v28 = vpop.f32.mrf.mxu2 }
 0x19f   : > { %v1415_v46 = vadd.f32 %v1360_v28, %v979_v38  ;;  %v981_v7 = vpop.f32.mrf.mxu1  ;;  %v2419_v38 = vld [vmem:[#allocation2 + $0x49] sm:$0xff] }
 0x1a0   : > { %v1614_v22 = vpop.f32.mrf.mxu3  ;;  %v982_v29 = vadd.f32 %v981_v7, %v5664_v40 }
 0x1a1   : > { %v4887_v47 = vpop.f32.mrf.mxu0  ;;  %v1669_v50 = vadd.f32 %v1614_v22, %v1415_v46  ;;  %v2448_v22 = vpack.c.bf16 %v2419_v38, %v2418_v25  ;;  %v2420_v25 = vld [vmem:[#allocation2 + $0x51] sm:$0xff]  ;;  %v2421_v38 = vld [vmem:[#allocation2 + $0x59] sm:$0xff] }
 0x1a2   : > { %3203 = vmatmul.msk.bf16.gmra.mxu0 %vm246_vm1, %v5657_v43  ;;  %3150 = vmatmul.msk.bf16.gmra.mxu1 %vm246_vm1, %v5660_v2  ;;  %v5674_v2 = vpack.c.bf16 %v5672_v21, %v5673_v0  ;;  %v5684_v21 = vld [vmem:[#allocation13_spill] sm:$0xff] }
 0x1a3   : > { %3167 = vmatmul.msk.bf16.gmra.mxu2 %vm246_vm1, %v5663_v10  ;;  %v4902_v63 = vadd.f32 %v4825_v39, %v1669_v50  ;;  %v5667_v50 = vld [vmem:[#allocation34_spill] sm:$0xff] }
 0x1a4   : > { %3184 = vmatmul.msk.bf16.gmra.mxu3 %vm246_vm1, %v2447_v3  ;;  %v5666_v3 = vld [vmem:[#allocation18_spill] sm:$0xff] }
 0x1a5   : > { %v5668_v18 = vpack.c.bf16 %v5666_v3, %v5667_v50  ;;  %v5677_v3 = vld [vmem:[#allocation42_spill] sm:$0xff] }
 0x1a6   : > { %v1363_v54 = vpop.f32.mrf.mxu2  ;;  %v5678_v50 = vld [vmem:[#allocation22_spill] sm:$0xff] }
 0x1a7   : > { %v1416_v6 = vadd.f32 %v1363_v54, %v982_v29  ;;  %v983_v31 = vpop.f32.mrf.mxu1 }
 0x1a8   : > { %v1617_v44 = vpop.f32.mrf.mxu3  ;;  %v984_v11 = vadd.f32 %v983_v31, %v5665_v20  ;;  %v5676_v20 = vld [vmem:[#allocation109_spill] sm:$0xff] }
 0x1a9   : > { %v4906_v52 = vpop.f32.mrf.mxu0  ;;  %v1670_v41 = vadd.f32 %v1617_v44, %v1416_v6 }
 0x1ab   : > { %v4909_v8 = vadd.f32 %v4841_v56, %v1670_v41  ;;  %v5670_v56 = vld [vmem:[#allocation7_spill] sm:$0xff] }
 0x1ac   : > { %v5671_v43 = vpack.c.bf16 %v5669_v34, %v5670_v56  ;;  %v5680_v34 = vld [vmem:[#allocation29_spill] sm:$0xff] }
 0x1ae   : > { %v1365_v39 = vpop.f32.mrf.mxu2 }
 0x1af   : > { %v1417_v61 = vadd.f32 %v1365_v39, %v984_v11  ;;  %v986_v46 = vpop.f32.mrf.mxu1 }
 0x1b0   : > { %v1619_v28 = vpop.f32.mrf.mxu3  ;;  %v987_v10 = vadd.f32 %v986_v46, %v5675_v57  ;;  %v5686_v57 = vld [vmem:[#allocation118_spill] sm:$0xff] }
 0x1b1   : > { %v4912_v48 = vpop.f32.mrf.mxu0  ;;  %v1671_v7 = vadd.f32 %v1619_v28, %v1417_v61 }
 0x1b2   : > { %3204 = vmatmul.msk.bf16.gmra.mxu0 %vm246_vm1, %v5668_v18  ;;  %3151 = vmatmul.msk.bf16.gmra.mxu1 %vm246_vm1, %v5671_v43  ;;  %v5679_v18 = vpack.c.bf16 %v5677_v3, %v5678_v50  ;;  %v5683_v43 = vld [vmem:[#allocation32_spill] sm:$0xff] }
 0x1b3   : > { %3168 = vmatmul.msk.bf16.gmra.mxu2 %vm246_vm1, %v5674_v2  ;;  %v4927_v49 = vadd.f32 %v4856_v42, %v1671_v7  ;;  %v5685_v0 = vpack.c.bf16 %v5683_v43, %v5684_v21  ;;  %v5694_v21 = vld [vmem:[#allocation38_spill] sm:$0xff] }
 0x1b4   : > { %3185 = vmatmul.msk.bf16.gmra.mxu3 %vm246_vm1, %v2448_v22  ;;  %v2449_v22 = vpack.c.bf16 %v2421_v38, %v2420_v25  ;;  %v5687_v25 = vld [vmem:[#allocation129_spill] sm:$0xff] }
 0x1b6   : > { %v1368_v40 = vpop.f32.mrf.mxu2 }
 0x1b7   : > { %v1418_v54 = vadd.f32 %v1368_v40, %v987_v10  ;;  %v988_v44 = vpop.f32.mrf.mxu1 }
 0x1b8   : > { %v1622_v6 = vpop.f32.mrf.mxu3  ;;  %v989_v11 = vadd.f32 %v988_v44, %v5676_v20 }
 0x1b9   : > { %v4931_v29 = vpop.f32.mrf.mxu0  ;;  %v1672_v31 = vadd.f32 %v1622_v6, %v1418_v54 }
 0x1bb   : > { %v4934_v41 = vadd.f32 %v4862_v24, %v1672_v31  ;;  %v5681_v24 = vld [vmem:[#allocation27_spill] sm:$0xff] }
 0x1bc   : > { %v5682_v56 = vpack.c.bf16 %v5680_v34, %v5681_v24  ;;  %v5689_v34 = vld [vmem:[#allocation48_spill] sm:$0xff] }
 0x1be   : > { %v1370_v42 = vpop.f32.mrf.mxu2 }
 0x1bf   : > { %v1419_v61 = vadd.f32 %v1370_v42, %v989_v11  ;;  %v991_v46 = vpop.f32.mrf.mxu1  ;;  %v2422_v42 = vld [vmem:[#allocation2 + $0x61] sm:$0xff] }
 0x1c0   : > { %v1624_v28 = vpop.f32.mrf.mxu3  ;;  %v992_v10 = vadd.f32 %v991_v46, %v5686_v57 }
 0x1c1   : > { %v4937_v39 = vpop.f32.mrf.mxu0  ;;  %v1673_v7 = vadd.f32 %v1624_v28, %v1419_v61  ;;  %v2423_v61 = vld [vmem:[#allocation2 + $0x69] sm:$0xff] }
 0x1c2   : > { %3205 = vmatmul.msk.bf16.gmra.mxu0 %vm246_vm1, %v5679_v18  ;;  %3152 = vmatmul.msk.bf16.gmra.mxu1 %vm246_vm1, %v5682_v56  ;;  %v2450_v3 = vpack.c.bf16 %v2423_v61, %v2422_v42  ;;  %v5688_v18 = vld [vmem:[#allocation51_spill] sm:$0xff]  ;;  %v5691_v56 = vld [vmem:[#allocation17_spill] sm:$0xff] }
 0x1c3   : > { %3169 = vmatmul.msk.bf16.gmra.mxu2 %vm246_vm1, %v5685_v0  ;;  %v4952_v2 = vadd.f32 %v4881_v27, %v1673_v7  ;;  %v5690_v24 = vpack.c.bf16 %v5688_v18, %v5689_v34  ;;  %v5695_v0 = vld [vmem:[#allocation37_spill] sm:$0xff] }
 0x1c4   : > { %3186 = vmatmul.msk.bf16.gmra.mxu3 %vm246_vm1, %v2449_v22  ;;  %v5696_v57 = vpack.c.bf16 %v5694_v21, %v5695_v0  ;;  %v2425_v18 = vld [vmem:[#allocation2 + $0x79] sm:$0xff] }
 0x1c5   : > { %v5702_v0 = vld [vmem:[#allocation41_spill] sm:$0xff] }
 0x1c6   : > { %v1373_v40 = vpop.f32.mrf.mxu2 }
 0x1c7   : > { %v1420_v6 = vadd.f32 %v1373_v40, %v992_v10  ;;  %v993_v31 = vpop.f32.mrf.mxu1  ;;  %v5697_v40 = vld [vmem:[#allocation58_spill] sm:$0xff] }
 0x1c8   : > { %v1627_v44 = vpop.f32.mrf.mxu3  ;;  %v994_v38 = vadd.f32 %v993_v31, %v5687_v25 }
 0x1c9   : > { %v4956_v54 = vpop.f32.mrf.mxu0  ;;  %v1674_v20 = vadd.f32 %v1627_v44, %v1420_v6 }
 0x1cb   : > { %v4959_v11 = vadd.f32 %v4887_v47, %v1674_v20  ;;  %v5692_v47 = vld [vmem:[#allocation33_spill] sm:$0xff] }
 0x1cc   : > { %v5693_v43 = vpack.c.bf16 %v5691_v56, %v5692_v47  ;;  %v5699_v47 = vld [vmem:[#allocation36_spill] sm:$0xff] }
 0x1ce   : > { %v1375_v27 = vpop.f32.mrf.mxu2 }
 0x1cf   : > { %v1421_v22 = vadd.f32 %v1375_v27, %v994_v38  ;;  %v996_v46 = vpop.f32.mrf.mxu1  ;;  %v5698_v27 = vld [vmem:[#allocation69_spill] sm:$0xff] }
 0x1d0   : > { %v1629_v7 = vpop.f32.mrf.mxu3  ;;  %v997_v6 = vadd.f32 %v996_v46, %v5697_v40  ;;  %v5705_v40 = vld [vmem:[#allocation26_spill] sm:$0xff] }
 0x1d1   : > { %v4962_v28 = vpop.f32.mrf.mxu0  ;;  %v1675_v50 = vadd.f32 %v1629_v7, %v1421_v22  ;;  %v2424_v7 = vld [vmem:[#allocation2 + $0x71] sm:$0xff] }
 0x1d2   : > { %3206 = vmatmul.msk.bf16.gmra.mxu0 %vm246_vm1, %v5690_v24  ;;  %3153 = vmatmul.msk.bf16.gmra.mxu1 %vm246_vm1, %v5693_v43  ;;  %v2451_v24 = vpack.c.bf16 %v2425_v18, %v2424_v7  ;;  %v5700_v43 = vld [vmem:[#allocation61_spill] sm:$0xff] }
 0x1d3   : > { %3170 = vmatmul.msk.bf16.gmra.mxu2 %vm246_vm1, %v5696_v57  ;;  %v4977_v10 = vadd.f32 %v4906_v52, %v1675_v50  ;;  %v5701_v21 = vpack.c.bf16 %v5699_v47, %v5700_v43  ;;  %v2426_v43 = vld [vmem:[#allocation2 + $0x81] sm:$0xff] }
 0x1d4   : > { %3187 = vmatmul.msk.bf16.gmra.mxu3 %vm246_vm1, %v2450_v3 }
 0x1d6   : > { %v1378_v44 = vpop.f32.mrf.mxu2 }
 0x1d7   : > { %v1422_v20 = vadd.f32 %v1378_v44, %v997_v6  ;;  %v998_v38 = vpop.f32.mrf.mxu1  ;;  %v5706_v6 = vld [vmem:[#allocation44_spill] sm:$0xff] }
 0x1d8   : > { %v1632_v25 = vpop.f32.mrf.mxu3  ;;  %v999_v22 = vadd.f32 %v998_v38, %v5698_v27  ;;  %v5707_v44 = vpack.c.bf16 %v5705_v40, %v5706_v6  ;;  %v5710_v40 = vld [vmem:[#allocation79_spill] sm:$0xff]  ;;  %v5711_v6 = vld [vmem:[#allocation40_spill] sm:$0xff] }
 0x1d9   : > { %v4981_v31 = vpop.f32.mrf.mxu0  ;;  %v1676_v42 = vadd.f32 %v1632_v25, %v1422_v20  ;;  %v5708_v25 = vld [vmem:[#allocation80_spill] sm:$0xff] }
 0x1db   : > { %v4984_v61 = vadd.f32 %v4912_v48, %v1676_v42  ;;  %v5703_v48 = vld [vmem:[#allocation21_spill] sm:$0xff] }
 0x1dc   : > { %v5704_v57 = vpack.c.bf16 %v5702_v0, %v5703_v48 }
 0x1de   : > { %v1380_v52 = vpop.f32.mrf.mxu2 }
 0x1df   : > { %v1423_v3 = vadd.f32 %v1380_v52, %v999_v22  ;;  %v1001_v46 = vpop.f32.mrf.mxu1 }
 0x1e0   : > { %v1634_v34 = vpop.f32.mrf.mxu3  ;;  %v1002_v38 = vadd.f32 %v1001_v46, %v5708_v25  ;;  %v5713_v25 = vld [vmem:[#allocation50_spill] sm:$0xff] }
 0x1e1   : > { %v4987_v50 = vpop.f32.mrf.mxu0  ;;  %v1677_v56 = vadd.f32 %v1634_v34, %v1423_v3  ;;  %v5709_v34 = vld [vmem:[#allocation92_spill] sm:$0xff] }
 0x1e2   : > { %3207 = vmatmul.msk.bf16.gmra.mxu0 %vm246_vm1, %v5701_v21  ;;  %3154 = vmatmul.msk.bf16.gmra.mxu1 %vm246_vm1, %v5704_v57  ;;  %v2427_v21 = vld [vmem:[#allocation2 + $0x89] sm:$0xff] }
 0x1e3   : > { %3171 = vmatmul.msk.bf16.gmra.mxu2 %vm246_vm1, %v5707_v44  ;;  %v5002_v20 = vadd.f32 %v4931_v29, %v1677_v56  ;;  %v2452_v48 = vpack.c.bf16 %v2427_v21, %v2426_v43  ;;  %v5712_v44 = vpack.c.bf16 %v5710_v40, %v5711_v6  ;;  %v5720_v6 = vld [vmem:[#allocation110_spill] sm:$0xff] }
 0x1e4   : > { %3188 = vmatmul.msk.bf16.gmra.mxu3 %vm246_vm1, %v2451_v24 }
 0x1e6   : > { %v1383_v42 = vpop.f32.mrf.mxu2 }
 0x1e7   : > { %v1424_v22 = vadd.f32 %v1383_v42, %v1002_v38  ;;  %v1003_v18 = vpop.f32.mrf.mxu1  ;;  %v5716_v42 = vld [vmem:[#allocation57_spill] sm:$0xff] }
 0x1e8   : > { %v1637_v7 = vpop.f32.mrf.mxu3  ;;  %v1004_v47 = vadd.f32 %v1003_v18, %v5709_v34 }
 0x1e9   : > { %v5006_v27 = vpop.f32.mrf.mxu0  ;;  %v1678_v52 = vadd.f32 %v1637_v7, %v1424_v22  ;;  %v5717_v22 = vld [vmem:[#allocation31_spill] sm:$0xff] }
 0x1ea   : > { %v5718_v7 = vpack.c.bf16 %v5716_v42, %v5717_v22 }
 0x1eb   : > { %v5009_v3 = vadd.f32 %v4937_v39, %v1678_v52  ;;  %v5714_v39 = vld [vmem:[#allocation47_spill] sm:$0xff]  ;;  %v5719_v52 = vld [vmem:[#allocation101_spill] sm:$0xff] }
 0x1ec   : > { %v5715_v38 = vpack.c.bf16 %v5713_v25, %v5714_v39  ;;  %v2428_v25 = vld [vmem:[#allocation2 + $0x91] sm:$0xff]  ;;  %v2429_v39 = vld [vmem:[#allocation2 + $0x99] sm:$0xff] }
 0x1ed   : > { %v2453_v42 = vpack.c.bf16 %v2429_v39, %v2428_v25 }
 0x1ee   : > { %v1385_v29 = vpop.f32.mrf.mxu2 }
 0x1ef   : > { %v1425_v24 = vadd.f32 %v1385_v29, %v1004_v47  ;;  %v1006_v46 = vpop.f32.mrf.mxu1 }
 0x1f0   : > { %v1639_v0 = vpop.f32.mrf.mxu3  ;;  %v1007_v34 = vadd.f32 %v1006_v46, %v5719_v52  ;;  %v5722_v52 = vld [vmem:[#allocation87_spill] sm:$0xff] }
 0x1f1   : > { %v5012_v56 = vpop.f32.mrf.mxu0  ;;  %v1679_v57 = vadd.f32 %v1639_v0, %v1425_v24 }
 0x1f2   : > { %3208 = vmatmul.msk.bf16.gmra.mxu0 %vm246_vm1, %v5712_v44  ;;  %3155 = vmatmul.msk.bf16.gmra.mxu1 %vm246_vm1, %v5715_v38 }
 0x1f3   : > { %3172 = vmatmul.msk.bf16.gmra.mxu2 %vm246_vm1, %v5718_v7  ;;  %v5027_v18 = vadd.f32 %v4956_v54, %v1679_v57  ;;  %v5721_v7 = vld [vmem:[#allocation91_spill] sm:$0xff] }
 0x1f4   : > { %3189 = vmatmul.msk.bf16.gmra.mxu3 %vm246_vm1, %v2452_v48 }
 0x1f6   : > { %v1388_v47 = vpop.f32.mrf.mxu2 }
 0x1f7   : > { %v1426_v21 = vadd.f32 %v1388_v47, %v1007_v34  ;;  %v1008_v24 = vpop.f32.mrf.mxu1  ;;  %v5723_v34 = vpack.c.bf16 %v5721_v7, %v5722_v52  ;;  %v5724_v47 = vld [vmem:[#allocation35_spill] sm:$0xff] }
 0x1f8   : > { %v1642_v29 = vpop.f32.mrf.mxu3  ;;  %v1009_v44 = vadd.f32 %v1008_v24, %v5720_v6  ;;  %v5728_v24 = vld [vmem:[#allocation68_spill] sm:$0xff] }
 0x1f9   : > { %v5031_v43 = vpop.f32.mrf.mxu0  ;;  %v1680_v0 = vadd.f32 %v1642_v29, %v1426_v21  ;;  %v5727_v29 = vld [vmem:[#allocation71_spill] sm:$0xff] }
 0x1fb   : > { %v5034_v40 = vadd.f32 %v4962_v28, %v1680_v0  ;;  %v5725_v28 = vld [vmem:[#allocation60_spill] sm:$0xff]  ;;  %v5729_v0 = vpack.c.bf16 %v5727_v29, %v5728_v24 }
 0x1fc   : > { %v5726_v21 = vpack.c.bf16 %v5724_v47, %v5725_v28  ;;  %v5731_v47 = vld [vmem:[#allocation130_spill] sm:$0xff] }
 0x1fe   : > { %v1390_v54 = vpop.f32.mrf.mxu2 }
 0x1ff   : > { %v1427_v48 = vadd.f32 %v1390_v54, %v1009_v44  ;;  %v1011_v46 = vpop.f32.mrf.mxu1  ;;  %v5730_v44 = vld [vmem:[#allocation120_spill] sm:$0xff] }
 0x200   : > { %v1644_v38 = vpop.f32.mrf.mxu3  ;;  %v1012_v25 = vadd.f32 %v1011_v46, %v5730_v44 }
 0x201   : > { %v5037_v57 = vpop.f32.mrf.mxu0  ;;  %v1681_v22 = vadd.f32 %v1644_v38, %v1427_v48 }
 0x202   : > { %3209 = vmatmul.msk.bf16.gmra.mxu0 %vm246_vm1, %v5723_v34  ;;  %3156 = vmatmul.msk.bf16.gmra.mxu1 %vm246_vm1, %v5726_v21  ;;  %v2430_v21 = vld [vmem:[#allocation2 + $0xa1] sm:$0xff] }
 0x203   : > { %3173 = vmatmul.msk.bf16.gmra.mxu2 %vm246_vm1, %v5729_v0  ;;  %v5052_v6 = vadd.f32 %v4981_v31, %v1681_v22  ;;  %v2431_v31 = vld [vmem:[#allocation2 + $0xa9] sm:$0xff] }
 0x204   : > { %3190 = vmatmul.msk.bf16.gmra.mxu3 %vm246_vm1, %v2453_v42  ;;  %v2454_v0 = vpack.c.bf16 %v2431_v31, %v2430_v21  ;;  %v5741_v21 = vld [vmem:[#allocation137_spill] sm:$0xff] }
 0x206   : > { %v1393_v39 = vpop.f32.mrf.mxu2 }
 0x207   : > { %v1428_v48 = vadd.f32 %v1393_v39, %v1012_v25  ;;  %v1013_v7 = vpop.f32.mrf.mxu1  ;;  %v5732_v25 = vld [vmem:[#allocation67_spill] sm:$0xff]  ;;  %v5733_v39 = vld [vmem:[#allocation100_spill] sm:$0xff] }
 0x208   : > { %v1647_v38 = vpop.f32.mrf.mxu3  ;;  %v1014_v28 = vadd.f32 %v1013_v7, %v5731_v47  ;;  %v5734_v60 = vpack.c.bf16 %v5732_v25, %v5733_v39  ;;  %v5738_v7 = vld [vmem:[#allocation46_spill] sm:$0xff] }
 0x209   : > { %v5056_v54 = vpop.f32.mrf.mxu0  ;;  %v1682_v52 = vadd.f32 %v1647_v38, %v1428_v48  ;;  %v5735_v48 = vld [vmem:[#allocation78_spill] sm:$0xff] }
 0x20b   : > { %v5059_v34 = vadd.f32 %v4987_v50, %v1682_v52  ;;  %v5736_v50 = vld [vmem:[#allocation39_spill] sm:$0xff]  ;;  %v5739_v52 = vld [vmem:[#allocation82_spill] sm:$0xff] }
 0x20c   : > { %v5737_v38 = vpack.c.bf16 %v5735_v48, %v5736_v50  ;;  %v5740_v47 = vpack.c.bf16 %v5738_v7, %v5739_v52  ;;  %v2432_v48 = vld [vmem:[#allocation2 + $0xb1] sm:$0xff]  ;;  %v2433_v50 = vld [vmem:[#allocation2 + $0xb9] sm:$0xff] }
 0x20e   : > { %v1395_v22 = vpop.f32.mrf.mxu2 }
 0x20f   : > { %v1429_v42 = vadd.f32 %v1395_v22, %v1014_v28  ;;  %v2048_v24 = vpop.f32.mrf.mxu1 }
 0x210   : > { %v1649_v46 = vpop.f32.mrf.mxu3  ;;  %v2128_v31 = vadd.f32 %v2048_v24, %v5741_v21  ;;  %v2455_v21 = vpack.c.bf16 %v2433_v50, %v2432_v48 }
 0x211   : > { %v5062_v29 = vpop.f32.mrf.mxu0  ;;  %v1683_v44 = vadd.f32 %v1649_v46, %v1429_v42 }
 0x212   : > { %3210 = vmatmul.msk.bf16.gmra.mxu0 %vm246_vm1, %v5734_v60  ;;  %3157 = vmatmul.msk.bf16.gmra.mxu1 %vm246_vm1, %v5737_v38 }
 0x213   : > { %3174 = vmatmul.msk.bf16.gmra.mxu2 %vm246_vm1, %v5740_v47  ;;  %v5077_v28 = vadd.f32 %v5006_v27, %v1683_v44  ;;  %v2890_v27 = vld [vmem:[%s5087_s14] sm:$0xff] }
 0x214   : > { %3191 = vmatmul.msk.bf16.gmra.mxu3 %vm246_vm1, %v2454_v0 }
 0x216   : > { %v2302_v22 = vpop.f32.mrf.mxu2 }
 0x217   : > { %v2382_v42 = vadd.f32 %v2302_v22, %v2128_v31  ;;  %v2050_v25 = vpop.f32.mrf.mxu1  ;;  %v5742_v22 = vld [vmem:[#allocation115_spill] sm:$0xff] }
 0x218   : > { %v2524_v46 = vpop.f32.mrf.mxu3  ;;  %v2129_v0 = vadd.f32 %v2050_v25, %v4634_v23  ;;  %v2891_v23 = vld [vmem:[%s5087_s14 + $0x8] sm:$0xff] }
 0x219   : > { %v5082_v60 = vpop.f32.mrf.mxu0  ;;  %v2604_v39 = vadd.f32 %v2524_v46, %v2382_v42  ;;  %v5743_v42 = vld [vmem:[#allocation76_spill] sm:$0xff] }
 0x21a   : > { %v5744_v46 = vpack.c.bf16 %v5742_v22, %v5743_v42 }
 0x21b   : > { %v2858_v44 = vadd.f32 %v5012_v56, %v2604_v39  ;;  %v5745_v39 = vld [vmem:[#allocation90_spill] sm:$0xff] }
 0x21d   : > { %v2922_v24 = vadd.f32 %v2890_v27, %v2858_v44  ;;  %v5746_v27 = vld [vmem:[#allocation86_spill] sm:$0xff] }
 0x21e   : > { %v2304_v38 = vpop.f32.mrf.mxu2  ;;  %v5747_v44 = vpack.c.bf16 %v5745_v39, %v5746_v27 }
 0x21f   : > { %2954 = vst.msk [vmem:[%s5094_s16] sm:$0xff] %vm246_vm1, %v2922_v24  ;;  %v2383_v52 = vadd.f32 %v2304_v38, %v2129_v0  ;;  %v2053_v56 = vpop.f32.mrf.mxu1  ;;  %v5748_v24 = vld [vmem:[#allocation96_spill] sm:$0xff] }
 0x220   : > { %v2526_v47 = vpop.f32.mrf.mxu3  ;;  %v5749_v0 = vld [vmem:[#allocation56_spill] sm:$0xff]  ;;  %v2130_v50 = vadd.f32 %v2053_v56, %v4661_v32 }
 0x221   : > { %v5097_v7 = vpop.f32.mrf.mxu0  ;;  %v2605_v31 = vadd.f32 %v2526_v47, %v2383_v52  ;;  %v5750_v38 = vpack.c.bf16 %v5748_v24, %v5749_v0  ;;  %v5751_v0 = vld [vmem:[#allocation128_spill] sm:$0xff] }
 0x222   : > { %3211 = vmatmul.msk.bf16.gmra.mxu0 %vm246_vm1, %v5744_v46  ;;  %3158 = vmatmul.msk.bf16.gmra.mxu1 %vm246_vm1, %v5747_v44  ;;  %v2892_v46 = vld [vmem:[%s5087_s14 + $0x10] sm:$0xff] }
 0x223   : > { %v2859_v25 = vadd.f32 %v5031_v43, %v2605_v31  ;;  %3175 = vmatmul.msk.bf16.gmra.mxu2 %vm246_vm1, %v5750_v38  ;;  %v5752_v38 = vld [vmem:[#allocation126_spill] sm:$0xff] }
 0x224   : > { %3192 = vmatmul.msk.bf16.gmra.mxu3 %vm246_vm1, %v2455_v21 }
 0x225   : > { %v2923_v48 = vadd.f32 %v2891_v23, %v2859_v25 }
 0x226   : > { %v2307_v52 = vpop.f32.mrf.mxu2 }
 0x227   : > { %2955 = vst.msk [vmem:[%s5094_s16 + $0x8] sm:$0xff] %vm246_vm1, %v2923_v48  ;;  %v2384_v43 = vadd.f32 %v2307_v52, %v2130_v50  ;;  %v2055_v22 = vpop.f32.mrf.mxu1  ;;  %v5753_v48 = vpack.c.bf16 %v5751_v0, %v5752_v38  ;;  %v5755_v52 = vld [vmem:[#allocation98_spill] sm:$0xff] }
 0x228   : > { %v2529_v31 = vpop.f32.mrf.mxu3  ;;  %v2131_v21 = vadd.f32 %v2055_v22, %v4697_v53  ;;  %v5754_v53 = vld [vmem:[#allocation66_spill] sm:$0xff]  ;;  %v5758_v22 = vld [vmem:[#allocation105_spill] sm:$0xff] }
 0x229   : > { %v5117_v47 = vpop.f32.mrf.mxu0  ;;  %v2606_v42 = vadd.f32 %v2529_v31, %v2384_v43  ;;  %v5756_v43 = vpack.c.bf16 %v5754_v53, %v5755_v52  ;;  %v5757_v31 = vld [vmem:[#allocation108_spill] sm:$0xff]  ;;  %v5760_v52 = vld [vmem:[#allocation107_spill] sm:$0xff] }
 0x22b   : > { %v2860_v39 = vadd.f32 %v5037_v57, %v2606_v42  ;;  %v2893_v57 = vld [vmem:[%s5087_s14 + $0x18] sm:$0xff]  ;;  %v5759_v42 = vpack.c.bf16 %v5757_v31, %v5758_v22 }
 0x22d   : > { %v2924_v27 = vadd.f32 %v2892_v46, %v2860_v39 }
 0x22e   : > { %v2309_v44 = vpop.f32.mrf.mxu2 }
 0x22f   : > { %2956 = vst.msk [vmem:[%s5094_s16 + $0x10] sm:$0xff] %vm246_vm1, %v2924_v27  ;;  %v2385_v32 = vadd.f32 %v2309_v44, %v2131_v21  ;;  %v2058_v25 = vpop.f32.mrf.mxu1 }
 0x230   : > { %v2531_v56 = vpop.f32.mrf.mxu3  ;;  %v2132_v39 = vadd.f32 %v2058_v25, %v4704_v59 }
 0x231   : > { %v5124_v23 = vpop.f32.mrf.mxu0  ;;  %v2607_v24 = vadd.f32 %v2531_v56, %v2385_v32 }
 0x232   : > { %3212 = vmatmul.msk.bf16.gmra.mxu0 %vm246_vm1, %v5753_v48  ;;  %3159 = vmatmul.msk.bf16.gmra.mxu1 %vm246_vm1, %v5756_v43  ;;  %v5761_v43 = vld [vmem:[#allocation133_spill] sm:$0xff] }
 0x233   : > { %v2861_v50 = vadd.f32 %v5056_v54, %v2607_v24  ;;  %3176 = vmatmul.msk.bf16.gmra.mxu2 %vm246_vm1, %v5759_v42  ;;  %v2894_v24 = vld [vmem:[%s5087_s14 + $0x20] sm:$0xff]  ;;  %v5762_v31 = vpack.c.bf16 %v5760_v52, %v5761_v43  ;;  %v5764_v42 = vld [vmem:[#allocation75_spill] sm:$0xff] }
 0x234   : > { %3193 = vmatmul.msk.bf16.gmra.mxu3 %vm246_vm1, %v4597_v1 }
 0x235   : > { %v2925_v46 = vadd.f32 %v2893_v57, %v2861_v50 }
 0x236   : > { %v2312_v27 = vpop.f32.mrf.mxu2 }
 0x237   : > { %2957 = vst.msk [vmem:[%s5094_s16 + $0x18] sm:$0xff] %vm246_vm1, %v2925_v46  ;;  %v2386_v54 = vadd.f32 %v2312_v27, %v2132_v39  ;;  %v2060_v32 = vpop.f32.mrf.mxu1  ;;  %v5766_v39 = vld [vmem:[#allocation85_spill] sm:$0xff] }
 0x238   : > { %v2534_v44 = vpop.f32.mrf.mxu3  ;;  %v2133_v1 = vadd.f32 %v2060_v32, %v4728_v26  ;;  %v5763_v26 = vld [vmem:[#allocation114_spill] sm:$0xff]  ;;  %v5767_v27 = vld [vmem:[#allocation117_spill] sm:$0xff] }
 0x239   : > { %v5145_v21 = vpop.f32.mrf.mxu0  ;;  %v2608_v56 = vadd.f32 %v2534_v44, %v2386_v54  ;;  %v5765_v46 = vpack.c.bf16 %v5763_v26, %v5764_v42  ;;  %v5768_v54 = vpack.c.bf16 %v5766_v39, %v5767_v27  ;;  %v5771_v26 = vld [vmem:[#allocation125_spill] sm:$0xff] }
 0x23a   : > { %v5774_v39 = vld [vmem:[#allocation97_spill] sm:$0xff] }
 0x23b   : > { %v2862_v0 = vadd.f32 %v5062_v29, %v2608_v56  ;;  %v2895_v29 = vld [vmem:[%s5087_s14 + $0x28] sm:$0xff] }
 0x23d   : > { %v2926_v38 = vadd.f32 %v2894_v24, %v2862_v0 }
 0x23e   : > { %v2314_v48 = vpop.f32.mrf.mxu2 }
 0x23f   : > { %2958 = vst.msk [vmem:[%s5094_s16 + $0x20] sm:$0xff] %vm246_vm1, %v2926_v38  ;;  %v2387_v59 = vadd.f32 %v2314_v48, %v2133_v1  ;;  %v2063_v50 = vpop.f32.mrf.mxu1  ;;  %v2896_v48 = vld [vmem:[%s5087_s14 + $0x30] sm:$0xff] }
 0x240   : > { %v2536_v25 = vpop.f32.mrf.mxu3  ;;  %v2134_v32 = vadd.f32 %v2063_v50, %v4735_v9 }
 0x241   : > { %v5152_v57 = vpop.f32.mrf.mxu0  ;;  %v2609_v53 = vadd.f32 %v2536_v25, %v2387_v59 }
 0x242   : > { %3213 = vmatmul.msk.bf16.gmra.mxu0 %vm246_vm1, %v5762_v31  ;;  %3160 = vmatmul.msk.bf16.gmra.mxu1 %vm246_vm1, %v5765_v46  ;;  %v5769_v31 = vpack.c.bf16 %v4613_v16, %v4602_v30  ;;  %v5773_v46 = vld [vmem:[#allocation131_spill] sm:$0xff] }
 0x243   : > { %v2863_v22 = vadd.f32 %v5082_v60, %v2609_v53  ;;  %3177 = vmatmul.msk.bf16.gmra.mxu2 %vm246_vm1, %v5768_v54  ;;  %v5775_v27 = vpack.c.bf16 %v5773_v46, %v5774_v39 }
 0x244   : > { %3194 = vmatmul.msk.bf16.gmra.mxu3 %vm246_vm1, %v4676_v33 }
 0x245   : > { %v2927_v44 = vadd.f32 %v2895_v29, %v2863_v22  ;;  %v2897_v29 = vld [vmem:[%s5087_s14 + $0x38] sm:$0xff] }
 0x246   : > { %v2317_v56 = vpop.f32.mrf.mxu2 }
 0x247   : > { %2959 = vst.msk [vmem:[%s5094_s16 + $0x28] sm:$0xff] %vm246_vm1, %v2927_v44  ;;  %v2388_v60 = vadd.f32 %v2317_v56, %v2134_v32  ;;  %v2065_v0 = vpop.f32.mrf.mxu1 }
 0x248   : > { %v2539_v24 = vpop.f32.mrf.mxu3  ;;  %v2135_v53 = vadd.f32 %v2065_v0, %v4759_v19  ;;  %v5770_v19 = vld [vmem:[#allocation127_spill] sm:$0xff] }
 0x249   : > { %v5175_v38 = vpop.f32.mrf.mxu0  ;;  %v2610_v1 = vadd.f32 %v2539_v24, %v2388_v60  ;;  %v5772_v42 = vpack.c.bf16 %v5770_v19, %v5771_v26  ;;  %v2898_v60 = vld [vmem:[%s5087_s14 + $0x40] sm:$0xff] }
 0x24b   : > { %v2864_v59 = vadd.f32 %v5097_v7, %v2610_v1 }
 0x24d   : > { %v2928_v25 = vadd.f32 %v2896_v48, %v2864_v59 }
 0x24e   : > { %v2319_v33 = vpop.f32.mrf.mxu2 }
 0x24f   : > { %2960 = vst.msk [vmem:[%s5094_s16 + $0x30] sm:$0xff] %vm246_vm1, %v2928_v25  ;;  %v2389_v9 = vadd.f32 %v2319_v33, %v2135_v53  ;;  %v2068_v52 = vpop.f32.mrf.mxu1  ;;  %v5776_v33 = vld [vmem:[#allocation43_spill] sm:$0xff] }
 0x250   : > { %v2541_v50 = vpop.f32.mrf.mxu3  ;;  %v2136_v16 = vadd.f32 %v2068_v52, %v4766_v36  ;;  %v5778_v52 = vld [vmem:[#allocation106_spill] sm:$0xff] }
 0x251   : > { %v2611_v43 = vadd.f32 %v2541_v50, %v2389_v9  ;;  %v5187_v22 = vpop.f32.mrf.mxu0  ;;  %v5777_v9 = vpack.c.bf16 %v4654_v35, %v5776_v33 }
 0x252   : > { %3214 = vmatmul.msk.bf16.gmra.mxu0 %vm246_vm1, %v5769_v31  ;;  %3161 = vmatmul.msk.bf16.gmra.mxu1 %vm246_vm1, %v5772_v42  ;;  %v5781_v31 = vld [vmem:[#allocation136_spill] sm:$0xff] }
 0x253   : > { %v2865_v7 = vadd.f32 %v5117_v47, %v2611_v43  ;;  %3178 = vmatmul.msk.bf16.gmra.mxu2 %vm246_vm1, %v5775_v27  ;;  %v5779_v43 = vld [vmem:[#allocation132_spill] sm:$0xff] }
 0x254   : > { %3195 = vmatmul.msk.bf16.gmra.mxu3 %vm246_vm1, %v4713_v15 }
 0x255   : > { %v2929_v30 = vadd.f32 %v2897_v29, %v2865_v7  ;;  %v5782_v29 = vld [vmem:[#allocation135_spill] sm:$0xff] }
 0x256   : > { %v2322_v54 = vpop.f32.mrf.mxu2  ;;  %v5783_v7 = vpack.c.bf16 %v5781_v31, %v5782_v29 }
 0x257   : > { %2961 = vst.msk [vmem:[%s5094_s16 + $0x38] sm:$0xff] %vm246_vm1, %v2929_v30  ;;  %v2390_v47 = vadd.f32 %v2322_v54, %v2136_v16  ;;  %v2070_v32 = vpop.f32.mrf.mxu1  ;;  %v2900_v30 = vld [vmem:[%s5087_s14 + $0x50] sm:$0xff] }
 0x258   : > { %v2544_v44 = vpop.f32.mrf.mxu3  ;;  %v2137_v48 = vadd.f32 %v2070_v32, %v4790_v13  ;;  %v5780_v13 = vpack.c.bf16 %v5778_v52, %v5779_v43  ;;  %v2902_v52 = vld [vmem:[%s5087_s14 + $0x60] sm:$0xff] }
 0x259   : > { %v2612_v56 = vadd.f32 %v2544_v44, %v2390_v47  ;;  %v5205_v0 = vpop.f32.mrf.mxu0 }
 0x25b   : > { %v2866_v24 = vadd.f32 %v5124_v23, %v2612_v56  ;;  %v2899_v23 = vld [vmem:[%s5087_s14 + $0x48] sm:$0xff] }
 0x25d   : > { %v2930_v1 = vadd.f32 %v2898_v60, %v2866_v24  ;;  %v2901_v24 = vld [vmem:[%s5087_s14 + $0x58] sm:$0xff] }
 0x25e   : > { %v2324_v15 = vpop.f32.mrf.mxu2 }
 0x25f   : > { %2962 = vst.msk [vmem:[%s5094_s16 + $0x40] sm:$0xff] %vm246_vm1, %v2930_v1  ;;  %v2391_v36 = vadd.f32 %v2324_v15, %v2137_v48  ;;  %v2073_v25 = vpop.f32.mrf.mxu1  ;;  %v5784_v48 = vld [vmem:[#allocation55_spill] sm:$0xff]  ;;  %v5785_v15 = vld [vmem:[#allocation116_spill] sm:$0xff] }
 0x260   : > { %v2546_v59 = vpop.f32.mrf.mxu3  ;;  %v2138_v19 = vadd.f32 %v2073_v25, %v4797_v5 }
 0x261   : > { %v2613_v53 = vadd.f32 %v2546_v59, %v2391_v36  ;;  %v2813_v42 = vpop.f32.mrf.mxu0  ;;  %v5786_v36 = vpack.c.bf16 %v5784_v48, %v5785_v15 }
 0x262   : > { %3215 = vmatmul.msk.bf16.gmra.mxu0 %vm246_vm1, %v5777_v9  ;;  %3162 = vmatmul.msk.bf16.gmra.mxu1 %vm246_vm1, %v5780_v13 }
 0x263   : > { %v2867_v50 = vadd.f32 %v5145_v21, %v2613_v53  ;;  %3179 = vmatmul.msk.bf16.gmra.mxu2 %vm246_vm1, %v5783_v7  ;;  %v2445_v7 = vld [vmem:[#allocation2 + $0x119] sm:$0xff] }
 0x264   : > { %3196 = vmatmul.msk.bf16.gmra.mxu3 %vm246_vm1, %v4746_v58 }
 0x265   : > { %v2931_v35 = vadd.f32 %v2899_v23, %v2867_v50 }
 0x266   : > { %v2327_v26 = vpop.f32.mrf.mxu2 }
 0x267   : > { %2963 = vst.msk [vmem:[%s5094_s16 + $0x48] sm:$0xff] %vm246_vm1, %v2931_v35  ;;  %v2392_v21 = vadd.f32 %v2327_v26, %v2138_v19  ;;  %v2075_v39 = vpop.f32.mrf.mxu1 }
 0x268   : > { %v2549_v46 = vpop.f32.mrf.mxu3  ;;  %v2139_v47 = vadd.f32 %v2075_v39, %v4821_v45  ;;  %v5788_v45 = vld [vmem:[#allocation45_spill] sm:$0xff]  ;;  %v2903_v39 = vld [vmem:[%s5087_s14 + $0x68] sm:$0xff] }
 0x269   : > { %v2614_v27 = vadd.f32 %v2549_v46, %v2392_v21  ;;  %v2815_v56 = vpop.f32.mrf.mxu0 }
 0x26b   : > { %v2868_v16 = vadd.f32 %v5152_v57, %v2614_v27  ;;  %v5787_v57 = vld [vmem:[#allocation123_spill] sm:$0xff] }
 0x26c   : > { %v5789_v59 = vpack.c.bf16 %v5787_v57, %v5788_v45 }
 0x26d   : > { %v2932_v54 = vadd.f32 %v2900_v30, %v2868_v16  ;;  %v5790_v30 = vld [vmem:[#allocation138_spill] sm:$0xff] }
 0x26e   : > { %v2329_v58 = vpop.f32.mrf.mxu2 }
 0x26f   : > { %2964 = vst.msk [vmem:[%s5094_s16 + $0x50] sm:$0xff] %vm246_vm1, %v2932_v54  ;;  %v2393_v5 = vadd.f32 %v2329_v58, %v2139_v47  ;;  %v2078_v32 = vpop.f32.mrf.mxu1 }
 0x270   : > { %v2551_v44 = vpop.f32.mrf.mxu3  ;;  %v2140_v53 = vadd.f32 %v2078_v32, %v4828_v62 }
 0x271   : > { %v2615_v60 = vadd.f32 %v2551_v44, %v2393_v5  ;;  %v2818_v43 = vpop.f32.mrf.mxu0 }
 0x272   : > { %3163 = vmatmul.msk.bf16.gmra.mxu1 %vm246_vm1, %v5786_v36 }
 0x273   : > { %v2869_v1 = vadd.f32 %v5175_v38, %v2615_v60  ;;  %3180 = vmatmul.msk.bf16.gmra.mxu2 %vm246_vm1, %v5789_v59  ;;  %v2905_v59 = vld [vmem:[%s5087_s14 + $0x78] sm:$0xff] }
 0x274   : > { %3197 = vmatmul.msk.bf16.gmra.mxu3 %vm246_vm1, %v4779_v17  ;;  %v2444_v17 = vld [vmem:[#allocation2 + $0x111] sm:$0xff] }
 0x275   : > { %v2933_v25 = vadd.f32 %v2901_v24, %v2869_v1  ;;  %v2461_v21 = vpack.c.bf16 %v2445_v7, %v2444_v17  ;;  %v2904_v24 = vld [vmem:[%s5087_s14 + $0x70] sm:$0xff] }
 0x276   : > { %v2332_v33 = vpop.f32.mrf.mxu2 }
 0x277   : > { %2965 = vst.msk [vmem:[%s5094_s16 + $0x58] sm:$0xff] %vm246_vm1, %v2933_v25  ;;  %v2394_v38 = vadd.f32 %v2332_v33, %v2140_v53  ;;  %v2080_v23 = vpop.f32.mrf.mxu1 }
 0x278   : > { %v2554_v9 = vpop.f32.mrf.mxu3  ;;  %v2141_v29 = vadd.f32 %v2080_v23, %v4852_v51  ;;  %v5793_v51 = vpack.c.bf16 %v4688_v14, %v4683_v37 }
 0x279   : > { %v2616_v50 = vadd.f32 %v2554_v9, %v2394_v38  ;;  %v2820_v54 = vpop.f32.mrf.mxu0 }
 0x27b   : > { %v2870_v13 = vadd.f32 %v5187_v22, %v2616_v50  ;;  %v5791_v22 = vld [vmem:[#allocation77_spill] sm:$0xff] }
 0x27c   : > { %v5792_v16 = vpack.c.bf16 %v5790_v30, %v5791_v22  ;;  %v2908_v22 = vld [vmem:[%s5087_s14 + $0x90] sm:$0xff] }
 0x27d   : > { %v2934_v31 = vadd.f32 %v2902_v52, %v2870_v13  ;;  %v2906_v52 = vld [vmem:[%s5087_s14 + $0x80] sm:$0xff] }
 0x27e   : > { %v2334_v35 = vpop.f32.mrf.mxu2 }
 0x27f   : > { %2966 = vst.msk [vmem:[%s5094_s16 + $0x60] sm:$0xff] %vm246_vm1, %v2934_v31  ;;  %v2395_v62 = vadd.f32 %v2334_v35, %v2141_v29  ;;  %v2083_v26 = vpop.f32.mrf.mxu1 }
 0x280   : > { %v2556_v19 = vpop.f32.mrf.mxu3  ;;  %v2142_v58 = vadd.f32 %v2083_v26, %v4859_v55 }
 0x281   : > { %v2617_v46 = vadd.f32 %v2556_v19, %v2395_v62  ;;  %v2823_v15 = vpop.f32.mrf.mxu0  ;;  %v2907_v62 = vld [vmem:[%s5087_s14 + $0x88] sm:$0xff] }
 0x282   : > { %3164 = vmatmul.msk.bf16.gmra.mxu1 %vm246_vm1, %v5792_v16 }
 0x283   : > { %v2871_v27 = vadd.f32 %v5205_v0, %v2617_v46  ;;  %3181 = vmatmul.msk.bf16.gmra.mxu2 %vm246_vm1, %v5793_v51 }
 0x284   : > { %3198 = vmatmul.msk.bf16.gmra.mxu3 %vm246_vm1, %v2461_v21 }
 0x285   : > { %v2935_v47 = vadd.f32 %v2903_v39, %v2871_v27 }
 0x286   : > { %v2337_v5 = vpop.f32.mrf.mxu2 }
 0x287   : > { %2967 = vst.msk [vmem:[%s5094_s16 + $0x68] sm:$0xff] %vm246_vm1, %v2935_v47  ;;  %v2396_v0 = vadd.f32 %v2337_v5, %v2142_v58  ;;  %v2085_v32 = vpop.f32.mrf.mxu1 }
 0x288   : > { %v2559_v44 = vpop.f32.mrf.mxu3  ;;  %v2143_v1 = vadd.f32 %v2085_v32, %v4877_v12  ;;  %v2909_v32 = vld [vmem:[%s5087_s14 + $0x98] sm:$0xff] }
 0x289   : > { %v2618_v60 = vadd.f32 %v2559_v44, %v2396_v0  ;;  %v2825_v23 = vpop.f32.mrf.mxu0 }
 0x28b   : > { %v2872_v37 = vadd.f32 %v2813_v42, %v2618_v60 }
 0x28d   : > { %v2936_v14 = vadd.f32 %v2904_v24, %v2872_v37 }
 0x28e   : > { %v2339_v48 = vpop.f32.mrf.mxu2 }
 0x28f   : > { %2968 = vst.msk [vmem:[%s5094_s16 + $0x70] sm:$0xff] %vm246_vm1, %v2936_v14  ;;  %v2397_v55 = vadd.f32 %v2339_v48, %v2143_v1  ;;  %v2088_v57 = vpop.f32.mrf.mxu1 }
 0x290   : > { %v2561_v36 = vpop.f32.mrf.mxu3  ;;  %v2144_v33 = vadd.f32 %v2088_v57, %v4884_v4 }
 0x291   : > { %v2619_v45 = vadd.f32 %v2561_v36, %v2397_v55  ;;  %v2828_v19 = vpop.f32.mrf.mxu0  ;;  %v2910_v36 = vld [vmem:[%s5087_s14 + $0xa0] sm:$0xff] }
 0x293   : > { %v2873_v25 = vadd.f32 %v2815_v56, %v2619_v45 }
 0x295   : > { %v2937_v53 = vadd.f32 %v2905_v59, %v2873_v25 }
 0x296   : > { %v2342_v38 = vpop.f32.mrf.mxu2 }
 0x297   : > { %2969 = vst.msk [vmem:[%s5094_s16 + $0x78] sm:$0xff] %vm246_vm1, %v2937_v53  ;;  %v2398_v12 = vadd.f32 %v2342_v38, %v2144_v33  ;;  %v2090_v9 = vpop.f32.mrf.mxu1 }
 0x298   : > { %v2564_v42 = vpop.f32.mrf.mxu3  ;;  %v2145_v29 = vadd.f32 %v2090_v9, %v4902_v63 }
 0x299   : > { %v2620_v50 = vadd.f32 %v2564_v42, %v2398_v12  ;;  %v2830_v51 = vpop.f32.mrf.mxu0  ;;  %v2911_v42 = vld [vmem:[%s5087_s14 + $0xa8] sm:$0xff] }
 0x29b   : > { %v2874_v13 = vadd.f32 %v2818_v43, %v2620_v50 }
 0x29d   : > { %v2938_v31 = vadd.f32 %v2906_v52, %v2874_v13 }
 0x29e   : > { %v2344_v17 = vpop.f32.mrf.mxu2 }
 0x29f   : > { %2970 = vst.msk [vmem:[%s5094_s16 + $0x80] sm:$0xff] %vm246_vm1, %v2938_v31  ;;  %v2399_v4 = vadd.f32 %v2344_v17, %v2145_v29  ;;  %v2093_v7 = vpop.f32.mrf.mxu1  ;;  %v2912_v17 = vld [vmem:[%s5087_s14 + $0xb0] sm:$0xff] }
 0x2a0   : > { %v2566_v56 = vpop.f32.mrf.mxu3  ;;  %v2146_v46 = vadd.f32 %v2093_v7, %v4909_v8 }
 0x2a1   : > { %v2621_v35 = vadd.f32 %v2566_v56, %v2399_v4  ;;  %v2833_v1 = vpop.f32.mrf.mxu0 }
 0x2a3   : > { %v2875_v26 = vadd.f32 %v2820_v54, %v2621_v35 }
 0x2a5   : > { %v2939_v21 = vadd.f32 %v2907_v62, %v2875_v26 }
 0x2a6   : > { %v2347_v39 = vpop.f32.mrf.mxu2 }
 0x2a7   : > { %2971 = vst.msk [vmem:[%s5094_s16 + $0x88] sm:$0xff] %vm246_vm1, %v2939_v21  ;;  %v2400_v63 = vadd.f32 %v2347_v39, %v2146_v46  ;;  %v2095_v27 = vpop.f32.mrf.mxu1  ;;  %v2913_v46 = vld [vmem:[%s5087_s14 + $0xb8] sm:$0xff] }
 0x2a8   : > { %v2569_v43 = vpop.f32.mrf.mxu3  ;;  %v2147_v58 = vadd.f32 %v2095_v27, %v4927_v49 }
 0x2a9   : > { %v2622_v30 = vadd.f32 %v2569_v43, %v2400_v63  ;;  %v2835_v38 = vpop.f32.mrf.mxu0 }
 0x2ab   : > { %v2876_v16 = vadd.f32 %v2823_v15, %v2622_v30 }
 0x2ad   : > { %v2940_v47 = vadd.f32 %v2908_v22, %v2876_v16 }
 0x2ae   : > { %v2349_v5 = vpop.f32.mrf.mxu2 }
 0x2af   : > { %2972 = vst.msk [vmem:[%s5094_s16 + $0x90] sm:$0xff] %vm246_vm1, %v2940_v47  ;;  %v2401_v8 = vadd.f32 %v2349_v5, %v2147_v58  ;;  %v2098_v0 = vpop.f32.mrf.mxu1  ;;  %v2914_v47 = vld [vmem:[%s5087_s14 + $0xc0] sm:$0xff] }
 0x2b0   : > { %v2571_v54 = vpop.f32.mrf.mxu3  ;;  %v2148_v37 = vadd.f32 %v2098_v0, %v4934_v41 }
 0x2b1   : > { %v2623_v44 = vadd.f32 %v2571_v54, %v2401_v8  ;;  %v2838_v4 = vpop.f32.mrf.mxu0 }
 0x2b3   : > { %v2877_v60 = vadd.f32 %v2825_v23, %v2623_v44 }
 0x2b5   : > { %v2941_v24 = vadd.f32 %v2909_v32, %v2877_v60 }
 0x2b6   : > { %v2352_v14 = vpop.f32.mrf.mxu2 }
 0x2b7   : > { %2973 = vst.msk [vmem:[%s5094_s16 + $0x98] sm:$0xff] %vm246_vm1, %v2941_v24  ;;  %v2402_v49 = vadd.f32 %v2352_v14, %v2148_v37  ;;  %v2100_v15 = vpop.f32.mrf.mxu1  ;;  %v2915_v24 = vld [vmem:[%s5087_s14 + $0xc8] sm:$0xff] }
 0x2b8   : > { %v2574_v48 = vpop.f32.mrf.mxu3  ;;  %v2149_v59 = vadd.f32 %v2100_v15, %v4952_v2 }
 0x2b9   : > { %v2624_v55 = vadd.f32 %v2574_v48, %v2402_v49  ;;  %v2840_v63 = vpop.f32.mrf.mxu0 }
 0x2bb   : > { %v2878_v57 = vadd.f32 %v2828_v19, %v2624_v55 }
 0x2bd   : > { %v2942_v45 = vadd.f32 %v2910_v36, %v2878_v57  ;;  %v2916_v57 = vld [vmem:[%s5087_s14 + $0xd0] sm:$0xff] }
 0x2be   : > { %v2354_v25 = vpop.f32.mrf.mxu2 }
 0x2bf   : > { %2974 = vst.msk [vmem:[%s5094_s16 + $0xa0] sm:$0xff] %vm246_vm1, %v2942_v45  ;;  %v2403_v41 = vadd.f32 %v2354_v25, %v2149_v59  ;;  %v2103_v33 = vpop.f32.mrf.mxu1 }
 0x2c0   : > { %v2576_v53 = vpop.f32.mrf.mxu3  ;;  %v2150_v50 = vadd.f32 %v2103_v33, %v4959_v11 }
 0x2c1   : > { %v2625_v12 = vadd.f32 %v2576_v53, %v2403_v41  ;;  %v2843_v0 = vpop.f32.mrf.mxu0 }
 0x2c3   : > { %v2879_v9 = vadd.f32 %v2830_v51, %v2625_v12  ;;  %v2917_v12 = vld [vmem:[%s5087_s14 + $0xd8] sm:$0xff] }
 0x2c5   : > { %v2943_v23 = vadd.f32 %v2911_v42, %v2879_v9 }
 0x2c6   : > { %v2357_v52 = vpop.f32.mrf.mxu2 }
 0x2c7   : > { %2975 = vst.msk [vmem:[%s5094_s16 + $0xa8] sm:$0xff] %vm246_vm1, %v2943_v23  ;;  %v2404_v2 = vadd.f32 %v2357_v52, %v2150_v50  ;;  %v2105_v31 = vpop.f32.mrf.mxu1 }
 0x2c8   : > { %v2579_v13 = vpop.f32.mrf.mxu3  ;;  %v2151_v35 = vadd.f32 %v2105_v31, %v4977_v10 }
 0x2c9   : > { %v2626_v29 = vadd.f32 %v2579_v13, %v2404_v2  ;;  %v2845_v36 = vpop.f32.mrf.mxu0 }
 0x2cb   : > { %v2880_v56 = vadd.f32 %v2833_v1, %v2626_v29  ;;  %v2918_v29 = vld [vmem:[%s5087_s14 + $0xe0] sm:$0xff] }
 0x2cd   : > { %v2944_v7 = vadd.f32 %v2912_v17, %v2880_v56 }
 0x2ce   : > { %v2359_v62 = vpop.f32.mrf.mxu2 }
 0x2cf   : > { %2976 = vst.msk [vmem:[%s5094_s16 + $0xb0] sm:$0xff] %vm246_vm1, %v2944_v7  ;;  %v2405_v11 = vadd.f32 %v2359_v62, %v2151_v35  ;;  %v2108_v26 = vpop.f32.mrf.mxu1 }
 0x2d0   : > { %v2581_v19 = vpop.f32.mrf.mxu3  ;;  %v2152_v27 = vadd.f32 %v2108_v26, %v4984_v61  ;;  %v2919_v26 = vld [vmem:[%s5087_s14 + $0xe8] sm:$0xff] }
 0x2d1   : > { %v2627_v21 = vadd.f32 %v2581_v19, %v2405_v11  ;;  %v2848_v9 = vpop.f32.mrf.mxu0 }
 0x2d3   : > { %v2881_v39 = vadd.f32 %v2835_v38, %v2627_v21 }
 0x2d5   : > { %v2945_v43 = vadd.f32 %v2913_v46, %v2881_v39 }
 0x2d6   : > { %v2362_v30 = vpop.f32.mrf.mxu2 }
 0x2d7   : > { %2977 = vst.msk [vmem:[%s5094_s16 + $0xb8] sm:$0xff] %vm246_vm1, %v2945_v43  ;;  %v2406_v10 = vadd.f32 %v2362_v30, %v2152_v27  ;;  %v2110_v16 = vpop.f32.mrf.mxu1 }
 0x2d8   : > { %v2584_v22 = vpop.f32.mrf.mxu3  ;;  %v2153_v8 = vadd.f32 %v2110_v16, %v5002_v20 }
 0x2d9   : > { %v2628_v51 = vadd.f32 %v2584_v22, %v2406_v10  ;;  %v2850_v7 = vpop.f32.mrf.mxu0  ;;  %v2920_v10 = vld [vmem:[%s5087_s14 + $0xf0] sm:$0xff] }
 0x2db   : > { %v2882_v58 = vadd.f32 %v2838_v4, %v2628_v51 }
 0x2dd   : > { %v2946_v5 = vadd.f32 %v2914_v47, %v2882_v58 }
 0x2de   : > { %v2364_v54 = vpop.f32.mrf.mxu2 }
 0x2df   : > { %2978 = vst.msk [vmem:[%s5094_s16 + $0xc0] sm:$0xff] %vm246_vm1, %v2946_v5  ;;  %v2407_v61 = vadd.f32 %v2364_v54, %v2153_v8  ;;  %v2113_v32 = vpop.f32.mrf.mxu1 }
 0x2e0   : > { %v2586_v44 = vpop.f32.mrf.mxu3  ;;  %v2154_v1 = vadd.f32 %v2113_v32, %v5009_v3 }
 0x2e1   : > { %v2629_v60 = vadd.f32 %v2586_v44, %v2407_v61  ;;  %v2853_v43 = vpop.f32.mrf.mxu0 }
 0x2e3   : > { %v2883_v37 = vadd.f32 %v2840_v63, %v2629_v60 }
 0x2e5   : > { %v2947_v14 = vadd.f32 %v2915_v24, %v2883_v37 }
 0x2e6   : > { %v2367_v49 = vpop.f32.mrf.mxu2 }
 0x2e7   : > { %2979 = vst.msk [vmem:[%s5094_s16 + $0xc8] sm:$0xff] %vm246_vm1, %v2947_v14  ;;  %v2408_v20 = vadd.f32 %v2367_v49, %v2154_v1  ;;  %v2115_v15 = vpop.f32.mrf.mxu1 }
 0x2e8   : > { %v2589_v48 = vpop.f32.mrf.mxu3  ;;  %v2155_v25 = vadd.f32 %v2115_v15, %v5027_v18 }
 0x2e9   : > { %v2630_v55 = vadd.f32 %v2589_v48, %v2408_v20  ;;  %v2855_v54 = vpop.f32.mrf.mxu0 }
 0x2eb   : > { %v2884_v45 = vadd.f32 %v2843_v0, %v2630_v55  ;;  %v2921_v0 = vld [vmem:[%s5087_s14 + $0xf8] sm:$0xff] }
 0x2ed   : > { %v2948_v59 = vadd.f32 %v2916_v57, %v2884_v45 }
 0x2ee   : > { %v2369_v41 = vpop.f32.mrf.mxu2 }
 0x2ef   : > { %2980 = vst.msk [vmem:[%s5094_s16 + $0xd0] sm:$0xff] %vm246_vm1, %v2948_v59  ;;  %v2409_v3 = vadd.f32 %v2369_v41, %v2155_v25  ;;  %v2118_v33 = vpop.f32.mrf.mxu1 }
 0x2f0   : > { %v2591_v53 = vpop.f32.mrf.mxu3  ;;  %v2156_v50 = vadd.f32 %v2118_v33, %v5034_v40 }
 0x2f1   : > { %v2631_v38 = vadd.f32 %v2591_v53, %v2409_v3 }
 0x2f3   : > { %v2885_v42 = vadd.f32 %v2845_v36, %v2631_v38 }
 0x2f5   : > { %v2949_v23 = vadd.f32 %v2917_v12, %v2885_v42 }
 0x2f6   : > { %v2372_v52 = vpop.f32.mrf.mxu2 }
 0x2f7   : > { %2981 = vst.msk [vmem:[%s5094_s16 + $0xd8] sm:$0xff] %vm246_vm1, %v2949_v23  ;;  %v2410_v18 = vadd.f32 %v2372_v52, %v2156_v50  ;;  %v2120_v13 = vpop.f32.mrf.mxu1 }
 0x2f8   : > { %v2594_v2 = vpop.f32.mrf.mxu3  ;;  %v2157_v56 = vadd.f32 %v2120_v13, %v5052_v6 }
 0x2f9   : > { %v2632_v31 = vadd.f32 %v2594_v2, %v2410_v18 }
 0x2fb   : > { %v2886_v17 = vadd.f32 %v2848_v9, %v2632_v31 }
 0x2fd   : > { %v2950_v4 = vadd.f32 %v2918_v29, %v2886_v17 }
 0x2fe   : > { %v2374_v35 = vpop.f32.mrf.mxu2 }
 0x2ff   : > { %2982 = vst.msk [vmem:[%s5094_s16 + $0xe0] sm:$0xff] %vm246_vm1, %v2950_v4  ;;  %v2411_v40 = vadd.f32 %v2374_v35, %v2157_v56  ;;  %v2123_v11 = vpop.f32.mrf.mxu1 }
 0x300   : > { %v2596_v62 = vpop.f32.mrf.mxu3  ;;  %v2158_v39 = vadd.f32 %v2123_v11, %v5059_v34 }
 0x301   : > { %v2633_v19 = vadd.f32 %v2596_v62, %v2411_v40 }
 0x303   : > { %v2887_v21 = vadd.f32 %v2850_v7, %v2633_v19 }
 0x305   : > { %v2951_v46 = vadd.f32 %v2919_v26, %v2887_v21 }
 0x306   : > { %v2377_v63 = vpop.f32.mrf.mxu2 }
 0x307   : > { %2983 = vst.msk [vmem:[%s5094_s16 + $0xe8] sm:$0xff] %vm246_vm1, %v2951_v46  ;;  %v2412_v6 = vadd.f32 %v2377_v63, %v2158_v39  ;;  %v2125_v22 = vpop.f32.mrf.mxu1 }
 0x308   : > { %v2599_v27 = vpop.f32.mrf.mxu3  ;;  %v2159_v47 = vadd.f32 %v2125_v22, %v5077_v28 }
 0x309   : > { %v2634_v30 = vadd.f32 %v2599_v27, %v2412_v6 }
 0x30b   : > { %v2888_v16 = vadd.f32 %v2853_v43, %v2634_v30 }
 0x30d   : > { %v2952_v51 = vadd.f32 %v2920_v10, %v2888_v16 }
 0x30e   : > { %v2379_v58 = vpop.f32.mrf.mxu2 }
 0x30f   : > { %2984 = vst.msk [vmem:[%s5094_s16 + $0xf0] sm:$0xff] %vm246_vm1, %v2952_v51  ;;  %v2413_v5 = vadd.f32 %v2379_v58, %v2159_v47 }
 0x310   : > { %v2601_v34 = vpop.f32.mrf.mxu3 }
 0x311   : > { %v2635_v8 = vadd.f32 %v2601_v34, %v2413_v5 }
 0x313   : > { %v2889_v61 = vadd.f32 %v2855_v54, %v2635_v8 }
 0x315   : > { %v2953_v44 = vadd.f32 %v2921_v0, %v2889_v61 }
 0x317   : > { %2985 = vst.msk [vmem:[%s5094_s16 + $0xf8] sm:$0xff] %vm246_vm1, %v2953_v44 }
 0x318 PF: > { %s15_s18 = sadd.s32 1, %s3322_s18  }
 0x319   : > { %p12_p4 = scmp.ge.s32.totalorder %s15_s18, 4  }
 0x31b   :  { %14 = sbr.rel (!%p12_p4) target bundleno = 1 (0x1), region = 81 }

// kernel: basic_block_forward.2
= control target key start
LH: loop header
LB: loop body
LE: loop exit
PB: predicated region body
PF: predicated region fallthrough
CT: control target
= control target key end

     0   :  { %s3602_s30 = smov 0   ;;  %s5783_s0 = inlined_call_operand.vmem [shape: f32[2,256,4], index: 0, kind: input, shape index: {}]   ;;  %s5784_s1 = inlined_call_operand.vmem [shape: bf16[9,4,4], index: 1, kind: input, shape index: {}]   ;;  %s5785_s2 = inlined_call_operand.vmem [shape: f32[256,1], index: 2, kind: input, shape index: {}]   ;;  %s5786_s3 = inlined_call_operand.vmem [shape: f32[256,1], index: 3, kind: input, shape index: {}]   ;;  %s5787_s4 = inlined_call_operand.vmem [shape: f32[1,4], index: 4, kind: input, shape index: {}]   ;;  %s5788_s5 = inlined_call_operand.vmem [shape: f32[1,4], index: 5, kind: input, shape index: {}]   ;;  %s5789_s6 = inlined_call_operand.vmem [shape: f32[1,4], index: 6, kind: input, shape index: {}]   ;;  %s5790_s7 = inlined_call_operand.vmem [shape: f32[1,4], index: 7, kind: input, shape index: {}]   ;;  %s5791_s8 = inlined_call_operand.vmem [shape: f32[2,256,4], index: 8, kind: output, shape index: {0}]   ;;  %s5792_s9 = inlined_call_operand.vmem [shape: bf16[2,256,4], index: 9, kind: output, shape index: {1}]  }
   0x1 LB: > { %s3352_s10 = sadd.s32 4294967295, %s3548_s30   ;;  %p3356_p0 = scmp.ge.s32.totalorder %s3548_s30, 1  ;;  %s3548_s30 = sphi %s3602_s30, %s20_s30  }
   0x2   : > { %p290_p1 = scmp.lt.s32.totalorder %s3548_s30, 3 }
   0x4   : > { %p291_p2 = pnand %p3356_p0, %p290_p1 }
   0x6   : > { %294 = sbr.rel (%p291_p2) target bundleno = 804 (0x324), region = 52 }
   0xb   : > { %v619_v0 = vld [vmem:[%s5786_s3 + $0x10] sm:$0xff]  ;;  %v617_v1 = vld [vmem:[%s5786_s3] sm:$0xff]  ;;  %vm988_vm0 = vcmask 1041408   ;;  %vm451_vm1 = vcmask 31744   ;;  %v3550_v3 = vmov 0   ;;  %v3551_v6 = vmov 0.0  }
   0xc   : > { %v585_v2 = vld [vmem:[%s5785_s2] sm:$0xff]  ;;  %3535 = vset.pattern.permute.xlu2 %v3550_v3  ;;  %3534 = vset.pattern.permute.xlu1 %v3550_v3  ;;  %516 = vst.msk [vmem:[#allocation2] sm:$0xff] %vm451_vm1, %v3551_v6  ;;  %v620_v7 = vld [vmem:[%s5786_s3 + $0x18] sm:$0xff]  ;;  %v618_v8 = vld [vmem:[%s5786_s3 + $0x8] sm:$0xff]  ;;  %p331_p3 = scmp.lt.s32.totalorder %s3352_s10, 1  ;;  %vm3231_vm2 = vcmask 27648  }
   0xd   : > { %v3363_v4 = vld [vmem:[%s5784_s1 + $0x2] sm:$0x3]  ;;  %3533 = vset.pattern.permute.xlu0 %v3550_v3  ;;  %1265 = vperm.xlu2 %3535, %v619_v0   ;;  %517 = vst.msk [vmem:[#allocation2 + $0x8] sm:$0xff] %vm451_vm1, %v3551_v6  ;;  %v586_v9 = vld [vmem:[%s5785_s2 + $0x8] sm:$0xff]  ;;  %v587_v14 = vld [vmem:[%s5785_s2 + $0x10] sm:$0xff] }
   0xe   : > { %v990_v5 = vsel %vm988_vm0, %v3363_v4, 0  ;;  %1255 = vperm.xlu0 %3533, %v617_v1   ;;  %683 = vperm.xlu1 %3534, %v585_v2   ;;  %518 = vst.msk [vmem:[#allocation2 + $0x10] sm:$0xff] %vm451_vm1, %v3551_v6  ;;  %v621_v13 = vld [vmem:[%s5786_s3 + $0x20] sm:$0xff]  ;;  %v588_v15 = vld [vmem:[%s5785_s2 + $0x18] sm:$0xff]  ;;  %s6249_s10 = smov (!%p331_p3, %s3352_s10), 1  ;;  %v590_v16 = vld [vmem:[%s5785_s2 + $0x28] sm:$0xff] }
   0xf   : > { %999 = vmatpush.bf16.msra.mxu0 %v990_v5  ;;  %3521 = vmatpush.bf16.msra.mxu2 %v990_v5  ;;  %519 = vst.msk [vmem:[#allocation2 + $0x18] sm:$0xff] %vm451_vm1, %v3551_v6  ;;  %s3517_s12 = sshll.u32 %s6249_s10, 8  ;;  %v622_v17 = vld [vmem:[%s5786_s3 + $0x28] sm:$0xff]  ;;  %v589_v18 = vld [vmem:[%s5785_s2 + $0x20] sm:$0xff]  ;;  %v591_v26 = vld [vmem:[%s5785_s2 + $0x30] sm:$0xff]  ;;  %s3519_s18 = sshll.u32 %s6249_s10, 7 }
  0x10   : > { %3522 = vmatpush.bf16.msra.mxu3 %v990_v5  ;;  %3520 = vmatpush.bf16.msra.mxu1 %v990_v5  ;;  %520 = vst.msk [vmem:[#allocation2 + $0x20] sm:$0xff] %vm451_vm1, %v3551_v6  ;;  %s3701_s17 = scalar_lea.vmem %s5783_s0, %s3517_s12  ;;  %v3716_v19 = vld [vmem:[%s5787_s4] ss:$0 sm:$0xff]  ;;  %v623_v28 = vld [vmem:[%s5786_s3 + $0x30] sm:$0xff]  ;;  %v624_v29 = vld [vmem:[%s5786_s3 + $0x38] sm:$0xff]  ;;  %s3771_s16 = scalar_lea.vmem %s5791_s8, %s3517_s12 }
  0x11   : > { %521 = vst.msk [vmem:[#allocation2 + $0x28] sm:$0xff] %vm451_vm1, %v3551_v6  ;;  %v347_v20 = vld [vmem:[%s3701_s17] sm:$0xff]  ;;  %v348_v21 = vld [vmem:[%s3701_s17 + $0x8] sm:$0xff]  ;;  %v349_v25 = vld [vmem:[%s3701_s17 + $0x10] sm:$0xff]  ;;  %s5508_s21 = scalar_lea.vmem %s5792_s9, %s3519_s18 }
  0x12   : > { %522 = vst.msk [vmem:[#allocation2 + $0x30] sm:$0xff] %vm451_vm1, %v3551_v6  ;;  %v383_v22 = vmul.f32 %v3716_v19, %v347_v20  ;;  %v3732_v23 = vld [vmem:[%s5788_s5] ss:$0 sm:$0xff]  ;;  %v384_v24 = vmul.f32 %v3716_v19, %v348_v21  ;;  %v350_v27 = vld [vmem:[%s3701_s17 + $0x18] sm:$0xff]  ;;  %v385_v31 = vmul.f32 %v3716_v19, %v349_v25  ;;  %v361_v34 = vld [vmem:[%s3701_s17 + $0x70] sm:$0xff] }
  0x13   : > { %523 = vst.msk [vmem:[#allocation2 + $0x38] sm:$0xff] %vm451_vm1, %v3551_v6  ;;  %v386_v33 = vmul.f32 %v3716_v19, %v350_v27  ;;  %v362_v35 = vld [vmem:[%s3701_s17 + $0x78] sm:$0xff]  ;;  %v397_v38 = vmul.f32 %v3716_v19, %v361_v34  ;;  %v351_v42 = vld [vmem:[%s3701_s17 + $0x20] sm:$0xff]  ;;  %v626_v43 = vld [vmem:[%s5786_s3 + $0x48] sm:$0xff] }
  0x14   : > { %v890_v10 = vld [vmem:[#allocation2 + $0x1] sm:$0xff]  ;;  %524 = vst.msk [vmem:[#allocation2 + $0x40] sm:$0xff] %vm451_vm1, %v3551_v6  ;;  %v419_v30 = vadd.f32 %v3732_v23, %v383_v22  ;;  %v420_v32 = vadd.f32 %v3732_v23, %v384_v24  ;;  %v421_v37 = vadd.f32 %v3732_v23, %v385_v31  ;;  %v398_v41 = vmul.f32 %v3716_v19, %v362_v35  ;;  %v592_v45 = vld [vmem:[%s5785_s2 + $0x38] sm:$0xff]  ;;  %v369_v50 = vld [vmem:[%s3701_s17 + $0xb0] sm:$0xff] }
  0x15   : > { %1270 = vperm.xlu2 %3535, %v620_v7   ;;  %v891_v11 = vld [vmem:[#allocation2 + $0x9] sm:$0xff]  ;;  %525 = vst.msk [vmem:[#allocation2 + $0x48] sm:$0xff] %vm451_vm1, %v3551_v6  ;;  %v422_v40 = vadd.f32 %v3732_v23, %v386_v33  ;;  %v625_v46 = vld [vmem:[%s5786_s3 + $0x40] sm:$0xff]  ;;  %v433_v48 = vadd.f32 %v3732_v23, %v397_v38  ;;  %v387_v49 = vmul.f32 %v3716_v19, %v351_v42  ;;  %v370_v54 = vld [vmem:[%s3701_s17 + $0xb8] sm:$0xff] }
  0x16   : > { %1260 = vperm.xlu0 %3533, %v618_v8   ;;  %688 = vperm.xlu1 %3534, %v586_v9   ;;  %v922_v12 = vpack.c.bf16 %v891_v11, %v890_v10  ;;  %526 = vst.msk [vmem:[#allocation2 + $0x50] sm:$0xff] %vm451_vm1, %v3551_v6  ;;  %v484_v36 = vmax.f32 %v419_v30, 0.0  ;;  %v485_v39 = vmax.f32 %v420_v32, 0.0  ;;  %v352_v44 = vld [vmem:[%s3701_s17 + $0x28] sm:$0xff]  ;;  %v486_v47 = vmax.f32 %v421_v37, 0.0  ;;  %v353_v61 = vld [vmem:[%s3701_s17 + $0x30] sm:$0xff] }
  0x17   : > { %527 = vst.msk [vmem:[#allocation2 + $0x58] sm:$0xff] %vm451_vm1, %v3551_v6  ;;  %v487_v51 = vmax.f32 %v422_v40, 0.0  ;;  %v434_v52 = vadd.f32 %v3732_v23, %v398_v41  ;;  %v388_v53 = vmul.f32 %v3716_v19, %v352_v44  ;;  %v405_v55 = vmul.f32 %v3716_v19, %v369_v50  ;;  %v627_v62 = vld [vmem:[%s5786_s3 + $0x50] sm:$0xff]  ;;  %v354_v63 = vld [vmem:[%s3701_s17 + $0x38] sm:$0xff]  ;;  %v593_v1 = vld [vmem:[%s5785_s2 + $0x40] sm:$0xff] }
  0x18   : > { %3364 = vmatmul.msk.bf16.vlgmr.msra.gmra.mxu0 %vm451_vm1, %v922_v12  ;;  %528 = vst.msk [vmem:[#allocation2 + $0x60] sm:$0xff] %vm451_vm1, %v3551_v6  ;;  %v498_v56 = vmax.f32 %v433_v48, 0.0  ;;  %v423_v57 = vadd.f32 %v3732_v23, %v387_v49  ;;  %v406_v58 = vmul.f32 %v3716_v19, %v370_v54  ;;  %v594_v2 = vld [vmem:[%s5785_s2 + $0x48] sm:$0xff]  ;;  %v389_v7 = vmul.f32 %v3716_v19, %v353_v61  ;;  %v363_v11 = vld [vmem:[%s3701_s17 + $0x80] sm:$0xff]  ;;  %v595_v33 = vld [vmem:[%s5785_s2 + $0x50] sm:$0xff] }
  0x19   : > { %529 = vst.msk [vmem:[#allocation2 + $0x68] sm:$0xff] %vm451_vm1, %v3551_v6  ;;  %v499_v59 = vmax.f32 %v434_v52, 0.0  ;;  %v424_v60 = vadd.f32 %v3732_v23, %v388_v53  ;;  %v441_v3 = vadd.f32 %v3732_v23, %v405_v55  ;;  %v390_v10 = vmul.f32 %v3716_v19, %v354_v63  ;;  %v364_v12 = vld [vmem:[%s3701_s17 + $0x88] sm:$0xff]  ;;  %v3413_v22 = vld [vmem:[%s5784_s1 + $0x6] sm:$0x3]  ;;  %v366_v63 = vld [vmem:[%s3701_s17 + $0x98] sm:$0xff] }
  0x1a   : > { %530 = vst.msk [vmem:[#allocation2 + $0x70] sm:$0xff] %vm451_vm1, %v3551_v6  ;;  %v488_v5 = vmax.f32 %v423_v57, 0.0  ;;  %v399_v20 = vmul.f32 %v3716_v19, %v363_v11  ;;  %v889_v24 = vld [vmem:[%s5784_s1] sm:$0x3]  ;;  %v400_v25 = vmul.f32 %v3716_v19, %v364_v12  ;;  %v1766_v27 = vsel %vm988_vm0, %v3413_v22, 0  ;;  %v356_v44 = vld [vmem:[%s3701_s17 + $0x48] sm:$0xff] }
  0x1b   : > { %531 = vst.msk [vmem:[#allocation2 + $0x78] sm:$0xff] %vm451_vm1, %v3551_v6  ;;  %v489_v9 = vmax.f32 %v424_v60, 0.0  ;;  %v426_v21 = vadd.f32 %v3732_v23, %v390_v10  ;;  %1775 = vmatpush.bf16.msrb.mxu3 %v1766_v27  ;;  %v392_v50 = vmul.f32 %v3716_v19, %v356_v44  ;;  %v597_v53 = vld [vmem:[%s5785_s2 + $0x60] sm:$0xff]  ;;  %v631_v22 = vld [vmem:[%s5786_s3 + $0x70] sm:$0xff] }
  0x1c   : > { %532 = vst.msk [vmem:[#allocation2 + $0x80] sm:$0xff] %vm451_vm1, %v3551_v6  ;;  %v436_v41 = vadd.f32 %v3732_v23, %v400_v25  ;;  %v599_v44 = vld [vmem:[%s5785_s2 + $0x70] sm:$0xff] }
  0x1d   : > { %1275 = vperm.xlu2 %3535, %v621_v13   ;;  %533 = vst.msk [vmem:[#allocation2 + $0x88] sm:$0xff] %vm451_vm1, %v3551_v6  ;;  %v506_v13 = vmax.f32 %v441_v3, 0.0  ;;  %v428_v61 = vadd.f32 %v3732_v23, %v392_v50 }
  0x1e   : > { %693 = vperm.xlu0 %3533, %v587_v14   ;;  %698 = vperm.xlu1 %3534, %v588_v15   ;;  %534 = vst.msk [vmem:[#allocation2 + $0x90] sm:$0xff] %vm451_vm1, %v3551_v6  ;;  %v3396_v14 = vld [vmem:[%s5784_s1 + $0x4] sm:$0x3]  ;;  %v596_v15 = vld [vmem:[%s5785_s2 + $0x58] sm:$0xff] }
  0x1f   : > { %535 = vst.msk [vmem:[#allocation2 + $0x98] sm:$0xff] %vm451_vm1, %v3551_v6 }
  0x20   : > { %536 = vst.msk [vmem:[#allocation2 + $0xa0] sm:$0xff] %vm451_vm1, %v3551_v6 }
  0x21   : > { %537 = vst.msk [vmem:[#allocation2 + $0xa8] sm:$0xff] %vm451_vm1, %v3551_v6 }
  0x22   : > { %538 = vst.msk [vmem:[#allocation2 + $0xb0] sm:$0xff] %vm451_vm1, %v3551_v6 }
  0x23   : > { %539 = vst.msk [vmem:[#allocation2 + $0xb8] sm:$0xff] %vm451_vm1, %v3551_v6 }
  0x24   : > { %540 = vst.msk [vmem:[#allocation2 + $0xc0] sm:$0xff] %vm451_vm1, %v3551_v6 }
  0x25   : > { %708 = vperm.xlu2 %3535, %v590_v16   ;;  %541 = vst.msk [vmem:[#allocation2 + $0xc8] sm:$0xff] %vm451_vm1, %v3551_v6 }
  0x26   : > { %1280 = vperm.xlu0 %3533, %v622_v17   ;;  %703 = vperm.xlu1 %3534, %v589_v18   ;;  %542 = vst.msk [vmem:[#allocation2 + $0xd0] sm:$0xff] %vm451_vm1, %v3551_v6  ;;  %v425_v17 = vadd.f32 %v3732_v23, %v389_v7  ;;  %v1512_v18 = vsel %vm988_vm0, %v3396_v14, 0 }
  0x27   : > { %543 = vst.msk [vmem:[#allocation2 + $0xd8] sm:$0xff] %vm451_vm1, %v3551_v6  ;;  %1521 = vmatpush.bf16.msrb.mxu2 %v1512_v18  ;;  %v358_v18 = vld [vmem:[%s3701_s17 + $0x58] sm:$0xff] }
  0x28   : > { %544 = vst.msk [vmem:[#allocation2 + $0xe0] sm:$0xff] %vm451_vm1, %v3551_v6 }
  0x29   : > { %545 = vst.msk [vmem:[#allocation2 + $0xe8] sm:$0xff] %vm451_vm1, %v3551_v6 }
  0x2a   : > { %546 = vst.msk [vmem:[#allocation2 + $0xf0] sm:$0xff] %vm451_vm1, %v3551_v6 }
  0x2b   : > { %547 = vst.msk [vmem:[#allocation2 + $0xf8] sm:$0xff] %vm451_vm1, %v3551_v6 }
  0x2c   : > { %548 = vst.msk [vmem:[#allocation2 + $0x100] sm:$0xff] %vm451_vm1, %v3551_v6 }
  0x2d   : > { %713 = vperm.xlu2 %3535, %v591_v26   ;;  %549 = vst.msk [vmem:[#allocation2 + $0x108] sm:$0xff] %vm451_vm1, %v3551_v6  ;;  %v371_v26 = vld [vmem:[%s3701_s17 + $0xc0] sm:$0xff] }
  0x2e   : > { %1285 = vperm.xlu0 %3533, %v623_v28   ;;  %1290 = vperm.xlu1 %3534, %v624_v29   ;;  %550 = vst.msk [vmem:[#allocation2 + $0x110] sm:$0xff] %vm451_vm1, %v3551_v6  ;;  %v1130_v28 = vsel %vm988_vm0, %v889_v24, 0  ;;  %v3430_v29 = vld [vmem:[%s5784_s1 + $0x8] sm:$0x3]  ;;  %v407_v38 = vmul.f32 %v3716_v19, %v371_v26 }
  0x2f   : > { %551 = vst.msk [vmem:[#allocation2 + $0x118] sm:$0xff] %vm451_vm1, %v3551_v6  ;;  %1139 = vmatpush.bf16.msrb.mxu1 %v1130_v28  ;;  %v1988_v34 = vsel %vm988_vm0, %v3430_v29, 0 }
  0x30   : > { %552 = vst.msk [vmem:[#allocation2 + $0x120] sm:$0xff] %vm451_vm1, %v3551_v6  ;;  %v442_v6 = vadd.f32 %v3732_v23, %v406_v58  ;;  %1997 = vmatpush.bf16.msrb.mxu0 %v1988_v34 }
  0x31   : > { %452 = vst.msk [vmem:[%s3771_s16] sm:$0xff] %vm451_vm1, %v419_v30  ;;  %v372_v30 = vld [vmem:[%s3701_s17 + $0xc8] sm:$0xff] }
  0x32   : > { %453 = vst.msk [vmem:[%s3771_s16 + $0x8] sm:$0xff] %vm451_vm1, %v420_v32  ;;  %v507_v16 = vmax.f32 %v442_v6, 0.0  ;;  %v628_v32 = vld [vmem:[%s5786_s3 + $0x58] sm:$0xff]  ;;  %v408_v42 = vmul.f32 %v3716_v19, %v372_v30 }
  0x33   : > { %553 = vst.msk [vmem:[#allocation2 + $0x11] sm:$0xff] %vm451_vm1, %v484_v36  ;;  %v490_v36 = vmax.f32 %v425_v17, 0.0 }
  0x34   : > { %554 = vst.msk [vmem:[#allocation2 + $0x19] sm:$0xff] %vm451_vm1, %v485_v39 }
  0x35   : > { %1300 = vperm.xlu2 %3535, %v626_v43   ;;  %454 = vst.msk [vmem:[%s3771_s16 + $0x10] sm:$0xff] %vm451_vm1, %v421_v37  ;;  %v435_v37 = vadd.f32 %v3732_v23, %v399_v20  ;;  %v355_v43 = vld [vmem:[%s3701_s17 + $0x40] sm:$0xff] }
  0x36   : > { %718 = vperm.xlu0 %3533, %v592_v45   ;;  %1295 = vperm.xlu1 %3534, %v625_v46   ;;  %455 = vst.msk [vmem:[%s3771_s16 + $0x18] sm:$0xff] %vm451_vm1, %v422_v40  ;;  %v491_v40 = vmax.f32 %v426_v21, 0.0  ;;  %v391_v49 = vmul.f32 %v3716_v19, %v355_v43 }
  0x37   : > { %555 = vst.msk [vmem:[#allocation2 + $0x21] sm:$0xff] %vm451_vm1, %v486_v47  ;;  %v500_v47 = vmax.f32 %v435_v37, 0.0 }
  0x38   : > { %556 = vst.msk [vmem:[#allocation2 + $0x29] sm:$0xff] %vm451_vm1, %v487_v51  ;;  %v501_v51 = vmax.f32 %v436_v41, 0.0 }
  0x39   : > { %466 = vst.msk [vmem:[%s3771_s16 + $0x70] sm:$0xff] %vm451_vm1, %v433_v48  ;;  %v443_v48 = vadd.f32 %v3732_v23, %v407_v38 }
  0x3a   : > { %v892_v0 = vld [vmem:[#allocation2 + $0x11] sm:$0xff]  ;;  %467 = vst.msk [vmem:[%s3771_s16 + $0x78] sm:$0xff] %vm451_vm1, %v434_v52  ;;  %v444_v52 = vadd.f32 %v3732_v23, %v408_v42 }
  0x3b   : > { %v893_v4 = vld [vmem:[#allocation2 + $0x19] sm:$0xff]  ;;  %567 = vst.msk [vmem:[#allocation2 + $0x81] sm:$0xff] %vm451_vm1, %v498_v56 }
  0x3c   : > { %v3833_v8 = vpack.c.bf16 %v893_v4, %v892_v0  ;;  %568 = vst.msk [vmem:[#allocation2 + $0x89] sm:$0xff] %vm451_vm1, %v499_v59  ;;  %v629_v56 = vld [vmem:[%s5786_s3 + $0x60] sm:$0xff]  ;;  %v508_v59 = vmax.f32 %v443_v48, 0.0  ;;  %v373_v4 = vld [vmem:[%s3701_s17 + $0xd0] sm:$0xff] }
  0x3d   : > { %1305 = vperm.xlu2 %3535, %v627_v62   ;;  %456 = vst.msk [vmem:[%s3771_s16 + $0x20] sm:$0xff] %vm451_vm1, %v423_v57  ;;  %v630_v57 = vld [vmem:[%s5786_s3 + $0x68] sm:$0xff]  ;;  %v365_v62 = vld [vmem:[%s3701_s17 + $0x90] sm:$0xff]  ;;  %v409_v11 = vmul.f32 %v3716_v19, %v373_v4 }
  0x3e   : > { %723 = vperm.xlu0 %3533, %v593_v1   ;;  %728 = vperm.xlu1 %3534, %v594_v2   ;;  %457 = vst.msk [vmem:[%s3771_s16 + $0x28] sm:$0xff] %vm451_vm1, %v424_v60  ;;  %v894_v45 = vld [vmem:[#allocation2 + $0x21] sm:$0xff]  ;;  %v427_v60 = vadd.f32 %v3732_v23, %v391_v49  ;;  %v509_v1 = vmax.f32 %v444_v52, 0.0  ;;  %v401_v2 = vmul.f32 %v3716_v19, %v365_v62 }
  0x3f   : > { %3365 = vmatmul.msk.bf16.gmra.mxu0 %vm451_vm1, %v3833_v8  ;;  %557 = vst.msk [vmem:[#allocation2 + $0x31] sm:$0xff] %vm451_vm1, %v488_v5  ;;  %v895_v46 = vld [vmem:[#allocation2 + $0x29] sm:$0xff]  ;;  %v374_v5 = vld [vmem:[%s3701_s17 + $0xd8] sm:$0xff]  ;;  %v445_v26 = vadd.f32 %v3732_v23, %v409_v11 }
  0x40   : > { %558 = vst.msk [vmem:[#allocation2 + $0x39] sm:$0xff] %vm451_vm1, %v489_v9  ;;  %v3906_v54 = vpack.c.bf16 %v895_v46, %v894_v45  ;;  %v492_v9 = vmax.f32 %v427_v60, 0.0  ;;  %v437_v10 = vadd.f32 %v3732_v23, %v401_v2  ;;  %v600_v45 = vld [vmem:[%s5785_s2 + $0x78] sm:$0xff]  ;;  %v368_v49 = vld [vmem:[%s3701_s17 + $0xa8] sm:$0xff] }
  0x41   : > { %474 = vst.msk [vmem:[%s3771_s16 + $0xb0] sm:$0xff] %vm451_vm1, %v441_v3  ;;  %v402_v3 = vmul.f32 %v3716_v19, %v366_v63  ;;  %v602_v2 = vld [vmem:[%s5785_s2 + $0x88] sm:$0xff] }
  0x42   : > { %v906_v31 = vld [vmem:[#allocation2 + $0x81] sm:$0xff]  ;;  %475 = vst.msk [vmem:[%s3771_s16 + $0xb8] sm:$0xff] %vm451_vm1, %v442_v6  ;;  %v502_v25 = vmax.f32 %v437_v10, 0.0 }
  0x43   : > { %v907_v35 = vld [vmem:[#allocation2 + $0x89] sm:$0xff]  ;;  %575 = vst.msk [vmem:[#allocation2 + $0xc1] sm:$0xff] %vm451_vm1, %v506_v13  ;;  %v493_v13 = vmax.f32 %v428_v61, 0.0  ;;  %v438_v14 = vadd.f32 %v3732_v23, %v402_v3 }
  0x44   : > { %v930_v39 = vpack.c.bf16 %v907_v35, %v906_v31  ;;  %576 = vst.msk [vmem:[#allocation2 + $0xc9] sm:$0xff] %vm451_vm1, %v507_v16  ;;  %v357_v16 = vld [vmem:[%s3701_s17 + $0x50] sm:$0xff]  ;;  %v394_v31 = vmul.f32 %v3716_v19, %v358_v18 }
  0x45   : > { %738 = vperm.xlu2 %3535, %v596_v15   ;;  %458 = vst.msk [vmem:[%s3771_s16 + $0x30] sm:$0xff] %vm451_vm1, %v425_v17  ;;  %v410_v15 = vmul.f32 %v3716_v19, %v374_v5  ;;  %v632_v17 = vld [vmem:[%s5786_s3 + $0x78] sm:$0xff]  ;;  %v393_v27 = vmul.f32 %v3716_v19, %v357_v16  ;;  %v503_v29 = vmax.f32 %v438_v14, 0.0  ;;  %v634_v5 = vld [vmem:[%s5786_s3 + $0x88] sm:$0xff] }
  0x46   : > { %1310 = vperm.xlu0 %3533, %v628_v32   ;;  %733 = vperm.xlu1 %3534, %v595_v33   ;;  %459 = vst.msk [vmem:[%s3771_s16 + $0x38] sm:$0xff] %vm451_vm1, %v426_v21  ;;  %v598_v21 = vld [vmem:[%s5785_s2 + $0x68] sm:$0xff]  ;;  %v896_v32 = vld [vmem:[#allocation2 + $0x31] sm:$0xff] }
  0x47   : > { %3372 = vmatmul.msk.bf16.vlgmr.msra.gmra.mxu2 %vm451_vm1, %v930_v39  ;;  %559 = vst.msk [vmem:[#allocation2 + $0x41] sm:$0xff] %vm451_vm1, %v490_v36  ;;  %v446_v30 = vadd.f32 %v3732_v23, %v410_v15  ;;  %v897_v33 = vld [vmem:[#allocation2 + $0x39] sm:$0xff]  ;;  %v510_v36 = vmax.f32 %v445_v26, 0.0  ;;  %v430_v39 = vadd.f32 %v3732_v23, %v394_v31 }
  0x48   : > { %560 = vst.msk [vmem:[#allocation2 + $0x49] sm:$0xff] %vm451_vm1, %v491_v40  ;;  %v633_v40 = vld [vmem:[%s5786_s3 + $0x80] sm:$0xff]  ;;  %v4031_v11 = vld [vmem:[#allocation2 + $0x32] sm:$0xff] }
  0x49   : > { %468 = vst.msk [vmem:[%s3771_s16 + $0x80] sm:$0xff] %vm451_vm1, %v435_v37  ;;  %v429_v37 = vadd.f32 %v3732_v23, %v393_v27  ;;  %v511_v38 = vmax.f32 %v446_v30, 0.0  ;;  %v495_v50 = vmax.f32 %v430_v39, 0.0 }
  0x4a   : > { %v914_v55 = vld [vmem:[#allocation2 + $0xc1] sm:$0xff]  ;;  %469 = vst.msk [vmem:[%s3771_s16 + $0x88] sm:$0xff] %vm451_vm1, %v436_v41  ;;  %v3978_v41 = vpack.c.bf16 %v897_v33, %v896_v32 }
  0x4b   : > { %v915_v58 = vld [vmem:[#allocation2 + $0xc9] sm:$0xff]  ;;  %569 = vst.msk [vmem:[#allocation2 + $0x91] sm:$0xff] %vm451_vm1, %v500_v47  ;;  %v494_v47 = vmax.f32 %v429_v37, 0.0 }
  0x4c   : > { %v934_v0 = vpack.c.bf16 %v915_v58, %v914_v55  ;;  %570 = vst.msk [vmem:[#allocation2 + $0x99] sm:$0xff] %vm451_vm1, %v501_v51  ;;  %v375_v55 = vld [vmem:[%s3701_s17 + $0xe0] sm:$0xff] }
  0x4d   : > { %743 = vperm.xlu2 %3535, %v597_v53   ;;  %476 = vst.msk [vmem:[%s3771_s16 + $0xc0] sm:$0xff] %vm451_vm1, %v443_v48  ;;  %v367_v48 = vld [vmem:[%s3701_s17 + $0xa0] sm:$0xff] }
  0x4e   : > { %1315 = vperm.xlu0 %3533, %v629_v56   ;;  %1320 = vperm.xlu1 %3534, %v630_v57   ;;  %v898_v6 = vld [vmem:[#allocation2 + $0x41] sm:$0xff]  ;;  %477 = vst.msk [vmem:[%s3771_s16 + $0xc8] sm:$0xff] %vm451_vm1, %v444_v52  ;;  %v403_v51 = vmul.f32 %v3716_v19, %v367_v48  ;;  %v404_v52 = vmul.f32 %v3716_v19, %v368_v49 }
  0x4f   : > { %3366 = vmatmul.msk.bf16.gmra.mxu0 %vm451_vm1, %v3906_v54  ;;  %3376 = vmatmul.msk.bf16.vlgmr.msra.gmra.mxu3 %vm451_vm1, %v934_v0  ;;  %v899_v7 = vld [vmem:[#allocation2 + $0x49] sm:$0xff]  ;;  %577 = vst.msk [vmem:[#allocation2 + $0xd1] sm:$0xff] %vm451_vm1, %v508_v59  ;;  %v411_v59 = vmul.f32 %v3716_v19, %v375_v55  ;;  %v4071_v32 = vld [vmem:[#allocation2 + $0x3a] sm:$0xff] }
  0x50   : > { %v3936_v12 = vpack.c.bf16 %v899_v7, %v898_v6  ;;  %578 = vst.msk [vmem:[#allocation2 + $0xd9] sm:$0xff] %vm451_vm1, %v509_v1  ;;  %v376_v56 = vld [vmem:[%s3701_s17 + $0xe8] sm:$0xff]  ;;  %v439_v57 = vadd.f32 %v3732_v23, %v403_v51  ;;  %v440_v58 = vadd.f32 %v3732_v23, %v404_v52  ;;  %v601_v6 = vld [vmem:[%s5785_s2 + $0x80] sm:$0xff]  ;;  %v639_v52 = vld [vmem:[%s5786_s3 + $0xb0] sm:$0xff] }
  0x51   : > { %460 = vst.msk [vmem:[%s3771_s16 + $0x40] sm:$0xff] %vm451_vm1, %v427_v60  ;;  %v412_v62 = vmul.f32 %v3716_v19, %v376_v56  ;;  %v447_v1 = vadd.f32 %v3732_v23, %v411_v59  ;;  %v605_v56 = vld [vmem:[%s5785_s2 + $0xa0] sm:$0xff] }
  0x52   : > { %3368 = vmatmul.msk.bf16.vlgmr.msra.gmra.mxu1 %vm451_vm1, %v3936_v12  ;;  %v908_v20 = vld [vmem:[#allocation2 + $0x91] sm:$0xff]  ;;  %461 = vst.msk [vmem:[%s3771_s16 + $0x48] sm:$0xff] %vm451_vm1, %v428_v61  ;;  %v504_v63 = vmax.f32 %v439_v57, 0.0  ;;  %v505_v0 = vmax.f32 %v440_v58, 0.0 }
  0x53   : > { %v909_v24 = vld [vmem:[#allocation2 + $0x99] sm:$0xff]  ;;  %561 = vst.msk [vmem:[#allocation2 + $0x51] sm:$0xff] %vm451_vm1, %v492_v9  ;;  %v448_v3 = vadd.f32 %v3732_v23, %v412_v62  ;;  %v512_v7 = vmax.f32 %v447_v1, 0.0 }
  0x54   : > { %v931_v28 = vpack.c.bf16 %v909_v24, %v908_v20  ;;  %562 = vst.msk [vmem:[#allocation2 + $0x59] sm:$0xff] %vm451_vm1, %v493_v13  ;;  %v359_v9 = vld [vmem:[%s3701_s17 + $0x60] sm:$0xff] }
  0x55   : > { %1330 = vperm.xlu2 %3535, %v632_v17   ;;  %470 = vst.msk [vmem:[%s3771_s16 + $0x90] sm:$0xff] %vm451_vm1, %v437_v10  ;;  %v360_v10 = vld [vmem:[%s3701_s17 + $0x68] sm:$0xff]  ;;  %v513_v13 = vmax.f32 %v448_v3, 0.0 }
  0x56   : > { %748 = vperm.xlu0 %3533, %v598_v21   ;;  %1325 = vperm.xlu1 %3534, %v631_v22   ;;  %471 = vst.msk [vmem:[%s3771_s16 + $0x98] sm:$0xff] %vm451_vm1, %v438_v14  ;;  %v916_v34 = vld [vmem:[#allocation2 + $0xd1] sm:$0xff]  ;;  %v395_v14 = vmul.f32 %v3716_v19, %v359_v9  ;;  %v396_v15 = vmul.f32 %v3716_v19, %v360_v10  ;;  %v4041_v17 = vld [vmem:[#allocation2 + $0x22] sm:$0xff]  ;;  %v3481_v10 = vld [vmem:[%s5784_s1 + $0xe] sm:$0x3] }
  0x57   : > { %3373 = vmatmul.msk.bf16.gmra.mxu2 %vm451_vm1, %v931_v28  ;;  %v917_v35 = vld [vmem:[#allocation2 + $0xd9] sm:$0xff]  ;;  %571 = vst.msk [vmem:[#allocation2 + $0xa1] sm:$0xff] %vm451_vm1, %v502_v25  ;;  %v635_v28 = vld [vmem:[%s5786_s3 + $0x90] sm:$0xff] }
  0x58   : > { %572 = vst.msk [vmem:[#allocation2 + $0xa9] sm:$0xff] %vm451_vm1, %v503_v29  ;;  %v935_v42 = vpack.c.bf16 %v917_v35, %v916_v34  ;;  %v431_v18 = vadd.f32 %v3732_v23, %v395_v14  ;;  %v432_v20 = vadd.f32 %v3732_v23, %v396_v15  ;;  %v603_v23 = vld [vmem:[%s5785_s2 + $0x90] sm:$0xff]  ;;  %v636_v29 = vld [vmem:[%s5786_s3 + $0x98] sm:$0xff]  ;;  %v2718_v15 = vsel %vm988_vm0, %v3481_v10, 0 }
  0x59   : > { %478 = vst.msk [vmem:[%s3771_s16 + $0xd0] sm:$0xff] %vm451_vm1, %v445_v26  ;;  %v4081_v35 = vld [vmem:[#allocation2 + $0x2a] sm:$0xff]  ;;  %2727 = vmatpush.bf16.msra.mxu3 %v2718_v15 }
  0x5a   : > { %v900_v43 = vld [vmem:[#allocation2 + $0x51] sm:$0xff]  ;;  %479 = vst.msk [vmem:[%s3771_s16 + $0xd8] sm:$0xff] %vm451_vm1, %v446_v30  ;;  %v496_v25 = vmax.f32 %v431_v18, 0.0  ;;  %v497_v26 = vmax.f32 %v432_v20, 0.0 }
  0x5b   : > { %v901_v46 = vld [vmem:[#allocation2 + $0x59] sm:$0xff]  ;;  %579 = vst.msk [vmem:[#allocation2 + $0xe1] sm:$0xff] %vm451_vm1, %v510_v36  ;;  %v607_v14 = vld [vmem:[%s5785_s2 + $0xb0] sm:$0xff] }
  0x5c   : > { %580 = vst.msk [vmem:[#allocation2 + $0xe9] sm:$0xff] %vm451_vm1, %v511_v38  ;;  %v3994_v53 = vpack.c.bf16 %v901_v46, %v900_v43  ;;  %v4106_v46 = vld [vmem:[#allocation2 + $0x42] sm:$0xff] }
  0x5d   : > { %1335 = vperm.xlu2 %3535, %v633_v40   ;;  %462 = vst.msk [vmem:[%s3771_s16 + $0x50] sm:$0xff] %vm451_vm1, %v429_v37 }
  0x5e   : > { %753 = vperm.xlu0 %3533, %v599_v44   ;;  %758 = vperm.xlu1 %3534, %v600_v45   ;;  %463 = vst.msk [vmem:[%s3771_s16 + $0x58] sm:$0xff] %vm451_vm1, %v430_v39  ;;  %v910_v60 = vld [vmem:[#allocation2 + $0xa1] sm:$0xff]  ;;  %v604_v44 = vld [vmem:[%s5785_s2 + $0x98] sm:$0xff] }
  0x5f   : > { %3367 = vmatmul.msk.bf16.gmra.mxu0 %vm451_vm1, %v3978_v41  ;;  %3377 = vmatmul.msk.bf16.gmra.mxu3 %vm451_vm1, %v935_v42  ;;  %v911_v61 = vld [vmem:[#allocation2 + $0xa9] sm:$0xff]  ;;  %563 = vst.msk [vmem:[#allocation2 + $0x61] sm:$0xff] %vm451_vm1, %v494_v47  ;;  %v637_v45 = vld [vmem:[%s5786_s3 + $0xa0] sm:$0xff] }
  0x60   : > { %564 = vst.msk [vmem:[#allocation2 + $0x69] sm:$0xff] %vm451_vm1, %v495_v50  ;;  %v932_v4 = vpack.c.bf16 %v911_v61, %v910_v60  ;;  %v638_v42 = vld [vmem:[%s5786_s3 + $0xa8] sm:$0xff]  ;;  %v4130_v61 = vld [vmem:[#allocation2 + $0x12] sm:$0xff] }
  0x61   : > { %472 = vst.msk [vmem:[%s3771_s16 + $0xa0] sm:$0xff] %vm451_vm1, %v439_v57  ;;  %v606_v57 = vld [vmem:[%s5785_s2 + $0xa8] sm:$0xff] }
  0x62   : > { %3369 = vmatmul.msk.bf16.gmra.mxu1 %vm451_vm1, %v3994_v53  ;;  %473 = vst.msk [vmem:[%s3771_s16 + $0xa8] sm:$0xff] %vm451_vm1, %v440_v58  ;;  %v918_v21 = vld [vmem:[#allocation2 + $0xe1] sm:$0xff] }
  0x63   : > { %573 = vst.msk [vmem:[#allocation2 + $0xb1] sm:$0xff] %vm451_vm1, %v504_v63  ;;  %v919_v19 = vld [vmem:[#allocation2 + $0xe9] sm:$0xff] }
  0x64   : > { %574 = vst.msk [vmem:[#allocation2 + $0xb9] sm:$0xff] %vm451_vm1, %v505_v0  ;;  %v936_v27 = vpack.c.bf16 %v919_v19, %v918_v21  ;;  %v4128_v60 = vld [vmem:[#allocation2 + $0x48] sm:$0xff]  ;;  %v4139_v0 = vld [vmem:[#allocation2 + $0x20] sm:$0xff]  ;;  %v4177_v21 = vld [vmem:[#allocation2 + $0x50] sm:$0xff] }
  0x65   : > { %768 = vperm.xlu2 %3535, %v602_v2   ;;  %480 = vst.msk [vmem:[%s3771_s16 + $0xe0] sm:$0xff] %vm451_vm1, %v447_v1  ;;  %v4179_v19 = vld [vmem:[#allocation2 + $0x1a] sm:$0xff] }
  0x66   : > { %1340 = vperm.xlu0 %3533, %v634_v5   ;;  %763 = vperm.xlu1 %3534, %v601_v6   ;;  %481 = vst.msk [vmem:[%s3771_s16 + $0xe8] sm:$0xff] %vm451_vm1, %v448_v3  ;;  %v902_v30 = vld [vmem:[#allocation2 + $0x61] sm:$0xff] }
  0x67   : > { %3374 = vmatmul.msk.bf16.gmra.mxu2 %vm451_vm1, %v932_v4  ;;  %v4039_v16 = vpop.permute.xlu2 %1265  ;;  %581 = vst.msk [vmem:[#allocation2 + $0xf1] sm:$0xff] %vm451_vm1, %v512_v7  ;;  %v903_v31 = vld [vmem:[#allocation2 + $0x69] sm:$0xff]  ;;  %v608_v7 = vld [vmem:[%s5785_s2 + $0xb8] sm:$0xff] }
  0x68   : > { %v4049_v22 = vmul.f32 %v4041_v17, %v4039_v16  ;;  %v4053_v24 = vmul.f32 %v4031_v11, %v4039_v16  ;;  %582 = vst.msk [vmem:[#allocation2 + $0xf9] sm:$0xff] %vm451_vm1, %v513_v13  ;;  %v4077_v33 = vpack.c.bf16 %v903_v31, %v902_v30  ;;  %v640_v13 = vld [vmem:[%s5786_s3 + $0xb8] sm:$0xff] }
  0x69   : > { %464 = vst.msk [vmem:[%s3771_s16 + $0x60] sm:$0xff] %vm451_vm1, %v431_v18  ;;  %v3447_v18 = vld [vmem:[%s5784_s1 + $0xa] sm:$0x3] }
  0x6a   : > { %5912 = vst [vmem:[#allocation3_spill] sm:$0xff] %v4049_v22  ;;  %v912_v38 = vld [vmem:[#allocation2 + $0xb1] sm:$0xff] }
  0x6b   : > { %5913 = vst [vmem:[#allocation4_spill] sm:$0xff] %v4053_v24  ;;  %v913_v39 = vld [vmem:[#allocation2 + $0xb9] sm:$0xff] }
  0x6c   : > { %465 = vst.msk [vmem:[%s3771_s16 + $0x68] sm:$0xff] %vm451_vm1, %v432_v20  ;;  %v933_v43 = vpack.c.bf16 %v913_v39, %v912_v38  ;;  %v2242_v20 = vsel %vm988_vm0, %v3447_v18, 0  ;;  %v650_v39 = vld [vmem:[#allocation2 + $0x8] sm:$0xff]  ;;  %v4224_v18 = vld [vmem:[#allocation2 + $0x30] sm:$0xff]  ;;  %v612_v22 = vld [vmem:[%s5785_s2 + $0xd8] sm:$0xff] }
  0x6d   : > { %565 = vst.msk [vmem:[#allocation2 + $0x71] sm:$0xff] %vm451_vm1, %v496_v25  ;;  %773 = vperm.xlu2 %3535, %v603_v23   ;;  %2251 = vmatpush.bf16.msra.mxu1 %v2242_v20  ;;  %v1221_v25 = vld [vmem:[#allocation2 + $0x2] sm:$0xff]  ;;  %v4228_v20 = vld [vmem:[#allocation2 + $0x38] sm:$0xff] }
  0x6e   : > { %566 = vst.msk [vmem:[#allocation2 + $0x79] sm:$0xff] %vm451_vm1, %v497_v26  ;;  %1345 = vperm.xlu0 %3533, %v635_v28   ;;  %1350 = vperm.xlu1 %3534, %v636_v29   ;;  %v920_v48 = vld [vmem:[#allocation2 + $0xf1] sm:$0xff]  ;;  %v4181_v23 = vld [vmem:[#allocation2 + $0x28] sm:$0xff] }
  0x6f   : > { %3431 = vmatmul.msk.bf16.vlgmr.msrb.gmra.mxu0 %vm451_vm1, %v3833_v8  ;;  %3378 = vmatmul.msk.bf16.gmra.mxu3 %vm451_vm1, %v936_v27  ;;  %v4079_v34 = vpop.permute.xlu2 %1270  ;;  %v921_v49 = vld [vmem:[#allocation2 + $0xf9] sm:$0xff]  ;;  %v1222_v26 = vld [vmem:[#allocation2 + $0xa] sm:$0xff] }
  0x70   : > { %v4085_v36 = vmul.f32 %v4081_v35, %v4079_v34  ;;  %v4089_v37 = vmul.f32 %v4071_v32, %v4079_v34  ;;  %v937_v55 = vpack.c.bf16 %v921_v49, %v920_v48  ;;  %v4183_v27 = vld [vmem:[#allocation2 + $0x10] sm:$0xff]  ;;  %v4187_v29 = vld [vmem:[#allocation2 + $0x18] sm:$0xff]  ;;  %v649_v48 = vld [vmem:[#allocation2] sm:$0xff] }
  0x72   : > { %5914 = vst [vmem:[#allocation5_spill] sm:$0xff] %v4085_v36  ;;  %3370 = vmatmul.msk.bf16.gmra.mxu1 %vm451_vm1, %v4077_v33  ;;  %v4324_v36 = vld [vmem:[#allocation2 + $0x52] sm:$0xff] }
  0x73   : > { %5915 = vst [vmem:[#allocation6_spill] sm:$0xff] %v4089_v37 }
  0x74   : > { %v904_v58 = vld [vmem:[#allocation2 + $0x71] sm:$0xff] }
  0x75   : > { %1360 = vperm.xlu2 %3535, %v638_v42   ;;  %v905_v59 = vld [vmem:[#allocation2 + $0x79] sm:$0xff]  ;;  %v4222_v15 = vld [vmem:[#allocation2 + $0x6a] sm:$0xff] }
  0x76   : > { %778 = vperm.xlu0 %3533, %v604_v44   ;;  %1355 = vperm.xlu1 %3534, %v637_v45   ;;  %v4135_v62 = vpack.c.bf16 %v905_v59, %v904_v58  ;;  %v611_v59 = vld [vmem:[%s5785_s2 + $0xd0] sm:$0xff] }
  0x77   : > { %3375 = vmatmul.msk.bf16.gmra.mxu2 %vm451_vm1, %v933_v43  ;;  %v4109_v47 = vpop.permute.xlu2 %1275 }
  0x78   : > { %v4113_v50 = vmul.f32 %v4031_v11, %v4109_v47  ;;  %v4117_v51 = vmul.f32 %v4106_v46, %v4109_v47 }
  0x7a   : > { %5916 = vst [vmem:[#allocation7_spill] sm:$0xff] %v4113_v50 }
  0x7b   : > { %5917 = vst [vmem:[#allocation8_spill] sm:$0xff] %v4117_v51 }
  0x7d   : > { %1365 = vperm.xlu2 %3535, %v639_v52  }
  0x7e   : > { %783 = vperm.xlu0 %3533, %v605_v56   ;;  %788 = vperm.xlu1 %3534, %v606_v57   ;;  %v609_v56 = vld [vmem:[%s5785_s2 + $0xc0] sm:$0xff] }
  0x7f   : > { %3432 = vmatmul.msk.bf16.gmra.mxu0 %vm451_vm1, %v3906_v54  ;;  %3379 = vmatmul.msk.bf16.gmra.mxu3 %vm451_vm1, %v937_v55  ;;  %v4137_v63 = vpop.permute.xlu2 %708  ;;  %v3464_v54 = vld [vmem:[%s5784_s1 + $0xc] sm:$0x3] }
  0x80   : > { %v1256_v1 = vpop.permute.xlu0 %1255  ;;  %v4143_v2 = vmul.f32 %v4128_v60, %v4137_v63  ;;  %v684_v3 = vpop.permute.xlu1 %683  ;;  %v2496_v9 = vsel %vm988_vm0, %v3464_v54, 0  ;;  %v641_v54 = vld [vmem:[%s5786_s3 + $0xc0] sm:$0xff] }
  0x81   : > { %v4146_v4 = vmul.f32 %v1256_v1, %v4130_v61  ;;  %v4149_v5 = vmul.f32 %v4041_v17, %v1256_v1  ;;  %v4155_v6 = vmul.f32 %v4139_v0, %v684_v3  ;;  %2505 = vmatpush.bf16.msra.mxu2 %v2496_v9  ;;  %v1413_v42 = vmul.f32 %v1256_v1, %v1221_v25 }
  0x82   : > { %5918 = vst [vmem:[#allocation9_spill] sm:$0xff] %v4143_v2  ;;  %3371 = vmatmul.msk.bf16.gmra.mxu1 %vm451_vm1, %v4135_v62  ;;  %v1667_v49 = vmul.f32 %v4183_v27, %v684_v3  ;;  %v647_v2 = vld [vmem:[%s5786_s3 + $0xf0] sm:$0xff] }
  0x83   : > { %5919 = vst [vmem:[#allocation10_spill] sm:$0xff] %v4146_v4 }
  0x84   : > { %5920 = vst [vmem:[#allocation11_spill] sm:$0xff] %v4149_v5  ;;  %v4508_v5 = vld [vmem:[#allocation2 + $0xa8] sm:$0xff] }
  0x85   : > { %5921 = vst [vmem:[#allocation12_spill] sm:$0xff] %v4155_v6  ;;  %798 = vperm.xlu2 %3535, %v608_v7   ;;  %v642_v7 = vld [vmem:[%s5786_s3 + $0xc8] sm:$0xff] }
  0x86   : > { %1370 = vperm.xlu0 %3533, %v640_v13   ;;  %793 = vperm.xlu1 %3534, %v607_v14   ;;  %v841_v13 = vmul.f32 %v684_v3, %v649_v48  ;;  %v4220_v14 = vld [vmem:[#allocation2 + $0x5a] sm:$0xff]  ;;  %5957 = vst [vmem:[#allocation48_spill] sm:$0xff] %v4508_v5 }
  0x87   : > { %v4185_v28 = vpop.permute.xlu2 %713 }
  0x88   : > { %v1261_v30 = vpop.permute.xlu0 %1260  ;;  %v4191_v31 = vmul.f32 %v4177_v21, %v4185_v28  ;;  %v689_v38 = vpop.permute.xlu1 %688 }
  0x89   : > { %v1414_v43 = vmul.f32 %v1261_v30, %v1222_v26  ;;  %v4194_v44 = vmul.f32 %v1261_v30, %v4179_v19  ;;  %v4197_v45 = vmul.f32 %v4081_v35, %v1261_v30  ;;  %v1668_v52 = vmul.f32 %v4187_v29, %v689_v38  ;;  %v3498_v26 = vld [vmem:[%s5784_s1 + $0x10] sm:$0x3] }
  0x8a   : > { %5922 = vst [vmem:[#allocation13_spill] sm:$0xff] %v4191_v31  ;;  %v4202_v55 = vmul.f32 %v689_v38, %v4181_v23  ;;  %v842_v1 = vmul.f32 %v689_v38, %v650_v39  ;;  %v846_v31 = vmul.f32 %v4137_v63, %v4181_v23 }
  0x8b   : > { %5923 = vst [vmem:[#allocation14_spill] sm:$0xff] %v4194_v44  ;;  %v1445_v57 = vpack.c.bf16 %v1414_v43, %v1413_v42  ;;  %v1699_v9 = vpack.c.bf16 %v1668_v52, %v1667_v49  ;;  %v2972_v42 = vsel %vm988_vm0, %v3498_v26, 0  ;;  %v644_v49 = vld [vmem:[%s5786_s3 + $0xd8] sm:$0xff]  ;;  %v610_v52 = vld [vmem:[%s5785_s2 + $0xc8] sm:$0xff] }
  0x8c   : > { %5924 = vst [vmem:[#allocation15_spill] sm:$0xff] %v4197_v45  ;;  %v873_v25 = vpack.c.bf16 %v842_v1, %v841_v13  ;;  %2981 = vmatpush.bf16.msra.mxu0 %v2972_v42  ;;  %v4263_v1 = vld [vmem:[#allocation2 + $0x62] sm:$0xff]  ;;  %v847_v45 = vmul.f32 %v4185_v28, %v4224_v18 }
  0x8d   : > { %5925 = vst [vmem:[#allocation16_spill] sm:$0xff] %v4202_v55  ;;  %3397 = vmatmul.msk.bf16.vlgmr.msrb.gmra.mxu2 %vm451_vm1, %v1445_v57  ;;  %803 = vperm.xlu2 %3535, %v609_v56   ;;  %v643_v56 = vld [vmem:[%s5786_s3 + $0xd0] sm:$0xff]  ;;  %v645_v57 = vld [vmem:[%s5786_s3 + $0xe0] sm:$0xff] }
  0x8e   : > { %1375 = vperm.xlu0 %3533, %v641_v54   ;;  %1380 = vperm.xlu1 %3534, %v642_v7   ;;  %v4265_v54 = vld [vmem:[#allocation2 + $0x72] sm:$0xff]  ;;  %v1415_v7 = vmul.f32 %v4039_v16, %v4130_v61 }
  0x8f   : > { %3433 = vmatmul.msk.bf16.gmra.mxu0 %vm451_vm1, %v3978_v41  ;;  %3414 = vmatmul.msk.bf16.vlgmr.msrb.gmra.mxu3 %vm451_vm1, %v1699_v9  ;;  %v4231_v3 = vpop.permute.xlu2 %1300  ;;  %v1416_v9 = vmul.f32 %v4079_v34, %v4179_v19 }
  0x90   : > { %v4238_v30 = vmul.f32 %v4220_v14, %v4231_v3  ;;  %v4242_v38 = vmul.f32 %v4222_v15, %v4231_v3  ;;  %v694_v41 = vpop.permute.xlu0 %693  ;;  %v699_v39 = vpop.permute.xlu1 %698 }
  0x91   : > { %v4246_v43 = vmul.f32 %v694_v41, %v4224_v18  ;;  %v4249_v48 = vmul.f32 %v4228_v20, %v699_v39  ;;  %v1669_v16 = vmul.f32 %v4139_v0, %v694_v41  ;;  %v1670_v34 = vmul.f32 %v699_v39, %v4181_v23  ;;  %v4439_v23 = vld [vmem:[#allocation2 + $0x68] sm:$0xff] }
  0x92   : > { %5926 = vst [vmem:[#allocation17_spill] sm:$0xff] %v4238_v30  ;;  %3380 = vmatmul.msk.bf16.vlgmr.msrb.gmra.mxu1 %vm451_vm1, %v873_v25  ;;  %v4273_v25 = vld [vmem:[#allocation2 + $0x4a] sm:$0xff]  ;;  %v1446_v40 = vpack.c.bf16 %v1416_v9, %v1415_v7  ;;  %v4317_v7 = vld [vmem:[#allocation2 + $0x78] sm:$0xff] }
  0x93   : > { %5927 = vst [vmem:[#allocation18_spill] sm:$0xff] %v4242_v38  ;;  %v1700_v58 = vpack.c.bf16 %v1670_v34, %v1669_v16  ;;  %v4364_v34 = vld [vmem:[#allocation2 + $0x80] sm:$0xff]  ;;  %v615_v16 = vld [vmem:[%s5785_s2 + $0xf0] sm:$0xff] }
  0x94   : > { %5928 = vst [vmem:[#allocation19_spill] sm:$0xff] %v4246_v43  ;;  %v843_v43 = vmul.f32 %v4183_v27, %v694_v41  ;;  %v4550_v38 = vld [vmem:[#allocation2 + $0xb0] sm:$0xff] }
  0x95   : > { %5929 = vst [vmem:[#allocation20_spill] sm:$0xff] %v4249_v48  ;;  %1390 = vperm.xlu2 %3535, %v644_v49   ;;  %v844_v48 = vmul.f32 %v4187_v29, %v699_v39  ;;  %v614_v39 = vld [vmem:[%s5785_s2 + $0xe8] sm:$0xff] }
  0x96   : > { %808 = vperm.xlu0 %3533, %v610_v52   ;;  %1385 = vperm.xlu1 %3534, %v643_v56   ;;  %v4285_v56 = vld [vmem:[#allocation2 + $0x40] sm:$0xff]  ;;  %5964 = vst [vmem:[#allocation55_spill] sm:$0xff] %v4550_v38 }
  0x97   : > { %v4271_v13 = vpop.permute.xlu2 %1305  ;;  %v874_v41 = vpack.c.bf16 %v844_v48, %v843_v43  ;;  %v646_v43 = vld [vmem:[%s5786_s3 + $0xe8] sm:$0xff]  ;;  %v613_v48 = vld [vmem:[%s5785_s2 + $0xe0] sm:$0xff] }
  0x98   : > { %v4277_v26 = vmul.f32 %v4263_v1, %v4271_v13  ;;  %v4281_v42 = vmul.f32 %v4265_v54, %v4271_v13  ;;  %v1281_v49 = vpop.permute.xlu0 %1280  ;;  %v4283_v52 = vpop.permute.xlu1 %703 }
  0x99   : > { %v4290_v61 = vmul.f32 %v4071_v32, %v1281_v49  ;;  %v4293_v19 = vmul.f32 %v1281_v49, %v4273_v25  ;;  %v4297_v8 = vmul.f32 %v4285_v56, %v4283_v52  ;;  %v1418_v10 = vmul.f32 %v4081_v35, %v1281_v49 }
  0x9a   : > { %5930 = vst [vmem:[#allocation21_spill] sm:$0xff] %v4277_v26  ;;  %v845_v44 = vmul.f32 %v4139_v0, %v4283_v52  ;;  %v4425_v0 = vld [vmem:[#allocation2 + $0x60] sm:$0xff]  ;;  %v4556_v26 = vld [vmem:[#allocation2 + $0x88] sm:$0xff] }
  0x9b   : > { %5931 = vst [vmem:[#allocation22_spill] sm:$0xff] %v4281_v42 }
  0x9c   : > { %5932 = vst [vmem:[#allocation23_spill] sm:$0xff] %v4290_v61  ;;  %v4371_v61 = vld [vmem:[#allocation2 + $0x58] sm:$0xff] }
  0x9d   : > { %5933 = vst [vmem:[#allocation24_spill] sm:$0xff] %v4293_v19  ;;  %3398 = vmatmul.msk.bf16.gmra.mxu2 %vm451_vm1, %v1446_v40  ;;  %1395 = vperm.xlu2 %3535, %v645_v57  }
  0x9e   : > { %5934 = vst [vmem:[#allocation25_spill] sm:$0xff] %v4297_v8  ;;  %813 = vperm.xlu0 %3533, %v611_v59   ;;  %818 = vperm.xlu1 %3534, %v612_v22  }
  0x9f   : > { %3434 = vmatmul.msk.bf16.gmra.mxu0 %vm451_vm1, %v3936_v12  ;;  %3415 = vmatmul.msk.bf16.gmra.mxu3 %vm451_vm1, %v1700_v58  ;;  %v4322_v9 = vpop.permute.xlu2 %738 }
  0xa0   : > { %v4328_v27 = vmul.f32 %v4317_v7, %v4322_v9  ;;  %v4330_v40 = vpop.permute.xlu0 %1285  ;;  %v4332_v29 = vpop.permute.xlu1 %1290 }
  0xa1   : > { %v4336_v22 = vmul.f32 %v4106_v46, %v4330_v40  ;;  %v4340_v12 = vmul.f32 %v4330_v40, %v4324_v36  ;;  %v4344_v58 = vmul.f32 %v4332_v29, %v4273_v25  ;;  %v4348_v59 = vmul.f32 %v4220_v14, %v4332_v29 }
  0xa2   : > { %5935 = vst [vmem:[#allocation26_spill] sm:$0xff] %v4328_v27  ;;  %3381 = vmatmul.msk.bf16.gmra.mxu1 %vm451_vm1, %v874_v41  ;;  %v4366_v41 = vpop.f32.mrf.mxu0  ;;  %v1419_v4 = vmul.f32 %v4031_v11, %v4330_v40  ;;  %v4481_v11 = vld [vmem:[#allocation2 + $0x70] sm:$0xff] }
  0xa3   : > { %5936 = vst [vmem:[#allocation27_spill] sm:$0xff] %v4336_v22 }
  0xa4   : > { %5937 = vst [vmem:[#allocation28_spill] sm:$0xff] %v4340_v12  ;;  %v648_v12 = vld [vmem:[%s5786_s3 + $0xf8] sm:$0xff] }
  0xa5   : > { %5938 = vst [vmem:[#allocation29_spill] sm:$0xff] %v4344_v58  ;;  %828 = vperm.xlu2 %3535, %v614_v39   ;;  %v1417_v39 = vmul.f32 %v4041_v17, %v4109_v47  ;;  %v1672_v17 = vmul.f32 %v4228_v20, %v4137_v63  ;;  %v4416_v47 = vld [vmem:[#allocation2 + $0x9a] sm:$0xff] }
  0xa6   : > { %5939 = vst [vmem:[#allocation30_spill] sm:$0xff] %v4348_v59  ;;  %1400 = vperm.xlu0 %3533, %v646_v43   ;;  %823 = vperm.xlu1 %3534, %v613_v48   ;;  %v1671_v43 = vmul.f32 %v4283_v52, %v4224_v18 }
  0xa7   : > { %v4369_v50 = vpop.permute.xlu2 %743  ;;  %v1447_v58 = vpack.c.bf16 %v1418_v10, %v1417_v39  ;;  %v4414_v39 = vld [vmem:[#allocation2 + $0x8a] sm:$0xff]  ;;  %5944 = vst [vmem:[#allocation35_spill] sm:$0xff] %v4416_v47 }
  0xa8   : > { %v4375_v8 = vmul.f32 %v4364_v34, %v4369_v50  ;;  %v719_v57 = vpop.permute.xlu0 %718  ;;  %v4377_v22 = vpop.permute.xlu1 %1295  ;;  %v1701_v10 = vpack.c.bf16 %v1672_v17, %v1671_v43  ;;  %v616_v17 = vld [vmem:[%s5785_s2 + $0xf8] sm:$0xff] }
  0xa9   : > { %v4384_v48 = vmul.f32 %v719_v57, %v4371_v61  ;;  %v4388_v35 = vmul.f32 %v4377_v22, %v4324_v36  ;;  %v4392_v49 = vmul.f32 %v4263_v1, %v4377_v22  ;;  %v848_v24 = vmul.f32 %v4228_v20, %v719_v57 }
  0xaa   : > { %5940 = vst [vmem:[#allocation31_spill] sm:$0xff] %v4375_v8  ;;  %v1421_v55 = vmul.f32 %v4106_v46, %v4377_v22 }
  0xab   : > { %5941 = vst [vmem:[#allocation32_spill] sm:$0xff] %v4384_v48 }
  0xac   : > { %5942 = vst [vmem:[#allocation33_spill] sm:$0xff] %v4388_v35  ;;  %v1420_v35 = vmul.f32 %v4071_v32, %v4332_v29  ;;  %v1674_v32 = vmul.f32 %v4128_v60, %v719_v57 }
  0xad   : > { %5943 = vst [vmem:[#allocation34_spill] sm:$0xff] %v4392_v49  ;;  %3399 = vmatmul.msk.bf16.gmra.mxu2 %vm451_vm1, %v1447_v58  ;;  %833 = vperm.xlu2 %3535, %v615_v16   ;;  %v4445_v16 = vpop.f32.mrf.mxu0  ;;  %v1673_v49 = vmul.f32 %v4285_v56, %v4185_v28 }
  0xae   : > { %1405 = vperm.xlu0 %3533, %v647_v2   ;;  %1410 = vperm.xlu1 %3534, %v648_v12   ;;  %5948 = vst [vmem:[#allocation39_spill] sm:$0xff] %v4445_v16  ;;  %v1448_v19 = vpack.c.bf16 %v1420_v35, %v1419_v4  ;;  %v4517_v35 = vld [vmem:[#allocation2 + $0x82] sm:$0xff] }
  0xaf   : > { %3435 = vmatmul.msk.bf16.gmra.mxu0 %vm451_vm1, %v3994_v53  ;;  %3416 = vmatmul.msk.bf16.gmra.mxu3 %vm451_vm1, %v1701_v10  ;;  %v4423_v59 = vpop.permute.xlu2 %1330  ;;  %v875_v53 = vpack.c.bf16 %v846_v31, %v845_v44  ;;  %v4457_v31 = vld [vmem:[#allocation2 + $0x92] sm:$0xff]  ;;  %v4459_v44 = vld [vmem:[#allocation2 + $0xa2] sm:$0xff]  ;;  %v1702_v37 = vpack.c.bf16 %v1674_v32, %v1673_v49  ;;  %v876_v49 = vpack.c.bf16 %v848_v24, %v847_v45 }
  0xb0   : > { %v4429_v52 = vmul.f32 %v4414_v39, %v4423_v59  ;;  %v4433_v2 = vmul.f32 %v4416_v47, %v4423_v59  ;;  %v4435_v12 = vpop.permute.xlu0 %723  ;;  %v4437_v63 = vpop.permute.xlu1 %728  ;;  %5950 = vst [vmem:[#allocation41_spill] sm:$0xff] %v4457_v31  ;;  %v1422_v24 = vmul.f32 %v4231_v3, %v4273_v25 }
  0xb1   : > { %v4443_v58 = vmul.f32 %v4435_v12, %v4425_v0  ;;  %v4449_v43 = vmul.f32 %v4439_v23, %v4437_v63  ;;  %v1675_v45 = vmul.f32 %v4177_v21, %v4435_v12  ;;  %v1676_v46 = vmul.f32 %v4437_v63, %v4371_v61 }
  0xb2   : > { %5945 = vst [vmem:[#allocation36_spill] sm:$0xff] %v4429_v52  ;;  %3382 = vmatmul.msk.bf16.gmra.mxu1 %vm451_vm1, %v875_v53  ;;  %v4467_v53 = vld [vmem:[#allocation2 + $0x7a] sm:$0xff]  ;;  %v1449_v25 = vpack.c.bf16 %v1422_v24, %v1421_v55  ;;  %v4601_v55 = vld [vmem:[#allocation2 + $0xca] sm:$0xff]  ;;  %v4645_v52 = vld [vmem:[#allocation2 + $0xd2] sm:$0xff] }
  0xb3   : > { %5946 = vst [vmem:[#allocation37_spill] sm:$0xff] %v4433_v2  ;;  %v1903_v2 = vld [vmem:[#allocation2 + $0x81] sm:$0xff] }
  0xb4   : > { %5947 = vst [vmem:[#allocation38_spill] sm:$0xff] %v4443_v58 }
  0xb5   : > { %5949 = vst [vmem:[#allocation40_spill] sm:$0xff] %v4449_v43 }
  0xb6   : > { %838 = vperm.xlu0 %3533, %v616_v17   ;;  %5972 = vst [vmem:[#allocation63_spill] sm:$0xff] %v4601_v55 }
  0xb7   : > { %v4465_v30 = vpop.permute.xlu2 %1335 }
  0xb8   : > { %v4471_v48 = vmul.f32 %v4457_v31, %v4465_v30  ;;  %v4475_v10 = vmul.f32 %v4459_v44, %v4465_v30  ;;  %v4477_v58 = vpop.permute.xlu0 %1310  ;;  %v4479_v17 = vpop.permute.xlu1 %733 }
  0xb9   : > { %v4486_v40 = vmul.f32 %v4222_v15, %v4477_v58  ;;  %v4490_v29 = vmul.f32 %v4477_v58, %v4467_v53  ;;  %v4494_v43 = vmul.f32 %v4481_v11, %v4479_v17  ;;  %v1424_v8 = vmul.f32 %v4220_v14, %v4477_v58 }
  0xba   : > { %5951 = vst [vmem:[#allocation42_spill] sm:$0xff] %v4471_v48 }
  0xbb   : > { %5952 = vst [vmem:[#allocation43_spill] sm:$0xff] %v4475_v10 }
  0xbc   : > { %5953 = vst [vmem:[#allocation44_spill] sm:$0xff] %v4486_v40  ;;  %v4502_v6 = vpop.f32.mrf.mxu0 }
  0xbd   : > { %5954 = vst [vmem:[#allocation45_spill] sm:$0xff] %v4490_v29  ;;  %3400 = vmatmul.msk.bf16.gmra.mxu2 %vm451_vm1, %v1448_v19  ;;  %v849_v29 = vmul.f32 %v4285_v56, %v4435_v12  ;;  %v4610_v56 = vld [vmem:[#allocation2 + $0x90] sm:$0xff] }
  0xbe   : > { %5955 = vst [vmem:[#allocation46_spill] sm:$0xff] %v4494_v43 }
  0xbf   : > { %5956 = vst [vmem:[#allocation47_spill] sm:$0xff] %v4502_v6  ;;  %3436 = vmatmul.msk.bf16.gmra.mxu0 %vm451_vm1, %v4077_v33  ;;  %3417 = vmatmul.msk.bf16.gmra.mxu3 %vm451_vm1, %v1702_v37  ;;  %v4515_v4 = vpop.permute.xlu2 %768  ;;  %v377_v6 = vld [vmem:[%s3701_s17 + $0xf0] sm:$0xff] }
  0xc0   : > { %v4521_v20 = vmul.f32 %v4508_v5, %v4515_v4  ;;  %v4523_v19 = vpop.permute.xlu0 %1315  ;;  %v4525_v57 = vpop.permute.xlu1 %1320  ;;  %v378_v5 = vld [vmem:[%s3701_s17 + $0xf8] sm:$0xff] }
  0xc1   : > { %v4529_v28 = vmul.f32 %v4265_v54, %v4523_v19  ;;  %v4533_v33 = vmul.f32 %v4523_v19, %v4517_v35  ;;  %v4537_v37 = vmul.f32 %v4525_v57, %v4467_v53  ;;  %v4541_v18 = vmul.f32 %v4414_v39, %v4525_v57 }
  0xc2   : > { %5958 = vst [vmem:[#allocation49_spill] sm:$0xff] %v4521_v20  ;;  %3383 = vmatmul.msk.bf16.gmra.mxu1 %vm451_vm1, %v876_v49  ;;  %v4760_v20 = vld [vmem:[#allocation2 + $0xe0] sm:$0xff] }
  0xc3   : > { %5959 = vst [vmem:[#allocation50_spill] sm:$0xff] %v4529_v28 }
  0xc4   : > { %5960 = vst [vmem:[#allocation51_spill] sm:$0xff] %v4533_v33  ;;  %v4544_v32 = vpop.f32.mrf.mxu0 }
  0xc5   : > { %5961 = vst [vmem:[#allocation52_spill] sm:$0xff] %v4537_v37 }
  0xc6   : > { %5962 = vst [vmem:[#allocation53_spill] sm:$0xff] %v4541_v18 }
  0xc7   : > { %5963 = vst [vmem:[#allocation54_spill] sm:$0xff] %v4544_v32  ;;  %v4554_v51 = vpop.permute.xlu2 %773  ;;  %v850_v32 = vmul.f32 %v4128_v60, %v4437_v63 }
  0xc8   : > { %5965 = vst [vmem:[#allocation56_spill] sm:$0xff] %v4554_v51  ;;  %v4560_v49 = vmul.f32 %v4550_v38, %v4554_v51  ;;  %v4562_v40 = vpop.permute.xlu0 %748  ;;  %v4564_v43 = vpop.permute.xlu1 %1325  ;;  %v4599_v38 = vld [vmem:[#allocation2 + $0xba] sm:$0xff] }
  0xc9   : > { %v4574_v22 = vmul.f32 %v4562_v40, %v4556_v26  ;;  %v4578_v28 = vmul.f32 %v4564_v43, %v4517_v35  ;;  %v4582_v37 = vmul.f32 %v4457_v31, %v4564_v43  ;;  %6003 = vst [vmem:[#allocation94_spill] sm:$0xff] %v4760_v20 }
  0xca   : > { %5966 = vst [vmem:[#allocation57_spill] sm:$0xff] %v4560_v49  ;;  %v4584_v27 = vpop.f32.mrf.mxu2  ;;  %v1427_v49 = vmul.f32 %v4265_v54, %v4564_v43 }
  0xcb   : > { %5967 = vst [vmem:[#allocation58_spill] sm:$0xff] %v4574_v22 }
  0xcc   : > { %5968 = vst [vmem:[#allocation59_spill] sm:$0xff] %v4578_v28  ;;  %v4588_v33 = vpop.f32.mrf.mxu0 }
  0xcd   : > { %5969 = vst [vmem:[#allocation60_spill] sm:$0xff] %v4582_v37  ;;  %3401 = vmatmul.msk.bf16.gmra.mxu2 %vm451_vm1, %v1449_v25  ;;  %v1423_v37 = vmul.f32 %v4271_v13, %v4324_v36  ;;  %v1677_v36 = vmul.f32 %v4479_v17, %v4425_v0  ;;  %v4669_v13 = vld [vmem:[#allocation2 + $0xa0] sm:$0xff] }
  0xce   : > { %5970 = vst [vmem:[#allocation61_spill] sm:$0xff] %v4584_v27  ;;  %v1703_v27 = vpack.c.bf16 %v1676_v46, %v1675_v45  ;;  %v4622_v45 = vld [vmem:[#allocation2 + $0x98] sm:$0xff] }
  0xcf   : > { %5971 = vst [vmem:[#allocation62_spill] sm:$0xff] %v4588_v33  ;;  %3437 = vmatmul.msk.bf16.gmra.mxu0 %vm451_vm1, %v4135_v62  ;;  %v4606_v24 = vpop.permute.xlu2 %1360  ;;  %v4608_v18 = vpop.f32.mrf.mxu1  ;;  %v877_v62 = vpack.c.bf16 %v850_v32, %v849_v29  ;;  %v4643_v32 = vld [vmem:[#allocation2 + $0xc2] sm:$0xff] }
  0xd0   : > { %3418 = vmatmul.msk.bf16.gmra.mxu3 %vm451_vm1, %v1703_v27  ;;  %5973 = vst [vmem:[#allocation64_spill] sm:$0xff] %v4606_v24  ;;  %v4614_v60 = vmul.f32 %v4599_v38, %v4606_v24  ;;  %v4618_v12 = vmul.f32 %v4601_v55, %v4606_v24  ;;  %v4620_v63 = vpop.permute.xlu0 %753  ;;  %v4628_v46 = vpop.permute.xlu1 %758  ;;  %v1450_v24 = vpack.c.bf16 %v1424_v8, %v1423_v37  ;;  %v4706_v37 = vld [vmem:[#allocation2 + $0xd8] sm:$0xff] }
  0xd1   : > { %5974 = vst [vmem:[#allocation65_spill] sm:$0xff] %v4608_v18  ;;  %v4626_v27 = vmul.f32 %v4620_v63, %v4610_v56  ;;  %v4634_v3 = vmul.f32 %v4622_v45, %v4628_v46  ;;  %v1678_v18 = vmul.f32 %v4439_v23, %v4322_v9  ;;  %v851_v8 = vmul.f32 %v4177_v21, %v4479_v17 }
  0xd2   : > { %5975 = vst [vmem:[#allocation66_spill] sm:$0xff] %v4614_v60  ;;  %v4630_v25 = vpop.f32.mrf.mxu3  ;;  %v4636_v42 = vpop.f32.mrf.mxu2  ;;  %3384 = vmatmul.msk.bf16.gmra.mxu1 %vm451_vm1, %v877_v62  ;;  %v1681_v54 = vmul.f32 %v4364_v34, %v4620_v63  ;;  %v1682_v43 = vmul.f32 %v4628_v46, %v4556_v26 }
  0xd3   : > { %5976 = vst [vmem:[#allocation67_spill] sm:$0xff] %v4618_v12  ;;  %v1907_v12 = vld [vmem:[#allocation2 + $0xa1] sm:$0xff] }
  0xd4   : > { %5977 = vst [vmem:[#allocation68_spill] sm:$0xff] %v4626_v27  ;;  %v4639_v28 = vpop.f32.mrf.mxu0 }
  0xd5   : > { %5978 = vst [vmem:[#allocation69_spill] sm:$0xff] %v4630_v25  ;;  %v1904_v25 = vld [vmem:[#allocation2 + $0x89] sm:$0xff] }
  0xd6   : > { %5979 = vst [vmem:[#allocation70_spill] sm:$0xff] %v4634_v3  ;;  %v1928_v51 = vpack.c.bf16 %v1904_v25, %v1903_v2  ;;  %v1704_v2 = vpack.c.bf16 %v1678_v18, %v1677_v36  ;;  %v3541_v25 = vld [vmem:[%s5788_s5] ss:$0 sm:$0xff]  ;;  %v4721_v18 = vld [vmem:[#allocation2 + $0xb2] sm:$0xff] }
  0xd7   : > { %5980 = vst [vmem:[#allocation71_spill] sm:$0xff] %v4636_v42  ;;  %v4649_v22 = vpop.permute.xlu2 %1365  ;;  %v4653_v62 = vpop.f32.mrf.mxu1  ;;  %v4655_v42 = vld [vmem:[#allocation2 + $0xaa] sm:$0xff] }
  0xd8   : > { %5981 = vst [vmem:[#allocation72_spill] sm:$0xff] %v4639_v28  ;;  %v4659_v29 = vmul.f32 %v4643_v32, %v4649_v22  ;;  %v4663_v27 = vmul.f32 %v4645_v52, %v4649_v22  ;;  %v4665_v14 = vpop.permute.xlu0 %1340 }
  0xd9   : > { %5982 = vst [vmem:[#allocation73_spill] sm:$0xff] %v4643_v32  ;;  %v4673_v58 = vmul.f32 %v4416_v47, %v4665_v14  ;;  %v4677_v3 = vmul.f32 %v4665_v14, %v4655_v42 }
  0xda   : > { %5983 = vst [vmem:[#allocation74_spill] sm:$0xff] %v4649_v22  ;;  %v4683_v28 = vpop.f32.mrf.mxu3  ;;  %v4689_v33 = vpop.f32.mrf.mxu2 }
  0xdb   : > { %5984 = vst [vmem:[#allocation75_spill] sm:$0xff] %v4653_v62  ;;  %v4679_v62 = vpop.permute.xlu1 %763 }
  0xdc   : > { %5985 = vst [vmem:[#allocation76_spill] sm:$0xff] %v4659_v29  ;;  %v4687_v22 = vmul.f32 %v4669_v13, %v4679_v62  ;;  %v4699_v31 = vpop.f32.mrf.mxu0  ;;  %v1430_v29 = vmul.f32 %v4414_v39, %v4665_v14 }
  0xdd   : > { %5986 = vst [vmem:[#allocation77_spill] sm:$0xff] %v4663_v27  ;;  %3402 = vmatmul.msk.bf16.gmra.mxu2 %vm451_vm1, %v1450_v24  ;;  %v4961_v27 = vld [vmem:[#allocation2 + $0xe8] sm:$0xff] }
  0xde   : > { %5987 = vst [vmem:[#allocation78_spill] sm:$0xff] %v4673_v58 }
  0xdf   : > { %5988 = vst [vmem:[#allocation79_spill] sm:$0xff] %v4677_v3  ;;  %3438 = vmatmul.msk.bf16.gmra.mxu0 %vm451_vm1, %v1928_v51  ;;  %v4719_v17 = vpop.f32.mrf.mxu1  ;;  %v1425_v3 = vmul.f32 %v4263_v1, %v4523_v19 }
  0xe0   : > { %5989 = vst [vmem:[#allocation80_spill] sm:$0xff] %v4683_v28  ;;  %v3540_v28 = vld [vmem:[%s5787_s4] ss:$0 sm:$0xff]  ;;  %3419 = vmatmul.msk.bf16.gmra.mxu3 %vm451_vm1, %v1704_v2  ;;  %v4727_v24 = vpop.permute.xlu0 %1345 }
  0xe1   : > { %5990 = vst [vmem:[#allocation81_spill] sm:$0xff] %v4687_v22  ;;  %v413_v47 = vmul.f32 %v3540_v28, %v377_v6  ;;  %v852_v6 = vmul.f32 %v4322_v9, %v4371_v61  ;;  %v4731_v51 = vmul.f32 %v4459_v44, %v4727_v24  ;;  %v4735_v9 = vmul.f32 %v4727_v24, %v4721_v18 }
  0xe2   : > { %5991 = vst [vmem:[#allocation82_spill] sm:$0xff] %v4689_v33  ;;  %v4715_v33 = vpop.permute.xlu2 %798  ;;  %v4740_v36 = vpop.f32.mrf.mxu3  ;;  %v414_v48 = vmul.f32 %v3540_v28, %v378_v5  ;;  %v1905_v28 = vld [vmem:[#allocation2 + $0x91] sm:$0xff] }
  0xe3   : > { %5992 = vst [vmem:[#allocation83_spill] sm:$0xff] %v4699_v31  ;;  %v449_v16 = vadd.f32 %v3541_v25, %v413_v47  ;;  %v4725_v47 = vmul.f32 %v4706_v37, %v4715_v33  ;;  %v878_v61 = vpack.c.bf16 %v852_v6, %v851_v8  ;;  %v4750_v6 = vpop.f32.mrf.mxu2  ;;  %v4922_v31 = vld [vmem:[#allocation2 + $0xe2] sm:$0xff] }
  0xe4   : > { %5993 = vst [vmem:[#allocation84_spill] sm:$0xff] %v4706_v37  ;;  %v4754_v58 = vpop.f32.mrf.mxu0  ;;  %v450_v10 = vadd.f32 %v3541_v25, %v414_v48 }
  0xe5   : > { %482 = vst.msk [vmem:[%s3771_s16 + $0xf0] sm:$0xff] %vm451_vm1, %v449_v16  ;;  %v514_v21 = vmax.f32 %v449_v16, 0.0  ;;  %v4737_v16 = vpop.permute.xlu1 %1350  ;;  %3385 = vmatmul.msk.bf16.gmra.mxu1 %vm451_vm1, %v878_v61  ;;  %v1906_v61 = vld [vmem:[#allocation2 + $0x99] sm:$0xff] }
  0xe6   : > { %5994 = vst [vmem:[#allocation85_spill] sm:$0xff] %v4719_v17  ;;  %v4744_v2 = vmul.f32 %v4737_v16, %v4655_v42  ;;  %v4748_v8 = vmul.f32 %v4599_v38, %v4737_v16  ;;  %v515_v5 = vmax.f32 %v450_v10, 0.0 }
  0xe7   : > { %5995 = vst [vmem:[#allocation86_spill] sm:$0xff] %v4725_v47 }
  0xe8   : > { %5996 = vst [vmem:[#allocation87_spill] sm:$0xff] %v4731_v51  ;;  %v4772_v51 = vld [vmem:[#allocation2 + $0xb8] sm:$0xff]  ;;  %v4778_v25 = vpop.permute.xlu0 %778 }
  0xe9   : > { %5997 = vst [vmem:[#allocation88_spill] sm:$0xff] %v4735_v9  ;;  %v4784_v1 = vmul.f32 %v4778_v25, %v4772_v51  ;;  %v1929_v9 = vpack.c.bf16 %v1906_v61, %v1905_v28  ;;  %v4814_v61 = vld [vmem:[#allocation2 + $0xea] sm:$0xff] }
  0xea   : > { %583 = vst.msk [vmem:[#allocation2 + $0x101] sm:$0xff] %vm451_vm1, %v514_v21  ;;  %v4770_v21 = vpop.f32.mrf.mxu1  ;;  %v4789_v19 = vpop.f32.mrf.mxu3 }
  0xeb   : > { %5998 = vst [vmem:[#allocation89_spill] sm:$0xff] %v4740_v36  ;;  %v1426_v36 = vmul.f32 %v4222_v15, %v4525_v57  ;;  %v1680_v15 = vmul.f32 %v4317_v7, %v4562_v40 }
  0xec   : > { %5999 = vst [vmem:[#allocation90_spill] sm:$0xff] %v4744_v2  ;;  %v1679_v2 = vmul.f32 %v4481_v11, %v4369_v50  ;;  %v4805_v17 = vpop.f32.mrf.mxu0 }
  0xed   : > { %6000 = vst [vmem:[#allocation91_spill] sm:$0xff] %v4748_v8 }
  0xee   : > { %6001 = vst [vmem:[#allocation92_spill] sm:$0xff] %v4750_v6  ;;  %v4766_v6 = vpop.permute.xlu2 %803  ;;  %v1705_v28 = vpack.c.bf16 %v1680_v15, %v1679_v2 }
  0xef   : > { %6002 = vst [vmem:[#allocation93_spill] sm:$0xff] %v4754_v58  ;;  %v4776_v48 = vmul.f32 %v4760_v20, %v4766_v6  ;;  %3439 = vmatmul.msk.bf16.gmra.mxu0 %vm451_vm1, %v1929_v9  ;;  %v4826_v20 = vld [vmem:[#allocation2 + $0xc0] sm:$0xff] }
  0xf0   : > { %6004 = vst [vmem:[#allocation95_spill] sm:$0xff] %v4766_v6  ;;  %v854_v6 = vmul.f32 %v4439_v23, %v4562_v40  ;;  %3420 = vmatmul.msk.bf16.gmra.mxu3 %vm451_vm1, %v1705_v28  ;;  %v4836_v2 = vpop.permute.xlu0 %783 }
  0xf1   : > { %483 = vst.msk [vmem:[%s3771_s16 + $0xf8] sm:$0xff] %vm451_vm1, %v450_v10  ;;  %v4786_v10 = vpop.permute.xlu1 %1355  ;;  %v4816_v8 = vld [vmem:[#allocation2 + $0xfa] sm:$0xff]  ;;  %v4842_v9 = vmul.f32 %v4836_v2, %v4826_v20 }
  0xf2   : > { %6005 = vst [vmem:[#allocation96_spill] sm:$0xff] %v4770_v21  ;;  %v4793_v57 = vmul.f32 %v4786_v10, %v4721_v18  ;;  %v4797_v22 = vmul.f32 %v4643_v32, %v4786_v10  ;;  %v4803_v21 = vpop.f32.mrf.mxu2 }
  0xf3   : > { %6006 = vst [vmem:[#allocation97_spill] sm:$0xff] %v4776_v48 }
  0xf4   : > { %6007 = vst [vmem:[#allocation98_spill] sm:$0xff] %v4784_v1 }
  0xf5   : > { %584 = vst.msk [vmem:[#allocation2 + $0x109] sm:$0xff] %vm451_vm1, %v515_v5  ;;  %v1451_v5 = vpack.c.bf16 %v1426_v36, %v1425_v3  ;;  %v853_v3 = vmul.f32 %v4369_v50, %v4425_v0  ;;  %v4838_v50 = vld [vmem:[#allocation2 + $0xc8] sm:$0xff] }
  0xf6   : > { %6008 = vst [vmem:[#allocation99_spill] sm:$0xff] %v4789_v19  ;;  %v4822_v36 = vpop.permute.xlu2 %1390  ;;  %v4824_v19 = vpop.f32.mrf.mxu1 }
  0xf7   : > { %6009 = vst [vmem:[#allocation100_spill] sm:$0xff] %v4793_v57  ;;  %3403 = vmatmul.msk.bf16.gmra.mxu2 %vm451_vm1, %v1451_v5  ;;  %v4830_v23 = vmul.f32 %v4814_v61, %v4822_v36  ;;  %v4834_v40 = vmul.f32 %v4816_v8, %v4822_v36  ;;  %v879_v0 = vpack.c.bf16 %v854_v6, %v853_v3  ;;  %v4846_v5 = vpop.f32.mrf.mxu3  ;;  %v4853_v57 = vpop.f32.mrf.mxu0  ;;  %v4859_v3 = vld [vmem:[#allocation2 + $0xf2] sm:$0xff] }
  0xf8   : > { %6010 = vst [vmem:[#allocation101_spill] sm:$0xff] %v4797_v22  ;;  %v1428_v22 = vmul.f32 %v4423_v59, %v4467_v53 }
  0xf9   : > { %6011 = vst [vmem:[#allocation102_spill] sm:$0xff] %v4803_v21  ;;  %v4844_v15 = vpop.permute.xlu1 %788  ;;  %3386 = vmatmul.msk.bf16.gmra.mxu1 %vm451_vm1, %v879_v0  ;;  %v4869_v21 = vld [vmem:[#allocation2 + $0xda] sm:$0xff] }
  0xfa   : > { %6012 = vst [vmem:[#allocation103_spill] sm:$0xff] %v4816_v8  ;;  %v4850_v28 = vmul.f32 %v4838_v50, %v4844_v15  ;;  %v4857_v6 = vpop.f32.mrf.mxu2 }
  0xfb   : > { %6013 = vst [vmem:[#allocation104_spill] sm:$0xff] %v4822_v36 }
  0xfc   : > { %6014 = vst [vmem:[#allocation105_spill] sm:$0xff] %v4824_v19 }
  0xfd   : > { %6015 = vst [vmem:[#allocation106_spill] sm:$0xff] %v4830_v23  ;;  %v2870_v23 = vld [vmem:[#allocation2 + $0x10a] sm:$0xff] }
  0xfe   : > { %6016 = vst [vmem:[#allocation107_spill] sm:$0xff] %v4834_v40  ;;  %v4863_v1 = vpop.permute.xlu2 %1395  ;;  %v4867_v0 = vpop.f32.mrf.mxu1 }
  0xff   : > { %6017 = vst [vmem:[#allocation108_spill] sm:$0xff] %v4842_v9  ;;  %v4873_v60 = vmul.f32 %v4859_v3, %v4863_v1  ;;  %v4875_v9 = vpop.permute.xlu0 %1370  ;;  %v4903_v32 = vpop.f32.mrf.mxu0 }
 0x100   : > { %6018 = vst [vmem:[#allocation109_spill] sm:$0xff] %v4846_v5  ;;  %v1908_v5 = vld [vmem:[#allocation2 + $0xa9] sm:$0xff]  ;;  %v4885_v59 = vmul.f32 %v4601_v55, %v4875_v9  ;;  %v4889_v53 = vmul.f32 %v4875_v9, %v4869_v21  ;;  %v1452_v55 = vpack.c.bf16 %v1428_v22, %v1427_v49 }
 0x101   : > { %6019 = vst [vmem:[#allocation110_spill] sm:$0xff] %v4850_v28  ;;  %v4881_v28 = vld [vmem:[#allocation2 + $0xd0] sm:$0xff]  ;;  %v1930_v36 = vpack.c.bf16 %v1908_v5, %v1907_v12  ;;  %v1706_v12 = vpack.c.bf16 %v1682_v43, %v1681_v54  ;;  %v4912_v5 = vld [vmem:[#allocation2 + $0x108] sm:$0xff] }
 0x102   : > { %6020 = vst [vmem:[#allocation111_spill] sm:$0xff] %v4857_v6  ;;  %v4891_v6 = vpop.permute.xlu1 %793  ;;  %v4915_v58 = vpop.f32.mrf.mxu2 }
 0x103   : > { %6021 = vst [vmem:[#allocation112_spill] sm:$0xff] %v4859_v3  ;;  %v4897_v19 = vmul.f32 %v4881_v28, %v4891_v6  ;;  %3440 = vmatmul.msk.bf16.gmra.mxu0 %vm451_vm1, %v1930_v36  ;;  %3421 = vmatmul.msk.bf16.gmra.mxu3 %vm451_vm1, %v1706_v12 }
 0x104   : > { %6022 = vst [vmem:[#allocation113_spill] sm:$0xff] %v4867_v0  ;;  %v4893_v0 = vpop.f32.mrf.mxu3 }
 0x105   : > { %6023 = vst [vmem:[#allocation114_spill] sm:$0xff] %v4873_v60 }
 0x106   : > { %6024 = vst [vmem:[#allocation115_spill] sm:$0xff] %v4881_v28  ;;  %v856_v28 = vmul.f32 %v4317_v7, %v4628_v46  ;;  %v4918_v49 = vpop.permute.xlu2 %828  ;;  %v4920_v22 = vpop.f32.mrf.mxu1 }
 0x107   : > { %6025 = vst [vmem:[#allocation116_spill] sm:$0xff] %v4885_v59  ;;  %3404 = vmatmul.msk.bf16.gmra.mxu2 %vm451_vm1, %v1452_v55  ;;  %v4926_v7 = vmul.f32 %v4912_v5, %v4918_v49  ;;  %v1909_v59 = vld [vmem:[#allocation2 + $0xb1] sm:$0xff] }
 0x108   : > { %6026 = vst [vmem:[#allocation117_spill] sm:$0xff] %v4889_v53 }
 0x109   : > { %6027 = vst [vmem:[#allocation118_spill] sm:$0xff] %v4893_v0  ;;  %v855_v0 = vmul.f32 %v4481_v11, %v4620_v63  ;;  %v4928_v11 = vpop.permute.xlu0 %1375 }
 0x10a   : > { %6028 = vst [vmem:[#allocation119_spill] sm:$0xff] %v4897_v19  ;;  %v4932_v63 = vmul.f32 %v4645_v52, %v4928_v11  ;;  %v4936_v46 = vmul.f32 %v4928_v11, %v4922_v31  ;;  %v4938_v36 = vpop.permute.xlu1 %1380  ;;  %v1910_v19 = vld [vmem:[#allocation2 + $0xb9] sm:$0xff] }
 0x10b   : > { %6029 = vst [vmem:[#allocation120_spill] sm:$0xff] %v4912_v5  ;;  %v880_v55 = vpack.c.bf16 %v856_v28, %v855_v0  ;;  %v4944_v43 = vmul.f32 %v4938_v36, %v4869_v21  ;;  %v4948_v12 = vmul.f32 %v4814_v61, %v4938_v36  ;;  %v4951_v28 = vpop.f32.mrf.mxu0  ;;  %v1683_v0 = vmul.f32 %v4679_v62, %v4610_v56 }
 0x10c   : > { %6030 = vst [vmem:[#allocation121_spill] sm:$0xff] %v4915_v58  ;;  %v4940_v54 = vpop.f32.mrf.mxu3 }
 0x10d   : > { %6031 = vst [vmem:[#allocation122_spill] sm:$0xff] %v4918_v49  ;;  %3387 = vmatmul.msk.bf16.gmra.mxu1 %vm451_vm1, %v880_v55  ;;  %v1429_v55 = vmul.f32 %v4465_v30, %v4517_v35  ;;  %v1684_v35 = vmul.f32 %v4622_v45, %v4515_v4 }
 0x10e   : > { %6032 = vst [vmem:[#allocation123_spill] sm:$0xff] %v4920_v22  ;;  %v4959_v47 = vpop.f32.mrf.mxu1 }
 0x10f   : > { %6033 = vst [vmem:[#allocation124_spill] sm:$0xff] %v4926_v7  ;;  %v1707_v22 = vpack.c.bf16 %v1684_v35, %v1683_v0  ;;  %v6048_v35 = vld [vmem:[#allocation41_spill] sm:$0xff] }
 0x110   : > { %6034 = vst [vmem:[#allocation125_spill] sm:$0xff] %v4932_v63  ;;  %v4969_v63 = vpop.f32.mrf.mxu2 }
 0x111   : > { %6035 = vst [vmem:[#allocation126_spill] sm:$0xff] %v4936_v46  ;;  %v4963_v53 = vpop.permute.xlu0 %808  ;;  %v1453_v46 = vpack.c.bf16 %v1430_v29, %v1429_v55  ;;  %v858_v29 = vmul.f32 %v4515_v4, %v4556_v26 }
 0x112   : > { %6036 = vst [vmem:[#allocation127_spill] sm:$0xff] %v4940_v54  ;;  %v4973_v37 = vmul.f32 %v4963_v53, %v4961_v27  ;;  %v4975_v39 = vpop.permute.xlu1 %1385  ;;  %v5008_v54 = vld [vmem:[#allocation2 + $0xf8] sm:$0xff] }
 0x113   : > { %6037 = vst [vmem:[#allocation128_spill] sm:$0xff] %v4944_v43  ;;  %v4981_v43 = vmul.f32 %v4975_v39, %v4922_v31  ;;  %v4985_v30 = vmul.f32 %v4859_v3, %v4975_v39  ;;  %3422 = vmatmul.msk.bf16.gmra.mxu3 %vm451_vm1, %v1707_v22 }
 0x114   : > { %6038 = vst [vmem:[#allocation129_spill] sm:$0xff] %v4948_v12  ;;  %v4977_v14 = vpop.f32.mrf.mxu3  ;;  %v1931_v12 = vpack.c.bf16 %v1910_v19, %v1909_v59  ;;  %v5004_v19 = vld [vmem:[#allocation2 + $0xf0] sm:$0xff] }
 0x115   : > { %6039 = vst [vmem:[#allocation130_spill] sm:$0xff] %v4959_v47  ;;  %v857_v47 = vmul.f32 %v4364_v34, %v4679_v62 }
 0x116   : > { %6040 = vst [vmem:[#allocation131_spill] sm:$0xff] %v4969_v63  ;;  %v4991_v63 = vpop.f32.mrf.mxu0  ;;  %3441 = vmatmul.msk.bf16.gmra.mxu0 %vm451_vm1, %v1931_v12  ;;  %v1141_v59 = vpop.f32.mrf.mxu1 }
 0x117   : > { %6041 = vst [vmem:[#allocation132_spill] sm:$0xff] %v4973_v37  ;;  %3405 = vmatmul.msk.bf16.gmra.mxu2 %vm451_vm1, %v1453_v46  ;;  %v1142_v34 = vadd.f32 %v1141_v59, %v4366_v41  ;;  %v6049_v59 = vld [vmem:[#allocation35_spill] sm:$0xff]  ;;  %v6055_v41 = vld [vmem:[#allocation56_spill] sm:$0xff] }
 0x118   : > { %6042 = vst [vmem:[#allocation133_spill] sm:$0xff] %v4977_v14  ;;  %v881_v14 = vpack.c.bf16 %v858_v29, %v857_v47  ;;  %v1523_v26 = vpop.f32.mrf.mxu2  ;;  %v1431_v29 = vmul.f32 %v6048_v35, %v4727_v24  ;;  %v1432_v58 = vmul.f32 %v6049_v59, %v4737_v16  ;;  %v1912_v37 = vld [vmem:[#allocation2 + $0xc9] sm:$0xff]  ;;  %v5040_v24 = vld [vmem:[#allocation2 + $0x100] sm:$0xff] }
 0x119   : > { %6043 = vst [vmem:[#allocation134_spill] sm:$0xff] %v4981_v43  ;;  %v5006_v55 = vpop.permute.xlu0 %813  ;;  %v1603_v12 = vadd.f32 %v1523_v26, %v1142_v34  ;;  %v2869_v43 = vld [vmem:[#allocation2 + $0x102] sm:$0xff] }
 0x11a   : > { %6044 = vst [vmem:[#allocation135_spill] sm:$0xff] %v4985_v30  ;;  %v5013_v62 = vmul.f32 %v5006_v55, %v5004_v19  ;;  %v5015_v46 = vpop.permute.xlu1 %818  ;;  %v1911_v26 = vld [vmem:[#allocation2 + $0xc1] sm:$0xff] }
 0x11b   : > { %6045 = vst [vmem:[#allocation136_spill] sm:$0xff] %v5008_v54  ;;  %v5019_v4 = vmul.f32 %v5008_v54, %v5015_v46 }
 0x11c   : > { %6046 = vst [vmem:[#allocation137_spill] sm:$0xff] %v5013_v62  ;;  %v1777_v22 = vpop.f32.mrf.mxu3  ;;  %v1685_v62 = vmul.f32 %v4669_v13, %v6055_v41 }
 0x11d   : > { %6047 = vst [vmem:[#allocation138_spill] sm:$0xff] %v5019_v4  ;;  %3388 = vmatmul.msk.bf16.gmra.mxu1 %vm451_vm1, %v881_v14  ;;  %v1857_v0 = vadd.f32 %v1777_v22, %v1603_v12  ;;  %v6051_v14 = vld [vmem:[#allocation48_spill] sm:$0xff]  ;;  %v5038_v22 = vmul.f32 %v2869_v43, %v4863_v1  ;;  %v6053_v12 = vld [vmem:[#allocation39_spill] sm:$0xff]  ;;  %v1454_v4 = vpack.c.bf16 %v1432_v58, %v1431_v29 }
 0x11e   : > { %v5022_v47 = vpop.f32.mrf.mxu0  ;;  %v1686_v34 = vmul.f32 %v6051_v14, %v4778_v25  ;;  %v1143_v30 = vpop.f32.mrf.mxu1  ;;  %6052 = vst [vmem:[#allocation35_spill] sm:$0xff] %v5040_v24  ;;  %v860_v58 = vmul.f32 %v4622_v45, %v4778_v25  ;;  %v6057_v25 = vld [vmem:[#allocation47_spill] sm:$0xff] }
 0x11f   : > { %v5031_v48 = vadd.f32 %v4805_v17, %v1857_v0  ;;  %v1144_v16 = vadd.f32 %v1143_v30, %v6053_v12  ;;  %v5058_v30 = vpack.c.bf16 %v1912_v37, %v1911_v26  ;;  %v2871_v37 = vld [vmem:[#allocation2 + $0x112] sm:$0xff]  ;;  %v859_v26 = vmul.f32 %v6055_v41, %v4610_v56 }
 0x120   : > { %v1525_v59 = vpop.f32.mrf.mxu2  ;;  %v1708_v29 = vpack.c.bf16 %v1686_v34, %v1685_v62 }
 0x121   : > { %6050 = vst [vmem:[#allocation41_spill] sm:$0xff] %v5031_v48  ;;  %v5035_v40 = vpop.permute.xlu0 %1400  ;;  %v1604_v3 = vadd.f32 %v1525_v59, %v1144_v16  ;;  %v2872_v16 = vld [vmem:[#allocation2 + $0x11a] sm:$0xff]  ;;  %v882_v45 = vpack.c.bf16 %v860_v58, %v859_v26 }
 0x122   : > { %v5045_v35 = vmul.f32 %v4816_v8, %v5035_v40  ;;  %v5048_v17 = vmul.f32 %v2870_v23, %v5035_v40  ;;  %v5050_v0 = vpop.permute.xlu1 %823  ;;  %v2396_v26 = vld [vmem:[#allocation2 + $0x118] sm:$0xff] }
 0x123   : > { %v5056_v48 = vmul.f32 %v5040_v24, %v5050_v0  ;;  %3423 = vmatmul.msk.bf16.gmra.mxu3 %vm451_vm1, %v1708_v29  ;;  %v1913_v8 = vld [vmem:[#allocation2 + $0xd1] sm:$0xff] }
 0x124   : > { %6054 = vst [vmem:[#allocation48_spill] sm:$0xff] %v5045_v35  ;;  %v1779_v5 = vpop.f32.mrf.mxu3 }
 0x125   : > { %6056 = vst [vmem:[#allocation39_spill] sm:$0xff] %v5056_v48  ;;  %v1858_v24 = vadd.f32 %v1779_v5, %v1604_v3 }
 0x126   : > { %v5064_v54 = vpop.f32.mrf.mxu0  ;;  %3442 = vmatmul.msk.bf16.gmra.mxu0 %vm451_vm1, %v5058_v30  ;;  %v1146_v12 = vpop.f32.mrf.mxu1 }
 0x127   : > { %3406 = vmatmul.msk.bf16.gmra.mxu2 %vm451_vm1, %v1454_v4  ;;  %v5077_v59 = vadd.f32 %v4853_v57, %v1858_v24  ;;  %v1147_v3 = vadd.f32 %v1146_v12, %v6057_v25 }
 0x128   : > { %v1528_v4 = vpop.f32.mrf.mxu2 }
 0x129   : > { %v5079_v49 = vpop.permute.xlu0 %1405  ;;  %v1605_v24 = vadd.f32 %v1528_v4, %v1147_v3  ;;  %v6061_v4 = vld [vmem:[#allocation55_spill] sm:$0xff] }
 0x12a   : > { %v5083_v5 = vmul.f32 %v2869_v43, %v5079_v49  ;;  %v5086_v56 = vmul.f32 %v2871_v37, %v5079_v49  ;;  %v5088_v62 = vpop.permute.xlu1 %1410  ;;  %v5103_v37 = vpop.permute.xlu2 %833  ;;  %v1687_v43 = vmul.f32 %v6061_v4, %v4836_v2 }
 0x12b   : > { %v5091_v41 = vmul.f32 %v2870_v23, %v5088_v62  ;;  %v5094_v57 = vmul.f32 %v2872_v16, %v5088_v62  ;;  %v2395_v23 = vld [vmem:[#allocation2 + $0x110] sm:$0xff]  ;;  %v1433_v16 = vmul.f32 %v4459_v44, %v4786_v10  ;;  %v6062_v44 = vld [vmem:[#allocation54_spill] sm:$0xff] }
 0x12c   : > { %6058 = vst [vmem:[#allocation56_spill] sm:$0xff] %v5083_v5  ;;  %v1782_v34 = vpop.f32.mrf.mxu3  ;;  %v1914_v5 = vld [vmem:[#allocation2 + $0xd9] sm:$0xff] }
 0x12d   : > { %6059 = vst [vmem:[#allocation47_spill] sm:$0xff] %v5091_v41  ;;  %3389 = vmatmul.msk.bf16.gmra.mxu1 %vm451_vm1, %v882_v45  ;;  %v1859_v29 = vadd.f32 %v1782_v34, %v1605_v24  ;;  %v6060_v45 = vld [vmem:[#allocation64_spill] sm:$0xff]  ;;  %v1688_v24 = vmul.f32 %v4844_v15, %v4772_v51  ;;  %v5119_v41 = vmul.f32 %v2395_v23, %v5103_v37 }
 0x12e   : > { %v5097_v12 = vpop.f32.mrf.mxu0  ;;  %v1434_v3 = vmul.f32 %v6060_v45, %v4655_v42  ;;  %v1148_v58 = vpop.f32.mrf.mxu1  ;;  %v5125_v60 = vpack.c.bf16 %v1914_v5, %v1913_v8  ;;  %v861_v23 = vmul.f32 %v4669_v13, %v4836_v2 }
 0x12f   : > { %v5108_v25 = vadd.f32 %v4903_v32, %v1859_v29  ;;  %v1149_v32 = vadd.f32 %v1148_v58, %v6062_v44  ;;  %v862_v58 = vmul.f32 %v6051_v14, %v4844_v15  ;;  %v1709_v44 = vpack.c.bf16 %v1688_v24, %v1687_v43 }
 0x130   : > { %v1530_v42 = vpop.f32.mrf.mxu2  ;;  %v1455_v45 = vpack.c.bf16 %v1434_v3, %v1433_v16  ;;  %v6063_v3 = vld [vmem:[#allocation62_spill] sm:$0xff]  ;;  %v1436_v43 = vmul.f32 %v4599_v38, %v4875_v9 }
 0x131   : > { %v5114_v34 = vpop.permute.xlu0 %838  ;;  %v1606_v48 = vadd.f32 %v1530_v42, %v1149_v32  ;;  %v883_v16 = vpack.c.bf16 %v862_v58, %v861_v23  ;;  %v1916_v42 = vld [vmem:[#allocation2 + $0xe9] sm:$0xff]  ;;  %v1689_v58 = vmul.f32 %v4891_v6, %v4826_v20 }
 0x132   : > { %v5123_v10 = vmul.f32 %v2396_v26, %v5114_v34 }
 0x133   : > { %3424 = vmatmul.msk.bf16.gmra.mxu3 %vm451_vm1, %v1709_v44  ;;  %v6065_v44 = vld [vmem:[#allocation72_spill] sm:$0xff] }
 0x134   : > { %v1784_v29 = vpop.f32.mrf.mxu3 }
 0x135   : > { %v1860_v26 = vadd.f32 %v1784_v29, %v1606_v48 }
 0x136   : > { %v5129_v7 = vpop.f32.mrf.mxu0  ;;  %3443 = vmatmul.msk.bf16.gmra.mxu0 %vm451_vm1, %v5125_v60  ;;  %v1151_v5 = vpop.f32.mrf.mxu1 }
 0x137   : > { %3407 = vmatmul.msk.bf16.gmra.mxu2 %vm451_vm1, %v1455_v45  ;;  %v5140_v8 = vadd.f32 %v4951_v28, %v1860_v26  ;;  %v1152_v32 = vadd.f32 %v1151_v5, %v6063_v3  ;;  %v1915_v28 = vld [vmem:[#allocation2 + $0xe1] sm:$0xff]  ;;  %v1690_v3 = vmul.f32 %v4838_v50, %v4715_v33 }
 0x138   : > { %v1533_v13 = vpop.f32.mrf.mxu2  ;;  %v6064_v45 = vld [vmem:[#allocation74_spill] sm:$0xff]  ;;  %v5158_v9 = vpack.c.bf16 %v1916_v42, %v1915_v28  ;;  %v6066_v42 = vld [vmem:[#allocation83_spill] sm:$0xff] }
 0x139   : > { %v1607_v15 = vadd.f32 %v1533_v13, %v1152_v32  ;;  %v1435_v23 = vmul.f32 %v6064_v45, %v4721_v18  ;;  %v863_v13 = vmul.f32 %v6061_v4, %v4891_v6  ;;  %v1710_v18 = vpack.c.bf16 %v1690_v3, %v1689_v58 }
 0x13b   : > { %v1456_v38 = vpack.c.bf16 %v1436_v43, %v1435_v23 }
 0x13c   : > { %v1787_v2 = vpop.f32.mrf.mxu3 }
 0x13d   : > { %3390 = vmatmul.msk.bf16.gmra.mxu1 %vm451_vm1, %v883_v16  ;;  %v1861_v14 = vadd.f32 %v1787_v2, %v1607_v15  ;;  %v864_v15 = vmul.f32 %v4715_v33, %v4772_v51  ;;  %v6067_v51 = vld [vmem:[#allocation73_spill] sm:$0xff] }
 0x13e   : > { %v5144_v48 = vpop.f32.mrf.mxu0  ;;  %v1153_v29 = vpop.f32.mrf.mxu1  ;;  %v1437_v58 = vmul.f32 %v6067_v51, %v4928_v11 }
 0x13f   : > { %v5149_v24 = vadd.f32 %v4991_v63, %v1861_v14  ;;  %v1154_v26 = vadd.f32 %v1153_v29, %v6065_v44  ;;  %v884_v28 = vpack.c.bf16 %v864_v15, %v863_v13  ;;  %v6068_v44 = vld [vmem:[#allocation63_spill] sm:$0xff]  ;;  %v6070_v13 = vld [vmem:[#allocation93_spill] sm:$0xff] }
 0x140   : > { %v1535_v5 = vpop.f32.mrf.mxu2 }
 0x141   : > { %v1608_v63 = vadd.f32 %v1535_v5, %v1154_v26  ;;  %v1438_v26 = vmul.f32 %v6068_v44, %v4938_v36  ;;  %v1917_v5 = vld [vmem:[#allocation2 + $0xf1] sm:$0xff] }
 0x143   : > { %3425 = vmatmul.msk.bf16.gmra.mxu3 %vm451_vm1, %v1710_v18  ;;  %v1457_v11 = vpack.c.bf16 %v1438_v26, %v1437_v58  ;;  %v6073_v26 = vld [vmem:[#allocation65_spill] sm:$0xff] }
 0x144   : > { %v1789_v16 = vpop.f32.mrf.mxu3 }
 0x145   : > { %v1862_v2 = vadd.f32 %v1789_v16, %v1608_v63  ;;  %v1918_v16 = vld [vmem:[#allocation2 + $0xf9] sm:$0xff] }
 0x146   : > { %v5160_v32 = vpop.f32.mrf.mxu0  ;;  %3444 = vmatmul.msk.bf16.gmra.mxu0 %vm451_vm1, %v5158_v9  ;;  %v1156_v43 = vpop.f32.mrf.mxu1 }
 0x147   : > { %3408 = vmatmul.msk.bf16.gmra.mxu2 %vm451_vm1, %v1456_v38  ;;  %v5171_v14 = vadd.f32 %v5022_v47, %v1862_v2  ;;  %v1157_v29 = vadd.f32 %v1156_v43, %v6066_v42  ;;  %v6069_v38 = vld [vmem:[#allocation84_spill] sm:$0xff]  ;;  %v6071_v43 = vld [vmem:[#allocation95_spill] sm:$0xff] }
 0x148   : > { %v1538_v6 = vpop.f32.mrf.mxu2  ;;  %v1692_v63 = vmul.f32 %v6069_v38, %v4963_v53 }
 0x149   : > { %v1609_v45 = vadd.f32 %v1538_v6, %v1157_v29  ;;  %v5189_v29 = vpack.c.bf16 %v1918_v16, %v1917_v5 }
 0x14c   : > { %v1792_v4 = vpop.f32.mrf.mxu3 }
 0x14d   : > { %3391 = vmatmul.msk.bf16.gmra.mxu1 %vm451_vm1, %v884_v28  ;;  %v1863_v33 = vadd.f32 %v1792_v4, %v1609_v45  ;;  %v6072_v28 = vld [vmem:[#allocation115_spill] sm:$0xff] }
 0x14e   : > { %v5175_v23 = vpop.f32.mrf.mxu0  ;;  %v1158_v3 = vpop.f32.mrf.mxu1  ;;  %v1691_v42 = vmul.f32 %v6072_v28, %v6071_v43 }
 0x14f   : > { %v5182_v47 = vadd.f32 %v5064_v54, %v1863_v33  ;;  %v1159_v18 = vadd.f32 %v1158_v3, %v6070_v13  ;;  %v866_v54 = vmul.f32 %v4838_v50, %v4963_v53  ;;  %v865_v33 = vmul.f32 %v6071_v43, %v4826_v20 }
 0x150   : > { %v1540_v2 = vpop.f32.mrf.mxu2  ;;  %v1711_v4 = vpack.c.bf16 %v1692_v63, %v1691_v42  ;;  %v1439_v63 = vmul.f32 %v4645_v52, %v4975_v39  ;;  %v6075_v42 = vld [vmem:[#allocation94_spill] sm:$0xff] }
 0x151   : > { %v1610_v36 = vadd.f32 %v1540_v2, %v1159_v18  ;;  %v885_v44 = vpack.c.bf16 %v866_v54, %v865_v33  ;;  %v1920_v18 = vld [vmem:[#allocation2 + $0x109] sm:$0xff] }
 0x152   : > { %v6076_v54 = vld [vmem:[#allocation75_spill] sm:$0xff] }
 0x153   : > { %3426 = vmatmul.msk.bf16.gmra.mxu3 %vm451_vm1, %v1711_v4 }
 0x154   : > { %v1794_v15 = vpop.f32.mrf.mxu3 }
 0x155   : > { %v1864_v45 = vadd.f32 %v1794_v15, %v1610_v36  ;;  %v6074_v15 = vld [vmem:[#allocation104_spill] sm:$0xff]  ;;  %v1694_v36 = vmul.f32 %v5015_v46, %v4961_v27 }
 0x156   : > { %v5191_v6 = vpop.f32.mrf.mxu0  ;;  %3445 = vmatmul.msk.bf16.gmra.mxu0 %vm451_vm1, %v5189_v29  ;;  %v1161_v58 = vpop.f32.mrf.mxu1  ;;  %v1440_v43 = vmul.f32 %v6074_v15, %v4869_v21  ;;  %v868_v21 = vmul.f32 %v6069_v38, %v5015_v46  ;;  %v1441_v15 = vmul.f32 %v4863_v1, %v4922_v31  ;;  %v6081_v1 = vld [vmem:[#allocation15_spill] sm:$0xff] }
 0x157   : > { %3409 = vmatmul.msk.bf16.gmra.mxu2 %vm451_vm1, %v1457_v11  ;;  %v5202_v51 = vadd.f32 %v5097_v12, %v1864_v45  ;;  %v1162_v5 = vadd.f32 %v1161_v58, %v6073_v26  ;;  %v1919_v12 = vld [vmem:[#allocation2 + $0x101] sm:$0xff]  ;;  %v1693_v11 = vmul.f32 %v6075_v42, %v5006_v55 }
 0x158   : > { %v1543_v50 = vpop.f32.mrf.mxu2  ;;  %v1458_v52 = vpack.c.bf16 %v1440_v43, %v1439_v63  ;;  %v5220_v39 = vpack.c.bf16 %v1920_v18, %v1919_v12  ;;  %v1442_v18 = vmul.f32 %v4814_v61, %v5035_v40  ;;  %v1695_v43 = vmul.f32 %v5050_v0, %v5004_v19 }
 0x159   : > { %v1611_v16 = vadd.f32 %v1543_v50, %v1162_v5  ;;  %v1712_v26 = vpack.c.bf16 %v1694_v36, %v1693_v11  ;;  %v6078_v11 = vld [vmem:[#allocation96_spill] sm:$0xff]  ;;  %v869_v40 = vmul.f32 %v6075_v42, %v5050_v0  ;;  %v6084_v0 = vld [vmem:[#allocation105_spill] sm:$0xff] }
 0x15c   : > { %v1797_v53 = vpop.f32.mrf.mxu3 }
 0x15d   : > { %3392 = vmatmul.msk.bf16.gmra.mxu1 %vm451_vm1, %v885_v44  ;;  %v1865_v20 = vadd.f32 %v1797_v53, %v1611_v16  ;;  %v867_v44 = vmul.f32 %v6072_v28, %v5006_v55 }
 0x15e   : > { %v5206_v3 = vpop.f32.mrf.mxu0  ;;  %v1163_v2 = vpop.f32.mrf.mxu1 }
 0x15f   : > { %v5211_v13 = vadd.f32 %v5129_v7, %v1865_v20  ;;  %v1164_v4 = vadd.f32 %v1163_v2, %v6076_v54  ;;  %v886_v16 = vpack.c.bf16 %v868_v21, %v867_v44  ;;  %v6077_v20 = vld [vmem:[#allocation85_spill] sm:$0xff] }
 0x160   : > { %v1545_v45 = vpop.f32.mrf.mxu2 }
 0x161   : > { %v1612_v7 = vadd.f32 %v1545_v45, %v1164_v4  ;;  %v6079_v45 = vld [vmem:[#allocation122_spill] sm:$0xff] }
 0x162   : > { %v870_v31 = vmul.f32 %v6079_v45, %v4961_v27 }
 0x163   : > { %3427 = vmatmul.msk.bf16.gmra.mxu3 %vm451_vm1, %v1712_v26  ;;  %v6082_v26 = vld [vmem:[#allocation11_spill] sm:$0xff] }
 0x164   : > { %v1799_v33 = vpop.f32.mrf.mxu3 }
 0x165   : > { %v1866_v5 = vadd.f32 %v1799_v33, %v1612_v7  ;;  %v6080_v33 = vld [vmem:[#allocation136_spill] sm:$0xff]  ;;  %v1459_v7 = vpack.c.bf16 %v1442_v18, %v1441_v15 }
 0x166   : > { %v5222_v58 = vpop.f32.mrf.mxu0  ;;  %3446 = vmatmul.msk.bf16.gmra.mxu0 %vm451_vm1, %v5220_v39  ;;  %v1166_v53 = vpop.f32.mrf.mxu1 }
 0x167   : > { %3410 = vmatmul.msk.bf16.gmra.mxu2 %vm451_vm1, %v1458_v52  ;;  %v5233_v50 = vadd.f32 %v5144_v48, %v1866_v5  ;;  %v1167_v63 = vadd.f32 %v1166_v53, %v6077_v20  ;;  %v1696_v52 = vmul.f32 %v6080_v33, %v6079_v45  ;;  %v6083_v5 = vpack.c.bf16 %v6081_v1, %v6082_v26  ;;  %v6090_v1 = vld [vmem:[#allocation6_spill] sm:$0xff]  ;;  %v6091_v26 = vld [vmem:[#allocation4_spill] sm:$0xff] }
 0x168   : > { %v1548_v55 = vpop.f32.mrf.mxu2  ;;  %v887_v20 = vpack.c.bf16 %v870_v31, %v869_v40  ;;  %v871_v31 = vmul.f32 %v5103_v37, %v5004_v19 }
 0x169   : > { %v1613_v46 = vadd.f32 %v1548_v55, %v1167_v63 }
 0x16c   : > { %v1802_v28 = vpop.f32.mrf.mxu3 }
 0x16d   : > { %3393 = vmatmul.msk.bf16.gmra.mxu1 %vm451_vm1, %v886_v16  ;;  %v1867_v12 = vadd.f32 %v1802_v28, %v1613_v46 }
 0x16e   : > { %v5237_v38 = vpop.f32.mrf.mxu0  ;;  %v1168_v48 = vpop.f32.mrf.mxu1 }
 0x16f   : > { %v5242_v2 = vadd.f32 %v5160_v32, %v1867_v12  ;;  %v1169_v36 = vadd.f32 %v1168_v48, %v6078_v11  ;;  %v1713_v32 = vpack.c.bf16 %v1696_v52, %v1695_v43  ;;  %v6085_v12 = vld [vmem:[#allocation112_spill] sm:$0xff]  ;;  %v6086_v48 = vld [vmem:[#allocation103_spill] sm:$0xff] }
 0x170   : > { %v1550_v54 = vpop.f32.mrf.mxu2  ;;  %v1443_v18 = vmul.f32 %v6085_v12, %v5079_v49  ;;  %v1444_v15 = vmul.f32 %v6086_v48, %v5088_v62  ;;  %v6087_v11 = vld [vmem:[#allocation120_spill] sm:$0xff]  ;;  %v872_v62 = vmul.f32 %v6080_v33, %v5114_v34  ;;  %v2619_v12 = vld [vmem:[#allocation2 + $0x21] sm:$0xff] }
 0x171   : > { %v1614_v44 = vadd.f32 %v1550_v54, %v1169_v36  ;;  %v1698_v36 = vmul.f32 %v6087_v11, %v5114_v34  ;;  %v6088_v54 = vld [vmem:[#allocation113_spill] sm:$0xff]  ;;  %v6093_v34 = vld [vmem:[#allocation123_spill] sm:$0xff]  ;;  %v6094_v48 = vld [vmem:[#allocation130_spill] sm:$0xff] }
 0x172   : > { %v1460_v40 = vpack.c.bf16 %v1444_v15, %v1443_v18  ;;  %v2620_v18 = vld [vmem:[#allocation2 + $0x29] sm:$0xff] }
 0x173   : > { %3428 = vmatmul.msk.bf16.gmra.mxu3 %vm451_vm1, %v1713_v32 }
 0x174   : > { %v1804_v4 = vpop.f32.mrf.mxu3 }
 0x175   : > { %v1868_v21 = vadd.f32 %v1804_v4, %v1614_v44 }
 0x176   : > { %v5251_v61 = vpop.f32.mrf.mxu0  ;;  %3499 = vmatmul.msk.bf16.vlgmr.msra.gmra.mxu0 %vm451_vm1, %v6083_v5  ;;  %v1171_v16 = vpop.f32.mrf.mxu1  ;;  %v6092_v5 = vpack.c.bf16 %v6090_v1, %v6091_v26  ;;  %v6102_v26 = vld [vmem:[#allocation14_spill] sm:$0xff] }
 0x177   : > { %3411 = vmatmul.msk.bf16.gmra.mxu2 %vm451_vm1, %v1459_v7  ;;  %v5264_v53 = vadd.f32 %v5175_v23, %v1868_v21  ;;  %v1172_v42 = vadd.f32 %v1171_v16, %v6084_v0  ;;  %v6089_v7 = vld [vmem:[#allocation35_spill] sm:$0xff]  ;;  %v888_v0 = vpack.c.bf16 %v872_v62, %v871_v31 }
 0x178   : > { %v1697_v44 = vmul.f32 %v6089_v7, %v5103_v37 }
 0x17a   : > { %v1553_v63 = vpop.f32.mrf.mxu2 }
 0x17b   : > { %v1615_v28 = vadd.f32 %v1553_v63, %v1172_v42 }
 0x17c   : > { %v1807_v55 = vpop.f32.mrf.mxu3 }
 0x17d   : > { %3394 = vmatmul.msk.bf16.gmra.mxu1 %vm451_vm1, %v887_v20  ;;  %v1869_v46 = vadd.f32 %v1807_v55, %v1615_v28 }
 0x17e   : > { %v5268_v27 = vpop.f32.mrf.mxu0  ;;  %v1173_v43 = vpop.f32.mrf.mxu1 }
 0x17f   : > { %v5275_v23 = vadd.f32 %v5191_v6, %v1869_v46  ;;  %v1174_v4 = vadd.f32 %v1173_v43, %v6088_v54  ;;  %v1714_v6 = vpack.c.bf16 %v1698_v36, %v1697_v44  ;;  %v2651_v36 = vpack.c.bf16 %v2620_v18, %v2619_v12  ;;  %v6098_v44 = vld [vmem:[#allocation24_spill] sm:$0xff] }
 0x182   : > { %v1555_v45 = vpop.f32.mrf.mxu2 }
 0x183   : > { %v1616_v32 = vadd.f32 %v1555_v45, %v1174_v4  ;;  %3429 = vmatmul.msk.bf16.gmra.mxu3 %vm451_vm1, %v1714_v6  ;;  %v6095_v45 = vld [vmem:[#allocation16_spill] sm:$0xff]  ;;  %v6101_v6 = vld [vmem:[#allocation61_spill] sm:$0xff] }
 0x184   : > { %v1809_v52 = vpop.f32.mrf.mxu3 }
 0x185   : > { %v1870_v21 = vadd.f32 %v1809_v52, %v1616_v32  ;;  %v6096_v52 = vld [vmem:[#allocation12_spill] sm:$0xff] }
 0x186   : > { %v5282_v49 = vpop.f32.mrf.mxu0  ;;  %3500 = vmatmul.msk.bf16.gmra.mxu0 %vm451_vm1, %v6092_v5  ;;  %v6097_v7 = vpack.c.bf16 %v6095_v45, %v6096_v52  ;;  %v6103_v5 = vld [vmem:[#allocation10_spill] sm:$0xff]  ;;  %v6110_v52 = vld [vmem:[#allocation28_spill] sm:$0xff] }
 0x187   : > { %3412 = vmatmul.msk.bf16.gmra.mxu2 %vm451_vm1, %v1460_v40  ;;  %v5295_v16 = vadd.f32 %v5206_v3, %v1870_v21  ;;  %v6099_v40 = vld [vmem:[#allocation8_spill] sm:$0xff]  ;;  %v6109_v45 = vld [vmem:[#allocation30_spill] sm:$0xff] }
 0x18a   : > { %v1176_v20 = vpop.f32.mrf.mxu1  ;;  %v1558_v42 = vpop.f32.mrf.mxu2 }
 0x18b   : > { %v1177_v33 = vadd.f32 %v1176_v20, %v6093_v34  ;;  %v6104_v20 = vpack.c.bf16 %v6102_v26, %v6103_v5 }
 0x18c   : > { %v1812_v63 = vpop.f32.mrf.mxu3 }
 0x18d   : > { %3395 = vmatmul.msk.bf16.gmra.mxu1 %vm451_vm1, %v888_v0  ;;  %v1617_v55 = vadd.f32 %v1558_v42, %v1177_v33 }
 0x18e   : > { %v2046_v19 = vpop.f32.mrf.mxu0 }
 0x18f   : > { %v1871_v37 = vadd.f32 %v1812_v63, %v1617_v55  ;;  %v2621_v55 = vld [vmem:[#allocation2 + $0x31] sm:$0xff] }
 0x191   : > { %v5300_v28 = vadd.f32 %v5222_v58, %v1871_v37  ;;  %v6100_v58 = vpack.c.bf16 %v6098_v44, %v6099_v40  ;;  %v6105_v37 = vld [vmem:[#allocation71_spill] sm:$0xff]  ;;  %v6112_v40 = vld [vmem:[#allocation82_spill] sm:$0xff] }
 0x192   : > { %v1178_v46 = vpop.f32.mrf.mxu1  ;;  %v1560_v15 = vpop.f32.mrf.mxu2 }
 0x193   : > { %v1179_v3 = vadd.f32 %v1178_v46, %v6094_v48  ;;  %3482 = vmatmul.msk.bf16.vlgmr.msra.gmra.mxu3 %vm451_vm1, %v2651_v36  ;;  %v6107_v36 = vld [vmem:[#allocation19_spill] sm:$0xff] }
 0x194   : > { %v1814_v43 = vpop.f32.mrf.mxu3 }
 0x195   : > { %v1618_v11 = vadd.f32 %v1560_v15, %v1179_v3 }
 0x196   : > { %v2049_v54 = vpop.f32.mrf.mxu0  ;;  %3501 = vmatmul.msk.bf16.gmra.mxu0 %vm451_vm1, %v6100_v58 }
 0x197   : > { %v1872_v4 = vadd.f32 %v1814_v43, %v1618_v11  ;;  %3465 = vmatmul.msk.bf16.vlgmr.msra.gmra.mxu2 %vm451_vm1, %v6097_v7  ;;  %v6106_v11 = vld [vmem:[#allocation20_spill] sm:$0xff] }
 0x199   : > { %v5313_v32 = vadd.f32 %v5237_v38, %v1872_v4  ;;  %v2622_v38 = vld [vmem:[#allocation2 + $0x39] sm:$0xff]  ;;  %v6108_v4 = vpack.c.bf16 %v6106_v11, %v6107_v36 }
 0x19a   : > { %v1181_v62 = vpop.f32.mrf.mxu1  ;;  %v1563_v31 = vpop.f32.mrf.mxu2  ;;  %v2652_v3 = vpack.c.bf16 %v2622_v38, %v2621_v55  ;;  %v6116_v55 = vld [vmem:[#allocation92_spill] sm:$0xff]  ;;  %v6118_v11 = vld [vmem:[#allocation25_spill] sm:$0xff] }
 0x19b   : > { %v1182_v21 = vadd.f32 %v1181_v62, %v6101_v6 }
 0x19c   : > { %v1817_v1 = vpop.f32.mrf.mxu3 }
 0x19d   : > { %3448 = vmatmul.msk.bf16.vlgmr.msra.gmra.mxu1 %vm451_vm1, %v6104_v20  ;;  %v1619_v0 = vadd.f32 %v1563_v31, %v1182_v21  ;;  %v6113_v21 = vld [vmem:[#allocation5_spill] sm:$0xff]  ;;  %v6114_v31 = vld [vmem:[#allocation3_spill] sm:$0xff] }
 0x19e   : > { %v2051_v34 = vpop.f32.mrf.mxu0 }
 0x19f   : > { %v1873_v33 = vadd.f32 %v1817_v1, %v1619_v0  ;;  %v6115_v1 = vpack.c.bf16 %v6113_v21, %v6114_v31  ;;  %v6125_v21 = vld [vmem:[#allocation7_spill] sm:$0xff] }
 0x1a1   : > { %v5321_v42 = vadd.f32 %v5251_v61, %v1873_v33  ;;  %v6111_v61 = vpack.c.bf16 %v6109_v45, %v6110_v52  ;;  %v6121_v45 = vld [vmem:[#allocation34_spill] sm:$0xff] }
 0x1a2   : > { %v1183_v63 = vpop.f32.mrf.mxu1  ;;  %v1565_v12 = vpop.f32.mrf.mxu2 }
 0x1a3   : > { %v1184_v46 = vadd.f32 %v1183_v63, %v6105_v37  ;;  %3483 = vmatmul.msk.bf16.gmra.mxu3 %vm451_vm1, %v2652_v3  ;;  %v2623_v63 = vld [vmem:[#allocation2 + $0x41] sm:$0xff] }
 0x1a4   : > { %v1819_v18 = vpop.f32.mrf.mxu3 }
 0x1a5   : > { %v1620_v48 = vadd.f32 %v1565_v12, %v1184_v46 }
 0x1a6   : > { %v2054_v15 = vpop.f32.mrf.mxu0  ;;  %3502 = vmatmul.msk.bf16.gmra.mxu0 %vm451_vm1, %v6111_v61 }
 0x1a7   : > { %v1874_v43 = vadd.f32 %v1819_v18, %v1620_v48  ;;  %3466 = vmatmul.msk.bf16.gmra.mxu2 %vm451_vm1, %v6108_v4  ;;  %v6120_v4 = vld [vmem:[#allocation18_spill] sm:$0xff] }
 0x1a9   : > { %v5334_v7 = vadd.f32 %v5268_v27, %v1874_v43  ;;  %v2624_v27 = vld [vmem:[#allocation2 + $0x49] sm:$0xff]  ;;  %v6117_v43 = vld [vmem:[#allocation9_spill] sm:$0xff] }
 0x1aa   : > { %v1186_v44 = vpop.f32.mrf.mxu1  ;;  %v1568_v62 = vpop.f32.mrf.mxu2  ;;  %v2653_v18 = vpack.c.bf16 %v2624_v27, %v2623_v63  ;;  %v6119_v36 = vpack.c.bf16 %v6117_v43, %v6118_v11  ;;  %v2625_v27 = vld [vmem:[#allocation2 + $0x51] sm:$0xff] }
 0x1ab   : > { %v1187_v58 = vadd.f32 %v1186_v44, %v6112_v40  ;;  %v6123_v44 = vld [vmem:[#allocation102_spill] sm:$0xff]  ;;  %v6128_v11 = vld [vmem:[#allocation32_spill] sm:$0xff] }
 0x1ac   : > { %v1822_v6 = vpop.f32.mrf.mxu3 }
 0x1ad   : > { %3449 = vmatmul.msk.bf16.gmra.mxu1 %vm451_vm1, %v6115_v1  ;;  %v1621_v26 = vadd.f32 %v1568_v62, %v1187_v58 }
 0x1ae   : > { %v2056_v5 = vpop.f32.mrf.mxu0 }
 0x1af   : > { %v1875_v20 = vadd.f32 %v1822_v6, %v1621_v26  ;;  %v6124_v6 = vld [vmem:[#allocation23_spill] sm:$0xff] }
 0x1b0   : > { %v6126_v31 = vpack.c.bf16 %v6124_v6, %v6125_v21  ;;  %v6135_v21 = vld [vmem:[#allocation29_spill] sm:$0xff] }
 0x1b1   : > { %v5342_v0 = vadd.f32 %v5282_v49, %v1875_v20  ;;  %v6122_v49 = vpack.c.bf16 %v6120_v4, %v6121_v45  ;;  %v6131_v45 = vld [vmem:[#allocation45_spill] sm:$0xff] }
 0x1b2   : > { %v1188_v33 = vpop.f32.mrf.mxu1  ;;  %v1570_v37 = vpop.f32.mrf.mxu2 }
 0x1b3   : > { %v1189_v38 = vadd.f32 %v1188_v33, %v6116_v55  ;;  %3484 = vmatmul.msk.bf16.gmra.mxu3 %vm451_vm1, %v2653_v18  ;;  %v2626_v55 = vld [vmem:[#allocation2 + $0x59] sm:$0xff] }
 0x1b4   : > { %v1824_v46 = vpop.f32.mrf.mxu3  ;;  %v2654_v18 = vpack.c.bf16 %v2626_v55, %v2625_v27 }
 0x1b5   : > { %v1622_v12 = vadd.f32 %v1570_v37, %v1189_v38 }
 0x1b6   : > { %v2059_v48 = vpop.f32.mrf.mxu0  ;;  %3503 = vmatmul.msk.bf16.gmra.mxu0 %vm451_vm1, %v6122_v49  ;;  %v6132_v49 = vld [vmem:[#allocation22_spill] sm:$0xff] }
 0x1b7   : > { %v1876_v3 = vadd.f32 %v1824_v46, %v1622_v12  ;;  %3467 = vmatmul.msk.bf16.gmra.mxu2 %vm451_vm1, %v6119_v36  ;;  %v6129_v36 = vld [vmem:[#allocation13_spill] sm:$0xff] }
 0x1b8   : > { %v6130_v4 = vpack.c.bf16 %v6128_v11, %v6129_v36 }
 0x1b9   : > { %v5354_v52 = vadd.f32 %v2046_v19, %v1876_v3  ;;  %v6127_v19 = vld [vmem:[#allocation111_spill] sm:$0xff] }
 0x1ba   : > { %v1191_v61 = vpop.f32.mrf.mxu1  ;;  %v1573_v58 = vpop.f32.mrf.mxu2 }
 0x1bb   : > { %v1192_v40 = vadd.f32 %v1191_v61, %v6123_v44 }
 0x1bc   : > { %v1827_v62 = vpop.f32.mrf.mxu3 }
 0x1bd   : > { %3450 = vmatmul.msk.bf16.gmra.mxu1 %vm451_vm1, %v6126_v31  ;;  %v1623_v1 = vadd.f32 %v1573_v58, %v1192_v40  ;;  %v6134_v40 = vld [vmem:[#allocation121_spill] sm:$0xff]  ;;  %v6136_v31 = vld [vmem:[#allocation27_spill] sm:$0xff] }
 0x1be   : > { %v2061_v26 = vpop.f32.mrf.mxu0 }
 0x1bf   : > { %v1877_v20 = vadd.f32 %v1827_v62, %v1623_v1  ;;  %v6137_v1 = vpack.c.bf16 %v6135_v21, %v6136_v31 }
 0x1c1   : > { %v5361_v33 = vadd.f32 %v2049_v54, %v1877_v20  ;;  %v6133_v54 = vpack.c.bf16 %v6131_v45, %v6132_v49  ;;  %v6139_v45 = vld [vmem:[#allocation40_spill] sm:$0xff]  ;;  %v6140_v49 = vld [vmem:[#allocation38_spill] sm:$0xff] }
 0x1c2   : > { %v1193_v63 = vpop.f32.mrf.mxu1  ;;  %v1575_v37 = vpop.f32.mrf.mxu2 }
 0x1c3   : > { %v1194_v38 = vadd.f32 %v1193_v63, %v6127_v19  ;;  %3485 = vmatmul.msk.bf16.gmra.mxu3 %vm451_vm1, %v2654_v18 }
 0x1c4   : > { %v1829_v46 = vpop.f32.mrf.mxu3 }
 0x1c5   : > { %v1624_v12 = vadd.f32 %v1575_v37, %v1194_v38  ;;  %v2627_v38 = vld [vmem:[#allocation2 + $0x61] sm:$0xff]  ;;  %v2628_v37 = vld [vmem:[#allocation2 + $0x69] sm:$0xff] }
 0x1c6   : > { %v2064_v3 = vpop.f32.mrf.mxu0  ;;  %3504 = vmatmul.msk.bf16.gmra.mxu0 %vm451_vm1, %v6133_v54  ;;  %v2655_v11 = vpack.c.bf16 %v2628_v37, %v2627_v38  ;;  %v6141_v54 = vpack.c.bf16 %v6139_v45, %v6140_v49 }
 0x1c7   : > { %v1878_v43 = vadd.f32 %v1829_v46, %v1624_v12  ;;  %3468 = vmatmul.msk.bf16.gmra.mxu2 %vm451_vm1, %v6130_v4 }
 0x1c9   : > { %v5373_v61 = vadd.f32 %v2051_v34, %v1878_v43  ;;  %v6138_v34 = vld [vmem:[#allocation131_spill] sm:$0xff] }
 0x1ca   : > { %v1196_v44 = vpop.f32.mrf.mxu1  ;;  %v1578_v62 = vpop.f32.mrf.mxu2 }
 0x1cb   : > { %v1197_v58 = vadd.f32 %v1196_v44, %v6134_v40  ;;  %v6142_v44 = vld [vmem:[#allocation53_spill] sm:$0xff]  ;;  %v6143_v40 = vld [vmem:[#allocation51_spill] sm:$0xff] }
 0x1cc   : > { %v1832_v6 = vpop.f32.mrf.mxu3 }
 0x1cd   : > { %3451 = vmatmul.msk.bf16.gmra.mxu1 %vm451_vm1, %v6137_v1  ;;  %v1625_v20 = vadd.f32 %v1578_v62, %v1197_v58 }
 0x1ce   : > { %v2066_v63 = vpop.f32.mrf.mxu0 }
 0x1cf   : > { %v1879_v27 = vadd.f32 %v1832_v6, %v1625_v20  ;;  %v6145_v6 = vld [vmem:[#allocation69_spill] sm:$0xff] }
 0x1d0   : > { %v6146_v20 = vld [vmem:[#allocation17_spill] sm:$0xff] }
 0x1d1   : > { %v5380_v55 = vadd.f32 %v2054_v15, %v1879_v27  ;;  %v6144_v15 = vpack.c.bf16 %v6142_v44, %v6143_v40  ;;  %v6147_v27 = vld [vmem:[#allocation33_spill] sm:$0xff] }
 0x1d2   : > { %v1198_v19 = vpop.f32.mrf.mxu1  ;;  %v1580_v12 = vpop.f32.mrf.mxu2 }
 0x1d3   : > { %v1199_v46 = vadd.f32 %v1198_v19, %v6138_v34  ;;  %3486 = vmatmul.msk.bf16.gmra.mxu3 %vm451_vm1, %v2655_v11  ;;  %v6148_v19 = vpack.c.bf16 %v6146_v20, %v6147_v27  ;;  %v6156_v27 = vld [vmem:[#allocation89_spill] sm:$0xff] }
 0x1d4   : > { %v1834_v18 = vpop.f32.mrf.mxu3 }
 0x1d5   : > { %v1626_v43 = vadd.f32 %v1580_v12, %v1199_v46 }
 0x1d6   : > { %v2069_v36 = vpop.f32.mrf.mxu0  ;;  %3505 = vmatmul.msk.bf16.gmra.mxu0 %vm451_vm1, %v6144_v15  ;;  %v6150_v15 = vld [vmem:[#allocation26_spill] sm:$0xff] }
 0x1d7   : > { %v1880_v4 = vadd.f32 %v1834_v18, %v1626_v43  ;;  %3469 = vmatmul.msk.bf16.gmra.mxu2 %vm451_vm1, %v6141_v54  ;;  %v2629_v18 = vld [vmem:[#allocation2 + $0x71] sm:$0xff]  ;;  %v2630_v43 = vld [vmem:[#allocation2 + $0x79] sm:$0xff] }
 0x1d8   : > { %v2656_v54 = vpack.c.bf16 %v2630_v43, %v2629_v18  ;;  %v6158_v18 = vld [vmem:[#allocation21_spill] sm:$0xff] }
 0x1d9   : > { %v5392_v58 = vadd.f32 %v2056_v5, %v1880_v4  ;;  %v6149_v5 = vld [vmem:[#allocation80_spill] sm:$0xff] }
 0x1da   : > { %v1201_v62 = vpop.f32.mrf.mxu1  ;;  %v1583_v31 = vpop.f32.mrf.mxu2 }
 0x1db   : > { %v1202_v21 = vadd.f32 %v1201_v62, %v6145_v6  ;;  %v6151_v62 = vld [vmem:[#allocation46_spill] sm:$0xff] }
 0x1dc   : > { %v1837_v1 = vpop.f32.mrf.mxu3  ;;  %v6152_v6 = vpack.c.bf16 %v6150_v15, %v6151_v62  ;;  %v2631_v15 = vld [vmem:[#allocation2 + $0x81] sm:$0xff] }
 0x1dd   : > { %3452 = vmatmul.msk.bf16.gmra.mxu1 %vm451_vm1, %v6148_v19  ;;  %v1627_v38 = vadd.f32 %v1583_v31, %v1202_v21  ;;  %v6153_v21 = vld [vmem:[#allocation37_spill] sm:$0xff]  ;;  %v6154_v31 = vld [vmem:[#allocation60_spill] sm:$0xff] }
 0x1de   : > { %v2071_v37 = vpop.f32.mrf.mxu0 }
 0x1df   : > { %v1881_v34 = vadd.f32 %v1837_v1, %v1627_v38 }
 0x1e1   : > { %v5399_v46 = vadd.f32 %v2059_v48, %v1881_v34  ;;  %v6155_v48 = vpack.c.bf16 %v6153_v21, %v6154_v31 }
 0x1e2   : > { %v1203_v12 = vpop.f32.mrf.mxu1  ;;  %v1585_v4 = vpop.f32.mrf.mxu2 }
 0x1e3   : > { %v1204_v11 = vadd.f32 %v1203_v12, %v6149_v5  ;;  %3487 = vmatmul.msk.bf16.gmra.mxu3 %vm451_vm1, %v2656_v54  ;;  %v6157_v12 = vld [vmem:[#allocation44_spill] sm:$0xff] }
 0x1e4   : > { %v1839_v45 = vpop.f32.mrf.mxu3  ;;  %v6159_v43 = vpack.c.bf16 %v6157_v12, %v6158_v18  ;;  %v2632_v54 = vld [vmem:[#allocation2 + $0x89] sm:$0xff] }
 0x1e5   : > { %v1628_v49 = vadd.f32 %v1585_v4, %v1204_v11  ;;  %v2657_v31 = vpack.c.bf16 %v2632_v54, %v2631_v15  ;;  %v6162_v12 = vld [vmem:[#allocation31_spill] sm:$0xff]  ;;  %v6168_v54 = vld [vmem:[#allocation52_spill] sm:$0xff] }
 0x1e6   : > { %v2074_v44 = vpop.f32.mrf.mxu0  ;;  %3506 = vmatmul.msk.bf16.gmra.mxu0 %vm451_vm1, %v6155_v48 }
 0x1e7   : > { %v1882_v40 = vadd.f32 %v1839_v45, %v1628_v49  ;;  %3470 = vmatmul.msk.bf16.gmra.mxu2 %vm451_vm1, %v6152_v6 }
 0x1e9   : > { %v5411_v1 = vadd.f32 %v2061_v26, %v1882_v40  ;;  %v6160_v26 = vld [vmem:[#allocation99_spill] sm:$0xff] }
 0x1ea   : > { %v1206_v20 = vpop.f32.mrf.mxu1  ;;  %v1588_v38 = vpop.f32.mrf.mxu2 }
 0x1eb   : > { %v1207_v19 = vadd.f32 %v1206_v20, %v6156_v27  ;;  %v6161_v27 = vld [vmem:[#allocation58_spill] sm:$0xff] }
 0x1ec   : > { %v1842_v34 = vpop.f32.mrf.mxu3  ;;  %v6163_v18 = vpack.c.bf16 %v6161_v27, %v6162_v12 }
 0x1ed   : > { %3453 = vmatmul.msk.bf16.gmra.mxu1 %vm451_vm1, %v6159_v43  ;;  %v1629_v5 = vadd.f32 %v1588_v38, %v1207_v19  ;;  %v6164_v19 = vld [vmem:[#allocation79_spill] sm:$0xff] }
 0x1ee   : > { %v2076_v11 = vpop.f32.mrf.mxu0  ;;  %v6165_v38 = vld [vmem:[#allocation43_spill] sm:$0xff] }
 0x1ef   : > { %v1883_v4 = vadd.f32 %v1842_v34, %v1629_v5  ;;  %v6167_v5 = vld [vmem:[#allocation109_spill] sm:$0xff] }
 0x1f1   : > { %v5418_v45 = vadd.f32 %v2064_v3, %v1883_v4  ;;  %v6166_v3 = vpack.c.bf16 %v6164_v19, %v6165_v38 }
 0x1f2   : > { %v1208_v49 = vpop.f32.mrf.mxu1  ;;  %v1590_v62 = vpop.f32.mrf.mxu2 }
 0x1f3   : > { %v1209_v40 = vadd.f32 %v1208_v49, %v6160_v26  ;;  %3488 = vmatmul.msk.bf16.gmra.mxu3 %vm451_vm1, %v2657_v31  ;;  %v6169_v26 = vld [vmem:[#allocation50_spill] sm:$0xff]  ;;  %v2633_v31 = vld [vmem:[#allocation2 + $0x91] sm:$0xff] }
 0x1f4   : > { %v1844_v6 = vpop.f32.mrf.mxu3 }
 0x1f5   : > { %v1630_v21 = vadd.f32 %v1590_v62, %v1209_v40  ;;  %v6170_v40 = vpack.c.bf16 %v6168_v54, %v6169_v26  ;;  %v6172_v26 = vld [vmem:[#allocation70_spill] sm:$0xff] }
 0x1f6   : > { %v2983_v48 = vpop.f32.mrf.mxu0  ;;  %3507 = vmatmul.msk.bf16.gmra.mxu0 %vm451_vm1, %v6166_v3 }
 0x1f7   : > { %v1884_v20 = vadd.f32 %v1844_v6, %v1630_v21  ;;  %3471 = vmatmul.msk.bf16.gmra.mxu2 %vm451_vm1, %v6163_v18 }
 0x1f9   : > { %v5430_v34 = vadd.f32 %v2066_v63, %v1884_v20  ;;  %v2634_v63 = vld [vmem:[#allocation2 + $0x99] sm:$0xff] }
 0x1fa   : > { %v1211_v43 = vpop.f32.mrf.mxu1  ;;  %v1593_v49 = vpop.f32.mrf.mxu2  ;;  %v6171_v20 = vld [vmem:[#allocation118_spill] sm:$0xff] }
 0x1fb   : > { %v1212_v4 = vadd.f32 %v1211_v43, %v6167_v5  ;;  %v2658_v43 = vpack.c.bf16 %v2634_v63, %v2633_v31 }
 0x1fc   : > { %v1847_v15 = vpop.f32.mrf.mxu3 }
 0x1fd   : > { %3454 = vmatmul.msk.bf16.gmra.mxu1 %vm451_vm1, %v6170_v40  ;;  %v1631_v62 = vadd.f32 %v1593_v49, %v1212_v4  ;;  %v6173_v40 = vld [vmem:[#allocation68_spill] sm:$0xff]  ;;  %v6175_v49 = vld [vmem:[#allocation91_spill] sm:$0xff] }
 0x1fe   : > { %v5437_v6 = vpop.f32.mrf.mxu0  ;;  %v6174_v4 = vpack.c.bf16 %v6172_v26, %v6173_v40 }
 0x1ff   : > { %v1885_v21 = vadd.f32 %v1847_v15, %v1631_v62 }
 0x201   : > { %v5439_v27 = vadd.f32 %v2069_v36, %v1885_v21  ;;  %v6176_v36 = vld [vmem:[#allocation88_spill] sm:$0xff] }
 0x202   : > { %v1213_v12 = vpop.f32.mrf.mxu1  ;;  %v1595_v19 = vpop.f32.mrf.mxu2  ;;  %v6177_v15 = vpack.c.bf16 %v6175_v49, %v6176_v36 }
 0x203   : > { %v1214_v18 = vadd.f32 %v1213_v12, %v6171_v20  ;;  %3489 = vmatmul.msk.bf16.gmra.mxu3 %vm451_vm1, %v2658_v43  ;;  %v6179_v12 = vld [vmem:[#allocation127_spill] sm:$0xff] }
 0x204   : > { %v1849_v38 = vpop.f32.mrf.mxu3  ;;  %v2635_v43 = vld [vmem:[#allocation2 + $0xa1] sm:$0xff] }
 0x205   : > { %v1632_v3 = vadd.f32 %v1595_v19, %v1214_v18  ;;  %v6180_v18 = vld [vmem:[#allocation36_spill] sm:$0xff]  ;;  %v6181_v19 = vld [vmem:[#allocation59_spill] sm:$0xff] }
 0x206   : > { %v5442_v5 = vpop.f32.mrf.mxu0  ;;  %3508 = vmatmul.msk.bf16.gmra.mxu0 %vm451_vm1, %v6177_v15 }
 0x207   : > { %v1886_v54 = vadd.f32 %v1849_v38, %v1632_v3  ;;  %3472 = vmatmul.msk.bf16.gmra.mxu2 %vm451_vm1, %v6174_v4  ;;  %v6182_v38 = vpack.c.bf16 %v6180_v18, %v6181_v19  ;;  %v6184_v19 = vld [vmem:[#allocation49_spill] sm:$0xff] }
 0x209   : > { %v5453_v62 = vadd.f32 %v2071_v37, %v1886_v54  ;;  %v2636_v37 = vld [vmem:[#allocation2 + $0xa9] sm:$0xff]  ;;  %v6183_v54 = vld [vmem:[#allocation133_spill] sm:$0xff] }
 0x20a   : > { %v1216_v21 = vpop.f32.mrf.mxu1  ;;  %v1598_v63 = vpop.f32.mrf.mxu2  ;;  %v2659_v35 = vpack.c.bf16 %v2636_v37, %v2635_v43 }
 0x20b   : > { %6178 = vst [vmem:[#allocation64_spill] sm:$0xff] %v5453_v62  ;;  %v1217_v31 = vadd.f32 %v1216_v21, %v6179_v12 }
 0x20c   : > { %v1852_v20 = vpop.f32.mrf.mxu3 }
 0x20d   : > { %3455 = vmatmul.msk.bf16.gmra.mxu1 %vm451_vm1, %v6182_v38  ;;  %v1633_v3 = vadd.f32 %v1598_v63, %v1217_v31  ;;  %v6185_v38 = vld [vmem:[#allocation81_spill] sm:$0xff]  ;;  %v6187_v63 = vld [vmem:[#allocation67_spill] sm:$0xff] }
 0x20e   : > { %v5460_v26 = vpop.f32.mrf.mxu0  ;;  %v6186_v31 = vpack.c.bf16 %v6184_v19, %v6185_v38 }
 0x20f   : > { %v1887_v40 = vadd.f32 %v1852_v20, %v1633_v3 }
 0x211   : > { %v5462_v4 = vadd.f32 %v2074_v44, %v1887_v40  ;;  %v6188_v44 = vld [vmem:[#allocation101_spill] sm:$0xff] }
 0x212   : > { %v1218_v49 = vpop.f32.mrf.mxu1  ;;  %v1600_v15 = vpop.f32.mrf.mxu2  ;;  %v6189_v20 = vpack.c.bf16 %v6187_v63, %v6188_v44  ;;  %v2637_v63 = vld [vmem:[#allocation2 + $0xb1] sm:$0xff]  ;;  %v2638_v44 = vld [vmem:[#allocation2 + $0xb9] sm:$0xff] }
 0x213   : > { %v1219_v36 = vadd.f32 %v1218_v49, %v6183_v54  ;;  %3490 = vmatmul.msk.bf16.gmra.mxu3 %vm451_vm1, %v2659_v35  ;;  %v6191_v49 = vld [vmem:[#allocation41_spill] sm:$0xff]  ;;  %v5488_v35 = vld [vmem:[%s5789_s6] ss:$0 sm:$0xff] }
 0x214   : > { %v1854_v21 = vpop.f32.mrf.mxu3 }
 0x215   : > { %v1634_v12 = vadd.f32 %v1600_v15, %v1219_v36  ;;  %v6192_v36 = vld [vmem:[#allocation78_spill] sm:$0xff] }
 0x216   : > { %v5465_v62 = vpop.f32.mrf.mxu0  ;;  %3509 = vmatmul.msk.bf16.gmra.mxu0 %vm451_vm1, %v6189_v20  ;;  %v6193_v15 = vld [vmem:[#allocation42_spill] sm:$0xff] }
 0x217   : > { %v1888_v18 = vadd.f32 %v1854_v21, %v1634_v12  ;;  %3473 = vmatmul.msk.bf16.gmra.mxu2 %vm451_vm1, %v6186_v31  ;;  %v6194_v21 = vpack.c.bf16 %v6192_v36, %v6193_v15  ;;  %v2660_v36 = vpack.c.bf16 %v2638_v44, %v2637_v63 }
 0x219   : > { %v5476_v3 = vadd.f32 %v2076_v11, %v1888_v18  ;;  %v5493_v18 = vld [vmem:[%s5790_s7] ss:$0 sm:$0xff] }
 0x21a   : > { %v2253_v40 = vpop.f32.mrf.mxu1  ;;  %v2507_v37 = vpop.f32.mrf.mxu2 }
 0x21b   : > { %6190 = vst [vmem:[#allocation55_spill] sm:$0xff] %v5476_v3  ;;  %v2333_v43 = vadd.f32 %v2253_v40, %v6191_v49 }
 0x21c   : > { %v2729_v54 = vpop.f32.mrf.mxu3 }
 0x21d   : > { %3456 = vmatmul.msk.bf16.gmra.mxu1 %vm451_vm1, %v6194_v21  ;;  %v2587_v12 = vadd.f32 %v2507_v37, %v2333_v43 }
 0x21e   : > { %v5483_v19 = vpop.f32.mrf.mxu0 }
 0x21f   : > { %v2809_v38 = vadd.f32 %v2729_v54, %v2587_v12  ;;  %v6195_v12 = vld [vmem:[#allocation98_spill] sm:$0xff] }
 0x221   : > { %v3063_v11 = vadd.f32 %v2983_v48, %v2809_v38  ;;  %v6196_v38 = vld [vmem:[#allocation57_spill] sm:$0xff] }
 0x222   : > { %v2255_v31 = vpop.f32.mrf.mxu1  ;;  %v2509_v49 = vpop.f32.mrf.mxu2  ;;  %v6197_v3 = vpack.c.bf16 %v6195_v12, %v6196_v38  ;;  %v6202_v12 = vld [vmem:[#allocation87_spill] sm:$0xff] }
 0x223   : > { %v3099_v20 = vmul.f32 %v5488_v35, %v3063_v11  ;;  %v2334_v40 = vadd.f32 %v2255_v31, %v5077_v59  ;;  %v6198_v59 = vld [vmem:[#allocation117_spill] sm:$0xff]  ;;  %3491 = vmatmul.msk.bf16.gmra.mxu3 %vm451_vm1, %v2660_v36 }
 0x224   : > { %v2731_v43 = vpop.f32.mrf.mxu3  ;;  %v6199_v11 = vld [vmem:[#allocation77_spill] sm:$0xff] }
 0x225   : > { %v3135_v37 = vadd.f32 %v5493_v18, %v3099_v20  ;;  %v2588_v54 = vadd.f32 %v2509_v49, %v2334_v40  ;;  %v6200_v31 = vpack.c.bf16 %v6198_v59, %v6199_v11 }
 0x226   : > { %v5499_v48 = vpop.f32.mrf.mxu0 }
 0x227   : > { %v3167_v15 = vmax.f32 %v3135_v37, 0.0  ;;  %v2810_v21 = vadd.f32 %v2731_v43, %v2588_v54  ;;  %3474 = vmatmul.msk.bf16.gmra.mxu2 %vm451_vm1, %v6197_v3  ;;  %3510 = vmatmul.msk.bf16.gmra.mxu0 %vm451_vm1, %v6200_v31  ;;  %v6201_v54 = vld [vmem:[#allocation90_spill] sm:$0xff] }
 0x228   : > { %v6203_v38 = vpack.c.bf16 %v6201_v54, %v6202_v12  ;;  %v6204_v54 = vld [vmem:[#allocation110_spill] sm:$0xff]  ;;  %v6205_v12 = vld [vmem:[#allocation108_spill] sm:$0xff] }
 0x229   : > { %v3199_v63 = vpack.c.bf16 %v3167_v15, %v3167_v15  ;;  %v3064_v44 = vadd.f32 %v5437_v6, %v2810_v21 }
 0x22a   : > { %v2258_v20 = vpop.f32.mrf.mxu1  ;;  %v2512_v49 = vpop.f32.mrf.mxu2 }
 0x22b   : > { %3232 = vst.msk [vmem:[%s5508_s21] sm:$0xf] %vm3231_vm2, %v3199_v63  ;;  %v3100_v3 = vmul.f32 %v5488_v35, %v3064_v44  ;;  %v2335_v40 = vadd.f32 %v2258_v20, %v5108_v25 }
 0x22c   : > { %v2734_v43 = vpop.f32.mrf.mxu3 }
 0x22d   : > { %v3136_v37 = vadd.f32 %v5493_v18, %v3100_v3  ;;  %3457 = vmatmul.msk.bf16.gmra.mxu1 %vm451_vm1, %v6203_v38  ;;  %v2589_v6 = vadd.f32 %v2512_v49, %v2335_v40  ;;  %v6207_v38 = vld [vmem:[#allocation129_spill] sm:$0xff] }
 0x22e   : > { %v5525_v15 = vpop.f32.mrf.mxu0 }
 0x22f   : > { %v3168_v36 = vmax.f32 %v3136_v37, 0.0  ;;  %v2811_v21 = vadd.f32 %v2734_v43, %v2589_v6  ;;  %v6208_v6 = vld [vmem:[#allocation126_spill] sm:$0xff] }
 0x231   : > { %v3200_v59 = vpack.c.bf16 %v3168_v36, %v3168_v36  ;;  %v3065_v11 = vadd.f32 %v5442_v5, %v2811_v21  ;;  %v6206_v5 = vpack.c.bf16 %v6204_v54, %v6205_v12  ;;  %v6209_v36 = vpack.c.bf16 %v6207_v38, %v6208_v6 }
 0x232   : > { %v2260_v31 = vpop.f32.mrf.mxu1  ;;  %v2514_v44 = vpop.f32.mrf.mxu2 }
 0x233   : > { %3233 = vst.msk [vmem:[%s5508_s21 + $0x4] sm:$0xf] %vm3231_vm2, %v3200_v59  ;;  %v3101_v25 = vmul.f32 %v5488_v35, %v3065_v11  ;;  %v2336_v63 = vadd.f32 %v2260_v31, %v5140_v8  ;;  %3492 = vmatmul.msk.bf16.gmra.mxu3 %vm451_vm1, %v5058_v30 }
 0x234   : > { %v2736_v20 = vpop.f32.mrf.mxu3 }
 0x235   : > { %v3137_v3 = vadd.f32 %v5493_v18, %v3101_v25  ;;  %v2590_v40 = vadd.f32 %v2514_v44, %v2336_v63 }
 0x236   : > { %v5533_v49 = vpop.f32.mrf.mxu0 }
 0x237   : > { %v3169_v37 = vmax.f32 %v3137_v3, 0.0  ;;  %v2812_v43 = vadd.f32 %v2736_v20, %v2590_v40  ;;  %3475 = vmatmul.msk.bf16.gmra.mxu2 %vm451_vm1, %v6206_v5  ;;  %3511 = vmatmul.msk.bf16.gmra.mxu0 %vm451_vm1, %v6209_v36  ;;  %v6210_v20 = vld [vmem:[#allocation66_spill] sm:$0xff]  ;;  %v6211_v3 = vld [vmem:[#allocation100_spill] sm:$0xff] }
 0x238   : > { %v6212_v40 = vpack.c.bf16 %v6210_v20, %v6211_v3  ;;  %v6217_v20 = vld [vmem:[#allocation135_spill] sm:$0xff] }
 0x239   : > { %v3201_v8 = vpack.c.bf16 %v3169_v37, %v3169_v37  ;;  %v3066_v21 = vadd.f32 %v5460_v26, %v2812_v43 }
 0x23a   : > { %v2263_v59 = vpop.f32.mrf.mxu1  ;;  %v2517_v25 = vpop.f32.mrf.mxu2 }
 0x23b   : > { %3234 = vst.msk [vmem:[%s5508_s21 + $0x8] sm:$0xf] %vm3231_vm2, %v3201_v8  ;;  %v3102_v11 = vmul.f32 %v5488_v35, %v3066_v21  ;;  %v2337_v31 = vadd.f32 %v2263_v59, %v5149_v24 }
 0x23c   : > { %v2739_v63 = vpop.f32.mrf.mxu3 }
 0x23d   : > { %v3138_v44 = vadd.f32 %v5493_v18, %v3102_v11  ;;  %3458 = vmatmul.msk.bf16.gmra.mxu1 %vm451_vm1, %v6212_v40  ;;  %v2591_v26 = vadd.f32 %v2517_v25, %v2337_v31  ;;  %v6213_v25 = vld [vmem:[#allocation86_spill] sm:$0xff] }
 0x23e   : > { %v5555_v37 = vpop.f32.mrf.mxu0 }
 0x23f   : > { %v3170_v30 = vmax.f32 %v3138_v44, 0.0  ;;  %v2813_v43 = vadd.f32 %v2739_v63, %v2591_v26  ;;  %v6214_v63 = vld [vmem:[#allocation119_spill] sm:$0xff] }
 0x240   : > { %v6216_v44 = vld [vmem:[#allocation107_spill] sm:$0xff] }
 0x241   : > { %v3202_v54 = vpack.c.bf16 %v3170_v30, %v3170_v30  ;;  %v3067_v12 = vadd.f32 %v5465_v62, %v2813_v43  ;;  %v6215_v62 = vpack.c.bf16 %v6213_v25, %v6214_v63  ;;  %v6218_v3 = vpack.c.bf16 %v6216_v44, %v6217_v20 }
 0x242   : > { %v2265_v5 = vpop.f32.mrf.mxu1  ;;  %v2519_v6 = vpop.f32.mrf.mxu2 }
 0x243   : > { %3235 = vst.msk [vmem:[%s5508_s21 + $0xc] sm:$0xf] %vm3231_vm2, %v3202_v54  ;;  %v3103_v24 = vmul.f32 %v5488_v35, %v3067_v12  ;;  %v2338_v38 = vadd.f32 %v2265_v5, %v5171_v14  ;;  %3493 = vmatmul.msk.bf16.gmra.mxu3 %vm451_vm1, %v5125_v60 }
 0x244   : > { %v2741_v36 = vpop.f32.mrf.mxu3 }
 0x245   : > { %v3139_v8 = vadd.f32 %v5493_v18, %v3103_v24  ;;  %v2592_v21 = vadd.f32 %v2519_v6, %v2338_v38  ;;  %v6219_v24 = vld [vmem:[#allocation116_spill] sm:$0xff] }
 0x246   : > { %v5563_v59 = vpop.f32.mrf.mxu0  ;;  %v6220_v38 = vld [vmem:[#allocation76_spill] sm:$0xff] }
 0x247   : > { %v3171_v11 = vmax.f32 %v3139_v8, 0.0  ;;  %v2814_v31 = vadd.f32 %v2741_v36, %v2592_v21  ;;  %3476 = vmatmul.msk.bf16.gmra.mxu2 %vm451_vm1, %v6215_v62  ;;  %3512 = vmatmul.msk.bf16.gmra.mxu0 %vm451_vm1, %v6218_v3  ;;  %v6221_v6 = vpack.c.bf16 %v6219_v24, %v6220_v38 }
 0x249   : > { %v3203_v14 = vpack.c.bf16 %v3171_v11, %v3171_v11  ;;  %v3068_v40 = vadd.f32 %v5483_v19, %v2814_v31 }
 0x24a   : > { %v2268_v26 = vpop.f32.mrf.mxu1  ;;  %v2522_v54 = vpop.f32.mrf.mxu2 }
 0x24b   : > { %3236 = vst.msk [vmem:[%s5508_s21 + $0x10] sm:$0xf] %vm3231_vm2, %v3203_v14  ;;  %v3104_v30 = vmul.f32 %v5488_v35, %v3068_v40  ;;  %v2339_v43 = vadd.f32 %v2268_v26, %v5182_v47  ;;  %v6222_v40 = vld [vmem:[#allocation132_spill] sm:$0xff]  ;;  %v6223_v26 = vld [vmem:[#allocation97_spill] sm:$0xff] }
 0x24c   : > { %v2744_v12 = vpop.f32.mrf.mxu3 }
 0x24d   : > { %v3140_v5 = vadd.f32 %v5493_v18, %v3104_v30  ;;  %3459 = vmatmul.msk.bf16.gmra.mxu1 %vm451_vm1, %v6221_v6  ;;  %v2593_v19 = vadd.f32 %v2522_v54, %v2339_v43  ;;  %v6224_v30 = vpack.c.bf16 %v6222_v40, %v6223_v26  ;;  %v6226_v6 = vld [vmem:[#allocation128_spill] sm:$0xff]  ;;  %v6229_v40 = vld [vmem:[#allocation138_spill] sm:$0xff]  ;;  %v6230_v26 = vld [vmem:[#allocation137_spill] sm:$0xff] }
 0x24e   : > { %v5585_v8 = vpop.f32.mrf.mxu0 }
 0x24f   : > { %v3172_v36 = vmax.f32 %v3140_v5, 0.0  ;;  %v2815_v60 = vadd.f32 %v2744_v12, %v2593_v19  ;;  %v6227_v19 = vld [vmem:[#allocation125_spill] sm:$0xff] }
 0x251   : > { %v3204_v21 = vpack.c.bf16 %v3172_v36, %v3172_v36  ;;  %v3069_v11 = vadd.f32 %v5499_v48, %v2815_v60  ;;  %v6225_v48 = vpack.c.bf16 %v5048_v17, %v5038_v22 }
 0x252   : > { %v2270_v31 = vpop.f32.mrf.mxu1  ;;  %v2524_v63 = vpop.f32.mrf.mxu2 }
 0x253   : > { %3237 = vst.msk [vmem:[%s5508_s21 + $0x14] sm:$0xf] %vm3231_vm2, %v3204_v21  ;;  %v3105_v47 = vmul.f32 %v5488_v35, %v3069_v11  ;;  %v2340_v25 = vadd.f32 %v2270_v31, %v5202_v51  ;;  %3494 = vmatmul.msk.bf16.gmra.mxu3 %vm451_vm1, %v5158_v9 }
 0x254   : > { %v2746_v62 = vpop.f32.mrf.mxu3 }
 0x255   : > { %v3141_v44 = vadd.f32 %v5493_v18, %v3105_v47  ;;  %v2594_v20 = vadd.f32 %v2524_v63, %v2340_v25 }
 0x256   : > { %v5604_v54 = vpop.f32.mrf.mxu0 }
 0x257   : > { %v3173_v3 = vmax.f32 %v3141_v44, 0.0  ;;  %v2816_v14 = vadd.f32 %v2746_v62, %v2594_v20  ;;  %3477 = vmatmul.msk.bf16.gmra.mxu2 %vm451_vm1, %v6224_v30  ;;  %3513 = vmatmul.msk.bf16.gmra.mxu0 %vm451_vm1, %v6225_v48  ;;  %v6232_v30 = vpack.c.bf16 %v5094_v57, %v5086_v56  ;;  %v6233_v57 = vld [vmem:[#allocation106_spill] sm:$0xff] }
 0x259   : > { %v3205_v43 = vpack.c.bf16 %v3173_v3, %v3173_v3  ;;  %v3070_v51 = vadd.f32 %v5525_v15, %v2816_v14  ;;  %v6228_v15 = vpack.c.bf16 %v6226_v6, %v6227_v19 }
 0x25a   : > { %v2273_v12 = vpop.f32.mrf.mxu1  ;;  %v2527_v38 = vpop.f32.mrf.mxu2 }
 0x25b   : > { %3238 = vst.msk [vmem:[%s5508_s21 + $0x18] sm:$0xf] %vm3231_vm2, %v3205_v43  ;;  %v3106_v5 = vmul.f32 %v5488_v35, %v3070_v51  ;;  %v2341_v24 = vadd.f32 %v2273_v12, %v5211_v13 }
 0x25c   : > { %v2749_v22 = vpop.f32.mrf.mxu3 }
 0x25d   : > { %v3142_v17 = vadd.f32 %v5493_v18, %v3106_v5  ;;  %3460 = vmatmul.msk.bf16.gmra.mxu1 %vm451_vm1, %v6228_v15  ;;  %v2595_v9 = vadd.f32 %v2527_v38, %v2341_v24  ;;  %v6234_v38 = vld [vmem:[#allocation134_spill] sm:$0xff] }
 0x25e   : > { %v5620_v63 = vpop.f32.mrf.mxu0 }
 0x25f   : > { %v3174_v36 = vmax.f32 %v3142_v17, 0.0  ;;  %v2817_v60 = vadd.f32 %v2749_v22, %v2595_v9  ;;  %v6235_v22 = vpack.c.bf16 %v6233_v57, %v6234_v38  ;;  %v2649_v57 = vld [vmem:[#allocation2 + $0x111] sm:$0xff]  ;;  %v2650_v38 = vld [vmem:[#allocation2 + $0x119] sm:$0xff] }
 0x261   : > { %v3206_v21 = vpack.c.bf16 %v3174_v36, %v3174_v36  ;;  %v3071_v11 = vadd.f32 %v5533_v49, %v2817_v60  ;;  %v6231_v49 = vpack.c.bf16 %v6229_v40, %v6230_v26 }
 0x262   : > { %v2275_v31 = vpop.f32.mrf.mxu1  ;;  %v2529_v25 = vpop.f32.mrf.mxu2 }
 0x263   : > { %3239 = vst.msk [vmem:[%s5508_s21 + $0x1c] sm:$0xf] %vm3231_vm2, %v3206_v21  ;;  %v3107_v13 = vmul.f32 %v5488_v35, %v3071_v11  ;;  %v2342_v47 = vadd.f32 %v2275_v31, %v5233_v50  ;;  %3495 = vmatmul.msk.bf16.gmra.mxu3 %vm451_vm1, %v5189_v29 }
 0x264   : > { %v2751_v62 = vpop.f32.mrf.mxu3 }
 0x265   : > { %v3143_v44 = vadd.f32 %v5493_v18, %v3107_v13  ;;  %v2596_v20 = vadd.f32 %v2529_v25, %v2342_v47  ;;  %v6236_v25 = vld [vmem:[#allocation124_spill] sm:$0xff] }
 0x266   : > { %v5643_v17 = vpop.f32.mrf.mxu0 }
 0x267   : > { %v3175_v3 = vmax.f32 %v3143_v44, 0.0  ;;  %v2818_v14 = vadd.f32 %v2751_v62, %v2596_v20  ;;  %3478 = vmatmul.msk.bf16.gmra.mxu2 %vm451_vm1, %v6231_v49  ;;  %3514 = vmatmul.msk.bf16.gmra.mxu0 %vm451_vm1, %v6232_v30  ;;  %v6237_v62 = vld [vmem:[#allocation39_spill] sm:$0xff] }
 0x268   : > { %v6238_v44 = vpack.c.bf16 %v6236_v25, %v6237_v62  ;;  %v6244_v25 = vld [vmem:[#allocation56_spill] sm:$0xff] }
 0x269   : > { %v3207_v50 = vpack.c.bf16 %v3175_v3, %v3175_v3  ;;  %v3072_v48 = vadd.f32 %v5555_v37, %v2818_v14 }
 0x26a   : > { %v2278_v43 = vpop.f32.mrf.mxu1  ;;  %v2532_v5 = vpop.f32.mrf.mxu2 }
 0x26b   : > { %3240 = vst.msk [vmem:[%s5508_s21 + $0x20] sm:$0xf] %vm3231_vm2, %v3207_v50  ;;  %v3108_v51 = vmul.f32 %v5488_v35, %v3072_v48  ;;  %v2343_v12 = vadd.f32 %v2278_v43, %v5242_v2  ;;  %v6239_v50 = vld [vmem:[#allocation48_spill] sm:$0xff]  ;;  %v6240_v48 = vld [vmem:[#allocation114_spill] sm:$0xff] }
 0x26c   : > { %v2754_v24 = vpop.f32.mrf.mxu3  ;;  %v6241_v43 = vpack.c.bf16 %v6239_v50, %v6240_v48 }
 0x26d   : > { %v3144_v56 = vadd.f32 %v5493_v18, %v3108_v51  ;;  %3461 = vmatmul.msk.bf16.gmra.mxu1 %vm451_vm1, %v6235_v22  ;;  %v2597_v37 = vadd.f32 %v2532_v5, %v2343_v12 }
 0x26f   : > { %v3176_v29 = vmax.f32 %v3144_v56, 0.0  ;;  %v2819_v6 = vadd.f32 %v2754_v24, %v2597_v37 }
 0x271   : > { %v3208_v19 = vpack.c.bf16 %v3176_v29, %v3176_v29  ;;  %v3073_v15 = vadd.f32 %v5563_v59, %v2819_v6  ;;  %v3020_v59 = vpop.f32.mrf.mxu0 }
 0x272   : > { %v2280_v9 = vpop.f32.mrf.mxu1  ;;  %v2534_v60 = vpop.f32.mrf.mxu2 }
 0x273   : > { %3241 = vst.msk [vmem:[%s5508_s21 + $0x24] sm:$0xf] %vm3231_vm2, %v3208_v19  ;;  %v3109_v2 = vmul.f32 %v5488_v35, %v3073_v15  ;;  %v2344_v36 = vadd.f32 %v2280_v9, %v5264_v53  ;;  %3496 = vmatmul.msk.bf16.gmra.mxu3 %vm451_vm1, %v5220_v39  ;;  %v2666_v15 = vpack.c.bf16 %v2650_v38, %v2649_v57 }
 0x274   : > { %v2756_v21 = vpop.f32.mrf.mxu3 }
 0x275   : > { %v3145_v11 = vadd.f32 %v5493_v18, %v3109_v2  ;;  %v2598_v31 = vadd.f32 %v2534_v60, %v2344_v36 }
 0x277   : > { %v3177_v13 = vmax.f32 %v3145_v11, 0.0  ;;  %v2820_v47 = vadd.f32 %v2756_v21, %v2598_v31  ;;  %3479 = vmatmul.msk.bf16.gmra.mxu2 %vm451_vm1, %v6238_v44 }
 0x279   : > { %v3209_v20 = vpack.c.bf16 %v3177_v13, %v3177_v13  ;;  %v3074_v3 = vadd.f32 %v5585_v8, %v2820_v47  ;;  %v3023_v24 = vpop.f32.mrf.mxu0 }
 0x27a   : > { %v2283_v53 = vpop.f32.mrf.mxu1  ;;  %v2537_v26 = vpop.f32.mrf.mxu2 }
 0x27b   : > { %3242 = vst.msk [vmem:[%s5508_s21 + $0x28] sm:$0xf] %vm3231_vm2, %v3209_v20  ;;  %v3110_v14 = vmul.f32 %v5488_v35, %v3074_v3  ;;  %v2345_v40 = vadd.f32 %v2283_v53, %v5275_v23 }
 0x27c   : > { %v2759_v49 = vpop.f32.mrf.mxu3 }
 0x27d   : > { %v3146_v30 = vadd.f32 %v5493_v18, %v3110_v14  ;;  %3462 = vmatmul.msk.bf16.gmra.mxu1 %vm451_vm1, %v6241_v43  ;;  %v2599_v8 = vadd.f32 %v2537_v26, %v2345_v40 }
 0x27f   : > { %v3178_v51 = vmax.f32 %v3146_v30, 0.0  ;;  %v2821_v39 = vadd.f32 %v2759_v49, %v2599_v8 }
 0x281   : > { %v3210_v12 = vpack.c.bf16 %v3178_v51, %v3178_v51  ;;  %v3075_v5 = vadd.f32 %v5604_v54, %v2821_v39  ;;  %v6242_v54 = vpack.c.bf16 %v5123_v10, %v5119_v41  ;;  %v3025_v13 = vpop.f32.mrf.mxu0  ;;  %v6243_v10 = vld [vmem:[#allocation47_spill] sm:$0xff] }
 0x282   : > { %v2285_v56 = vpop.f32.mrf.mxu1  ;;  %v2539_v37 = vpop.f32.mrf.mxu2  ;;  %v6245_v62 = vpack.c.bf16 %v6243_v10, %v6244_v25 }
 0x283   : > { %3243 = vst.msk [vmem:[%s5508_s21 + $0x2c] sm:$0xf] %vm3231_vm2, %v3210_v12  ;;  %v3111_v23 = vmul.f32 %v5488_v35, %v3075_v5  ;;  %v2346_v22 = vadd.f32 %v2285_v56, %v5295_v16  ;;  %3497 = vmatmul.msk.bf16.gmra.mxu3 %vm451_vm1, %v2666_v15 }
 0x284   : > { %v2761_v29 = vpop.f32.mrf.mxu3 }
 0x285   : > { %v3147_v6 = vadd.f32 %v5493_v18, %v3111_v23  ;;  %v2600_v19 = vadd.f32 %v2539_v37, %v2346_v22 }
 0x287   : > { %v3179_v9 = vmax.f32 %v3147_v6, 0.0  ;;  %v2822_v2 = vadd.f32 %v2761_v29, %v2600_v19  ;;  %3480 = vmatmul.msk.bf16.gmra.mxu2 %vm451_vm1, %v6242_v54 }
 0x289   : > { %v3211_v36 = vpack.c.bf16 %v3179_v9, %v3179_v9  ;;  %v3076_v60 = vadd.f32 %v5620_v63, %v2822_v2  ;;  %v3028_v48 = vpop.f32.mrf.mxu0 }
 0x28a   : > { %v2288_v16 = vpop.f32.mrf.mxu1  ;;  %v2542_v31 = vpop.f32.mrf.mxu2 }
 0x28b   : > { %3244 = vst.msk [vmem:[%s5508_s21 + $0x30] sm:$0xf] %vm3231_vm2, %v3211_v36  ;;  %v3112_v21 = vmul.f32 %v5488_v35, %v3076_v60  ;;  %v2347_v11 = vadd.f32 %v2288_v16, %v5300_v28 }
 0x28c   : > { %v2764_v47 = vpop.f32.mrf.mxu3 }
 0x28d   : > { %v3148_v41 = vadd.f32 %v5493_v18, %v3112_v21  ;;  %3463 = vmatmul.msk.bf16.gmra.mxu1 %vm451_vm1, %v6245_v62  ;;  %v2601_v63 = vadd.f32 %v2542_v31, %v2347_v11 }
 0x28f   : > { %v3180_v44 = vmax.f32 %v3148_v41, 0.0  ;;  %v2823_v20 = vadd.f32 %v2764_v47, %v2601_v63 }
 0x291   : > { %v3212_v3 = vpack.c.bf16 %v3180_v44, %v3180_v44  ;;  %v3077_v53 = vadd.f32 %v5643_v17, %v2823_v20  ;;  %v3030_v37 = vpop.f32.mrf.mxu0 }
 0x292   : > { %v2290_v14 = vpop.f32.mrf.mxu1  ;;  %v2544_v26 = vpop.f32.mrf.mxu2 }
 0x293   : > { %3245 = vst.msk [vmem:[%s5508_s21 + $0x34] sm:$0xf] %vm3231_vm2, %v3212_v3  ;;  %v3113_v28 = vmul.f32 %v5488_v35, %v3077_v53  ;;  %v2348_v40 = vadd.f32 %v2290_v14, %v5313_v32 }
 0x294   : > { %v2766_v49 = vpop.f32.mrf.mxu3 }
 0x295   : > { %v3149_v30 = vadd.f32 %v5493_v18, %v3113_v28  ;;  %v2602_v50 = vadd.f32 %v2544_v26, %v2348_v40 }
 0x297   : > { %v3181_v43 = vmax.f32 %v3149_v30, 0.0  ;;  %v2824_v8 = vadd.f32 %v2766_v49, %v2602_v50 }
 0x299   : > { %v3213_v51 = vpack.c.bf16 %v3181_v43, %v3181_v43  ;;  %v3078_v39 = vadd.f32 %v3020_v59, %v2824_v8  ;;  %v3033_v11 = vpop.f32.mrf.mxu0 }
 0x29a   : > { %v2293_v12 = vpop.f32.mrf.mxu1  ;;  %v2547_v56 = vpop.f32.mrf.mxu2 }
 0x29b   : > { %3246 = vst.msk [vmem:[%s5508_s21 + $0x38] sm:$0xf] %vm3231_vm2, %v3213_v51  ;;  %v3114_v17 = vmul.f32 %v5488_v35, %v3078_v39  ;;  %v2349_v5 = vadd.f32 %v2293_v12, %v5321_v42 }
 0x29c   : > { %v2769_v32 = vpop.f32.mrf.mxu3 }
 0x29d   : > { %v3150_v57 = vadd.f32 %v5493_v18, %v3114_v17  ;;  %v2603_v38 = vadd.f32 %v2547_v56, %v2349_v5 }
 0x29f   : > { %v3182_v23 = vmax.f32 %v3150_v57, 0.0  ;;  %v2825_v22 = vadd.f32 %v2769_v32, %v2603_v38 }
 0x2a1   : > { %v3214_v29 = vpack.c.bf16 %v3182_v23, %v3182_v23  ;;  %v3079_v6 = vadd.f32 %v3023_v24, %v2825_v22  ;;  %v3035_v28 = vpop.f32.mrf.mxu0 }
 0x2a2   : > { %v2295_v19 = vpop.f32.mrf.mxu1  ;;  %v2549_v9 = vpop.f32.mrf.mxu2 }
 0x2a3   : > { %3247 = vst.msk [vmem:[%s5508_s21 + $0x3c] sm:$0xf] %vm3231_vm2, %v3214_v29  ;;  %v3115_v59 = vmul.f32 %v5488_v35, %v3079_v6  ;;  %v2350_v15 = vadd.f32 %v2295_v19, %v5334_v7 }
 0x2a4   : > { %v2771_v42 = vpop.f32.mrf.mxu3 }
 0x2a5   : > { %v3151_v2 = vadd.f32 %v5493_v18, %v3115_v59  ;;  %v2604_v54 = vadd.f32 %v2549_v9, %v2350_v15 }
 0x2a7   : > { %v3183_v36 = vmax.f32 %v3151_v2, 0.0  ;;  %v2826_v60 = vadd.f32 %v2771_v42, %v2604_v54 }
 0x2a9   : > { %v3215_v16 = vpack.c.bf16 %v3183_v36, %v3183_v36  ;;  %v3080_v21 = vadd.f32 %v3025_v13, %v2826_v60  ;;  %v3038_v5 = vpop.f32.mrf.mxu0 }
 0x2aa   : > { %v2298_v31 = vpop.f32.mrf.mxu1  ;;  %v2552_v41 = vpop.f32.mrf.mxu2 }
 0x2ab   : > { %3248 = vst.msk [vmem:[%s5508_s21 + $0x40] sm:$0xf] %vm3231_vm2, %v3215_v16  ;;  %v3116_v24 = vmul.f32 %v5488_v35, %v3080_v21  ;;  %v2351_v47 = vadd.f32 %v2298_v31, %v5342_v0 }
 0x2ac   : > { %v2774_v7 = vpop.f32.mrf.mxu3 }
 0x2ad   : > { %v3152_v10 = vadd.f32 %v5493_v18, %v3116_v24  ;;  %v2605_v25 = vadd.f32 %v2552_v41, %v2351_v47 }
 0x2af   : > { %v3184_v62 = vmax.f32 %v3152_v10, 0.0  ;;  %v2827_v63 = vadd.f32 %v2774_v7, %v2605_v25 }
 0x2b1   : > { %v3216_v44 = vpack.c.bf16 %v3184_v62, %v3184_v62  ;;  %v3081_v20 = vadd.f32 %v3028_v48, %v2827_v63  ;;  %v3040_v9 = vpop.f32.mrf.mxu0 }
 0x2b2   : > { %v2300_v3 = vpop.f32.mrf.mxu1  ;;  %v2554_v14 = vpop.f32.mrf.mxu2 }
 0x2b3   : > { %3249 = vst.msk [vmem:[%s5508_s21 + $0x44] sm:$0xf] %vm3231_vm2, %v3216_v44  ;;  %v3117_v13 = vmul.f32 %v5488_v35, %v3081_v20  ;;  %v2352_v53 = vadd.f32 %v2300_v3, %v5354_v52 }
 0x2b4   : > { %v2776_v0 = vpop.f32.mrf.mxu3 }
 0x2b5   : > { %v3153_v40 = vadd.f32 %v5493_v18, %v3117_v13  ;;  %v2606_v26 = vadd.f32 %v2554_v14, %v2352_v53 }
 0x2b7   : > { %v3185_v49 = vmax.f32 %v3153_v40, 0.0  ;;  %v2828_v30 = vadd.f32 %v2776_v0, %v2606_v26 }
 0x2b9   : > { %v3217_v50 = vpack.c.bf16 %v3185_v49, %v3185_v49  ;;  %v3082_v43 = vadd.f32 %v3030_v37, %v2828_v30  ;;  %v3043_v7 = vpop.f32.mrf.mxu0 }
 0x2ba   : > { %v2303_v8 = vpop.f32.mrf.mxu1  ;;  %v2557_v39 = vpop.f32.mrf.mxu2 }
 0x2bb   : > { %3250 = vst.msk [vmem:[%s5508_s21 + $0x48] sm:$0xf] %vm3231_vm2, %v3217_v50  ;;  %v3118_v48 = vmul.f32 %v5488_v35, %v3082_v43  ;;  %v2353_v51 = vadd.f32 %v2303_v8, %v5361_v33 }
 0x2bc   : > { %v2779_v52 = vpop.f32.mrf.mxu3 }
 0x2bd   : > { %v3154_v12 = vadd.f32 %v5493_v18, %v3118_v48  ;;  %v2607_v17 = vadd.f32 %v2557_v39, %v2353_v51 }
 0x2bf   : > { %v3186_v56 = vmax.f32 %v3154_v12, 0.0  ;;  %v2829_v32 = vadd.f32 %v2779_v52, %v2607_v17 }
 0x2c1   : > { %v3218_v57 = vpack.c.bf16 %v3186_v56, %v3186_v56  ;;  %v3083_v38 = vadd.f32 %v3033_v11, %v2829_v32  ;;  %v3045_v49 = vpop.f32.mrf.mxu0 }
 0x2c2   : > { %v2305_v23 = vpop.f32.mrf.mxu1  ;;  %v2559_v29 = vpop.f32.mrf.mxu2 }
 0x2c3   : > { %3251 = vst.msk [vmem:[%s5508_s21 + $0x4c] sm:$0xf] %vm3231_vm2, %v3218_v57  ;;  %v3119_v22 = vmul.f32 %v5488_v35, %v3083_v38  ;;  %v2354_v37 = vadd.f32 %v2305_v23, %v5373_v61 }
 0x2c4   : > { %v2781_v33 = vpop.f32.mrf.mxu3 }
 0x2c5   : > { %v3155_v6 = vadd.f32 %v5493_v18, %v3119_v22  ;;  %v2608_v19 = vadd.f32 %v2559_v29, %v2354_v37 }
 0x2c7   : > { %v3187_v59 = vmax.f32 %v3155_v6, 0.0  ;;  %v2830_v15 = vadd.f32 %v2781_v33, %v2608_v19 }
 0x2c9   : > { %v3219_v42 = vpack.c.bf16 %v3187_v59, %v3187_v59  ;;  %v3084_v2 = vadd.f32 %v3035_v28, %v2830_v15  ;;  %v3048_v32 = vpop.f32.mrf.mxu0 }
 0x2ca   : > { %v2308_v54 = vpop.f32.mrf.mxu1  ;;  %v2562_v16 = vpop.f32.mrf.mxu2 }
 0x2cb   : > { %3252 = vst.msk [vmem:[%s5508_s21 + $0x50] sm:$0xf] %vm3231_vm2, %v3219_v42  ;;  %v3120_v36 = vmul.f32 %v5488_v35, %v3084_v2  ;;  %v2355_v60 = vadd.f32 %v2308_v54, %v5380_v55 }
 0x2cc   : > { %v2784_v61 = vpop.f32.mrf.mxu3 }
 0x2cd   : > { %v3156_v21 = vadd.f32 %v5493_v18, %v3120_v36  ;;  %v2609_v11 = vadd.f32 %v2562_v16, %v2355_v60 }
 0x2cf   : > { %v3188_v31 = vmax.f32 %v3156_v21, 0.0  ;;  %v2831_v24 = vadd.f32 %v2784_v61, %v2609_v11 }
 0x2d1   : > { %v3220_v47 = vpack.c.bf16 %v3188_v31, %v3188_v31  ;;  %v3085_v41 = vadd.f32 %v3038_v5, %v2831_v24  ;;  %v3050_v42 = vpop.f32.mrf.mxu0 }
 0x2d2   : > { %v2310_v10 = vpop.f32.mrf.mxu1  ;;  %v2564_v63 = vpop.f32.mrf.mxu2 }
 0x2d3   : > { %3253 = vst.msk [vmem:[%s5508_s21 + $0x54] sm:$0xf] %vm3231_vm2, %v3220_v47  ;;  %v3121_v25 = vmul.f32 %v5488_v35, %v3085_v41  ;;  %v2356_v62 = vadd.f32 %v2310_v10, %v5392_v58 }
 0x2d4   : > { %v2786_v55 = vpop.f32.mrf.mxu3 }
 0x2d5   : > { %v3157_v44 = vadd.f32 %v5493_v18, %v3121_v25  ;;  %v2610_v20 = vadd.f32 %v2564_v63, %v2356_v62 }
 0x2d7   : > { %v3189_v3 = vmax.f32 %v3157_v44, 0.0  ;;  %v2832_v13 = vadd.f32 %v2786_v55, %v2610_v20 }
 0x2d9   : > { %v3221_v53 = vpack.c.bf16 %v3189_v3, %v3189_v3  ;;  %v3086_v14 = vadd.f32 %v3040_v9, %v2832_v13 }
 0x2da   : > { %v2313_v28 = vpop.f32.mrf.mxu1  ;;  %v2567_v26 = vpop.f32.mrf.mxu2 }
 0x2db   : > { %3254 = vst.msk [vmem:[%s5508_s21 + $0x58] sm:$0xf] %vm3231_vm2, %v3221_v53  ;;  %v3122_v0 = vmul.f32 %v5488_v35, %v3086_v14  ;;  %v2357_v40 = vadd.f32 %v2313_v28, %v5399_v46 }
 0x2dc   : > { %v2789_v58 = vpop.f32.mrf.mxu3 }
 0x2dd   : > { %v3158_v30 = vadd.f32 %v5493_v18, %v3122_v0  ;;  %v2611_v50 = vadd.f32 %v2567_v26, %v2357_v40  ;;  %v6246_v0 = vld [vmem:[#allocation64_spill] sm:$0xff] }
 0x2df   : > { %v3190_v43 = vmax.f32 %v3158_v30, 0.0  ;;  %v2833_v8 = vadd.f32 %v2789_v58, %v2611_v50 }
 0x2e1   : > { %v3222_v48 = vpack.c.bf16 %v3190_v43, %v3190_v43  ;;  %v3087_v51 = vadd.f32 %v3043_v7, %v2833_v8  ;;  %v3053_v7 = vpop.f32.mrf.mxu0 }
 0x2e2   : > { %v2315_v39 = vpop.f32.mrf.mxu1  ;;  %v2569_v17 = vpop.f32.mrf.mxu2 }
 0x2e3   : > { %3255 = vst.msk [vmem:[%s5508_s21 + $0x5c] sm:$0xf] %vm3231_vm2, %v3222_v48  ;;  %v3123_v52 = vmul.f32 %v5488_v35, %v3087_v51  ;;  %v2358_v12 = vadd.f32 %v2315_v39, %v5411_v1 }
 0x2e4   : > { %v2791_v46 = vpop.f32.mrf.mxu3 }
 0x2e5   : > { %v3159_v5 = vadd.f32 %v5493_v18, %v3123_v52  ;;  %v2612_v56 = vadd.f32 %v2569_v17, %v2358_v12 }
 0x2e7   : > { %v3191_v57 = vmax.f32 %v3159_v5, 0.0  ;;  %v2834_v38 = vadd.f32 %v2791_v46, %v2612_v56 }
 0x2e9   : > { %v3223_v23 = vpack.c.bf16 %v3191_v57, %v3191_v57  ;;  %v3088_v22 = vadd.f32 %v3045_v49, %v2834_v38  ;;  %v3055_v49 = vpop.f32.mrf.mxu0 }
 0x2ea   : > { %v2318_v37 = vpop.f32.mrf.mxu1  ;;  %v2572_v6 = vpop.f32.mrf.mxu2 }
 0x2eb   : > { %3256 = vst.msk [vmem:[%s5508_s21 + $0x60] sm:$0xf] %vm3231_vm2, %v3223_v23  ;;  %v3124_v29 = vmul.f32 %v5488_v35, %v3088_v22  ;;  %v2359_v33 = vadd.f32 %v2318_v37, %v5418_v45 }
 0x2ec   : > { %v2794_v1 = vpop.f32.mrf.mxu3 }
 0x2ed   : > { %v3160_v19 = vadd.f32 %v5493_v18, %v3124_v29  ;;  %v2613_v59 = vadd.f32 %v2572_v6, %v2359_v33  ;;  %v6247_v29 = vld [vmem:[#allocation55_spill] sm:$0xff] }
 0x2ef   : > { %v3192_v15 = vmax.f32 %v3160_v19, 0.0  ;;  %v2835_v9 = vadd.f32 %v2794_v1, %v2613_v59 }
 0x2f1   : > { %v3224_v2 = vpack.c.bf16 %v3192_v15, %v3192_v15  ;;  %v3089_v54 = vadd.f32 %v3048_v32, %v2835_v9  ;;  %v3058_v56 = vpop.f32.mrf.mxu0 }
 0x2f2   : > { %v2320_v36 = vpop.f32.mrf.mxu1  ;;  %v2574_v61 = vpop.f32.mrf.mxu2 }
 0x2f3   : > { %3257 = vst.msk [vmem:[%s5508_s21 + $0x64] sm:$0xf] %vm3231_vm2, %v3224_v2  ;;  %v3125_v60 = vmul.f32 %v5488_v35, %v3089_v54  ;;  %v2360_v16 = vadd.f32 %v2320_v36, %v5430_v34 }
 0x2f4   : > { %v2796_v45 = vpop.f32.mrf.mxu3 }
 0x2f5   : > { %v3161_v21 = vadd.f32 %v5493_v18, %v3125_v60  ;;  %v2614_v11 = vadd.f32 %v2574_v61, %v2360_v16 }
 0x2f7   : > { %v3193_v31 = vmax.f32 %v3161_v21, 0.0  ;;  %v2836_v24 = vadd.f32 %v2796_v45, %v2614_v11 }
 0x2f9   : > { %v3225_v47 = vpack.c.bf16 %v3193_v31, %v3193_v31  ;;  %v3090_v41 = vadd.f32 %v3050_v42, %v2836_v24  ;;  %v3060_v9 = vpop.f32.mrf.mxu0 }
 0x2fa   : > { %v2323_v10 = vpop.f32.mrf.mxu1  ;;  %v2577_v63 = vpop.f32.mrf.mxu2 }
 0x2fb   : > { %3258 = vst.msk [vmem:[%s5508_s21 + $0x68] sm:$0xf] %vm3231_vm2, %v3225_v47  ;;  %v3126_v25 = vmul.f32 %v5488_v35, %v3090_v41  ;;  %v2361_v62 = vadd.f32 %v2323_v10, %v5439_v27 }
 0x2fc   : > { %v2799_v34 = vpop.f32.mrf.mxu3 }
 0x2fd   : > { %v3162_v55 = vadd.f32 %v5493_v18, %v3126_v25  ;;  %v2615_v44 = vadd.f32 %v2577_v63, %v2361_v62 }
 0x2ff   : > { %v3194_v20 = vmax.f32 %v3162_v55, 0.0  ;;  %v2837_v3 = vadd.f32 %v2799_v34, %v2615_v44 }
 0x301   : > { %v3226_v13 = vpack.c.bf16 %v3194_v20, %v3194_v20  ;;  %v3091_v53 = vadd.f32 %v3053_v7, %v2837_v3 }
 0x302   : > { %v2325_v14 = vpop.f32.mrf.mxu1  ;;  %v2579_v26 = vpop.f32.mrf.mxu2 }
 0x303   : > { %3259 = vst.msk [vmem:[%s5508_s21 + $0x6c] sm:$0xf] %vm3231_vm2, %v3226_v13  ;;  %v3127_v28 = vmul.f32 %v5488_v35, %v3091_v53  ;;  %v2362_v40 = vadd.f32 %v2325_v14, %v6246_v0 }
 0x304   : > { %v2801_v27 = vpop.f32.mrf.mxu3 }
 0x305   : > { %v3163_v58 = vadd.f32 %v5493_v18, %v3127_v28  ;;  %v2616_v30 = vadd.f32 %v2579_v26, %v2362_v40 }
 0x307   : > { %v3195_v50 = vmax.f32 %v3163_v58, 0.0  ;;  %v2838_v43 = vadd.f32 %v2801_v27, %v2616_v30 }
 0x309   : > { %v3227_v8 = vpack.c.bf16 %v3195_v50, %v3195_v50  ;;  %v3092_v48 = vadd.f32 %v3055_v49, %v2838_v43 }
 0x30a   : > { %v2328_v51 = vpop.f32.mrf.mxu1  ;;  %v2582_v12 = vpop.f32.mrf.mxu2 }
 0x30b   : > { %3260 = vst.msk [vmem:[%s5508_s21 + $0x70] sm:$0xf] %vm3231_vm2, %v3227_v8  ;;  %v3128_v39 = vmul.f32 %v5488_v35, %v3092_v48  ;;  %v2363_v52 = vadd.f32 %v2328_v51, %v5462_v4 }
 0x30c   : > { %v2804_v17 = vpop.f32.mrf.mxu3 }
 0x30d   : > { %v3164_v46 = vadd.f32 %v5493_v18, %v3128_v39  ;;  %v2617_v5 = vadd.f32 %v2582_v12, %v2363_v52 }
 0x30f   : > { %v3196_v32 = vmax.f32 %v3164_v46, 0.0  ;;  %v2839_v57 = vadd.f32 %v2804_v17, %v2617_v5 }
 0x311   : > { %v3228_v38 = vpack.c.bf16 %v3196_v32, %v3196_v32  ;;  %v3093_v23 = vadd.f32 %v3058_v56, %v2839_v57 }
 0x312   : > { %v2330_v22 = vpop.f32.mrf.mxu1  ;;  %v2584_v4 = vpop.f32.mrf.mxu2 }
 0x313   : > { %3261 = vst.msk [vmem:[%s5508_s21 + $0x74] sm:$0xf] %vm3231_vm2, %v3228_v38  ;;  %v3129_v37 = vmul.f32 %v5488_v35, %v3093_v23  ;;  %v2364_v33 = vadd.f32 %v2330_v22, %v6247_v29 }
 0x314   : > { %v2806_v19 = vpop.f32.mrf.mxu3 }
 0x315   : > { %v3165_v6 = vadd.f32 %v5493_v18, %v3129_v37  ;;  %v2618_v1 = vadd.f32 %v2584_v4, %v2364_v33 }
 0x317   : > { %v3197_v59 = vmax.f32 %v3165_v6, 0.0  ;;  %v2840_v15 = vadd.f32 %v2806_v19, %v2618_v1 }
 0x319   : > { %v3229_v42 = vpack.c.bf16 %v3197_v59, %v3197_v59  ;;  %v3094_v2 = vadd.f32 %v3060_v9, %v2840_v15 }
 0x31b   : > { %3262 = vst.msk [vmem:[%s5508_s21 + $0x78] sm:$0xf] %vm3231_vm2, %v3229_v42  ;;  %v3130_v54 = vmul.f32 %v5488_v35, %v3094_v2 }
 0x31d   : > { %v3166_v36 = vadd.f32 %v5493_v18, %v3130_v54 }
 0x31f   : > { %v3198_v60 = vmax.f32 %v3166_v36, 0.0 }
 0x321   : > { %v3230_v16 = vpack.c.bf16 %v3198_v60, %v3198_v60 }
 0x323   : > { %3263 = vst.msk [vmem:[%s5508_s21 + $0x7c] sm:$0xf] %vm3231_vm2, %v3230_v16 }
 0x324 PF: > { %s20_s30 = sadd.s32 1, %s3548_s30  }
 0x325   : > { %p17_p4 = scmp.ge.s32.totalorder %s20_s30, 4  }
 0x327   :  { %19 = sbr.rel (!%p17_p4) target bundleno = 1 (0x1), region = 102 }

</bundles_post_ra>
